<compile_context>
chip_gen: v5e
topology: v5e:2x2
jax: 0.10.0
libtpu: 0.0.40
codegen_flags: <defaults>
</compile_context>

<pallas_src>
import jax
import jax.numpy as jnp
import numpy as np
from jax.experimental import pallas as pl
from jax.experimental.pallas import tpu as pltpu


# ----------------------------------------------------------------------------
# chip / feature detection
# ----------------------------------------------------------------------------
def _default_compute_dtype():
    # v6e / v7x have a bf16-native VPU -> run the elementwise path in bf16
    # (halves vreg/VMEM traffic of the taps).  v5e and older keep f32
    # elementwise and only cast the MXU operands.
    try:
        kind = jax.devices()[0].device_kind.lower()
    except Exception:
        kind = ""
    legacy = any(s in kind for s in ("v2", "v3", "v4", "v5"))
    return jnp.float32 if legacy else jnp.bfloat16


_LANE_REPEAT_OK = None


def _lane_repeat_supported():
    """Probe whether Mosaic lowers an element-wise repeat along the lane axis.

    This is what lets us fold the nearest upsample into the kernel (x stays at
    half length in HBM).  If unsupported we fall back to a wrapper-side repeat.
    """
    global _LANE_REPEAT_OK
    if _LANE_REPEAT_OK is None:
        def _probe(x_ref, o_ref):
            o_ref[...] = jnp.repeat(x_ref[...], 2, axis=1)

        try:
            x = jnp.arange(16 * 132, dtype=jnp.float32).reshape(16, 132)
            out = pl.pallas_call(
                _probe, out_shape=jax.ShapeDtypeStruct((16, 264), jnp.float32))(x)
            _LANE_REPEAT_OK = bool(jnp.array_equal(out, jnp.repeat(x, 2, axis=1)))
        except Exception:
            _LANE_REPEAT_OK = False
    return _LANE_REPEAT_OK


def _choose_seq_tile(L, r, max_tile):
    """Largest sequence tile <= max_tile that divides L and keeps 128-lane /
    128*r-lane alignment for the halo blocks.  Falls back to a single tile."""
    if max_tile is None or L <= max_tile:
        return L
    step = 128 * r
    best, t = 0, step
    while t <= max_tile:
        if L % t == 0:
            best = t
        t += step
    # TODO(synk): support a ragged last tile for lengths with no nice divisor.
    return best if best > 0 else L


# ----------------------------------------------------------------------------
# kernel
# ----------------------------------------------------------------------------
def _make_kernel(*, fold, use_halo, r, HX, HY, TL, TLin, L, W,
                 compute_dtype, mxu_dtype):
    """Fused decode-stage kernel for one (batch, L-tile) grid step."""

    def kernel(*refs):
        it = iter(refs)
        x_c = next(it)
        x_l = next(it) if use_halo else None
        x_r = next(it) if use_halo else None
        y_c = next(it)
        y_l = next(it) if use_halo else None
        y_r = next(it) if use_halo else None
        wup = next(it)
        w1 = next(it)
        w2 = next(it)
        w3 = next(it)
        o_ref = next(it)
        x_sc = next(it)
        y_sc = next(it)

        i = pl.program_id(1)

        # Validity mask over the extended tile (global sequence positions).
        lane = jax.lax.broadcasted_iota(jnp.int32, (1, W), 1)
        gpos = lane + (i * TL - HY)
        valid = jnp.logical_and(gpos >= 0, gpos < L)

        # ---- extended skip feature y_ext: [left halo | tile | right halo] ----
        y_sc[:, HY:HY + TL] = y_c[0]
        if use_halo:
            y_sc[:, 0:HY] = y_l[0][:, -HY:]
            y_sc[:, HY + TL:W] = y_r[0][:, 0:HY]
        # Zero out-of-range columns: emulates the convs' 'same' zero padding at
        # the true sequence ends (and kills scratch garbage in single-tile mode).
        y_ext = jnp.where(valid, y_sc[...], 0.0).astype(compute_dtype)   # (Cs, W)

        # ---- upsample(x) -> 1x1 conv -> t_ext (Cin, W) ----
        if fold:
            # x arrives at half resolution.  The 1x1 conv is pointwise in L so
            # it commutes with the nearest upsample: matmul on the half-length
            # tile, then lane-repeat in VMEM (no HBM blow-up of x).
            Win = TLin + 2 * HX
            x_sc[:, HX:HX + TLin] = x_c[0]
            if use_halo:
                x_sc[:, 0:HX] = x_l[0][:, -HX:]
                x_sc[:, HX + TLin:Win] = x_r[0][:, 0:HX]
            t_half = jnp.dot(wup[...], x_sc[...].astype(mxu_dtype),
                             preferred_element_type=jnp.float32)          # (Cin, Win)
            t_ext = jnp.repeat(t_half, r, axis=1)                          # (Cin, W)
        else:
            # x already repeated in the wrapper (full resolution, bf16).
            x_sc[:, HY:HY + TL] = x_c[0]
            if use_halo:
                x_sc[:, 0:HY] = x_l[0][:, -HY:]
                x_sc[:, HY + TL:W] = x_r[0][:, 0:HY]
            t_ext = jnp.dot(wup[...], x_sc[...].astype(mxu_dtype),
                            preferred_element_type=jnp.float32)            # (Cin, W)
        t_ext = jnp.where(valid, t_ext, 0.0).astype(compute_dtype)

        # ---- three k=3 'same' convs, each ONE stacked MXU matmul ----
        def taps(a):
            # rows [a[:, e-1]; a[:, e]; a[:, e+1]] for e in [1, width-1)
            w = a.shape[1]
            return jnp.concatenate(
                [a[:, 0:w - 2], a[:, 1:w - 1], a[:, 2:w]], axis=0).astype(mxu_dtype)

        def conv_relu_add(w_ref, a, y_res, vmask, final=False):
            acc = jnp.dot(w_ref[...], taps(a), preferred_element_type=jnp.float32)
            h = jnp.maximum(acc, 0.0) + y_res.astype(jnp.float32)
            if vmask is not None:              # re-zero global OOB halo columns
                h = jnp.where(vmask, h, 0.0)
            return h if final else h.astype(compute_dtype)

        a0 = jnp.concatenate([t_ext, y_ext], axis=0)           # channel concat folded in
        h1 = conv_relu_add(w1, a0, y_ext[:, 1:W - 1], valid[:, 1:W - 1])
        h2 = conv_relu_add(w2, h1, y_ext[:, 2:W - 2], valid[:, 2:W - 2])
        h3 = conv_relu_add(w3, h2, y_ext[:, 3:W - 3], None, final=True)

        # valid window of the recomputed (haloed) domain -> lane-dense NCL tile
        o_ref[0] = h3[:, HY - 3:HY - 3 + TL].astype(o_ref.dtype)

    return kernel


# ----------------------------------------------------------------------------
# wrapper
# ----------------------------------------------------------------------------
def decode_stage_v1(x_ncl, y_ncl, params, upsample_rate=2, *,
                    max_seq_tile=8192, out_dtype=None,
                    compute_dtype=None, mxu_dtype=jnp.bfloat16):
    """x_ncl: (B, Cin, Lin), y_ncl: (B, Cskip, Lin*upsample_rate) -> (B, Cskip, L).

    `params` holds PyTorch-layout Conv1d weights:
      wup: (Cin, Cin, 1)   w1: (Cskip, Cin+Cskip, 3)   w2/w3: (Cskip, Cskip, 3)

    mxu_dtype=jnp.float32 gives bit-closer results if needed (kernel is
    HBM-bound, so f32 MXU operands are nearly free).
    """
    B, Cin, Lin = x_ncl.shape
    By, Cskip, L = y_ncl.shape
    r = int(upsample_rate)
    assert By == B and L == Lin * r

    if compute_dtype is None:
        compute_dtype = _default_compute_dtype()
    if out_dtype is None:
        out_dtype = y_ncl.dtype      # bf16 in, bf16 out halves output writeback

    # ---- weight repack (tiny, host/XLA side), pre-cast once ----
    wup = params["wup"][:, :, 0].astype(mxu_dtype)                 # (Cin, Cin)

    def stack_k3(w):    # (Cout, C, 3) -> (Cout, 3C), columns [k0 | k1 | k2]
        return jnp.concatenate([w[:, :, 0], w[:, :, 1], w[:, :, 2]],
                               axis=1).astype(mxu_dtype)

    w1 = stack_k3(params["w1"])
    w2 = stack_k3(params["w2"])
    w3 = stack_k3(params["w3"])

    # ---- L tiling (exact halo of 3 full-res columns per side) ----
    HX = -(-3 // r)              # half-res halo = ceil(3 / r)
    HY = r * HX                  # full-res halo (>= 3, divisible by r)
    TL = _choose_seq_tile(L, r, max_seq_tile)
    n_tiles = L // TL
    TLin = TL // r
    W = TL + 2 * HY
    use_halo = n_tiles > 1
    grid = (B, n_tiles)

    def run(fold):
        if fold:
            x_in = x_ncl                               # half length, read once
            xc_len = TLin
            x_hblk = 128 if use_halo else Lin
            n_xh = Lin // x_hblk
            xtile_blocks = (TLin // x_hblk) if use_halo else 1
        else:
            # Fallback: wrapper-side nearest repeat, emitted in bf16 to halve
            # its HBM write + the kernel's read.
            x_in = jnp.repeat(x_ncl, r, axis=-1).astype(mxu_dtype)
            xc_len = TL
            x_hblk = 128 if use_halo else L
            n_xh = L // x_hblk
            xtile_blocks = (TL // x_hblk) if use_halo else 1
        y_hblk = 128 if use_halo else L
        n_yh = L // y_hblk
        ytile_blocks = (TL // y_hblk) if use_halo else 1

        in_specs = [pl.BlockSpec((1, Cin, xc_len), lambda b, i: (b, 0, i))]
        operands = [x_in]
        if use_halo:
            in_specs += [
                pl.BlockSpec((1, Cin, x_hblk),
                             lambda b, i: (b, 0, jnp.maximum(i * xtile_blocks - 1, 0))),
                pl.BlockSpec((1, Cin, x_hblk),
                             lambda b, i: (b, 0, jnp.minimum((i + 1) * xtile_blocks,
                                                             n_xh - 1))),
            ]
            operands += [x_in, x_in]
        in_specs.append(pl.BlockSpec((1, Cskip, TL), lambda b, i: (b, 0, i)))
        operands.append(y_ncl)
        if use_halo:
            in_specs += [
                pl.BlockSpec((1, Cskip, y_hblk),
                             lambda b, i: (b, 0, jnp.maximum(i * ytile_blocks - 1, 0))),
                pl.BlockSpec((1, Cskip, y_hblk),
                             lambda b, i: (b, 0, jnp.minimum((i + 1) * ytile_blocks,
                                                             n_yh - 1))),
            ]
            operands += [y_ncl, y_ncl]
        for wm in (wup, w1, w2, w3):
            in_specs.append(pl.BlockSpec(wm.shape, lambda b, i: (0, 0)))
            operands.append(wm)

        x_ext_w = (TLin + 2 * HX) if fold else W
        scratch = [pltpu.VMEM((Cin, x_ext_w), x_in.dtype),
                   pltpu.VMEM((Cskip, W), y_ncl.dtype)]

        kernel = _make_kernel(fold=fold, use_halo=use_halo, r=r, HX=HX, HY=HY,
                              TL=TL, TLin=TLin, L=L, W=W,
                              compute_dtype=compute_dtype, mxu_dtype=mxu_dtype)

        # TODO(synk): sweep pipeline_mode=pl.Buffered(3) on the x/y center specs
        # once tile counts are large; default double-buffering is used here.
        return pl.pallas_call(
            kernel,
            out_shape=jax.ShapeDtypeStruct((B, Cskip, L), out_dtype),
            grid=grid,
            in_specs=in_specs,
            out_specs=pl.BlockSpec((1, Cskip, TL), lambda b, i: (b, 0, i)),
            scratch_shapes=scratch,
            compiler_params=pltpu.CompilerParams(
                dimension_semantics=("parallel", "parallel"),
                vmem_limit_bytes=48 * 1024 * 1024),
        )(*operands)

    fold = (r > 1) and _lane_repeat_supported()
    if fold:
        try:
            out = run(True)
            jax.block_until_ready(out)
            return out
        except Exception:
            # Lane-repeat lowering not available on this Mosaic build/shape.
            global _LANE_REPEAT_OK
            _LANE_REPEAT_OK = False
    return run(False)


# ---------------- plain-JAX reference (for correctness check) ----------------
def _ref_conv1d_k3_same_ncl(x, w):
    """x: (B, C, L); w: (Cout, C, 3) PyTorch Conv1d layout; 'same', no bias."""
    L = x.shape[-1]
    xp = jnp.pad(x, ((0, 0), (0, 0), (1, 1)))
    hi = jax.lax.Precision.HIGHEST
    out = jnp.zeros((x.shape[0], w.shape[0], L), jnp.float32)
    for k in range(3):
        out = out + jnp.einsum("bcl,dc->bdl", xp[:, :, k:k + L], w[:, :, k],
                               precision=hi)
    return out


def _ref_decode_stage(x_ncl, y_ncl, params, upsample_rate=2):
    hi = jax.lax.Precision.HIGHEST
    x_up = jnp.repeat(x_ncl, upsample_rate, axis=-1).astype(jnp.float32)
    y = y_ncl.astype(jnp.float32)
    t = jnp.einsum("bcl,dc->bdl", x_up, params["wup"][:, :, 0], precision=hi)
    c = jnp.concatenate([t, y], axis=1)
    h = jnp.maximum(_ref_conv1d_k3_same_ncl(c, params["w1"]), 0.0) + y
    h = jnp.maximum(_ref_conv1d_k3_same_ncl(h, params["w2"]), 0.0) + y
    h = jnp.maximum(_ref_conv1d_k3_same_ncl(h, params["w3"]), 0.0) + y
    return h


if __name__ == "__main__":
    def make_case(key, B, Cin, Cskip, Lin, up):
        ks = jax.random.split(key, 6)
        x = jax.random.normal(ks[0], (B, Cin, Lin), jnp.float32)       # decoder feat
        y = jax.random.normal(ks[1], (B, Cskip, Lin * up), jnp.float32)  # skip feat
        params = {
            "wup": 0.1 * jax.random.normal(ks[2], (Cin, Cin, 1), jnp.float32),
            "w1": 0.1 * jax.random.normal(ks[3], (Cskip, Cin + Cskip, 3), jnp.float32),
            "w2": 0.1 * jax.random.normal(ks[4], (Cskip, Cskip, 3), jnp.float32),
            "w3": 0.1 * jax.random.normal(ks[5], (Cskip, Cskip, 3), jnp.float32),
        }
        return x, y, params

    k1, k2 = jax.random.split(jax.random.PRNGKey(0))

    # Case 1: small shapes, single L-tile.
    x, y, params = make_case(k1, B=2, Cin=16, Cskip=8, Lin=32, up=2)
    out = jax.block_until_ready(decode_stage_v1(x, y, params, 2))
    ref = _ref_decode_stage(x, y, params, 2)
    assert out.shape == ref.shape
    np.testing.assert_allclose(np.asarray(out, dtype=np.float32),
                               np.asarray(ref), rtol=5e-2, atol=5e-2)

    # Case 2: longer sequence, forced small tile -> exercises the halo / multi-
    # tile path (4 L-tiles x 2 batches grid).
    x2, y2, params2 = make_case(k2, B=2, Cin=16, Cskip=8, Lin=512, up=2)
    out2 = jax.block_until_ready(
        decode_stage_v1(x2, y2, params2, 2, max_seq_tile=256))
    ref2 = _ref_decode_stage(x2, y2, params2, 2)
    np.testing.assert_allclose(np.asarray(out2, dtype=np.float32),
                               np.asarray(ref2), rtol=5e-2, atol=5e-2)

    print("KERNEL_OK")
</pallas_src>

<mosaic_0001>
module attributes {stable_mosaic.version = 11 : i64} {
  func.func @_probe(%arg0: memref<16x132xf32, #tpu.memory_space<vmem>>, %arg1: memref<16x264xf32, #tpu.memory_space<vmem>>) attributes {dimension_semantics = [], scalar_prefetch = 0 : i64, scratch_operands = 0 : i64, tpu.core_type = #tpu.core_type<tc>} {
    %c0 = arith.constant 0 : index
    %c0_0 = arith.constant 0 : index
    %0 = vector.load %arg0[%c0, %c0_0] : memref<16x132xf32, #tpu.memory_space<vmem>>, vector<16x132xf32>
    %1 = vector.shape_cast %0 : vector<16x132xf32> to vector<16x132x1xf32>
    %2 = vector.broadcast %1 : vector<16x132x1xf32> to vector<16x132x2xf32>
    %3 = vector.shape_cast %2 : vector<16x132x2xf32> to vector<16x264xf32>
    %c0_1 = arith.constant 0 : index
    %c0_2 = arith.constant 0 : index
    %4 = vector.load %arg1[%c0_1, %c0_2] : memref<16x264xf32, #tpu.memory_space<vmem>>, vector<16x264xf32>
    tpu.vector_store %arg1[%c0_1, %c0_2], %3 {strides = array<i32>} : memref<16x264xf32, #tpu.memory_space<vmem>>, vector<16x264xf32>,
    return
  }
}

module attributes {stable_mosaic.version = 11 : i64} {
  func.func @kernel(%arg0: i32, %arg1: i32, %arg2: memref<1x16x64xbf16, #tpu.memory_space<vmem>>, %arg3: memref<1x8x64xf32, #tpu.memory_space<vmem>>, %arg4: memref<16x16xbf16, #tpu.memory_space<vmem>>, %arg5: memref<8x72xbf16, #tpu.memory_space<vmem>>, %arg6: memref<8x24xbf16, #tpu.memory_space<vmem>>, %arg7: memref<8x24xbf16, #tpu.memory_space<vmem>>, %arg8: memref<1x8x64xf32, #tpu.memory_space<vmem>>, %arg9: memref<16x72xbf16, #tpu.memory_space<vmem>>, %arg10: memref<8x72xf32, #tpu.memory_space<vmem>>) attributes {dimension_semantics = [#tpu.dimension_semantics<parallel>, #tpu.dimension_semantics<parallel>], iteration_bounds = array<i64: 2, 1>, scalar_prefetch = 0 : i64, scratch_operands = 2 : i64, tpu.core_type = #tpu.core_type<tc>, window_params = [{transform_indices = @transform_0, window_bounds = array<i64: 1, 16, 64>}, {transform_indices = @transform_1, window_bounds = array<i64: 1, 8, 64>}, {pipeline_mode = #tpu.pipeline_mode<synchronous>, transform_indices = @transform_2, window_bounds = array<i64: 16, 16>}, {pipeline_mode = #tpu.pipeline_mode<synchronous>, transform_indices = @transform_3, window_bounds = array<i64: 8, 72>}, {pipeline_mode = #tpu.pipeline_mode<synchronous>, transform_indices = @transform_4, window_bounds = array<i64: 8, 24>}, {pipeline_mode = #tpu.pipeline_mode<synchronous>, transform_indices = @transform_5, window_bounds = array<i64: 8, 24>}, {transform_indices = @transform_6, window_bounds = array<i64: 1, 8, 64>}]} {
    %0 = tpu.iota {dimensions = array<i32: 1>} : vector<1x72xi32>
    %c64_i32 = arith.constant 64 : i32
    %1 = arith.muli %arg1, %c64_i32 : i32
    %c4_i32 = arith.constant 4 : i32
    %2 = arith.subi %1, %c4_i32 : i32
    %3 = vector.broadcast %2 : i32 to vector<1x72xi32>
    %4 = arith.addi %0, %3 : vector<1x72xi32>
    %c0_i32 = arith.constant 0 : i32
    %5 = vector.broadcast %c0_i32 : i32 to vector<1x72xi32>
    %6 = arith.cmpi sge, %4, %5 : vector<1x72xi32>
    %c64_i32_0 = arith.constant 64 : i32
    %7 = vector.broadcast %c64_i32_0 : i32 to vector<1x72xi32>
    %8 = arith.cmpi slt, %4, %7 : vector<1x72xi32>
    %9 = arith.andi %6, %8 : vector<1x72xi1>
    %c0 = arith.constant 0 : index
    %c0_1 = arith.constant 0 : index
    %c0_2 = arith.constant 0 : index
    %10 = vector.load %arg3[%c0, %c0_1, %c0_2] : memref<1x8x64xf32, #tpu.memory_space<vmem>>, vector<1x8x64xf32>
    %11 = vector.shape_cast %10 : vector<1x8x64xf32> to vector<8x64xf32>
    %c0_3 = arith.constant 0 : index
    %c4 = arith.constant 4 : index
    %12 = vector.load %arg10[%c0_3, %c4] : memref<8x72xf32, #tpu.memory_space<vmem>>, vector<8x64xf32>
    tpu.vector_store %arg10[%c0_3, %c4], %11 {strides = array<i32>} : memref<8x72xf32, #tpu.memory_space<vmem>>, vector<8x64xf32>,
    %c0_4 = arith.constant 0 : index
    %c0_5 = arith.constant 0 : index
    %13 = vector.load %arg10[%c0_4, %c0_5] : memref<8x72xf32, #tpu.memory_space<vmem>>, vector<8x72xf32>
    %cst = arith.constant 0.000000e+00 : f32
    %14 = vector.shape_cast %9 : vector<1x72xi1> to vector<1x72xi1>
    %15 = vector.broadcast %14 : vector<1x72xi1> to vector<8x72xi1>
    %16 = vector.broadcast %cst : f32 to vector<8x72xf32>
    %17 = arith.select %15, %13, %16 : vector<8x72xi1>, vector<8x72xf32>
    %18 = arith.truncf %17 : vector<8x72xf32> to vector<8x72xbf16>
    %c0_6 = arith.constant 0 : index
    %c0_7 = arith.constant 0 : index
    %c0_8 = arith.constant 0 : index
    %19 = vector.load %arg2[%c0_6, %c0_7, %c0_8] : memref<1x16x64xbf16, #tpu.memory_space<vmem>>, vector<1x16x64xbf16>
    %20 = vector.shape_cast %19 : vector<1x16x64xbf16> to vector<16x64xbf16>
    %c0_9 = arith.constant 0 : index
    %c4_10 = arith.constant 4 : index
    %21 = vector.load %arg9[%c0_9, %c4_10] : memref<16x72xbf16, #tpu.memory_space<vmem>>, vector<16x64xbf16>
    tpu.vector_store %arg9[%c0_9, %c4_10], %20 {strides = array<i32>} : memref<16x72xbf16, #tpu.memory_space<vmem>>, vector<16x64xbf16>,
    %c0_11 = arith.constant 0 : index
    %c0_12 = arith.constant 0 : index
    %22 = vector.load %arg4[%c0_11, %c0_12] : memref<16x16xbf16, #tpu.memory_space<vmem>>, vector<16x16xbf16>
    %c0_13 = arith.constant 0 : index
    %c0_14 = arith.constant 0 : index
    %23 = vector.load %arg9[%c0_13, %c0_14] : memref<16x72xbf16, #tpu.memory_space<vmem>>, vector<16x72xbf16>
    %cst_15 = arith.constant dense<0.000000e+00> : vector<16x72xf32>
    %24 = tpu.matmul %22, %23, %cst_15 {dimension_numbers = #tpu.dot_dimension_numbers<[1], [0], [0], [1], [0, 0, 1, 1], [], []>} : vector<16x16xbf16>, vector<16x72xbf16>, vector<16x72xf32> -> vector<16x72xf32>
    %cst_16 = arith.constant 0.000000e+00 : f32
    %25 = vector.shape_cast %9 : vector<1x72xi1> to vector<1x72xi1>
    %26 = vector.broadcast %25 : vector<1x72xi1> to vector<16x72xi1>
    %27 = vector.broadcast %cst_16 : f32 to vector<16x72xf32>
    %28 = arith.select %26, %24, %27 : vector<16x72xi1>, vector<16x72xf32>
    %29 = arith.truncf %28 : vector<16x72xf32> to vector<16x72xbf16>
    %30 = tpu.concatenate %29, %18 in 0 : vector<16x72xbf16>, vector<8x72xbf16> -> vector<24x72xbf16>
    %31 = vector.extract_strided_slice %18 {offsets = [0, 1], sizes = [8, 70], strides = [1, 1]} : vector<8x72xbf16> to vector<8x70xbf16>
    %32 = vector.extract_strided_slice %9 {offsets = [0, 1], sizes = [1, 70], strides = [1, 1]} : vector<1x72xi1> to vector<1x70xi1>
    %c0_17 = arith.constant 0 : index
    %c0_18 = arith.constant 0 : index
    %33 = vector.load %arg5[%c0_17, %c0_18] : memref<8x72xbf16, #tpu.memory_space<vmem>>, vector<8x72xbf16>
    %34 = vector.extract_strided_slice %30 {offsets = [0, 0], sizes = [24, 70], strides = [1, 1]} : vector<24x72xbf16> to vector<24x70xbf16>
    %35 = vector.extract_strided_slice %30 {offsets = [0, 1], sizes = [24, 70], strides = [1, 1]} : vector<24x72xbf16> to vector<24x70xbf16>
    %36 = vector.extract_strided_slice %30 {offsets = [0, 2], sizes = [24, 70], strides = [1, 1]} : vector<24x72xbf16> to vector<24x70xbf16>
    %37 = tpu.concatenate %34, %35, %36 in 0 : vector<24x70xbf16>, vector<24x70xbf16>, vector<24x70xbf16> -> vector<72x70xbf16>
    %cst_19 = arith.constant dense<0.000000e+00> : vector<8x70xf32>
    %38 = tpu.matmul %33, %37, %cst_19 {dimension_numbers = #tpu.dot_dimension_numbers<[1], [0], [0], [1], [0, 0, 1, 1], [], []>} : vector<8x72xbf16>, vector<72x70xbf16>, vector<8x70xf32> -> vector<8x70xf32>
    %cst_20 = arith.constant 0.000000e+00 : f32
    %39 = vector.broadcast %cst_20 : f32 to vector<8x70xf32>
    %40 = arith.maximumf %38, %39 : vector<8x70xf32>
    %41 = arith.extf %31 : vector<8x70xbf16> to vector<8x70xf32>
    %42 = arith.addf %40, %41 : vector<8x70xf32>
    %cst_21 = arith.constant 0.000000e+00 : f32
    %43 = vector.shape_cast %32 : vector<1x70xi1> to vector<1x70xi1>
    %44 = vector.broadcast %43 : vector<1x70xi1> to vector<8x70xi1>
    %45 = vector.broadcast %cst_21 : f32 to vector<8x70xf32>
    %46 = arith.select %44, %42, %45 : vector<8x70xi1>, vector<8x70xf32>
    %47 = arith.truncf %46 : vector<8x70xf32> to vector<8x70xbf16>
    %48 = vector.extract_strided_slice %18 {offsets = [0, 2], sizes = [8, 68], strides = [1, 1]} : vector<8x72xbf16> to vector<8x68xbf16>
    %49 = vector.extract_strided_slice %9 {offsets = [0, 2], sizes = [1, 68], strides = [1, 1]} : vector<1x72xi1> to vector<1x68xi1>
    %c0_22 = arith.constant 0 : index
    %c0_23 = arith.constant 0 : index
    %50 = vector.load %arg6[%c0_22, %c0_23] : memref<8x24xbf16, #tpu.memory_space<vmem>>, vector<8x24xbf16>
    %51 = vector.extract_strided_slice %47 {offsets = [0, 0], sizes = [8, 68], strides = [1, 1]} : vector<8x70xbf16> to vector<8x68xbf16>
    %52 = vector.extract_strided_slice %47 {offsets = [0, 1], sizes = [8, 68], strides = [1, 1]} : vector<8x70xbf16> to vector<8x68xbf16>
    %53 = vector.extract_strided_slice %47 {offsets = [0, 2], sizes = [8, 68], strides = [1, 1]} : vector<8x70xbf16> to vector<8x68xbf16>
    %54 = tpu.concatenate %51, %52, %53 in 0 : vector<8x68xbf16>, vector<8x68xbf16>, vector<8x68xbf16> -> vector<24x68xbf16>
    %cst_24 = arith.constant dense<0.000000e+00> : vector<8x68xf32>
    %55 = tpu.matmul %50, %54, %cst_24 {dimension_numbers = #tpu.dot_dimension_numbers<[1], [0], [0], [1], [0, 0, 1, 1], [], []>} : vector<8x24xbf16>, vector<24x68xbf16>, vector<8x68xf32> -> vector<8x68xf32>
    %cst_25 = arith.constant 0.000000e+00 : f32
    %56 = vector.broadcast %cst_25 : f32 to vector<8x68xf32>
    %57 = arith.maximumf %55, %56 : vector<8x68xf32>
    %58 = arith.extf %48 : vector<8x68xbf16> to vector<8x68xf32>
    %59 = arith.addf %57, %58 : vector<8x68xf32>
    %cst_26 = arith.constant 0.000000e+00 : f32
    %60 = vector.shape_cast %49 : vector<1x68xi1> to vector<1x68xi1>
    %61 = vector.broadcast %60 : vector<1x68xi1> to vector<8x68xi1>
    %62 = vector.broadcast %cst_26 : f32 to vector<8x68xf32>
    %63 = arith.select %61, %59, %62 : vector<8x68xi1>, vector<8x68xf32>
    %64 = arith.truncf %63 : vector<8x68xf32> to vector<8x68xbf16>
    %65 = vector.extract_strided_slice %18 {offsets = [0, 3], sizes = [8, 66], strides = [1, 1]} : vector<8x72xbf16> to vector<8x66xbf16>
    %c0_27 = arith.constant 0 : index
    %c0_28 = arith.constant 0 : index
    %66 = vector.load %arg7[%c0_27, %c0_28] : memref<8x24xbf16, #tpu.memory_space<vmem>>, vector<8x24xbf16>
    %67 = vector.extract_strided_slice %64 {offsets = [0, 0], sizes = [8, 66], strides = [1, 1]} : vector<8x68xbf16> to vector<8x66xbf16>
    %68 = vector.extract_strided_slice %64 {offsets = [0, 1], sizes = [8, 66], strides = [1, 1]} : vector<8x68xbf16> to vector<8x66xbf16>
    %69 = vector.extract_strided_slice %64 {offsets = [0, 2], sizes = [8, 66], strides = [1, 1]} : vector<8x68xbf16> to vector<8x66xbf16>
    %70 = tpu.concatenate %67, %68, %69 in 0 : vector<8x66xbf16>, vector<8x66xbf16>, vector<8x66xbf16> -> vector<24x66xbf16>
    %cst_29 = arith.constant dense<0.000000e+00> : vector<8x66xf32>
    %71 = tpu.matmul %66, %70, %cst_29 {dimension_numbers = #tpu.dot_dimension_numbers<[1], [0], [0], [1], [0, 0, 1, 1], [], []>} : vector<8x24xbf16>, vector<24x66xbf16>, vector<8x66xf32> -> vector<8x66xf32>
    %cst_30 = arith.constant 0.000000e+00 : f32
    %72 = vector.broadcast %cst_30 : f32 to vector<8x66xf32>
    %73 = arith.maximumf %71, %72 : vector<8x66xf32>
    %74 = arith.extf %65 : vector<8x66xbf16> to vector<8x66xf32>
    %75 = arith.addf %73, %74 : vector<8x66xf32>
    %76 = vector.extract_strided_slice %75 {offsets = [0, 1], sizes = [8, 64], strides = [1, 1]} : vector<8x66xf32> to vector<8x64xf32>
    %c0_31 = arith.constant 0 : index
    %c0_32 = arith.constant 0 : index
    %c0_33 = arith.constant 0 : index
    %77 = vector.load %arg8[%c0_31, %c0_32, %c0_33] : memref<1x8x64xf32, #tpu.memory_space<vmem>>, vector<1x8x64xf32>
    %78 = vector.shape_cast %77 : vector<1x8x64xf32> to vector<8x64xf32>
    %79 = vector.shape_cast %76 : vector<8x64xf32> to vector<1x8x64xf32>
    tpu.vector_store %arg8[%c0_31, %c0_32, %c0_33], %79 {strides = array<i32>} : memref<1x8x64xf32, #tpu.memory_space<vmem>>, vector<1x8x64xf32>,
    return
  }
  func.func @transform_0(%arg0: i32, %arg1: i32) -> (i32, i32, i32) {
    %c0_i32 = arith.constant 0 : i32
    %c0_i32_0 = arith.constant 0 : i32
    return %arg0, %c0_i32, %arg1 : i32, i32, i32
  }
  func.func @transform_1(%arg0: i32, %arg1: i32) -> (i32, i32, i32) {
    %c0_i32 = arith.constant 0 : i32
    %c0_i32_0 = arith.constant 0 : i32
    return %arg0, %c0_i32, %arg1 : i32, i32, i32
  }
  func.func @transform_2(%arg0: i32, %arg1: i32) -> (i32, i32) {
    %c0_i32 = arith.constant 0 : i32
    %c0_i32_0 = arith.constant 0 : i32
    %c0_i32_1 = arith.constant 0 : i32
    return %c0_i32, %c0_i32_0 : i32, i32
  }
  func.func @transform_3(%arg0: i32, %arg1: i32) -> (i32, i32) {
    %c0_i32 = arith.constant 0 : i32
    %c0_i32_0 = arith.constant 0 : i32
    %c0_i32_1 = arith.constant 0 : i32
    return %c0_i32, %c0_i32_0 : i32, i32
  }
  func.func @transform_4(%arg0: i32, %arg1: i32) -> (i32, i32) {
    %c0_i32 = arith.constant 0 : i32
    %c0_i32_0 = arith.constant 0 : i32
    %c0_i32_1 = arith.constant 0 : i32
    return %c0_i32, %c0_i32_0 : i32, i32
  }
  func.func @transform_5(%arg0: i32, %arg1: i32) -> (i32, i32) {
    %c0_i32 = arith.constant 0 : i32
    %c0_i32_0 = arith.constant 0 : i32
    %c0_i32_1 = arith.constant 0 : i32
    return %c0_i32, %c0_i32_0 : i32, i32
  }
  func.func @transform_6(%arg0: i32, %arg1: i32) -> (i32, i32, i32) {
    %c0_i32 = arith.constant 0 : i32
    %c0_i32_0 = arith.constant 0 : i32
    return %arg0, %c0_i32, %arg1 : i32, i32, i32
  }
}

</mosaic_0001>

<bundles_post_ra>
// kernel: tpu_custom_call.1
= control target key start
LH: loop header
LB: loop body
LE: loop exit
PB: predicated region body
PF: predicated region fallthrough
CT: control target
= control target key end

     0   :  { %6 = vsyncpa [#allocation3], 0  ;;  %s12607_s0 = inlined_call_operand.hbm [shape: f32[16,132], index: 0, kind: input, shape index: {}]   ;;  %s12608_s1 = inlined_call_operand.hbm [shape: f32[16,264], index: 1, kind: output, shape index: {}]  }
   0x1   :  { %7 = vsyncpa [#allocation4], 0  ;;  %s12_s8 = sshll.u32 %s12607_s0, 4  ;;  %s7124_s9 = smov [#allocation2]   ;;  %s13_s8 = int_to_ptr.hbm [resolvable:$true] %s12_s8 }
   0x2   :  { %s14_s10 = sshll.u32 %s7124_s9, 4  ;;  %s7125_s11 = smov 256   ;;  %s15_s10 = int_to_ptr.vmem [resolvable:$true] %s14_s10 }
   0x3   :  { %s7126_s12 = smov 16  }
   0x4   :  { %20 = dma.hbm_to_vmem [thread:$0]  %s13_s8, 512, %s15_s10, [#allocation3], %s7125_s11, %s7125_s11, %s7126_s12  }
   0x5   :  { %7120 = dma.done.wait [#allocation3], 512  }
   0x6   :  { %7121 = vsyncadd [#allocation3], 4294966784  ;;  %v30_v0 = vlaneseq  ;;  %v7221_v5 = vld [vmem:[#allocation2] sm:$0xff]  ;;  %v7247_v11 = vld [vmem:[#allocation2 + $0x10] sm:$0xff]  ;;  %vm1694_vm0 = vcmask 1047556   ;;  %s7129_s0 = smov 2  }
   0x7   :  { %v7224_v6 = vperm.slane %v7221_v5, 0  ;;  %v7236_v9 = vperm.slane %v7221_v5, 1  ;;  %v7242_v10 = vperm.slane %v7221_v5, 6  ;;  %v7256_v14 = vperm.slane %v7247_v11, 3  ;;  %v7303_v21 = vld [vmem:[#allocation2 + $0x8] sm:$0xff]  ;;  %v7425_v36 = vld [vmem:[#allocation2 + $0x18] sm:$0xff] }
   0x8   :  { %v7207_v1 = vshrl.u32 %v30_v0, 7  ;;  %v126_v22 = vperm.slane %v7303_v21, 0  ;;  %v7309_v23 = vperm.slane %v7221_v5, 2  ;;  %v7315_v24 = vperm.slane %v7221_v5, 7  ;;  %s7130_s13 = smov 6   ;;  %s7131_s14 = smov 4  }
   0x9   :  { %v7321_v25 = vperm.slane %v7247_v11, 4  ;;  %v7360_v28 = vperm.slane %v7221_v5, 3  ;;  %v7366_v29 = vperm.slane %v7247_v11, 0  ;;  %v7372_v30 = vperm.slane %v7247_v11, 5  ;;  %s7132_s15 = smov 8   ;;  %s7133_s16 = smov 12  }
   0xa   :  { %v7210_v2 = vadd.s32 32, %v7207_v1  ;;  %v7213_v3 = vadd.s32 16, %v7207_v1  ;;  %v7216_v4 = vadd.s32 8, %v7207_v1  ;;  %v7230_v7 = vadd.s32 40, %v7207_v1  ;;  %s7134_s17 = smov 10   ;;  %s7135_s18 = smov 14  }
   0xb   :  { %v7233_v8 = vadd.s32 24, %v7207_v1  ;;  %v7250_v12 = vadd.s32 56, %v7207_v1  ;;  %v7253_v13 = vadd.s32 48, %v7207_v1  ;;  %v7265_v15 = vadd.s32 80, %v7207_v1  ;;  %s7136_s19 = smov 18   ;;  %s7137_s20 = smov 20  }
   0xc   :  { %6840 = vset.pattern.permute.xlu2 %v7210_v2  ;;  %6838 = vset.pattern.permute.xlu1 %v7213_v3  ;;  %v7268_v16 = vadd.s32 72, %v7207_v1  ;;  %v7277_v17 = vadd.s32 96, %v7207_v1  ;;  %v7280_v18 = vadd.s32 88, %v7207_v1  ;;  %v7289_v19 = vadd.s32 120, %v7207_v1  ;;  %s7138_s21 = smov 24   ;;  %s7139_s22 = smov 22  }
   0xd   :  { %6837 = vset.pattern.permute.xlu0 %v7216_v4  ;;  %v7292_v20 = vadd.s32 112, %v7207_v1  ;;  %v7330_v26 = vadd.s32 64, %v7207_v1  ;;  %v7345_v27 = vadd.s32 104, %v7207_v1  ;;  %v334_v31 = vperm.slane %v7303_v21, 2  ;;  %s7140_s23 = smov 26   ;;  %s7141_s24 = smov 30  }
   0xe   :  { %v230_v32 = vperm.slane %v7303_v21, 1  ;;  %v7411_v33 = vperm.slane %v7221_v5, 4  ;;  %v750_v34 = vperm.slane %v7303_v21, 6  ;;  %v7420_v35 = vperm.slane %v7247_v11, 1  ;;  %s7142_s25 = smov 28   ;;  %s7143_s26 = smov 32  }
   0xf   :  { %v1270_v37 = vperm.slane %v7425_v36, 3  ;;  %v7431_v38 = vperm.slane %v7247_v11, 6  ;;  %v438_v39 = vperm.slane %v7303_v21, 3  ;;  %v7476_v40 = vperm.slane %v7221_v5, 5  ;;  %s7144_s27 = smov 36   ;;  %s7145_s28 = smov 34  }
  0x10   :  { %v7482_v41 = vperm.slane %v7247_v11, 2  ;;  %v7488_v42 = vperm.slane %v7247_v11, 7  ;;  %v542_v46 = vperm.slane %v7303_v21, 4  ;;  %v646_v50 = vperm.slane %v7303_v21, 5  ;;  %s7146_s29 = smov 38   ;;  %s7147_s30 = smov 42  }
  0x11   :  { %v854_v59 = vperm.slane %v7303_v21, 7  ;;  %s7148_s2 = smov 40   ;;  %s7149_s3 = smov 44   ;;  %vm6422_vm1 = vcmask 15360   ;;  %vm6425_vm2 = vcmask 31744   ;;  %vm6428_vm3 = vcmask 48128  }
  0x12   :  { %s7150_s4 = smov 48   ;;  %s7151_s5 = smov 46   ;;  %vm6431_vm4 = vcmask 64512   ;;  %vm6434_vm5 = vcmask 80896   ;;  %vm6437_vm6 = vcmask 97280   ;;  %vm6440_vm7 = vcmask 113664  }
  0x13   :  { %s7152_s6 = smov 50   ;;  %s7153_s7 = smov 54   ;;  %vm6443_vm8 = vcmask 130048   ;;  %vm6446_vm9 = vcmask 146432   ;;  %vm6449_vm10 = vcmask 162816   ;;  %vm12885_vm11 = vcmask 179200  }
  0x14   :  { %58 = vperm.xlu2 %6840, %v7224_v6   ;;  %46 = vperm.xlu1 %6838, %v7224_v6   ;;  %s7154_s8 = smov 52   ;;  %s12814_s9 = smov 56   ;;  %vm12883_vm12 = vcmask 195584   ;;  %vm12884_vm13 = vcmask 211968   ;;  %vm12890_vm14 = vcmask 228352   ;;  %vm12886_vm15 = vcmask 244736  }
  0x15   :  { %40 = vperm.xlu0 %6837, %v7224_v6   ;;  %s12820_s10 = smov 60   ;;  %s12818_s11 = smov 58  }
  0x1c   :  { %6841 = vset.pattern.permute.xlu2 %v7230_v7  ;;  %6839 = vset.pattern.permute.xlu1 %v7233_v8 }
  0x1d   :  { %144 = vperm.xlu0 %6837, %v7236_v9  }
  0x24   :  { %64 = vperm.xlu2 %6841, %v7224_v6   ;;  %52 = vperm.xlu1 %6839, %v7224_v6  }
  0x25   :  { %664 = vperm.xlu0 %6837, %v7242_v10  }
  0x2c   :  { %6843 = vset.pattern.permute.xlu2 %v7250_v12  ;;  %6842 = vset.pattern.permute.xlu1 %v7253_v13 }
  0x2d   :  { %1184 = vperm.xlu0 %6837, %v7256_v14  }
  0x34   :  { %76 = vperm.xlu2 %6843, %v7224_v6   ;;  %70 = vperm.xlu1 %6842, %v7224_v6  }
  0x35   :  { %6988 = vset.pattern.permute.xlu0 %v7253_v13 }
  0x3c   :  { %6845 = vset.pattern.permute.xlu2 %v7265_v15  ;;  %6844 = vset.pattern.permute.xlu1 %v7268_v16 }
  0x3d   :  { %174 = vperm.xlu0 %6988, %v7236_v9  }
  0x44   :  { %94 = vperm.xlu2 %6845, %v7224_v6   ;;  %88 = vperm.xlu1 %6844, %v7224_v6  }
  0x45   :  { %694 = vperm.xlu0 %6988, %v7242_v10  }
  0x4c   :  { %6847 = vset.pattern.permute.xlu2 %v7277_v17  ;;  %6846 = vset.pattern.permute.xlu1 %v7280_v18 }
  0x4d   :  { %1214 = vperm.xlu0 %6988, %v7256_v14  }
  0x54   :  { %106 = vperm.xlu2 %6847, %v7224_v6   ;;  %100 = vperm.xlu1 %6846, %v7224_v6  }
  0x55   :  { %6993 = vset.pattern.permute.xlu0 %v7280_v18 }
  0x5c   :  { %6849 = vset.pattern.permute.xlu2 %v7289_v19  ;;  %6848 = vset.pattern.permute.xlu1 %v7292_v20 }
  0x5d   :  { %204 = vperm.xlu0 %6993, %v7236_v9  }
  0x64   :  { %124 = vperm.xlu2 %6849, %v7224_v6   ;;  %118 = vperm.xlu1 %6848, %v7224_v6  }
  0x65   :  { %724 = vperm.xlu0 %6993, %v7242_v10  }
  0x6c   :  { %6851 = vset.pattern.permute.xlu2 %v7207_v1  ;;  %6850 = vset.pattern.permute.xlu1 %v7207_v1 }
  0x6d   :  { %1244 = vperm.xlu0 %6993, %v7256_v14  }
  0x6e   :  { %v7592_v51 = vpop.permute.xlu2 %58 }
  0x6f   :  { %12939 = vst [vmem:[#allocation10_spill] sm:$0xff] %v7592_v51 }
  0x74   :  { %138 = vperm.xlu2 %6851, %v7236_v9   ;;  %131 = vperm.xlu1 %6850, %v126_v22  }
  0x75   :  { %6998 = vset.pattern.permute.xlu0 %v7210_v2 }
  0x7c   :  { %6853 = vset.pattern.permute.xlu2 %v7233_v8  ;;  %6852 = vset.pattern.permute.xlu1 %v7213_v3 }
  0x7d   :  { %266 = vperm.xlu0 %6998, %v7309_v23  }
  0x7e   :  { %v7600_v53 = vpop.permute.xlu2 %64 }
  0x7f   :  { %12941 = vst [vmem:[#allocation12_spill] sm:$0xff] %v7600_v53 }
  0x84   :  { %156 = vperm.xlu2 %6853, %v7236_v9   ;;  %150 = vperm.xlu1 %6852, %v7236_v9  }
  0x85   :  { %786 = vperm.xlu0 %6998, %v7315_v24  }
  0x86   :  { %v7594_v52 = vpop.permute.xlu1 %46 }
  0x87   :  { %v7502_v43 = vpop.permute.xlu0 %40  ;;  %12940 = vst [vmem:[#allocation11_spill] sm:$0xff] %v7594_v52 }
  0x8c   :  { %6855 = vset.pattern.permute.xlu2 %v7230_v7  ;;  %6854 = vset.pattern.permute.xlu1 %v7210_v2 }
  0x8d   :  { %1306 = vperm.xlu0 %6998, %v7321_v25  }
  0x8e   :  { %v7608_v55 = vpop.permute.xlu2 %76 }
  0x8f   :  { %v7509_v44 = vpop.permute.xlu0 %144  ;;  %12943 = vst [vmem:[#allocation14_spill] sm:$0xff] %v7608_v55 }
  0x94   :  { %168 = vperm.xlu2 %6855, %v7236_v9   ;;  %162 = vperm.xlu1 %6854, %v7236_v9  }
  0x95   :  { %7007 = vset.pattern.permute.xlu0 %v7268_v16 }
  0x96   :  { %v7602_v54 = vpop.permute.xlu1 %52 }
  0x97   :  { %v7515_v45 = vpop.permute.xlu0 %664  ;;  %12942 = vst [vmem:[#allocation13_spill] sm:$0xff] %v7602_v54 }
  0x9c   :  { %6857 = vset.pattern.permute.xlu2 %v7330_v26  ;;  %6856 = vset.pattern.permute.xlu1 %v7250_v12 }
  0x9d   :  { %296 = vperm.xlu0 %7007, %v7309_v23  }
  0x9e   :  { %v7616_v57 = vpop.permute.xlu2 %94 }
  0x9f   :  { %v7520_v47 = vpop.permute.xlu0 %1184  ;;  %12945 = vst [vmem:[#allocation16_spill] sm:$0xff] %v7616_v57 }
  0xa4   :  { %186 = vperm.xlu2 %6857, %v7236_v9   ;;  %180 = vperm.xlu1 %6856, %v7236_v9  }
  0xa5   :  { %816 = vperm.xlu0 %7007, %v7315_v24  }
  0xa6   :  { %v7610_v56 = vpop.permute.xlu1 %70 }
  0xa7   :  { %12944 = vst [vmem:[#allocation15_spill] sm:$0xff] %v7610_v56  ;;  %v1166_v56 = vperm.slane %v7425_v36, 2 }
  0xac   :  { %6859 = vset.pattern.permute.xlu2 %v7265_v15  ;;  %6858 = vset.pattern.permute.xlu1 %v7268_v16 }
  0xad   :  { %1336 = vperm.xlu0 %7007, %v7321_v25  }
  0xae   :  { %v7625_v60 = vpop.permute.xlu2 %106 }
  0xaf   :  { %v7525_v48 = vpop.permute.xlu0 %174  ;;  %12947 = vst [vmem:[#allocation18_spill] sm:$0xff] %v7625_v60 }
  0xb0   :  { %12937 = vst [vmem:[#allocation8_spill] sm:$0xff] %v7525_v48 }
  0xb4   :  { %198 = vperm.xlu2 %6859, %v7236_v9   ;;  %192 = vperm.xlu1 %6858, %v7236_v9  }
  0xb5   :  { %7012 = vset.pattern.permute.xlu0 %v7292_v20 }
  0xb6   :  { %v7618_v58 = vpop.permute.xlu1 %88 }
  0xb7   :  { %v7532_v49 = vpop.permute.xlu0 %694  ;;  %12946 = vst [vmem:[#allocation17_spill] sm:$0xff] %v7618_v58 }
  0xb8   :  { %12938 = vst [vmem:[#allocation9_spill] sm:$0xff] %v7532_v49 }
  0xbc   :  { %6861 = vset.pattern.permute.xlu2 %v7345_v27  ;;  %6860 = vset.pattern.permute.xlu1 %v7277_v17 }
  0xbd   :  { %326 = vperm.xlu0 %7012, %v7309_v23  }
  0xbe   :  { %v7632_v62 = vpop.permute.xlu2 %124 }
  0xbf   :  { %12949 = vst [vmem:[#allocation20_spill] sm:$0xff] %v7632_v62 }
  0xc4   :  { %216 = vperm.xlu2 %6861, %v7236_v9   ;;  %210 = vperm.xlu1 %6860, %v7236_v9  }
  0xc5   :  { %846 = vperm.xlu0 %7012, %v7315_v24  }
  0xc6   :  { %v7627_v61 = vpop.permute.xlu1 %100 }
  0xc7   :  { %12948 = vst [vmem:[#allocation19_spill] sm:$0xff] %v7627_v61 }
  0xcc   :  { %6863 = vset.pattern.permute.xlu2 %v7289_v19  ;;  %6862 = vset.pattern.permute.xlu1 %v7292_v20 }
  0xcd   :  { %1366 = vperm.xlu0 %7012, %v7321_v25  }
  0xce   :  { %v7640_v0 = vpop.permute.xlu2 %138 }
  0xd4   :  { %228 = vperm.xlu2 %6863, %v7236_v9   ;;  %222 = vperm.xlu1 %6862, %v7236_v9  }
  0xd5   :  { %7017 = vset.pattern.permute.xlu0 %v7213_v3 }
  0xd6   :  { %v7634_v63 = vpop.permute.xlu1 %118 }
  0xd7   :  { %12950 = vst [vmem:[#allocation21_spill] sm:$0xff] %v7634_v63 }
  0xdc   :  { %6865 = vset.pattern.permute.xlu2 %v7216_v4  ;;  %6864 = vset.pattern.permute.xlu1 %v7207_v1 }
  0xdd   :  { %358 = vperm.xlu0 %7017, %v7360_v28  }
  0xe4   :  { %248 = vperm.xlu2 %6865, %v7309_v23   ;;  %242 = vperm.xlu1 %6864, %v7309_v23  }
  0xe5   :  { %878 = vperm.xlu0 %7017, %v7366_v29  }
  0xe6   :  { %v7642_v5 = vpop.permute.xlu1 %131 }
  0xe7   :  { %12951 = vst [vmem:[#allocation22_spill] sm:$0xff] %v7642_v5 }
  0xec   :  { %6867 = vset.pattern.permute.xlu2 %v7233_v8  ;;  %6866 = vset.pattern.permute.xlu1 %v7213_v3 }
  0xed   :  { %1398 = vperm.xlu0 %7017, %v7372_v30  }
  0xf4   :  { %260 = vperm.xlu2 %6867, %v7309_v23   ;;  %254 = vperm.xlu1 %6866, %v7309_v23  }
  0xf5   :  { %7022 = vset.pattern.permute.xlu0 %v7250_v12 }
  0xf6   :  { %v7650_v9 = vpop.permute.xlu1 %150 }
  0xf7   :  { %12953 = vst [vmem:[#allocation24_spill] sm:$0xff] %v7650_v9 }
  0xfc   :  { %6869 = vset.pattern.permute.xlu2 %v7253_v13  ;;  %6868 = vset.pattern.permute.xlu1 %v7230_v7 }
  0xfd   :  { %388 = vperm.xlu0 %7022, %v7360_v28  }
 0x104   :  { %278 = vperm.xlu2 %6869, %v7309_v23   ;;  %272 = vperm.xlu1 %6868, %v7309_v23  }
 0x105   :  { %908 = vperm.xlu0 %7022, %v7366_v29  }
 0x106   :  { %v7658_v11 = vpop.permute.xlu1 %162 }
 0x107   :  { %12955 = vst [vmem:[#allocation26_spill] sm:$0xff] %v7658_v11 }
 0x10c   :  { %6871 = vset.pattern.permute.xlu2 %v7330_v26  ;;  %6870 = vset.pattern.permute.xlu1 %v7250_v12 }
 0x10d   :  { %1428 = vperm.xlu0 %7022, %v7372_v30  }
 0x114   :  { %290 = vperm.xlu2 %6871, %v7309_v23   ;;  %284 = vperm.xlu1 %6870, %v7309_v23  }
 0x115   :  { %7027 = vset.pattern.permute.xlu0 %v7277_v17 }
 0x116   :  { %v7666_v22 = vpop.permute.xlu1 %180 }
 0x117   :  { %12957 = vst [vmem:[#allocation28_spill] sm:$0xff] %v7666_v22 }
 0x11c   :  { %6873 = vset.pattern.permute.xlu2 %v7280_v18  ;;  %6872 = vset.pattern.permute.xlu1 %v7265_v15 }
 0x11d   :  { %418 = vperm.xlu0 %7027, %v7360_v28  }
 0x124   :  { %308 = vperm.xlu2 %6873, %v7309_v23   ;;  %302 = vperm.xlu1 %6872, %v7309_v23  }
 0x125   :  { %938 = vperm.xlu0 %7027, %v7366_v29  }
 0x12c   :  { %6875 = vset.pattern.permute.xlu2 %v7345_v27  ;;  %6874 = vset.pattern.permute.xlu1 %v7277_v17 }
 0x12d   :  { %1458 = vperm.xlu0 %7027, %v7372_v30  }
 0x134   :  { %320 = vperm.xlu2 %6875, %v7309_v23   ;;  %314 = vperm.xlu1 %6874, %v7309_v23  }
 0x135   :  { %7032 = vset.pattern.permute.xlu0 %v7207_v1 }
 0x13c   :  { %6877 = vset.pattern.permute.xlu2 %v7207_v1  ;;  %6876 = vset.pattern.permute.xlu1 %v7289_v19 }
 0x13d   :  { %34 = vperm.xlu0 %7032, %v7224_v6  }
 0x144   :  { %339 = vperm.xlu2 %6877, %v334_v31   ;;  %332 = vperm.xlu1 %6876, %v7309_v23   ;;  %v958_v31 = vperm.slane %v7425_v36, 0 }
 0x145   :  { %235 = vperm.xlu0 %7032, %v230_v32  }
 0x14c   :  { %6879 = vset.pattern.permute.xlu2 %v7216_v4  ;;  %6878 = vset.pattern.permute.xlu1 %v7207_v1 }
 0x14d   :  { %450 = vperm.xlu0 %7032, %v7411_v33  }
 0x154   :  { %352 = vperm.xlu2 %6879, %v7360_v28   ;;  %346 = vperm.xlu1 %6878, %v7360_v28  }
 0x155   :  { %755 = vperm.xlu0 %7032, %v750_v34  }
 0x15c   :  { %6881 = vset.pattern.permute.xlu2 %v7210_v2  ;;  %6880 = vset.pattern.permute.xlu1 %v7233_v8 }
 0x15d   :  { %970 = vperm.xlu0 %7032, %v7420_v35  }
 0x164   :  { %370 = vperm.xlu2 %6881, %v7360_v28   ;;  %364 = vperm.xlu1 %6880, %v7360_v28  }
 0x165   :  { %1275 = vperm.xlu0 %7032, %v1270_v37  }
 0x16c   :  { %6883 = vset.pattern.permute.xlu2 %v7253_v13  ;;  %6882 = vset.pattern.permute.xlu1 %v7230_v7 }
 0x16d   :  { %1490 = vperm.xlu0 %7032, %v7431_v38  }
 0x174   :  { %382 = vperm.xlu2 %6883, %v7360_v28   ;;  %376 = vperm.xlu1 %6882, %v7360_v28  }
 0x175   :  { %7037 = vset.pattern.permute.xlu0 %v7230_v7 }
 0x17c   :  { %6885 = vset.pattern.permute.xlu2 %v7268_v16  ;;  %6884 = vset.pattern.permute.xlu1 %v7330_v26 }
 0x17d   :  { %480 = vperm.xlu0 %7037, %v7411_v33  }
 0x184   :  { %400 = vperm.xlu2 %6885, %v7360_v28   ;;  %394 = vperm.xlu1 %6884, %v7360_v28  }
 0x185   :  { %1000 = vperm.xlu0 %7037, %v7420_v35  }
 0x18c   :  { %6887 = vset.pattern.permute.xlu2 %v7280_v18  ;;  %6886 = vset.pattern.permute.xlu1 %v7265_v15 }
 0x18d   :  { %1520 = vperm.xlu0 %7037, %v7431_v38  }
 0x194   :  { %412 = vperm.xlu2 %6887, %v7360_v28   ;;  %406 = vperm.xlu1 %6886, %v7360_v28  }
 0x195   :  { %7042 = vset.pattern.permute.xlu0 %v7265_v15 }
 0x19c   :  { %6889 = vset.pattern.permute.xlu2 %v7292_v20  ;;  %6888 = vset.pattern.permute.xlu1 %v7345_v27 }
 0x19d   :  { %510 = vperm.xlu0 %7042, %v7411_v33  }
 0x1a4   :  { %430 = vperm.xlu2 %6889, %v7360_v28   ;;  %424 = vperm.xlu1 %6888, %v7360_v28  }
 0x1a5   :  { %1030 = vperm.xlu0 %7042, %v7420_v35  }
 0x1ac   :  { %6891 = vset.pattern.permute.xlu2 %v7207_v1  ;;  %6890 = vset.pattern.permute.xlu1 %v7289_v19 }
 0x1ad   :  { %1550 = vperm.xlu0 %7042, %v7431_v38  }
 0x1b4   :  { %443 = vperm.xlu2 %6891, %v438_v39   ;;  %436 = vperm.xlu1 %6890, %v7360_v28  }
 0x1b5   :  { %7047 = vset.pattern.permute.xlu0 %v7289_v19 }
 0x1bc   :  { %6893 = vset.pattern.permute.xlu2 %v7213_v3  ;;  %6892 = vset.pattern.permute.xlu1 %v7216_v4 }
 0x1bd   :  { %540 = vperm.xlu0 %7047, %v7411_v33  }
 0x1c4   :  { %462 = vperm.xlu2 %6893, %v7411_v33   ;;  %456 = vperm.xlu1 %6892, %v7411_v33  }
 0x1c5   :  { %1060 = vperm.xlu0 %7047, %v7420_v35  }
 0x1cc   :  { %6895 = vset.pattern.permute.xlu2 %v7210_v2  ;;  %6894 = vset.pattern.permute.xlu1 %v7233_v8 }
 0x1cd   :  { %1580 = vperm.xlu0 %7047, %v7431_v38  }
 0x1d4   :  { %474 = vperm.xlu2 %6895, %v7411_v33   ;;  %468 = vperm.xlu1 %6894, %v7411_v33  }
 0x1d5   :  { %7052 = vset.pattern.permute.xlu0 %v7233_v8 }
 0x1dc   :  { %6897 = vset.pattern.permute.xlu2 %v7250_v12  ;;  %6896 = vset.pattern.permute.xlu1 %v7253_v13 }
 0x1dd   :  { %572 = vperm.xlu0 %7052, %v7476_v40  }
 0x1e4   :  { %492 = vperm.xlu2 %6897, %v7411_v33   ;;  %486 = vperm.xlu1 %6896, %v7411_v33  }
 0x1e5   :  { %1092 = vperm.xlu0 %7052, %v7482_v41  }
 0x1ec   :  { %6899 = vset.pattern.permute.xlu2 %v7268_v16  ;;  %6898 = vset.pattern.permute.xlu1 %v7330_v26 }
 0x1ed   :  { %1612 = vperm.xlu0 %7052, %v7488_v42  }
 0x1f4   :  { %504 = vperm.xlu2 %6899, %v7411_v33   ;;  %498 = vperm.xlu1 %6898, %v7411_v33  }
 0x1f5   :  { %7057 = vset.pattern.permute.xlu0 %v7330_v26 }
 0x1fc   :  { %6901 = vset.pattern.permute.xlu2 %v7277_v17  ;;  %6900 = vset.pattern.permute.xlu1 %v7280_v18 }
 0x1fd   :  { %82 = vperm.xlu0 %7057, %v7224_v6  }
 0x204   :  { %522 = vperm.xlu2 %6901, %v7411_v33   ;;  %516 = vperm.xlu1 %6900, %v7411_v33  }
 0x205   :  { %602 = vperm.xlu0 %7057, %v7476_v40  }
 0x20c   :  { %6903 = vset.pattern.permute.xlu2 %v7292_v20  ;;  %6902 = vset.pattern.permute.xlu1 %v7345_v27 }
 0x20d   :  { %1122 = vperm.xlu0 %7057, %v7482_v41  }
 0x214   :  { %534 = vperm.xlu2 %6903, %v7411_v33   ;;  %528 = vperm.xlu1 %6902, %v7411_v33  }
 0x215   :  { %1642 = vperm.xlu0 %7057, %v7488_v42  }
 0x21c   :  { %6905 = vset.pattern.permute.xlu2 %v7207_v1  ;;  %6904 = vset.pattern.permute.xlu1 %v7207_v1 }
 0x21d   :  { %7062 = vset.pattern.permute.xlu0 %v7345_v27 }
 0x224   :  { %554 = vperm.xlu2 %6905, %v7476_v40   ;;  %547 = vperm.xlu1 %6904, %v542_v46  }
 0x225   :  { %112 = vperm.xlu0 %7062, %v7224_v6   ;;  %v7648_v6 = vpop.permute.xlu2 %156 }
 0x226   :  { %12952 = vst [vmem:[#allocation23_spill] sm:$0xff] %v7648_v6 }
 0x22c   :  { %6907 = vset.pattern.permute.xlu2 %v7213_v3  ;;  %6906 = vset.pattern.permute.xlu1 %v7216_v4 }
 0x22d   :  { %632 = vperm.xlu0 %7062, %v7476_v40  }
 0x234   :  { %566 = vperm.xlu2 %6907, %v7476_v40   ;;  %560 = vperm.xlu1 %6906, %v7476_v40  }
 0x235   :  { %1152 = vperm.xlu0 %7062, %v7482_v41  }
 0x23c   :  { %6909 = vset.pattern.permute.xlu2 %v7230_v7  ;;  %6908 = vset.pattern.permute.xlu1 %v7210_v2 }
 0x23d   :  { %1672 = vperm.xlu0 %7062, %v7488_v42  }
 0x244   :  { %584 = vperm.xlu2 %6909, %v7476_v40   ;;  %578 = vperm.xlu1 %6908, %v7476_v40  }
 0x245   :  { %7070 = vset.pattern.permute.xlu0 %v7207_v1 }
 0x24c   :  { %6911 = vset.pattern.permute.xlu2 %v7250_v12  ;;  %6910 = vset.pattern.permute.xlu1 %v7253_v13 }
 0x254   :  { %596 = vperm.xlu2 %6911, %v7476_v40   ;;  %590 = vperm.xlu1 %6910, %v7476_v40  }
 0x25c   :  { %6913 = vset.pattern.permute.xlu2 %v7265_v15  ;;  %6912 = vset.pattern.permute.xlu1 %v7268_v16 }
 0x264   :  { %614 = vperm.xlu2 %6913, %v7476_v40   ;;  %608 = vperm.xlu1 %6912, %v7476_v40  }
 0x26c   :  { %6915 = vset.pattern.permute.xlu2 %v7277_v17  ;;  %6914 = vset.pattern.permute.xlu1 %v7280_v18 }
 0x274   :  { %626 = vperm.xlu2 %6915, %v7476_v40   ;;  %620 = vperm.xlu1 %6914, %v7476_v40  }
 0x27c   :  { %6917 = vset.pattern.permute.xlu2 %v7289_v19  ;;  %6916 = vset.pattern.permute.xlu1 %v7292_v20 }
 0x284   :  { %644 = vperm.xlu2 %6917, %v7476_v40   ;;  %638 = vperm.xlu1 %6916, %v7476_v40  }
 0x28c   :  { %6919 = vset.pattern.permute.xlu2 %v7207_v1  ;;  %6918 = vset.pattern.permute.xlu1 %v7207_v1 }
 0x294   :  { %658 = vperm.xlu2 %6919, %v7242_v10   ;;  %651 = vperm.xlu1 %6918, %v646_v50  }
 0x29c   :  { %6921 = vset.pattern.permute.xlu2 %v7233_v8  ;;  %6920 = vset.pattern.permute.xlu1 %v7213_v3 }
 0x2a4   :  { %676 = vperm.xlu2 %6921, %v7242_v10   ;;  %670 = vperm.xlu1 %6920, %v7242_v10  }
 0x2ac   :  { %6923 = vset.pattern.permute.xlu2 %v7230_v7  ;;  %6922 = vset.pattern.permute.xlu1 %v7210_v2 }
 0x2b4   :  { %688 = vperm.xlu2 %6923, %v7242_v10   ;;  %682 = vperm.xlu1 %6922, %v7242_v10  }
 0x2bc   :  { %6925 = vset.pattern.permute.xlu2 %v7330_v26  ;;  %6924 = vset.pattern.permute.xlu1 %v7250_v12 }
 0x2c4   :  { %706 = vperm.xlu2 %6925, %v7242_v10   ;;  %700 = vperm.xlu1 %6924, %v7242_v10  }
 0x2cc   :  { %6927 = vset.pattern.permute.xlu2 %v7265_v15  ;;  %6926 = vset.pattern.permute.xlu1 %v7268_v16 }
 0x2d4   :  { %718 = vperm.xlu2 %6927, %v7242_v10   ;;  %712 = vperm.xlu1 %6926, %v7242_v10  }
 0x2dc   :  { %6929 = vset.pattern.permute.xlu2 %v7345_v27  ;;  %6928 = vset.pattern.permute.xlu1 %v7277_v17 }
 0x2e4   :  { %736 = vperm.xlu2 %6929, %v7242_v10   ;;  %730 = vperm.xlu1 %6928, %v7242_v10  }
 0x2ec   :  { %6931 = vset.pattern.permute.xlu2 %v7289_v19  ;;  %6930 = vset.pattern.permute.xlu1 %v7292_v20 }
 0x2f4   :  { %748 = vperm.xlu2 %6931, %v7242_v10   ;;  %742 = vperm.xlu1 %6930, %v7242_v10   ;;  %v7656_v10 = vpop.permute.xlu2 %168 }
 0x2f5   :  { %12954 = vst [vmem:[#allocation25_spill] sm:$0xff] %v7656_v10 }
 0x2fc   :  { %6933 = vset.pattern.permute.xlu2 %v7216_v4  ;;  %6932 = vset.pattern.permute.xlu1 %v7207_v1  ;;  %v7664_v21 = vpop.permute.xlu2 %186 }
 0x2fd   :  { %12956 = vst [vmem:[#allocation27_spill] sm:$0xff] %v7664_v21 }
 0x304   :  { %768 = vperm.xlu2 %6933, %v7315_v24   ;;  %762 = vperm.xlu1 %6932, %v7315_v24   ;;  %v7672_v23 = vpop.permute.xlu2 %198 }
 0x305   :  { %12958 = vst [vmem:[#allocation29_spill] sm:$0xff] %v7672_v23 }
 0x30c   :  { %6935 = vset.pattern.permute.xlu2 %v7233_v8  ;;  %6934 = vset.pattern.permute.xlu1 %v7213_v3  ;;  %v7680_v28 = vpop.permute.xlu2 %216 }
 0x30d   :  { %12960 = vst [vmem:[#allocation31_spill] sm:$0xff] %v7680_v28 }
 0x314   :  { %780 = vperm.xlu2 %6935, %v7315_v24   ;;  %774 = vperm.xlu1 %6934, %v7315_v24   ;;  %v7686_v33 = vpop.permute.xlu2 %228 }
 0x315   :  { %12962 = vst [vmem:[#allocation33_spill] sm:$0xff] %v7686_v33 }
 0x31c   :  { %6937 = vset.pattern.permute.xlu2 %v7253_v13  ;;  %6936 = vset.pattern.permute.xlu1 %v7230_v7  ;;  %v7690_v34 = vpop.permute.xlu2 %248 }
 0x324   :  { %798 = vperm.xlu2 %6937, %v7315_v24   ;;  %792 = vperm.xlu1 %6936, %v7315_v24   ;;  %v7696_v39 = vpop.permute.xlu2 %260 }
 0x325   :  { %12964 = vst [vmem:[#allocation35_spill] sm:$0xff] %v7696_v39 }
 0x32c   :  { %6939 = vset.pattern.permute.xlu2 %v7330_v26  ;;  %6938 = vset.pattern.permute.xlu1 %v7250_v12 }
 0x334   :  { %810 = vperm.xlu2 %6939, %v7315_v24   ;;  %804 = vperm.xlu1 %6938, %v7315_v24  }
 0x33c   :  { %6941 = vset.pattern.permute.xlu2 %v7280_v18  ;;  %6940 = vset.pattern.permute.xlu1 %v7265_v15 }
 0x344   :  { %828 = vperm.xlu2 %6941, %v7315_v24   ;;  %822 = vperm.xlu1 %6940, %v7315_v24  }
 0x34c   :  { %6943 = vset.pattern.permute.xlu2 %v7345_v27  ;;  %6942 = vset.pattern.permute.xlu1 %v7277_v17 }
 0x354   :  { %840 = vperm.xlu2 %6943, %v7315_v24   ;;  %834 = vperm.xlu1 %6942, %v7315_v24  }
 0x35c   :  { %6945 = vset.pattern.permute.xlu2 %v7207_v1  ;;  %6944 = vset.pattern.permute.xlu1 %v7289_v19 }
 0x364   :  { %859 = vperm.xlu2 %6945, %v854_v59   ;;  %852 = vperm.xlu1 %6944, %v7315_v24   ;;  %v7674_v24 = vpop.permute.xlu1 %192 }
 0x365   :  { %12959 = vst [vmem:[#allocation30_spill] sm:$0xff] %v7674_v24 }
 0x36c   :  { %6947 = vset.pattern.permute.xlu2 %v7216_v4  ;;  %6946 = vset.pattern.permute.xlu1 %v7207_v1  ;;  %v7683_v32 = vpop.permute.xlu1 %210 }
 0x36d   :  { %12961 = vst [vmem:[#allocation32_spill] sm:$0xff] %v7683_v32  ;;  %v1062_v32 = vperm.slane %v7425_v36, 1 }
 0x374   :  { %872 = vperm.xlu2 %6947, %v7366_v29   ;;  %866 = vperm.xlu1 %6946, %v7366_v29   ;;  %v7692_v37 = vpop.permute.xlu1 %222 }
 0x375   :  { %12963 = vst [vmem:[#allocation34_spill] sm:$0xff] %v7692_v37 }
 0x37c   :  { %6949 = vset.pattern.permute.xlu2 %v7210_v2  ;;  %6948 = vset.pattern.permute.xlu1 %v7233_v8  ;;  %v7702_v40 = vpop.permute.xlu1 %242 }
 0x384   :  { %890 = vperm.xlu2 %6949, %v7366_v29   ;;  %884 = vperm.xlu1 %6948, %v7366_v29   ;;  %v7710_v50 = vpop.permute.xlu1 %254 }
 0x385   :  { %12967 = vst [vmem:[#allocation38_spill] sm:$0xff] %v7710_v50 }
 0x38c   :  { %6951 = vset.pattern.permute.xlu2 %v7253_v13  ;;  %6950 = vset.pattern.permute.xlu1 %v7230_v7  ;;  %v7720_v5 = vpop.permute.xlu1 %272 }
 0x38d   :  { %12970 = vst [vmem:[#allocation41_spill] sm:$0xff] %v7720_v5 }
 0x394   :  { %902 = vperm.xlu2 %6951, %v7366_v29   ;;  %896 = vperm.xlu1 %6950, %v7366_v29   ;;  %v7730_v63 = vpop.permute.xlu1 %284 }
 0x395   :  { %12972 = vst [vmem:[#allocation43_spill] sm:$0xff] %v7730_v63 }
 0x39c   :  { %6953 = vset.pattern.permute.xlu2 %v7268_v16  ;;  %6952 = vset.pattern.permute.xlu1 %v7330_v26 }
 0x3a4   :  { %920 = vperm.xlu2 %6953, %v7366_v29   ;;  %914 = vperm.xlu1 %6952, %v7366_v29  }
 0x3ac   :  { %6955 = vset.pattern.permute.xlu2 %v7280_v18  ;;  %6954 = vset.pattern.permute.xlu1 %v7265_v15 }
 0x3b4   :  { %932 = vperm.xlu2 %6955, %v7366_v29   ;;  %926 = vperm.xlu1 %6954, %v7366_v29  }
 0x3bc   :  { %6957 = vset.pattern.permute.xlu2 %v7292_v20  ;;  %6956 = vset.pattern.permute.xlu1 %v7345_v27 }
 0x3c4   :  { %950 = vperm.xlu2 %6957, %v7366_v29   ;;  %944 = vperm.xlu1 %6956, %v7366_v29  }
 0x3cc   :  { %6959 = vset.pattern.permute.xlu2 %v7207_v1  ;;  %6958 = vset.pattern.permute.xlu1 %v7289_v19 }
 0x3d4   :  { %963 = vperm.xlu2 %6959, %v958_v31   ;;  %956 = vperm.xlu1 %6958, %v7366_v29   ;;  %v7700_v29 = vpop.permute.xlu2 %278 }
 0x3d5   :  { %12965 = vst [vmem:[#allocation36_spill] sm:$0xff] %v7700_v29 }
 0x3dc   :  { %6961 = vset.pattern.permute.xlu2 %v7213_v3  ;;  %6960 = vset.pattern.permute.xlu1 %v7216_v4  ;;  %v7706_v46 = vpop.permute.xlu2 %290 }
 0x3dd   :  { %12966 = vst [vmem:[#allocation37_spill] sm:$0xff] %v7706_v46 }
 0x3e4   :  { %982 = vperm.xlu2 %6961, %v7420_v35   ;;  %976 = vperm.xlu1 %6960, %v7420_v35   ;;  %v7712_v59 = vpop.permute.xlu2 %308 }
 0x3e5   :  { %12968 = vst [vmem:[#allocation39_spill] sm:$0xff] %v7712_v59 }
 0x3ec   :  { %6963 = vset.pattern.permute.xlu2 %v7210_v2  ;;  %6962 = vset.pattern.permute.xlu1 %v7233_v8  ;;  %v7716_v31 = vpop.permute.xlu2 %320 }
 0x3ed   :  { %12969 = vst [vmem:[#allocation40_spill] sm:$0xff] %v7716_v31 }
 0x3f4   :  { %994 = vperm.xlu2 %6963, %v7420_v35   ;;  %988 = vperm.xlu1 %6962, %v7420_v35   ;;  %v7724_v62 = vpop.permute.xlu2 %339 }
 0x3f5   :  { %12971 = vst [vmem:[#allocation42_spill] sm:$0xff] %v7724_v62  ;;  %v7740_v62 = vpop.permute.xlu1 %302 }
 0x3f6   :  { %12975 = vst [vmem:[#allocation46_spill] sm:$0xff] %v7740_v62 }
 0x3fc   :  { %6965 = vset.pattern.permute.xlu2 %v7250_v12  ;;  %6964 = vset.pattern.permute.xlu1 %v7253_v13  ;;  %v7728_v33 = vpop.permute.xlu2 %352 }
 0x3fd   :  { %v7751_v61 = vpop.permute.xlu1 %314 }
 0x3fe   :  { %12978 = vst [vmem:[#allocation49_spill] sm:$0xff] %v7751_v61 }
 0x404   :  { %1012 = vperm.xlu2 %6965, %v7420_v35   ;;  %1006 = vperm.xlu1 %6964, %v7420_v35   ;;  %v7734_v37 = vpop.permute.xlu2 %370 }
 0x405   :  { %12973 = vst [vmem:[#allocation44_spill] sm:$0xff] %v7734_v37 }
 0x40c   :  { %6967 = vset.pattern.permute.xlu2 %v7268_v16  ;;  %6966 = vset.pattern.permute.xlu1 %v7330_v26  ;;  %v7738_v28 = vpop.permute.xlu2 %382 }
 0x40d   :  { %12974 = vst [vmem:[#allocation45_spill] sm:$0xff] %v7738_v28 }
 0x414   :  { %1024 = vperm.xlu2 %6967, %v7420_v35   ;;  %1018 = vperm.xlu1 %6966, %v7420_v35   ;;  %v7744_v31 = vpop.permute.xlu2 %400 }
 0x415   :  { %12976 = vst [vmem:[#allocation47_spill] sm:$0xff] %v7744_v31 }
 0x41c   :  { %6969 = vset.pattern.permute.xlu2 %v7277_v17  ;;  %6968 = vset.pattern.permute.xlu1 %v7280_v18  ;;  %v7748_v60 = vpop.permute.xlu2 %412 }
 0x41d   :  { %12977 = vst [vmem:[#allocation48_spill] sm:$0xff] %v7748_v60 }
 0x424   :  { %1042 = vperm.xlu2 %6969, %v7420_v35   ;;  %1036 = vperm.xlu1 %6968, %v7420_v35   ;;  %v7754_v62 = vpop.permute.xlu2 %430 }
 0x425   :  { %12979 = vst [vmem:[#allocation50_spill] sm:$0xff] %v7754_v62 }
 0x42c   :  { %6971 = vset.pattern.permute.xlu2 %v7292_v20  ;;  %6970 = vset.pattern.permute.xlu1 %v7345_v27  ;;  %v7760_v31 = vpop.permute.xlu2 %443 }
 0x42d   :  { %12981 = vst [vmem:[#allocation52_spill] sm:$0xff] %v7760_v31 }
 0x434   :  { %1054 = vperm.xlu2 %6971, %v7420_v35   ;;  %1048 = vperm.xlu1 %6970, %v7420_v35   ;;  %v7758_v35 = vpop.permute.xlu1 %332  ;;  %v7766_v61 = vpop.permute.xlu2 %462 }
 0x435   :  { %12980 = vst [vmem:[#allocation51_spill] sm:$0xff] %v7758_v35 }
 0x436   :  { %12982 = vst [vmem:[#allocation53_spill] sm:$0xff] %v7766_v61 }
 0x43c   :  { %6973 = vset.pattern.permute.xlu2 %v7207_v1  ;;  %6972 = vset.pattern.permute.xlu1 %v7207_v1  ;;  %v7764_v60 = vpop.permute.xlu1 %346  ;;  %v7772_v62 = vpop.permute.xlu2 %474 }
 0x43d   :  { %12984 = vst [vmem:[#allocation55_spill] sm:$0xff] %v7772_v62 }
 0x444   :  { %1074 = vperm.xlu2 %6973, %v7482_v41   ;;  %1067 = vperm.xlu1 %6972, %v1062_v32   ;;  %v7770_v32 = vpop.permute.xlu1 %364  ;;  %v7778_v35 = vpop.permute.xlu2 %492 }
 0x445   :  { %12983 = vst [vmem:[#allocation54_spill] sm:$0xff] %v7770_v32 }
 0x446   :  { %12986 = vst [vmem:[#allocation57_spill] sm:$0xff] %v7778_v35 }
 0x44c   :  { %6975 = vset.pattern.permute.xlu2 %v7213_v3  ;;  %6974 = vset.pattern.permute.xlu1 %v7216_v4  ;;  %v7776_v31 = vpop.permute.xlu1 %376  ;;  %v7784_v46 = vpop.permute.xlu2 %504 }
 0x44d   :  { %12985 = vst [vmem:[#allocation56_spill] sm:$0xff] %v7776_v31 }
 0x44e   :  { %12988 = vst [vmem:[#allocation59_spill] sm:$0xff] %v7784_v46 }
 0x454   :  { %1086 = vperm.xlu2 %6975, %v7482_v41   ;;  %1080 = vperm.xlu1 %6974, %v7482_v41   ;;  %v7782_v59 = vpop.permute.xlu1 %394  ;;  %v7790_v23 = vpop.permute.xlu2 %522 }
 0x455   :  { %12987 = vst [vmem:[#allocation58_spill] sm:$0xff] %v7782_v59 }
 0x456   :  { %12990 = vst [vmem:[#allocation61_spill] sm:$0xff] %v7790_v23 }
 0x45c   :  { %6977 = vset.pattern.permute.xlu2 %v7230_v7  ;;  %6976 = vset.pattern.permute.xlu1 %v7210_v2  ;;  %v7788_v24 = vpop.permute.xlu1 %406  ;;  %v7796_v21 = vpop.permute.xlu2 %534 }
 0x45d   :  { %12989 = vst [vmem:[#allocation60_spill] sm:$0xff] %v7788_v24 }
 0x45e   :  { %12992 = vst [vmem:[#allocation63_spill] sm:$0xff] %v7796_v21 }
 0x464   :  { %1104 = vperm.xlu2 %6977, %v7482_v41   ;;  %1098 = vperm.xlu1 %6976, %v7482_v41   ;;  %v7794_v35 = vpop.permute.xlu1 %424  ;;  %v7802_v59 = vpop.permute.xlu2 %554 }
 0x465   :  { %12991 = vst [vmem:[#allocation62_spill] sm:$0xff] %v7794_v35 }
 0x46c   :  { %6979 = vset.pattern.permute.xlu2 %v7250_v12  ;;  %6978 = vset.pattern.permute.xlu1 %v7253_v13  ;;  %v7800_v46 = vpop.permute.xlu1 %436  ;;  %v7808_v24 = vpop.permute.xlu2 %566 }
 0x46d   :  { %12993 = vst [vmem:[#allocation64_spill] sm:$0xff] %v7800_v46 }
 0x474   :  { %1116 = vperm.xlu2 %6979, %v7482_v41   ;;  %1110 = vperm.xlu1 %6978, %v7482_v41   ;;  %v7806_v23 = vpop.permute.xlu1 %456  ;;  %v7814_v35 = vpop.permute.xlu2 %584 }
 0x475   :  { %12995 = vst [vmem:[#allocation66_spill] sm:$0xff] %v7814_v35 }
 0x47c   :  { %6981 = vset.pattern.permute.xlu2 %v7265_v15  ;;  %6980 = vset.pattern.permute.xlu1 %v7268_v16  ;;  %v7812_v21 = vpop.permute.xlu1 %468  ;;  %v7820_v63 = vpop.permute.xlu2 %596 }
 0x47d   :  { %12994 = vst [vmem:[#allocation65_spill] sm:$0xff] %v7812_v21 }
 0x47e   :  { %12997 = vst [vmem:[#allocation68_spill] sm:$0xff] %v7820_v63 }
 0x484   :  { %1134 = vperm.xlu2 %6981, %v7482_v41   ;;  %1128 = vperm.xlu1 %6980, %v7482_v41   ;;  %v7818_v46 = vpop.permute.xlu1 %486  ;;  %v7826_v58 = vpop.permute.xlu2 %614 }
 0x485   :  { %12996 = vst [vmem:[#allocation67_spill] sm:$0xff] %v7818_v46 }
 0x486   :  { %12999 = vst [vmem:[#allocation70_spill] sm:$0xff] %v7826_v58 }
 0x48c   :  { %6983 = vset.pattern.permute.xlu2 %v7277_v17  ;;  %6982 = vset.pattern.permute.xlu1 %v7280_v18  ;;  %v7824_v22 = vpop.permute.xlu1 %498  ;;  %v7832_v55 = vpop.permute.xlu2 %626 }
 0x48d   :  { %12998 = vst [vmem:[#allocation69_spill] sm:$0xff] %v7824_v22 }
 0x48e   :  { %13001 = vst [vmem:[#allocation72_spill] sm:$0xff] %v7832_v55 }
 0x494   :  { %1146 = vperm.xlu2 %6983, %v7482_v41   ;;  %1140 = vperm.xlu1 %6982, %v7482_v41   ;;  %v7830_v57 = vpop.permute.xlu1 %516 }
 0x495   :  { %13000 = vst [vmem:[#allocation71_spill] sm:$0xff] %v7830_v57 }
 0x49c   :  { %6985 = vset.pattern.permute.xlu2 %v7289_v19  ;;  %6984 = vset.pattern.permute.xlu1 %v7292_v20  ;;  %v7836_v63 = vpop.permute.xlu1 %528 }
 0x49d   :  { %13002 = vst [vmem:[#allocation73_spill] sm:$0xff] %v7836_v63 }
 0x4a4   :  { %1164 = vperm.xlu2 %6985, %v7482_v41   ;;  %1158 = vperm.xlu1 %6984, %v7482_v41   ;;  %v7838_v41 = vpop.permute.xlu2 %644  ;;  %v7842_v58 = vpop.permute.xlu1 %547 }
 0x4a5   :  { %13003 = vst [vmem:[#allocation74_spill] sm:$0xff] %v7838_v41 }
 0x4a6   :  { %13004 = vst [vmem:[#allocation75_spill] sm:$0xff] %v7842_v58 }
 0x4ac   :  { %6987 = vset.pattern.permute.xlu2 %v7207_v1  ;;  %6986 = vset.pattern.permute.xlu1 %v7207_v1  ;;  %v7844_v22 = vpop.permute.xlu2 %658  ;;  %v7848_v55 = vpop.permute.xlu1 %560 }
 0x4b4   :  { %1178 = vperm.xlu2 %6987, %v7256_v14   ;;  %1171 = vperm.xlu1 %6986, %v1166_v56   ;;  %v7850_v57 = vpop.permute.xlu2 %676  ;;  %v7854_v56 = vpop.permute.xlu1 %578 }
 0x4b5   :  { %13005 = vst [vmem:[#allocation76_spill] sm:$0xff] %v7850_v57 }
 0x4b6   :  { %13006 = vst [vmem:[#allocation77_spill] sm:$0xff] %v7854_v56 }
 0x4bc   :  { %6990 = vset.pattern.permute.xlu2 %v7233_v8  ;;  %6989 = vset.pattern.permute.xlu1 %v7213_v3  ;;  %v7856_v41 = vpop.permute.xlu2 %688  ;;  %v7860_v58 = vpop.permute.xlu1 %590 }
 0x4bd   :  { %13007 = vst [vmem:[#allocation78_spill] sm:$0xff] %v7856_v41 }
 0x4be   :  { %13008 = vst [vmem:[#allocation79_spill] sm:$0xff] %v7860_v58 }
 0x4c4   :  { %1196 = vperm.xlu2 %6990, %v7256_v14   ;;  %1190 = vperm.xlu1 %6989, %v7256_v14   ;;  %v7862_v63 = vpop.permute.xlu2 %706  ;;  %v7866_v29 = vpop.permute.xlu1 %608 }
 0x4c5   :  { %13009 = vst [vmem:[#allocation80_spill] sm:$0xff] %v7862_v63 }
 0x4c6   :  { %13010 = vst [vmem:[#allocation81_spill] sm:$0xff] %v7866_v29 }
 0x4cc   :  { %6992 = vset.pattern.permute.xlu2 %v7230_v7  ;;  %6991 = vset.pattern.permute.xlu1 %v7210_v2  ;;  %v7868_v46 = vpop.permute.xlu2 %718  ;;  %v7872_v48 = vpop.permute.xlu1 %620 }
 0x4cd   :  { %13011 = vst [vmem:[#allocation82_spill] sm:$0xff] %v7868_v46 }
 0x4ce   :  { %13012 = vst [vmem:[#allocation83_spill] sm:$0xff] %v7872_v48 }
 0x4d4   :  { %1208 = vperm.xlu2 %6992, %v7256_v14   ;;  %1202 = vperm.xlu1 %6991, %v7256_v14   ;;  %v7876_v49 = vpop.permute.xlu1 %638  ;;  %v7878_v63 = vpop.permute.xlu2 %736 }
 0x4d5   :  { %13013 = vst [vmem:[#allocation84_spill] sm:$0xff] %v7876_v49 }
 0x4d6   :  { %13014 = vst [vmem:[#allocation85_spill] sm:$0xff] %v7878_v63 }
 0x4dc   :  { %6995 = vset.pattern.permute.xlu2 %v7330_v26  ;;  %6994 = vset.pattern.permute.xlu1 %v7250_v12  ;;  %v7882_v29 = vpop.permute.xlu1 %651  ;;  %v7884_v46 = vpop.permute.xlu2 %748 }
 0x4dd   :  { %13015 = vst [vmem:[#allocation86_spill] sm:$0xff] %v7882_v29 }
 0x4de   :  { %13016 = vst [vmem:[#allocation87_spill] sm:$0xff] %v7884_v46 }
 0x4e4   :  { %1226 = vperm.xlu2 %6995, %v7256_v14   ;;  %1220 = vperm.xlu1 %6994, %v7256_v14   ;;  %v7888_v48 = vpop.permute.xlu1 %670  ;;  %v7890_v28 = vpop.permute.xlu2 %768 }
 0x4ec   :  { %6997 = vset.pattern.permute.xlu2 %v7265_v15  ;;  %6996 = vset.pattern.permute.xlu1 %v7268_v16  ;;  %v7894_v49 = vpop.permute.xlu1 %682  ;;  %v7896_v63 = vpop.permute.xlu2 %780 }
 0x4ed   :  { %13017 = vst [vmem:[#allocation88_spill] sm:$0xff] %v7894_v49 }
 0x4ee   :  { %13018 = vst [vmem:[#allocation89_spill] sm:$0xff] %v7896_v63 }
 0x4f4   :  { %1238 = vperm.xlu2 %6997, %v7256_v14   ;;  %1232 = vperm.xlu1 %6996, %v7256_v14   ;;  %v7900_v29 = vpop.permute.xlu1 %700  ;;  %v7902_v46 = vpop.permute.xlu2 %798 }
 0x4f5   :  { %13019 = vst [vmem:[#allocation90_spill] sm:$0xff] %v7900_v29 }
 0x4f6   :  { %13020 = vst [vmem:[#allocation91_spill] sm:$0xff] %v7902_v46 }
 0x4fc   :  { %7000 = vset.pattern.permute.xlu2 %v7345_v27  ;;  %6999 = vset.pattern.permute.xlu1 %v7277_v17  ;;  %v7906_v58 = vpop.permute.xlu1 %712  ;;  %v7908_v53 = vpop.permute.xlu2 %810 }
 0x4fd   :  { %13021 = vst [vmem:[#allocation92_spill] sm:$0xff] %v7906_v58 }
 0x4fe   :  { %13022 = vst [vmem:[#allocation93_spill] sm:$0xff] %v7908_v53 }
 0x504   :  { %1256 = vperm.xlu2 %7000, %v7256_v14   ;;  %1250 = vperm.xlu1 %6999, %v7256_v14   ;;  %v7912_v5 = vpop.permute.xlu1 %730  ;;  %v7914_v10 = vpop.permute.xlu2 %828 }
 0x505   :  { %13023 = vst [vmem:[#allocation94_spill] sm:$0xff] %v7912_v5 }
 0x506   :  { %13024 = vst [vmem:[#allocation95_spill] sm:$0xff] %v7914_v10 }
 0x50c   :  { %7002 = vset.pattern.permute.xlu2 %v7289_v19  ;;  %7001 = vset.pattern.permute.xlu1 %v7292_v20  ;;  %v7918_v29 = vpop.permute.xlu1 %742  ;;  %v7920_v46 = vpop.permute.xlu2 %840 }
 0x50d   :  { %13025 = vst [vmem:[#allocation96_spill] sm:$0xff] %v7918_v29 }
 0x50e   :  { %13026 = vst [vmem:[#allocation97_spill] sm:$0xff] %v7920_v46 }
 0x514   :  { %1268 = vperm.xlu2 %7002, %v7256_v14   ;;  %1262 = vperm.xlu1 %7001, %v7256_v14   ;;  %v7924_v14 = vpop.permute.xlu1 %762  ;;  %v7926_v58 = vpop.permute.xlu2 %859 }
 0x515   :  { %13027 = vst [vmem:[#allocation98_spill] sm:$0xff] %v7926_v58 }
 0x51c   :  { %7004 = vset.pattern.permute.xlu2 %v7216_v4  ;;  %7003 = vset.pattern.permute.xlu1 %v7207_v1  ;;  %v7930_v5 = vpop.permute.xlu1 %774  ;;  %v7932_v10 = vpop.permute.xlu2 %872 }
 0x524   :  { %1288 = vperm.xlu2 %7004, %v7321_v25   ;;  %1282 = vperm.xlu1 %7003, %v7321_v25   ;;  %v7936_v29 = vpop.permute.xlu1 %792  ;;  %v7938_v46 = vpop.permute.xlu2 %890 }
 0x525   :  { %13028 = vst [vmem:[#allocation99_spill] sm:$0xff] %v7936_v29 }
 0x526   :  { %13029 = vst [vmem:[#allocation100_spill] sm:$0xff] %v7938_v46  ;;  %v7970_v46 = vpop.permute.xlu0 %1214 }
 0x527   :  { %13039 = vst [vmem:[#allocation110_spill] sm:$0xff] %v7970_v46 }
 0x52c   :  { %7006 = vset.pattern.permute.xlu2 %v7233_v8  ;;  %7005 = vset.pattern.permute.xlu1 %v7213_v3  ;;  %v7942_v58 = vpop.permute.xlu1 %804  ;;  %v7944_v53 = vpop.permute.xlu2 %902 }
 0x52d   :  { %13030 = vst [vmem:[#allocation101_spill] sm:$0xff] %v7942_v58 }
 0x52e   :  { %13031 = vst [vmem:[#allocation102_spill] sm:$0xff] %v7944_v53 }
 0x534   :  { %1300 = vperm.xlu2 %7006, %v7321_v25   ;;  %1294 = vperm.xlu1 %7005, %v7321_v25   ;;  %v7948_v41 = vpop.permute.xlu1 %822  ;;  %v7950_v35 = vpop.permute.xlu2 %920 }
 0x535   :  { %13032 = vst [vmem:[#allocation103_spill] sm:$0xff] %v7948_v41 }
 0x536   :  { %13033 = vst [vmem:[#allocation104_spill] sm:$0xff] %v7950_v35 }
 0x53c   :  { %7009 = vset.pattern.permute.xlu2 %v7253_v13  ;;  %7008 = vset.pattern.permute.xlu1 %v7230_v7  ;;  %v7954_v31 = vpop.permute.xlu1 %834  ;;  %v7956_v29 = vpop.permute.xlu2 %932 }
 0x53d   :  { %13034 = vst [vmem:[#allocation105_spill] sm:$0xff] %v7954_v31 }
 0x53e   :  { %13035 = vst [vmem:[#allocation106_spill] sm:$0xff] %v7956_v29 }
 0x544   :  { %1318 = vperm.xlu2 %7009, %v7321_v25   ;;  %1312 = vperm.xlu1 %7008, %v7321_v25   ;;  %v7960_v58 = vpop.permute.xlu1 %852  ;;  %v7962_v53 = vpop.permute.xlu2 %950 }
 0x545   :  { %13036 = vst [vmem:[#allocation107_spill] sm:$0xff] %v7960_v58  ;;  %v7978_v58 = vpop.permute.xlu0 %204 }
 0x546   :  { %13037 = vst [vmem:[#allocation108_spill] sm:$0xff] %v7962_v53 }
 0x547   :  { %13042 = vst [vmem:[#allocation113_spill] sm:$0xff] %v7978_v58  ;;  %v1374_v58 = vperm.slane %v7425_v36, 4 }
 0x54c   :  { %7011 = vset.pattern.permute.xlu2 %v7330_v26  ;;  %7010 = vset.pattern.permute.xlu1 %v7250_v12  ;;  %v7966_v41 = vpop.permute.xlu1 %866  ;;  %v7968_v35 = vpop.permute.xlu2 %963 }
 0x54d   :  { %13038 = vst [vmem:[#allocation109_spill] sm:$0xff] %v7968_v35  ;;  %v7988_v35 = vpop.permute.xlu0 %724 }
 0x54e   :  { %13045 = vst [vmem:[#allocation116_spill] sm:$0xff] %v7988_v35 }
 0x554   :  { %1330 = vperm.xlu2 %7011, %v7321_v25   ;;  %1324 = vperm.xlu1 %7010, %v7321_v25   ;;  %v7974_v31 = vpop.permute.xlu1 %884  ;;  %v7976_v29 = vpop.permute.xlu2 %982 }
 0x555   :  { %13040 = vst [vmem:[#allocation111_spill] sm:$0xff] %v7974_v31 }
 0x556   :  { %13041 = vst [vmem:[#allocation112_spill] sm:$0xff] %v7976_v29 }
 0x55c   :  { %7014 = vset.pattern.permute.xlu2 %v7280_v18  ;;  %7013 = vset.pattern.permute.xlu1 %v7265_v15  ;;  %v7982_v53 = vpop.permute.xlu1 %896  ;;  %v7984_v62 = vpop.permute.xlu2 %994 }
 0x55d   :  { %13043 = vst [vmem:[#allocation114_spill] sm:$0xff] %v7982_v53  ;;  %v7998_v53 = vpop.permute.xlu0 %1244 }
 0x55e   :  { %13044 = vst [vmem:[#allocation115_spill] sm:$0xff] %v7984_v62 }
 0x55f   :  { %13049 = vst [vmem:[#allocation120_spill] sm:$0xff] %v7998_v53 }
 0x564   :  { %1348 = vperm.xlu2 %7014, %v7321_v25   ;;  %1342 = vperm.xlu1 %7013, %v7321_v25   ;;  %v7990_v46 = vpop.permute.xlu1 %914  ;;  %v7992_v51 = vpop.permute.xlu2 %1012 }
 0x565   :  { %13046 = vst [vmem:[#allocation117_spill] sm:$0xff] %v7990_v46 }
 0x566   :  { %13047 = vst [vmem:[#allocation118_spill] sm:$0xff] %v7992_v51  ;;  %v8008_v51 = vpop.permute.xlu0 %266 }
 0x567   :  { %13053 = vst [vmem:[#allocation124_spill] sm:$0xff] %v8008_v51 }
 0x56c   :  { %7016 = vset.pattern.permute.xlu2 %v7345_v27  ;;  %7015 = vset.pattern.permute.xlu1 %v7277_v17  ;;  %v7996_v56 = vpop.permute.xlu1 %926  ;;  %v8000_v62 = vpop.permute.xlu2 %1024 }
 0x56d   :  { %13048 = vst [vmem:[#allocation119_spill] sm:$0xff] %v7996_v56 }
 0x56e   :  { %13050 = vst [vmem:[#allocation121_spill] sm:$0xff] %v8000_v62 }
 0x574   :  { %1360 = vperm.xlu2 %7016, %v7321_v25   ;;  %1354 = vperm.xlu1 %7015, %v7321_v25   ;;  %v8004_v35 = vpop.permute.xlu1 %944  ;;  %v8006_v46 = vpop.permute.xlu2 %1042 }
 0x575   :  { %13051 = vst [vmem:[#allocation122_spill] sm:$0xff] %v8004_v35 }
 0x576   :  { %13052 = vst [vmem:[#allocation123_spill] sm:$0xff] %v8006_v46 }
 0x57c   :  { %7019 = vset.pattern.permute.xlu2 %v7207_v1  ;;  %7018 = vset.pattern.permute.xlu1 %v7289_v19  ;;  %v8016_v56 = vpop.permute.xlu2 %1054 }
 0x57d   :  { %13056 = vst [vmem:[#allocation127_spill] sm:$0xff] %v8016_v56 }
 0x584   :  { %1379 = vperm.xlu2 %7019, %v1374_v58   ;;  %1372 = vperm.xlu1 %7018, %v7321_v25   ;;  %v8012_v25 = vpop.permute.xlu1 %956  ;;  %v8014_v58 = vpop.permute.xlu0 %786 }
 0x585   :  { %13054 = vst [vmem:[#allocation125_spill] sm:$0xff] %v8012_v25  ;;  %v8024_v46 = vpop.permute.xlu2 %1074 }
 0x586   :  { %13055 = vst [vmem:[#allocation126_spill] sm:$0xff] %v8014_v58 }
 0x58c   :  { %7021 = vset.pattern.permute.xlu2 %v7216_v4  ;;  %7020 = vset.pattern.permute.xlu1 %v7207_v1  ;;  %v8020_v62 = vpop.permute.xlu1 %976  ;;  %v8022_v35 = vpop.permute.xlu0 %1306 }
 0x58d   :  { %13057 = vst [vmem:[#allocation128_spill] sm:$0xff] %v8022_v35  ;;  %v8030_v25 = vpop.permute.xlu2 %1086 }
 0x58e   :  { %13059 = vst [vmem:[#allocation130_spill] sm:$0xff] %v8030_v25 }
 0x594   :  { %1392 = vperm.xlu2 %7021, %v7372_v30   ;;  %1386 = vperm.xlu1 %7020, %v7372_v30   ;;  %v8028_v53 = vpop.permute.xlu1 %988  ;;  %v8034_v56 = vpop.permute.xlu0 %296 }
 0x595   :  { %13058 = vst [vmem:[#allocation129_spill] sm:$0xff] %v8028_v53  ;;  %v8044_v11 = vpop.permute.xlu2 %1104 }
 0x596   :  { %13060 = vst [vmem:[#allocation131_spill] sm:$0xff] %v8034_v56 }
 0x597   :  { %13064 = vst [vmem:[#allocation135_spill] sm:$0xff] %v8044_v11 }
 0x59c   :  { %7024 = vset.pattern.permute.xlu2 %v7210_v2  ;;  %7023 = vset.pattern.permute.xlu1 %v7233_v8  ;;  %v8036_v49 = vpop.permute.xlu1 %1006  ;;  %v8040_v35 = vpop.permute.xlu0 %816 }
 0x59d   :  { %13061 = vst [vmem:[#allocation132_spill] sm:$0xff] %v8036_v49  ;;  %v8050_v37 = vpop.permute.xlu2 %1116 }
 0x59e   :  { %13062 = vst [vmem:[#allocation133_spill] sm:$0xff] %v8040_v35 }
 0x59f   :  { %13066 = vst [vmem:[#allocation137_spill] sm:$0xff] %v8050_v37 }
 0x5a4   :  { %1410 = vperm.xlu2 %7024, %v7372_v30   ;;  %1404 = vperm.xlu1 %7023, %v7372_v30   ;;  %v8042_v51 = vpop.permute.xlu1 %1018  ;;  %v8052_v56 = vpop.permute.xlu0 %1336 }
 0x5a5   :  { %13063 = vst [vmem:[#allocation134_spill] sm:$0xff] %v8042_v51  ;;  %v8058_v35 = vpop.permute.xlu2 %1134 }
 0x5a6   :  { %13067 = vst [vmem:[#allocation138_spill] sm:$0xff] %v8052_v56 }
 0x5a7   :  { %13069 = vst [vmem:[#allocation140_spill] sm:$0xff] %v8058_v35 }
 0x5ac   :  { %7026 = vset.pattern.permute.xlu2 %v7253_v13  ;;  %7025 = vset.pattern.permute.xlu1 %v7230_v7  ;;  %v8048_v58 = vpop.permute.xlu1 %1036  ;;  %v8060_v51 = vpop.permute.xlu0 %326 }
 0x5ad   :  { %13065 = vst [vmem:[#allocation136_spill] sm:$0xff] %v8048_v58  ;;  %v8066_v58 = vpop.permute.xlu2 %1146 }
 0x5ae   :  { %13070 = vst [vmem:[#allocation141_spill] sm:$0xff] %v8060_v51 }
 0x5af   :  { %13072 = vst [vmem:[#allocation143_spill] sm:$0xff] %v8066_v58 }
 0x5b4   :  { %1422 = vperm.xlu2 %7026, %v7372_v30   ;;  %1416 = vperm.xlu1 %7025, %v7372_v30   ;;  %v8056_v49 = vpop.permute.xlu1 %1048  ;;  %v8068_v37 = vpop.permute.xlu0 %846 }
 0x5b5   :  { %13068 = vst [vmem:[#allocation139_spill] sm:$0xff] %v8056_v49  ;;  %v8074_v49 = vpop.permute.xlu2 %1164 }
 0x5b6   :  { %13073 = vst [vmem:[#allocation144_spill] sm:$0xff] %v8068_v37 }
 0x5b7   :  { %13074 = vst [vmem:[#allocation145_spill] sm:$0xff] %v8074_v49 }
 0x5bc   :  { %7029 = vset.pattern.permute.xlu2 %v7268_v16  ;;  %7028 = vset.pattern.permute.xlu1 %v7330_v26  ;;  %v8064_v11 = vpop.permute.xlu1 %1067  ;;  %v8076_v35 = vpop.permute.xlu0 %1366 }
 0x5bd   :  { %13071 = vst [vmem:[#allocation142_spill] sm:$0xff] %v8064_v11  ;;  %v8082_v11 = vpop.permute.xlu2 %1178 }
 0x5be   :  { %13075 = vst [vmem:[#allocation146_spill] sm:$0xff] %v8076_v35 }
 0x5c4   :  { %1440 = vperm.xlu2 %7029, %v7372_v30   ;;  %1434 = vperm.xlu1 %7028, %v7372_v30   ;;  %v8072_v56 = vpop.permute.xlu1 %1080  ;;  %v8086_v37 = vpop.permute.xlu0 %358 }
 0x5c5   :  { %13077 = vst [vmem:[#allocation148_spill] sm:$0xff] %v8086_v37  ;;  %v8090_v31 = vpop.permute.xlu2 %1196  ;;  %v1708_v37 = vrot.slane %v7640_v0, 4 }
 0x5c6   :  { %13079 = vst [vmem:[#allocation150_spill] sm:$0xff] %v8090_v31 }
 0x5cc   :  { %7031 = vset.pattern.permute.xlu2 %v7280_v18  ;;  %7030 = vset.pattern.permute.xlu1 %v7265_v15  ;;  %v8080_v51 = vpop.permute.xlu1 %1098  ;;  %v8094_v49 = vpop.permute.xlu0 %878 }
 0x5cd   :  { %13076 = vst [vmem:[#allocation147_spill] sm:$0xff] %v8080_v51  ;;  %v1478_v51 = vperm.slane %v7425_v36, 5  ;;  %v8099_v54 = vpop.permute.xlu2 %1208 }
 0x5ce   :  { %13080 = vst [vmem:[#allocation151_spill] sm:$0xff] %v8094_v49 }
 0x5cf   :  { %13082 = vst [vmem:[#allocation153_spill] sm:$0xff] %v8099_v54 }
 0x5d4   :  { %1452 = vperm.xlu2 %7031, %v7372_v30   ;;  %1446 = vperm.xlu1 %7030, %v7372_v30   ;;  %v8088_v58 = vpop.permute.xlu1 %1110 }
 0x5d5   :  { %13078 = vst [vmem:[#allocation149_spill] sm:$0xff] %v8088_v58  ;;  %v8104_v58 = vpop.permute.xlu0 %1398  ;;  %v8106_v39 = vpop.permute.xlu2 %1226 }
 0x5d6   :  { %13084 = vst [vmem:[#allocation155_spill] sm:$0xff] %v8106_v39 }
 0x5dc   :  { %7034 = vset.pattern.permute.xlu2 %v7292_v20  ;;  %7033 = vset.pattern.permute.xlu1 %v7345_v27  ;;  %v8096_v35 = vpop.permute.xlu1 %1128 }
 0x5dd   :  { %13081 = vst [vmem:[#allocation152_spill] sm:$0xff] %v8096_v35  ;;  %v8112_v35 = vpop.permute.xlu0 %388  ;;  %v8114_v36 = vpop.permute.xlu2 %1238 }
 0x5de   :  { %13086 = vst [vmem:[#allocation157_spill] sm:$0xff] %v8112_v35 }
 0x5df   :  { %13087 = vst [vmem:[#allocation158_spill] sm:$0xff] %v8114_v36 }
 0x5e4   :  { %1470 = vperm.xlu2 %7034, %v7372_v30   ;;  %1464 = vperm.xlu1 %7033, %v7372_v30   ;;  %v8102_v53 = vpop.permute.xlu1 %1140 }
 0x5e5   :  { %13083 = vst [vmem:[#allocation154_spill] sm:$0xff] %v8102_v53  ;;  %v8122_v53 = vpop.permute.xlu2 %1256 }
 0x5e6   :  { %13090 = vst [vmem:[#allocation161_spill] sm:$0xff] %v8122_v53 }
 0x5ec   :  { %7036 = vset.pattern.permute.xlu2 %v7207_v1  ;;  %7035 = vset.pattern.permute.xlu1 %v7289_v19  ;;  %v8110_v31 = vpop.permute.xlu1 %1158 }
 0x5ed   :  { %13085 = vst [vmem:[#allocation156_spill] sm:$0xff] %v8110_v31  ;;  %v8128_v31 = vpop.permute.xlu2 %1268 }
 0x5ee   :  { %13091 = vst [vmem:[#allocation162_spill] sm:$0xff] %v8128_v31 }
 0x5f4   :  { %1483 = vperm.xlu2 %7036, %v1478_v51   ;;  %1476 = vperm.xlu1 %7035, %v7372_v30   ;;  %v8118_v30 = vpop.permute.xlu1 %1171  ;;  %v8120_v51 = vpop.permute.xlu0 %908 }
 0x5f5   :  { %13088 = vst [vmem:[#allocation159_spill] sm:$0xff] %v8118_v30  ;;  %v8136_v30 = vpop.permute.xlu2 %1288 }
 0x5f6   :  { %13089 = vst [vmem:[#allocation160_spill] sm:$0xff] %v8120_v51 }
 0x5fc   :  { %7039 = vset.pattern.permute.xlu2 %v7213_v3  ;;  %7038 = vset.pattern.permute.xlu1 %v7216_v4  ;;  %v8126_v39 = vpop.permute.xlu1 %1190  ;;  %v8130_v35 = vpop.permute.xlu0 %1428 }
 0x5fd   :  { %13092 = vst [vmem:[#allocation163_spill] sm:$0xff] %v8130_v35  ;;  %v8144_v51 = vpop.permute.xlu2 %1300 }
 0x5fe   :  { %13096 = vst [vmem:[#allocation167_spill] sm:$0xff] %v8144_v51 }
 0x604   :  { %1502 = vperm.xlu2 %7039, %v7431_v38   ;;  %1496 = vperm.xlu1 %7038, %v7431_v38   ;;  %v8134_v36 = vpop.permute.xlu1 %1202  ;;  %v8140_v53 = vpop.permute.xlu0 %418 }
 0x605   :  { %13093 = vst [vmem:[#allocation164_spill] sm:$0xff] %v8134_v36  ;;  %v8152_v54 = vpop.permute.xlu2 %1318 }
 0x606   :  { %13094 = vst [vmem:[#allocation165_spill] sm:$0xff] %v8140_v53 }
 0x607   :  { %13099 = vst [vmem:[#allocation170_spill] sm:$0xff] %v8152_v54 }
 0x60c   :  { %7041 = vset.pattern.permute.xlu2 %v7210_v2  ;;  %7040 = vset.pattern.permute.xlu1 %v7233_v8  ;;  %v8142_v8 = vpop.permute.xlu1 %1220  ;;  %v8148_v31 = vpop.permute.xlu0 %938 }
 0x60d   :  { %13095 = vst [vmem:[#allocation166_spill] sm:$0xff] %v8142_v8  ;;  %v8160_v8 = vpop.permute.xlu2 %1330 }
 0x60e   :  { %13097 = vst [vmem:[#allocation168_spill] sm:$0xff] %v8148_v31 }
 0x60f   :  { %13102 = vst [vmem:[#allocation173_spill] sm:$0xff] %v8160_v8 }
 0x614   :  { %1514 = vperm.xlu2 %7041, %v7431_v38   ;;  %1508 = vperm.xlu1 %7040, %v7431_v38   ;;  %v8150_v35 = vpop.permute.xlu1 %1232  ;;  %v8158_v53 = vpop.permute.xlu0 %1458 }
 0x615   :  { %13098 = vst [vmem:[#allocation169_spill] sm:$0xff] %v8150_v35  ;;  %v8168_v35 = vpop.permute.xlu2 %1348 }
 0x616   :  { %13101 = vst [vmem:[#allocation172_spill] sm:$0xff] %v8158_v53 }
 0x617   :  { %13104 = vst [vmem:[#allocation175_spill] sm:$0xff] %v8168_v35 }
 0x61c   :  { %7044 = vset.pattern.permute.xlu2 %v7250_v12  ;;  %7043 = vset.pattern.permute.xlu1 %v7253_v13  ;;  %v8156_v36 = vpop.permute.xlu1 %1250  ;;  %v8166_v31 = vpop.permute.xlu0 %34 }
 0x61d   :  { %13100 = vst [vmem:[#allocation171_spill] sm:$0xff] %v8156_v36  ;;  %v8176_v53 = vpop.permute.xlu2 %1360 }
 0x61e   :  { %13106 = vst [vmem:[#allocation177_spill] sm:$0xff] %v8176_v53 }
 0x624   :  { %1532 = vperm.xlu2 %7044, %v7431_v38   ;;  %1526 = vperm.xlu1 %7043, %v7431_v38   ;;  %v8164_v51 = vpop.permute.xlu1 %1262  ;;  %v8174_v36 = vpop.permute.xlu0 %235 }
 0x625   :  { %13103 = vst [vmem:[#allocation174_spill] sm:$0xff] %v8164_v51  ;;  %v8182_v51 = vpop.permute.xlu2 %1379 }
 0x626   :  { %13105 = vst [vmem:[#allocation176_spill] sm:$0xff] %v8174_v36 }
 0x627   :  { %13108 = vst [vmem:[#allocation179_spill] sm:$0xff] %v8182_v51 }
 0x62c   :  { %7046 = vset.pattern.permute.xlu2 %v7268_v16  ;;  %7045 = vset.pattern.permute.xlu1 %v7330_v26  ;;  %v8172_v26 = vpop.permute.xlu1 %1282  ;;  %v8184_v54 = vpop.permute.xlu0 %450 }
 0x62d   :  { %v8190_v21 = vpop.permute.xlu2 %1392 }
 0x634   :  { %1544 = vperm.xlu2 %7046, %v7431_v38   ;;  %1538 = vperm.xlu1 %7045, %v7431_v38   ;;  %v8180_v8 = vpop.permute.xlu1 %1294  ;;  %v8194_v36 = vpop.permute.xlu0 %755 }
 0x635   :  { %13107 = vst [vmem:[#allocation178_spill] sm:$0xff] %v8180_v8  ;;  %v8198_v6 = vpop.permute.xlu2 %1410 }
 0x636   :  { %13110 = vst [vmem:[#allocation181_spill] sm:$0xff] %v8194_v36 }
 0x637   :  { %13112 = vst [vmem:[#allocation183_spill] sm:$0xff] %v8198_v6 }
 0x63c   :  { %7049 = vset.pattern.permute.xlu2 %v7277_v17  ;;  %7048 = vset.pattern.permute.xlu1 %v7280_v18  ;;  %v8188_v35 = vpop.permute.xlu1 %1312 }
 0x63d   :  { %13109 = vst [vmem:[#allocation180_spill] sm:$0xff] %v8188_v35  ;;  %v8206_v35 = vld [vmem:[#allocation2 + $0x18] sm:$0xff]  ;;  %v8209_v32 = vpop.permute.xlu2 %1422 }
 0x63e   :  { %v1582_v57 = vperm.slane %v8206_v35, 6  ;;  %13114 = vst [vmem:[#allocation185_spill] sm:$0xff] %v8209_v32 }
 0x644   :  { %1562 = vperm.xlu2 %7049, %v7431_v38   ;;  %1556 = vperm.xlu1 %7048, %v7431_v38   ;;  %v8196_v53 = vpop.permute.xlu1 %1324 }
 0x645   :  { %13111 = vst [vmem:[#allocation182_spill] sm:$0xff] %v8196_v53  ;;  %v8216_v53 = vpop.permute.xlu2 %1440 }
 0x646   :  { %13117 = vst [vmem:[#allocation188_spill] sm:$0xff] %v8216_v53 }
 0x64c   :  { %7051 = vset.pattern.permute.xlu2 %v7292_v20  ;;  %7050 = vset.pattern.permute.xlu1 %v7345_v27  ;;  %v8202_v51 = vpop.permute.xlu1 %1342  ;;  %v8204_v27 = vpop.permute.xlu0 %970 }
 0x64d   :  { %13113 = vst [vmem:[#allocation184_spill] sm:$0xff] %v8202_v51  ;;  %v8222_v6 = vpop.permute.xlu2 %1452 }
 0x64e   :  { %13119 = vst [vmem:[#allocation190_spill] sm:$0xff] %v8222_v6 }
 0x654   :  { %1574 = vperm.xlu2 %7051, %v7431_v38   ;;  %1568 = vperm.xlu1 %7050, %v7431_v38   ;;  %v8212_v38 = vpop.permute.xlu1 %1354  ;;  %v8214_v36 = vpop.permute.xlu0 %1275 }
 0x655   :  { %13115 = vst [vmem:[#allocation186_spill] sm:$0xff] %v8212_v38  ;;  %v8230_v38 = vpop.permute.xlu2 %1470 }
 0x656   :  { %13116 = vst [vmem:[#allocation187_spill] sm:$0xff] %v8214_v36 }
 0x657   :  { %13120 = vst [vmem:[#allocation191_spill] sm:$0xff] %v8230_v38 }
 0x65c   :  { %7054 = vset.pattern.permute.xlu2 %v7207_v1  ;;  %7053 = vset.pattern.permute.xlu1 %v7207_v1  ;;  %v8220_v51 = vpop.permute.xlu1 %1372  ;;  %v8224_v63 = vpop.permute.xlu0 %1490 }
 0x65d   :  { %13118 = vst [vmem:[#allocation189_spill] sm:$0xff] %v8220_v51  ;;  %v8238_v36 = vpop.permute.xlu2 %1483 }
 0x65e   :  { %13123 = vst [vmem:[#allocation194_spill] sm:$0xff] %v8238_v36 }
 0x664   :  { %1594 = vperm.xlu2 %7054, %v7488_v42   ;;  %1587 = vperm.xlu1 %7053, %v1582_v57   ;;  %v8228_v57 = vpop.permute.xlu1 %1386 }
 0x66c   :  { %7056 = vset.pattern.permute.xlu2 %v7213_v3  ;;  %7055 = vset.pattern.permute.xlu1 %v7216_v4  ;;  %v8234_v3 = vpop.permute.xlu0 %480  ;;  %v8236_v4 = vpop.permute.xlu1 %1404 }
 0x66d   :  { %13121 = vst [vmem:[#allocation192_spill] sm:$0xff] %v8234_v3 }
 0x66e   :  { %13122 = vst [vmem:[#allocation193_spill] sm:$0xff] %v8236_v4  ;;  %v1830_v4 = vrot.slane %v8224_v63, 4 }
 0x674   :  { %1606 = vperm.xlu2 %7056, %v7488_v42   ;;  %1600 = vperm.xlu1 %7055, %v7488_v42   ;;  %v8242_v51 = vpop.permute.xlu1 %1416  ;;  %v8244_v6 = vpop.permute.xlu0 %1000 }
 0x675   :  { %13124 = vst [vmem:[#allocation195_spill] sm:$0xff] %v8242_v51 }
 0x676   :  { %13125 = vst [vmem:[#allocation196_spill] sm:$0xff] %v8244_v6 }
 0x67c   :  { %7059 = vset.pattern.permute.xlu2 %v7230_v7  ;;  %7058 = vset.pattern.permute.xlu1 %v7210_v2  ;;  %v8248_v7 = vpop.permute.xlu1 %1434  ;;  %v8250_v2 = vpop.permute.xlu2 %1502 }
 0x67d   :  { %13126 = vst [vmem:[#allocation197_spill] sm:$0xff] %v8248_v7  ;;  %v8252_v38 = vpop.permute.xlu0 %1520 }
 0x67e   :  { %13127 = vst [vmem:[#allocation198_spill] sm:$0xff] %v8252_v38 }
 0x684   :  { %1624 = vperm.xlu2 %7059, %v7488_v42   ;;  %1618 = vperm.xlu1 %7058, %v7488_v42   ;;  %v8256_v36 = vpop.permute.xlu1 %1446  ;;  %v8258_v53 = vpop.permute.xlu2 %1514 }
 0x685   :  { %13128 = vst [vmem:[#allocation199_spill] sm:$0xff] %v8256_v36  ;;  %v8260_v32 = vpop.permute.xlu0 %510 }
 0x686   :  { %13129 = vst [vmem:[#allocation200_spill] sm:$0xff] %v8258_v53 }
 0x687   :  { %13130 = vst [vmem:[#allocation201_spill] sm:$0xff] %v8260_v32  ;;  %v1818_v32 = vrot.slane %v8082_v11, 4 }
 0x68c   :  { %7061 = vset.pattern.permute.xlu2 %v7250_v12  ;;  %7060 = vset.pattern.permute.xlu1 %v7253_v13  ;;  %v8264_v12 = vpop.permute.xlu1 %1464  ;;  %v8266_v13 = vpop.permute.xlu2 %1532 }
 0x68d   :  { %13131 = vst [vmem:[#allocation202_spill] sm:$0xff] %v8264_v12  ;;  %v8270_v7 = vpop.permute.xlu0 %1030 }
 0x68e   :  { %13132 = vst [vmem:[#allocation203_spill] sm:$0xff] %v8266_v13  ;;  %v7127_v13 = vmov 1983009808  }
 0x68f   :  { %13133 = vst [vmem:[#allocation204_spill] sm:$0xff] %v8270_v7  ;;  %v1699_v6 = vunpack.c.l.s4 %v7127_v13  ;;  %v1706_v7 = vrot.slane %v7764_v60, 4 }
 0x691   :  { %v1707_v13 = vsel %vm1694_vm0, %v1706_v7, %v7640_v0 }
 0x694   :  { %1636 = vperm.xlu2 %7061, %v7488_v42   ;;  %1630 = vperm.xlu1 %7060, %v7488_v42   ;;  %v8272_v3 = vpop.permute.xlu1 %1476  ;;  %v8274_v36 = vpop.permute.xlu2 %1544 }
 0x695   :  { %13134 = vst [vmem:[#allocation205_spill] sm:$0xff] %v8272_v3  ;;  %v8282_v12 = vpop.permute.xlu0 %1550  ;;  %v8291_v3 = vunpack.c.0.s8 %v1699_v6  ;;  %v1693_v6 = vrot.slane %v7702_v40, 4 }
 0x696   :  { %13135 = vst [vmem:[#allocation206_spill] sm:$0xff] %v8274_v36  ;;  %v1806_v36 = vrot.slane %v8024_v46, 4 }
 0x697   :  { %13137 = vst [vmem:[#allocation208_spill] sm:$0xff] %v8282_v12  ;;  %v1713_v53 = vperm.slane %v1707_v13, %v8291_v3  ;;  %v7128_v13 = vmov 1934713408  }
 0x698   :  { %v1807_v7 = vsel %vm1694_vm0, %v1806_v36, %v7966_v41 }
 0x699   :  { %v1742_v49 = vrot.slane %v1713_v53, 4  ;;  %v8320_v52 = vperm.slane %v1807_v7, %v8291_v3 }
 0x69c   :  { %7064 = vset.pattern.permute.xlu2 %v7265_v15  ;;  %7063 = vset.pattern.permute.xlu1 %v7268_v16  ;;  %v8278_v15 = vpop.permute.xlu1 %1496 }
 0x69e   :  { %v8280_v16 = vpop.permute.xlu2 %1562 }
 0x69f   :  { %13136 = vst [vmem:[#allocation207_spill] sm:$0xff] %v8280_v16 }
 0x6a4   :  { %1654 = vperm.xlu2 %7064, %v7488_v42   ;;  %1648 = vperm.xlu1 %7063, %v7488_v42   ;;  %v8293_v16 = vpop.permute.xlu1 %1508 }
 0x6a5   :  { %13138 = vst [vmem:[#allocation209_spill] sm:$0xff] %v8293_v16 }
 0x6ac   :  { %7066 = vset.pattern.permute.xlu2 %v7277_v17  ;;  %7065 = vset.pattern.permute.xlu1 %v7280_v18  ;;  %v1730_v17 = vrot.slane %v7924_v14, 4  ;;  %v1819_v18 = vsel %vm1694_vm0, %v1818_v32, %v8204_v27  ;;  %v8306_v32 = vpop.permute.xlu0 %540  ;;  %v8322_v9 = vpop.permute.xlu1 %1526 }
 0x6ad   :  { %v8301_v38 = vperm.slane %v1819_v18, %v8291_v3  ;;  %13140 = vst [vmem:[#allocation211_spill] sm:$0xff] %v8306_v32  ;;  %v1747_v32 = vunpack.c.l.s4 %v7128_v13  ;;  %v1844_v13 = vrot.slane %v8228_v57, 4 }
 0x6ae   :  { %v8295_v12 = vpop.permute.xlu2 %1574  ;;  %v1731_v51 = vsel %vm1694_vm0, %v1730_v17, %v7802_v59  ;;  %v1695_v17 = vsel %vm1694_vm0, %v1693_v6, %v8166_v31  ;;  %13141 = vst [vmem:[#allocation212_spill] sm:$0xff] %v8322_v9 }
 0x6af   :  { %13139 = vst [vmem:[#allocation210_spill] sm:$0xff] %v8295_v12  ;;  %v1718_v12 = vrot.slane %v7844_v22, 4  ;;  %v1737_v16 = vperm.slane %v1731_v51, %v8291_v3  ;;  %v1854_v18 = vrot.slane %v8301_v38, 4  ;;  %v8334_v9 = vunpack.c.0.s8 %v1747_v32 }
 0x6b1   :  { %v1719_v51 = vsel %vm1694_vm0, %v1718_v12, %v8184_v54  ;;  %v1766_v61 = vrot.slane %v1737_v16, 4  ;;  %v1855_v6 = vsel %vm1694_vm0, %v1854_v18, %v8320_v52 }
 0x6b2   :  { %v1725_v8 = vperm.slane %v1719_v51, %v8291_v3  ;;  %v8343_v18 = vperm.slane %v1855_v6, %v8334_v9 }
 0x6b4   :  { %1666 = vperm.xlu2 %7066, %v7488_v42   ;;  %1660 = vperm.xlu1 %7065, %v7488_v42   ;;  %v1767_v32 = vsel %vm1694_vm0, %v1766_v61, %v1725_v8  ;;  %v8358_v6 = vpop.permute.xlu1 %1538  ;;  %v1720_v61 = vrot.slane %v8184_v54, 4 }
 0x6b5   :  { %13143 = vst [vmem:[#allocation214_spill] sm:$0xff] %v8358_v6 }
 0x6bc   :  { %7068 = vset.pattern.permute.xlu2 %v7289_v19  ;;  %7067 = vset.pattern.permute.xlu1 %v7292_v20  ;;  %v1831_v19 = vsel %vm1694_vm0, %v1830_v4, %v8172_v26  ;;  %v1701_v20 = vperm.slane %v1695_v17, %v8291_v3  ;;  %v1732_v17 = vrot.slane %v7802_v59, 4 }
 0x6bd   :  { %v1837_v12 = vperm.slane %v1831_v19, %v8291_v3 }
 0x6be   :  { %v1595_v36 = vpop.permute.xlu2 %1594  ;;  %v1743_v29 = vsel %vm1694_vm0, %v1742_v49, %v1701_v20  ;;  %v1820_v49 = vrot.slane %v8204_v27, 4  ;;  %v1733_v59 = vsel %vm1694_vm0, %v7924_v14, %v1732_v17  ;;  %v1744_v0 = vrot.slane %v1701_v20, 4 }
 0x6bf   :  { %v1842_v25 = vrot.slane %v1595_v36, 4  ;;  %v1845_v50 = vsel %vm1694_vm0, %v1595_v36, %v1844_v13  ;;  %v1832_v36 = vrot.slane %v8172_v26, 4  ;;  %v8356_v51 = vperm.slane %v1743_v29, %v8334_v9 }
 0x6c0   :  { %v1880_v19 = vrot.slane %v1837_v12, 4  ;;  %v8361_v13 = vperm.slane %v1845_v50, %v8291_v3  ;;  %v1904_v14 = vrot.slane %v8343_v18, 4  ;;  %v8370_v26 = vperm.slane %v1767_v32, %v8334_v9 }
 0x6c1   :  { %v1843_v7 = vsel %vm1694_vm0, %v1842_v25, %v8228_v57  ;;  %v8346_v25 = vpop.permute.xlu0 %1060  ;;  %v1768_v29 = vrot.slane %v1725_v8, 4  ;;  %v1741_v20 = vperm.slane %v1733_v59, %v8291_v3  ;;  %v1833_v54 = vsel %vm1694_vm0, %v8224_v63, %v1832_v36 }
 0x6c2   :  { %v1849_v4 = vperm.slane %v1843_v7, %v8291_v3  ;;  %13142 = vst [vmem:[#allocation213_spill] sm:$0xff] %v8346_v25  ;;  %v1745_v7 = vsel %vm1694_vm0, %v1713_v53, %v1744_v0  ;;  %v1709_v8 = vsel %vm1694_vm0, %v7764_v60, %v1708_v37  ;;  %v1890_v32 = vrot.slane %v8361_v13, 4 }
 0x6c3   :  { %v1769_v53 = vsel %vm1694_vm0, %v1737_v16, %v1768_v29  ;;  %v1778_v59 = vrot.slane %v1741_v20, 4  ;;  %v1856_v60 = vrot.slane %v8320_v52, 4  ;;  %v8400_v36 = vperm.slane %v1833_v54, %v8291_v3 }
 0x6c4   :  { %v1878_v57 = vrot.slane %v1849_v4, 4  ;;  %1684 = vperm.xlu2 %7068, %v7488_v42   ;;  %1678 = vperm.xlu1 %7067, %v7488_v42   ;;  %v1881_v50 = vsel %vm1694_vm0, %v1849_v4, %v1880_v19  ;;  %v1753_v4 = vperm.slane %v1745_v7, %v8334_v9  ;;  %v1808_v16 = vrot.slane %v7966_v41, 4 }
 0x6c5   :  { %v1777_v0 = vperm.slane %v1769_v53, %v8334_v9  ;;  %v1717_v19 = vperm.slane %v1709_v8, %v8291_v3 }
 0x6c6   :  { %v1879_v42 = vsel %vm1694_vm0, %v1878_v57, %v1837_v12  ;;  %v1821_v12 = vsel %vm1694_vm0, %v8082_v11, %v1820_v49  ;;  %v1792_v57 = vrot.slane %v8356_v51, 4  ;;  %v1721_v11 = vsel %vm1694_vm0, %v7844_v22, %v1720_v61  ;;  %v8411_v61 = vpop.permute.xlu1 %1556 }
 0x6c7   :  { %v8366_v27 = vperm.slane %v1879_v42, %v8334_v9  ;;  %v8393_v49 = vperm.slane %v1881_v50, %v8334_v9  ;;  %v8397_v37 = vperm.slane %v1821_v12, %v8291_v3  ;;  %v1696_v22 = vrot.slane %v8166_v31, 4  ;;  %13145 = vst [vmem:[#allocation216_spill] sm:$0xff] %v8411_v61 }
 0x6c8   :  { %v1793_v63 = vsel %vm1694_vm0, %v8370_v26, %v1792_v57  ;;  %v1729_v52 = vperm.slane %v1721_v11, %v8291_v3  ;;  %v1809_v31 = vsel %vm1694_vm0, %v8024_v46, %v1808_v16  ;;  %v1796_v41 = vrot.slane %v1753_v4, 4 }
 0x6c9   :  { %v1905_v17 = vsel %vm1694_vm0, %v8366_v27, %v1904_v14  ;;  %v8408_v42 = vpop.permute.xlu0 %1580  ;;  %v1857_v14 = vsel %vm1694_vm0, %v8301_v38, %v1856_v60  ;;  %v1906_v29 = vrot.slane %v8393_v49, 4  ;;  %v1866_v7 = vrot.slane %v8397_v37, 4 }
 0x6ca   :  { %5394 = vrot.lane.b32.xlu0 %v1905_v17, %s7129_s0  ;;  %13144 = vst [vmem:[#allocation215_spill] sm:$0xff] %v8408_v42  ;;  %v1686_v50 = vperm.slane %v8206_v35, 7  ;;  %v1779_v12 = vsel %vm1694_vm0, %v1778_v59, %v1729_v52  ;;  %v1697_v54 = vsel %vm1694_vm0, %v7702_v40, %v1696_v22  ;;  %v1797_v38 = vsel %vm1694_vm0, %v1777_v0, %v1796_v41 }
 0x6cb   :  { %v1865_v17 = vperm.slane %v1857_v14, %v8334_v9  ;;  %v1754_v8 = vrot.slane %v1717_v19, 4  ;;  %v1817_v46 = vperm.slane %v1809_v31, %v8291_v3  ;;  %v8432_v35 = vperm.slane %v1779_v12, %v8334_v9 }
 0x6cc   :  { %7069 = vset.pattern.permute.xlu1 %v7207_v1  ;;  %5392 = vrot.lane.b32.xlu2 %v1793_v63, %s7129_s0  ;;  %v1891_v1 = vsel %vm1694_vm0, %v1890_v32, %v8400_v36  ;;  %v1705_v53 = vperm.slane %v1697_v54, %v8291_v3  ;;  %v1780_v40 = vrot.slane %v1729_v52, 4  ;;  %v1930_v16 = vrot.slane %v7728_v33, 4 }
 0x6cd   :  { %v1897_v57 = vperm.slane %v1891_v1, %v8334_v9  ;;  %v1907_v32 = vsel %vm1694_vm0, %v1906_v29, %v1865_v17  ;;  %v1867_v11 = vsel %vm1694_vm0, %v1866_v7, %v1817_v46  ;;  %v1794_v1 = vrot.slane %v1777_v0, 4 }
 0x6ce   :  { %v1781_v59 = vsel %vm1694_vm0, %v1741_v20, %v1780_v40  ;;  %v8438_v60 = vpop.permute.xlu1 %1568  ;;  %v1755_v22 = vsel %vm1694_vm0, %v1754_v8, %v1705_v53  ;;  %v1873_v14 = vperm.slane %v1867_v11, %v8334_v9  ;;  %v1798_v52 = vrot.slane %v8432_v35, 4 }
 0x6cf   :  { %v1910_v63 = vrot.slane %v1897_v57, 4  ;;  %13146 = vst [vmem:[#allocation217_spill] sm:$0xff] %v8438_v60  ;;  %v8448_v29 = vperm.slane %v1755_v22, %v8334_v9  ;;  %v8451_v20 = vperm.slane %v1781_v59, %v8334_v9  ;;  %v1756_v7 = vrot.slane %v1705_v53, 4  ;;  %v13178_v60 = vld [vmem:[#allocation193_spill] sm:$0xff] }
 0x6d0   :  { %v1954_v0 = vrot.slane %v7890_v28, 4  ;;  %v1795_v12 = vsel %vm1694_vm0, %v1794_v1, %v1753_v4  ;;  %v1868_v40 = vrot.slane %v1817_v46, 4  ;;  %v1942_v4 = vrot.slane %v7515_v45, 4 }
 0x6d1   :  { %v8444_v31 = vpop.permute.xlu0 %572  ;;  %v1911_v41 = vsel %vm1694_vm0, %v1910_v63, %v1873_v14  ;;  %v1799_v54 = vsel %vm1694_vm0, %v1798_v52, %v8448_v29  ;;  %v1757_v8 = vsel %vm1694_vm0, %v1717_v19, %v1756_v7  ;;  %v2042_v22 = vrot.slane %v7520_v47, 4 }
 0x6d2   :  { %5408 = vrot.lane.b32.xlu0 %v1797_v38, %s7130_s13  ;;  %v1918_v38 = vrot.slane %v7690_v34, 4  ;;  %v1955_v63 = vsel %vm1694_vm0, %v1954_v0, %v7848_v55  ;;  %v1765_v59 = vperm.slane %v1757_v8, %v8334_v9  ;;  %v1892_v1 = vrot.slane %v8400_v36, 4 }
 0x6d3   :  { %v2054_v46 = vrot.slane %v8278_v15, 4  ;;  %v1912_v7 = vrot.slane %v1873_v14, 4  ;;  %v2030_v36 = vrot.slane %v8072_v56, 4  ;;  %v2043_v8 = vsel %vm1694_vm0, %v2042_v22, %v8020_v62 }
 0x6d4   :  { %1691 = vperm.xlu1 %7069, %v1686_v50   ;;  %5402 = vrot.lane.b32.xlu2 %v1907_v32, %s7131_s14  ;;  %v1931_v50 = vsel %vm1694_vm0, %v1930_v16, %v7509_v44  ;;  %v1802_v32 = vrot.slane %v8451_v20, 4  ;;  %v1919_v19 = vsel %vm1694_vm0, %v1918_v38, %v7502_v43  ;;  %v1869_v16 = vsel %vm1694_vm0, %v8397_v37, %v1868_v40 }
 0x6d5   :  { %v8466_v53 = vperm.slane %v1931_v50, %v8291_v3  ;;  %v1893_v37 = vsel %vm1694_vm0, %v8361_v13, %v1892_v1  ;;  %v8494_v14 = vperm.slane %v1869_v16, %v8334_v9  ;;  %v8497_v38 = vperm.slane %v1919_v19, %v8291_v3 }
 0x6d6   :  { %v8468_v11 = vpop.permute.xlu1 %1587  ;;  %v1803_v52 = vsel %vm1694_vm0, %v1802_v32, %v1765_v59  ;;  %v1943_v13 = vsel %vm1694_vm0, %v1942_v4, %v7806_v23  ;;  %v2049_v1 = vperm.slane %v2043_v8, %v8291_v3  ;;  %v1944_v8 = vrot.slane %v7806_v23, 4 }
 0x6d7   :  { %13147 = vst [vmem:[#allocation218_spill] sm:$0xff] %v8468_v11  ;;  %v1966_v50 = vrot.slane %v8466_v53, 4  ;;  %v1916_v16 = vrot.slane %v8494_v14, 4  ;;  %v1949_v22 = vperm.slane %v1943_v13, %v8291_v3 }
 0x6d9   :  { %v8483_v0 = vpop.permute.xlu0 %1092  ;;  %v1967_v4 = vsel %vm1694_vm0, %v1966_v50, %v8497_v38 }
 0x6da   :  { %5418 = vrot.lane.b32.xlu0 %v1911_v41, %s7132_s15  ;;  %v1908_v41 = vrot.slane %v1865_v17, 4  ;;  %v1913_v17 = vsel %vm1694_vm0, %v1897_v57, %v1912_v7  ;;  %v1901_v57 = vperm.slane %v1893_v37, %v8334_v9 }
 0x6dc   :  { %5400 = vrot.lane.b32.xlu1 %v1795_v12, %s7131_s14  ;;  %5416 = vrot.lane.b32.xlu2 %v1799_v54, %s7132_s15  ;;  %v1961_v12 = vperm.slane %v1955_v63, %v8291_v3  ;;  %v1909_v54 = vsel %vm1694_vm0, %v8393_v49, %v1908_v41  ;;  %v2055_v49 = vsel %vm1694_vm0, %v2054_v46, %v8136_v30  ;;  %v1956_v41 = vrot.slane %v7848_v55, 4 }
 0x6dd   :  { %v2031_v63 = vsel %vm1694_vm0, %v2030_v36, %v7932_v10  ;;  %v2061_v46 = vperm.slane %v2055_v49, %v8291_v3  ;;  %v1917_v37 = vsel %vm1694_vm0, %v1901_v57, %v1916_v16  ;;  %v1800_v36 = vrot.slane %v8448_v29, 4 }
 0x6de   :  { %v1990_v32 = vrot.slane %v1961_v12, 4  ;;  %v2037_v50 = vperm.slane %v2031_v63, %v8291_v3  ;;  %v1957_v55 = vsel %vm1694_vm0, %v7890_v28, %v1956_v41  ;;  %v2078_v63 = vrot.slane %v2049_v1, 4 }
 0x6df   :  { %v1801_v13 = vsel %vm1694_vm0, %v8432_v35, %v1800_v36  ;;  %v1992_v28 = vrot.slane %v1949_v22, 4  ;;  %v1914_v41 = vrot.slane %v1901_v57, 4 }
 0x6e1   :  { %v8539_v49 = vpop.permute.xlu0 %1612 }
 0x6e2   :  { %5432 = vrot.lane.b32.xlu0 %v1803_v52, %s7133_s16  ;;  %v1804_v52 = vrot.slane %v1765_v59, 4  ;;  %v1991_v59 = vsel %vm1694_vm0, %v1990_v32, %v1949_v22  ;;  %v8545_v32 = vperm.slane %v1957_v55, %v8291_v3  ;;  %v1920_v22 = vrot.slane %v7502_v43, 4 }
 0x6e3   :  { %v1997_v35 = vperm.slane %v1991_v59, %v8334_v9  ;;  %v1945_v59 = vsel %vm1694_vm0, %v7515_v45, %v1944_v8  ;;  %v2080_v55 = vrot.slane %v2037_v50, 4  ;;  %v2044_v45 = vrot.slane %v8020_v62, 4 }
 0x6e4   :  { %5410 = vrot.lane.b32.xlu1 %v1909_v54, %s7130_s13  ;;  %5426 = vrot.lane.b32.xlu2 %v1913_v17, %s7134_s17  ;;  %v1932_v54 = vrot.slane %v7509_v44, 4  ;;  %v1805_v29 = vsel %vm1694_vm0, %v8451_v20, %v1804_v52  ;;  %v8536_v44 = vperm.slane %v1967_v4, %v8334_v9  ;;  %v2079_v20 = vsel %vm1694_vm0, %v2078_v63, %v2037_v50 }
 0x6e5   :  { %v1968_v50 = vrot.slane %v8497_v38, 4  ;;  %v8581_v8 = vperm.slane %v1945_v59, %v8291_v3  ;;  %v2081_v63 = vsel %vm1694_vm0, %v2049_v1, %v2080_v55  ;;  %v1921_v62 = vsel %vm1694_vm0, %v7690_v34, %v1920_v22  ;;  %v8592_v38 = vpop.permute.xlu2 %1606 }
 0x6e6   :  { %v8508_v40 = vpop.permute.xlu1 %1600  ;;  %v2016_v52 = vrot.slane %v8536_v44, 4  ;;  %v1933_v36 = vsel %vm1694_vm0, %v7728_v33, %v1932_v54  ;;  %v1915_v33 = vsel %vm1694_vm0, %v1914_v41, %v8494_v14  ;;  %v2068_v14 = vrot.slane %v8190_v21, 4 }
 0x6e7   :  { %v2066_v19 = vrot.slane %v8508_v40, 4 }
 0x6e8   :  { %v2069_v34 = vsel %vm1694_vm0, %v8508_v40, %v2068_v14 }
 0x6e9   :  { %v2067_v7 = vsel %vm1694_vm0, %v2066_v19, %v8190_v21  ;;  %v2104_v19 = vrot.slane %v2061_v46, 4  ;;  %v2045_v21 = vsel %vm1694_vm0, %v7520_v47, %v2044_v45  ;;  %v2077_v40 = vperm.slane %v2069_v34, %v8291_v3 }
 0x6ea   :  { %v2073_v17 = vperm.slane %v2067_v7, %v8291_v3  ;;  %5442 = vrot.lane.b32.xlu0 %v1917_v37, %s7135_s18  ;;  %v1993_v37 = vsel %vm1694_vm0, %v1961_v12, %v1992_v28  ;;  %v2002_v12 = vrot.slane %v8545_v32, 4  ;;  %v2014_v28 = vrot.slane %v1997_v35, 4 }
 0x6eb   :  { %v8571_v43 = vperm.slane %v1993_v37, %v8334_v9  ;;  %v8616_v47 = vperm.slane %v2045_v21, %v8291_v3 }
 0x6ec   :  { %v2102_v16 = vrot.slane %v2073_v17, 4  ;;  %5424 = vrot.lane.b32.xlu1 %v1801_v13, %s7134_s17  ;;  %5440 = vrot.lane.b32.xlu2 %v1805_v29, %s7135_s18  ;;  %v2105_v23 = vsel %vm1694_vm0, %v2073_v17, %v2104_v19  ;;  %v8562_v17 = vperm.slane %v2079_v20, %v8334_v9  ;;  %v1941_v29 = vperm.slane %v1933_v36, %v8291_v3 }
 0x6ed   :  { %v8566_v13 = vperm.slane %v2105_v23, %v8334_v9  ;;  %v1969_v20 = vsel %vm1694_vm0, %v8466_v53, %v1968_v50  ;;  %v2003_v1 = vsel %vm1694_vm0, %v2002_v12, %v8581_v8  ;;  %v2032_v23 = vrot.slane %v7932_v10, 4  ;;  %v8637_v45 = vpop.permute.xlu2 %1624 }
 0x6ee   :  { %v2103_v4 = vsel %vm1694_vm0, %v2102_v16, %v2061_v46  ;;  %v2017_v46 = vsel %vm1694_vm0, %v1997_v35, %v2016_v52  ;;  %v8590_v16 = vpop.permute.xlu0 %82  ;;  %v2089_v52 = vperm.slane %v2081_v63, %v8334_v9  ;;  %v1978_v41 = vrot.slane %v1941_v29, 4 }
 0x6ef   :  { %v8552_v7 = vperm.slane %v2103_v4, %v8334_v9  ;;  %v2130_v19 = vrot.slane %v8566_v13, 4  ;;  %v2018_v4 = vrot.slane %v8571_v43, 4  ;;  %v2033_v35 = vsel %vm1694_vm0, %v8072_v56, %v2032_v23 }
 0x6f0   :  { %v8609_v37 = vperm.slane %v1969_v20, %v8334_v9  ;;  %v8612_v22 = vperm.slane %v2003_v1, %v8334_v9  ;;  %v1929_v10 = vperm.slane %v1921_v62, %v8291_v3  ;;  %v2056_v56 = vrot.slane %v8136_v30, 4 }
 0x6f1   :  { %v2126_v57 = vrot.slane %v8552_v7, 4  ;;  %v2131_v53 = vsel %vm1694_vm0, %v2130_v19, %v2089_v52  ;;  %v2015_v36 = vsel %vm1694_vm0, %v2014_v28, %v8536_v44  ;;  %v8626_v55 = vperm.slane %v2033_v35, %v8291_v3 }
 0x6f2   :  { %5456 = vrot.lane.b32.xlu0 %v2017_v46, %s7136_s19  ;;  %v2019_v59 = vsel %vm1694_vm0, %v2018_v4, %v8609_v37  ;;  %v1979_v46 = vsel %vm1694_vm0, %v1978_v41, %v1929_v10  ;;  %v2022_v30 = vrot.slane %v8612_v22, 4  ;;  %v2090_v44 = vrot.slane %v8616_v47, 4 }
 0x6f3   :  { %v2127_v54 = vsel %vm1694_vm0, %v2126_v57, %v8562_v17  ;;  %v2057_v57 = vsel %vm1694_vm0, %v8278_v15, %v2056_v56  ;;  %v1985_v50 = vperm.slane %v1979_v46, %v8334_v9  ;;  %v2178_v15 = vrot.slane %v7930_v5, 4  ;;  %v13148_v56 = vld [vmem:[#allocation148_spill] sm:$0xff] }
 0x6f4   :  { %5434 = vrot.lane.b32.xlu1 %v1915_v33, %s7133_s16  ;;  %5450 = vrot.lane.b32.xlu2 %v2127_v54, %s7126_s12  ;;  %v2114_v33 = vrot.slane %v2077_v40, 4  ;;  %v2290_v54 = vrot.slane %v8592_v38, 4  ;;  %v2091_v63 = vsel %vm1694_vm0, %v2090_v44, %v8626_v55  ;;  %v2065_v62 = vperm.slane %v2057_v57, %v8291_v3 }
 0x6f5   :  { %v2023_v14 = vsel %vm1694_vm0, %v2022_v30, %v1985_v50  ;;  %v2128_v19 = vrot.slane %v8562_v17, 4  ;;  %v2132_v28 = vrot.slane %v2089_v52, 4  ;;  %v1980_v20 = vrot.slane %v1929_v10, 4 }
 0x6f6   :  { %v8634_v12 = vpop.permute.xlu0 %602  ;;  %v2115_v4 = vsel %vm1694_vm0, %v2114_v33, %v2065_v62  ;;  %v2291_v1 = vsel %vm1694_vm0, %v2290_v54, %v8104_v58  ;;  %v8656_v34 = vperm.slane %v2091_v63, %v8334_v9  ;;  %v2179_v52 = vsel %vm1694_vm0, %v2178_v15, %v7808_v24  ;;  %v13150_v15 = vld [vmem:[#allocation112_spill] sm:$0xff] }
 0x6f7   :  { %v2129_v23 = vsel %vm1694_vm0, %v8552_v7, %v2128_v19  ;;  %v2133_v21 = vsel %vm1694_vm0, %v8566_v13, %v2132_v28  ;;  %v1981_v17 = vsel %vm1694_vm0, %v1941_v29, %v1980_v20  ;;  %v2266_v41 = vrot.slane %v8126_v39, 4  ;;  %v8670_v29 = vpop.permute.xlu2 %1636  ;;  %v13151_v19 = vld [vmem:[#allocation178_spill] sm:$0xff] }
 0x6f8   :  { %v2278_v7 = vrot.slane %v8250_v2, 4  ;;  %v2121_v35 = vperm.slane %v2115_v4, %v8334_v9  ;;  %v2166_v13 = vrot.slane %v7888_v48, 4  ;;  %v8668_v10 = vperm.slane %v2291_v1, %v8291_v3  ;;  %v13152_v1 = vld [vmem:[#allocation53_spill] sm:$0xff] }
 0x6f9   :  { %v2136_v57 = vrot.slane %v8656_v34, 4  ;;  %v8676_v30 = vperm.slane %v1981_v17, %v8334_v9  ;;  %v2004_v44 = vrot.slane %v8581_v8, 4  ;;  %v2185_v54 = vperm.slane %v2179_v52, %v8291_v3 }
 0x6fa   :  { %5466 = vrot.lane.b32.xlu0 %v2131_v53, %s7137_s20  ;;  %v2116_v53 = vrot.slane %v2065_v62, 4  ;;  %v2020_v62 = vrot.slane %v8609_v37, 4  ;;  %v2279_v28 = vsel %vm1694_vm0, %v2278_v7, %v13151_v19  ;;  %v2024_v4 = vrot.slane %v1985_v50, 4 }
 0x6fb   :  { %v2137_v20 = vsel %vm1694_vm0, %v2121_v35, %v2136_v57  ;;  %v2167_v8 = vsel %vm1694_vm0, %v2166_v13, %v13152_v1  ;;  %v2005_v37 = vsel %vm1694_vm0, %v8545_v32, %v2004_v44  ;;  %v8708_v13 = vperm.slane %v2279_v28, %v8291_v3  ;;  %v13154_v32 = vld [vmem:[#allocation24_spill] sm:$0xff]  ;;  %v13157_v28 = vld [vmem:[#allocation151_spill] sm:$0xff] }
 0x6fc   :  { %5448 = vrot.lane.b32.xlu1 %v2015_v36, %s7126_s12  ;;  %5464 = vrot.lane.b32.xlu2 %v2019_v59, %s7137_s20  ;;  %v2154_v36 = vrot.slane %v13148_v56, 4  ;;  %v13149_v59 = vld [vmem:[#allocation38_spill] sm:$0xff]  ;;  %v2117_v63 = vsel %vm1694_vm0, %v2077_v40, %v2116_v53  ;;  %v2021_v52 = vsel %vm1694_vm0, %v8571_v43, %v2020_v62  ;;  %v2025_v50 = vsel %vm1694_vm0, %v8612_v22, %v2024_v4  ;;  %v13155_v22 = vld [vmem:[#allocation11_spill] sm:$0xff] }
 0x6fd   :  { %v2142_v46 = vrot.slane %v13149_v59, 4  ;;  %v13153_v40 = vld [vmem:[#allocation130_spill] sm:$0xff]  ;;  %v2013_v53 = vperm.slane %v2005_v37, %v8334_v9  ;;  %v2173_v44 = vperm.slane %v2167_v8, %v8291_v3  ;;  %v2134_v4 = vrot.slane %v2121_v35, 4 }
 0x6fe   :  { %v8679_v33 = vpop.permute.xlu0 %1122  ;;  %v2254_v17 = vrot.slane %v13153_v40, 4  ;;  %v2155_v43 = vsel %vm1694_vm0, %v2154_v36, %v13154_v32  ;;  %v2028_v36 = vrot.slane %v8676_v30, 4  ;;  %v2144_v25 = vrot.slane %v13155_v22, 4 }
 0x6ff   :  { %v2143_v57 = vsel %vm1694_vm0, %v2142_v46, %v13155_v22  ;;  %v2161_v46 = vperm.slane %v2155_v43, %v8291_v3 }
 0x702   :  { %5480 = vrot.lane.b32.xlu0 %v2023_v14, %s7138_s21  ;;  %v2267_v14 = vsel %vm1694_vm0, %v2266_v41, %v13150_v15  ;;  %v8702_v41 = vperm.slane %v2117_v63, %v8334_v9  ;;  %v8718_v63 = vpop.permute.xlu2 %1654 }
 0x703   :  { %v8705_v7 = vperm.slane %v2267_v14, %v8291_v3  ;;  %13156 = vst [vmem:[#allocation148_spill] sm:$0xff] %v8718_v63 }
 0x704   :  { %5458 = vrot.lane.b32.xlu1 %v2129_v23, %s7136_s19  ;;  %5474 = vrot.lane.b32.xlu2 %v2133_v21, %s7139_s22  ;;  %v2092_v23 = vrot.slane %v8626_v55, 4  ;;  %v2326_v21 = vrot.slane %v8668_v10, 4  ;;  %v2214_v55 = vrot.slane %v2185_v54, 4  ;;  %v2138_v37 = vrot.slane %v8702_v41, 4 }
 0x705   :  { %v2302_v8 = vrot.slane %v8705_v7, 4 }
 0x706   :  { %v2093_v62 = vsel %vm1694_vm0, %v8616_v47, %v2092_v23  ;;  %v2327_v14 = vsel %vm1694_vm0, %v2326_v21, %v8708_v13  ;;  %v2149_v21 = vperm.slane %v2143_v57, %v8291_v3 }
 0x707   :  { %v8733_v47 = vperm.slane %v2093_v62, %v8334_v9  ;;  %v8736_v23 = vperm.slane %v2327_v14, %v8334_v9  ;;  %v2190_v14 = vrot.slane %v2161_v46, 4 }
 0x708   :  { %v2192_v11 = vrot.slane %v2149_v21, 4 }
 0x709   :  { %v2139_v43 = vsel %vm1694_vm0, %v2138_v37, %v8733_v47 }
 0x70a   :  { %5490 = vrot.lane.b32.xlu0 %v2137_v20, %s7140_s23  ;;  %v2255_v20 = vsel %vm1694_vm0, %v2254_v17, %v13157_v28  ;;  %v8739_v17 = vpop.permute.xlu0 %1642 }
 0x70b   :  { %v2261_v35 = vperm.slane %v2255_v20, %v8291_v3  ;;  %v2350_v20 = vrot.slane %v8736_v23, 4 }
 0x70c   :  { %5472 = vrot.lane.b32.xlu1 %v2021_v52, %s7139_s22  ;;  %5488 = vrot.lane.b32.xlu2 %v2025_v50, %s7140_s23  ;;  %v2215_v52 = vsel %vm1694_vm0, %v2214_v55, %v2173_v44  ;;  %v2029_v50 = vsel %vm1694_vm0, %v2013_v53, %v2028_v36  ;;  %v2135_v55 = vsel %vm1694_vm0, %v2134_v4, %v8656_v34  ;;  %v2216_v36 = vrot.slane %v2173_v44, 4 }
 0x70d   :  { %v8748_v62 = vperm.slane %v2215_v52, %v8334_v9  ;;  %v2303_v57 = vsel %vm1694_vm0, %v2302_v8, %v2261_v35  ;;  %v2191_v34 = vsel %vm1694_vm0, %v2190_v14, %v2149_v21  ;;  %v2026_v52 = vrot.slane %v2013_v53, 4 }
 0x70e   :  { %v2217_v4 = vsel %vm1694_vm0, %v2185_v54, %v2216_v36  ;;  %v2309_v37 = vperm.slane %v2303_v57, %v8334_v9  ;;  %v2156_v14 = vrot.slane %v13154_v32, 4  ;;  %v2292_v54 = vrot.slane %v8104_v58, 4 }
 0x70f   :  { %v2238_v44 = vrot.slane %v8748_v62, 4  ;;  %v8765_v8 = vperm.slane %v2217_v4, %v8334_v9  ;;  %v2027_v53 = vsel %vm1694_vm0, %v2026_v52, %v8676_v30  ;;  %v2145_v57 = vsel %vm1694_vm0, %v13149_v59, %v2144_v25 }
 0x710   :  { %v2157_v36 = vsel %vm1694_vm0, %v13148_v56, %v2156_v14  ;;  %v2193_v58 = vsel %vm1694_vm0, %v2161_v46, %v2192_v11  ;;  %v2180_v32 = vrot.slane %v7808_v24, 4  ;;  %v2293_v30 = vsel %vm1694_vm0, %v8592_v38, %v2292_v54  ;;  %v8788_v56 = vpop.permute.xlu1 %1618 }
 0x711   :  { %v8793_v25 = vperm.slane %v2157_v36, %v8291_v3  ;;  %v8796_v59 = vperm.slane %v2145_v57, %v8291_v3  ;;  %v2201_v24 = vperm.slane %v2193_v58, %v8334_v9  ;;  %v2268_v38 = vrot.slane %v13150_v15, 4 }
 0x712   :  { %5504 = vrot.lane.b32.xlu0 %v2029_v50, %s7141_s24  ;;  %v8754_v50 = vpop.permute.xlu2 %1666  ;;  %v8779_v22 = vpop.permute.xlu0 %112  ;;  %v2181_v11 = vsel %vm1694_vm0, %v7930_v5, %v2180_v32  ;;  %v2328_v46 = vrot.slane %v8708_v13, 4  ;;  %v2140_v14 = vrot.slane %v8733_v47, 4  ;;  %v2352_v54 = vrot.slane %v2309_v37, 4 }
 0x713   :  { %13158 = vst [vmem:[#allocation38_spill] sm:$0xff] %v8754_v50  ;;  %v2168_v5 = vrot.slane %v13152_v1, 4  ;;  %v2269_v15 = vsel %vm1694_vm0, %v8126_v39, %v2268_v38  ;;  %v13180_v50 = vld [vmem:[#allocation167_spill] sm:$0xff] }
 0x714   :  { %5482 = vrot.lane.b32.xlu1 %v2135_v55, %s7138_s21  ;;  %5498 = vrot.lane.b32.xlu2 %v2139_v43, %s7142_s25  ;;  %v2351_v55 = vsel %vm1694_vm0, %v2350_v20, %v2309_v37  ;;  %v8762_v43 = vperm.slane %v2191_v34, %v8334_v9  ;;  %13159 = vst [vmem:[#allocation112_spill] sm:$0xff] %v8779_v22  ;;  %v2242_v20 = vrot.slane %v8765_v8, 4  ;;  %v2304_v34 = vrot.slane %v2261_v35, 4 }
 0x715   :  { %v2301_v35 = vperm.slane %v2293_v30, %v8291_v3  ;;  %v2141_v13 = vsel %vm1694_vm0, %v8702_v41, %v2140_v14  ;;  %v2353_v1 = vsel %vm1694_vm0, %v8736_v23, %v2352_v54  ;;  %v2169_v41 = vsel %vm1694_vm0, %v7888_v48, %v2168_v5 }
 0x716   :  { %v2239_v21 = vsel %vm1694_vm0, %v2238_v44, %v8762_v43  ;;  %v2305_v52 = vsel %vm1694_vm0, %v8705_v7, %v2304_v34  ;;  %v2280_v44 = vrot.slane %v13151_v19, 4  ;;  %v2329_v7 = vsel %vm1694_vm0, %v8668_v10, %v2328_v46 }
 0x717   :  { %v8823_v47 = vperm.slane %v2305_v52, %v8334_v9  ;;  %v2338_v39 = vrot.slane %v2301_v35, 4  ;;  %v2202_v10 = vrot.slane %v8793_v25, 4  ;;  %v2337_v23 = vperm.slane %v2329_v7, %v8334_v9 }
 0x718   :  { %v2281_v19 = vsel %vm1694_vm0, %v8250_v2, %v2280_v44  ;;  %v2256_v2 = vrot.slane %v13157_v28, 4  ;;  %v2277_v36 = vperm.slane %v2269_v15, %v8291_v3  ;;  %v8836_v58 = vpop.permute.xlu1 %1630  ;;  %v2177_v48 = vperm.slane %v2169_v41, %v8291_v3 }
 0x719   :  { %v2289_v57 = vperm.slane %v2281_v19, %v8291_v3  ;;  %v2203_v30 = vsel %vm1694_vm0, %v2202_v10, %v8796_v59  ;;  %v2356_v28 = vrot.slane %v8823_v47, 4  ;;  %v2240_v52 = vrot.slane %v8762_v43, 4  ;;  %v13164_v19 = vld [vmem:[#allocation76_spill] sm:$0xff] }
 0x71a   :  { %5514 = vrot.lane.b32.xlu0 %v2351_v55, %s7143_s26  ;;  %v2243_v55 = vsel %vm1694_vm0, %v2242_v20, %v2201_v24  ;;  %v8825_v37 = vpop.permute.xlu0 %632  ;;  %v13162_v20 = vld [vmem:[#allocation89_spill] sm:$0xff]  ;;  %v2257_v38 = vsel %vm1694_vm0, %v13153_v40, %v2256_v2  ;;  %v2244_v44 = vrot.slane %v2201_v24, 4  ;;  %v8852_v14 = vperm.slane %v2203_v30, %v8334_v9  ;;  %v13163_v24 = vld [vmem:[#allocation54_spill] sm:$0xff] }
 0x71b   :  { %13161 = vst [vmem:[#allocation53_spill] sm:$0xff] %v8825_v37  ;;  %v2402_v34 = vrot.slane %v13162_v20, 4  ;;  %v2357_v46 = vsel %vm1694_vm0, %v2337_v23, %v2356_v28  ;;  %v2241_v40 = vsel %vm1694_vm0, %v8748_v62, %v2240_v52  ;;  %v2378_v7 = vrot.slane %v13163_v24, 4 }
 0x71c   :  { %5496 = vrot.lane.b32.xlu1 %v2027_v53, %s7142_s25  ;;  %5512 = vrot.lane.b32.xlu2 %v2239_v21, %s7143_s26  ;;  %v2189_v53 = vperm.slane %v2181_v11, %v8291_v3  ;;  %v2339_v11 = vsel %vm1694_vm0, %v2338_v39, %v2289_v57  ;;  %v2245_v15 = vsel %vm1694_vm0, %v8765_v8, %v2244_v44  ;;  %v2340_v10 = vrot.slane %v2289_v57, 4 }
 0x71d   :  { %v2403_v5 = vsel %vm1694_vm0, %v2402_v34, %v8444_v31  ;;  %v8862_v43 = vperm.slane %v2339_v11, %v8334_v9  ;;  %v2265_v39 = vperm.slane %v2257_v38, %v8291_v3  ;;  %v2228_v2 = vrot.slane %v2177_v48, 4  ;;  %v13168_v38 = vld [vmem:[#allocation23_spill] sm:$0xff] }
 0x71e   :  { %v8790_v4 = vpop.permute.xlu2 %1684  ;;  %v2226_v21 = vrot.slane %v2189_v53, 4  ;;  %v8873_v8 = vperm.slane %v2403_v5, %v8291_v3  ;;  %v2341_v41 = vsel %vm1694_vm0, %v2301_v35, %v2340_v10  ;;  %v2248_v57 = vrot.slane %v8852_v14, 4  ;;  %v13170_v35 = vld [vmem:[#allocation150_spill] sm:$0xff] }
 0x71f   :  { %13160 = vst [vmem:[#allocation178_spill] sm:$0xff] %v8790_v4  ;;  %v2354_v28 = vrot.slane %v2337_v23, 4  ;;  %v2358_v11 = vrot.slane %v8862_v43, 4  ;;  %v2229_v44 = vsel %vm1694_vm0, %v2189_v53, %v2228_v2  ;;  %v13171_v23 = vld [vmem:[#allocation35_spill] sm:$0xff]  ;;  %v2204_v10 = vrot.slane %v8796_v59, 4 }
 0x720   :  { %v2227_v54 = vsel %vm1694_vm0, %v2226_v21, %v2177_v48  ;;  %v8876_v21 = vpop.permute.xlu1 %1648  ;;  %v13169_v48 = vld [vmem:[#allocation65_spill] sm:$0xff]  ;;  %v2316_v42 = vrot.slane %v2265_v39, 4  ;;  %v8905_v2 = vperm.slane %v2229_v44, %v8334_v9  ;;  %v2478_v44 = vrot.slane %v8483_v0, 4 }
 0x721   :  { %v2233_v62 = vperm.slane %v2227_v54, %v8334_v9  ;;  %13166 = vst [vmem:[#allocation24_spill] sm:$0xff] %v8876_v21  ;;  %v2490_v54 = vrot.slane %v13170_v35, 4  ;;  %v2355_v53 = vsel %vm1694_vm0, %v2354_v28, %v8823_v47 }
 0x722   :  { %5528 = vrot.lane.b32.xlu0 %v2243_v55, %s7144_s27  ;;  %v2314_v55 = vrot.slane %v2277_v36, 4  ;;  %v2317_v47 = vsel %vm1694_vm0, %v2277_v36, %v2316_v42  ;;  %v13177_v36 = vld [vmem:[#allocation209_spill] sm:$0xff] }
 0x723   :  { %v2249_v5 = vsel %vm1694_vm0, %v2233_v62, %v2248_v57  ;;  %v13173_v57 = vld [vmem:[#allocation129_spill] sm:$0xff]  ;;  %v2502_v4 = vrot.slane %v13177_v36, 4  ;;  %v2246_v22 = vrot.slane %v2233_v62, 4 }
 0x724   :  { %5506 = vrot.lane.b32.xlu1 %v2141_v13, %s7141_s24  ;;  %5522 = vrot.lane.b32.xlu2 %v2353_v1, %s7145_s28  ;;  %v2390_v13 = vrot.slane %v13164_v19, 4  ;;  %v8866_v1 = vpop.permute.xlu0 %1152  ;;  %v2315_v34 = vsel %vm1694_vm0, %v2314_v55, %v2265_v39  ;;  %v8894_v55 = vperm.slane %v2341_v41, %v8334_v9  ;;  %v2514_v39 = vrot.slane %v8539_v49, 4 }
 0x725   :  { %13165 = vst [vmem:[#allocation130_spill] sm:$0xff] %v8866_v1  ;;  %v2491_v28 = vsel %vm1694_vm0, %v2490_v54, %v13173_v57  ;;  %v2325_v54 = vperm.slane %v2317_v47, %v8334_v9  ;;  %v2250_v1 = vrot.slane %v8905_v2, 4  ;;  %v13179_v47 = vld [vmem:[#allocation111_spill] sm:$0xff]  ;;  %v2503_v61 = vsel %vm1694_vm0, %v2502_v4, %v13180_v50 }
 0x726   :  { %v8838_v32 = vpop.permute.xlu2 %5392  ;;  %v2391_v52 = vsel %vm1694_vm0, %v2390_v13, %v13169_v48  ;;  %v8938_v37 = vperm.slane %v2491_v28, %v8291_v3  ;;  %v2479_v28 = vsel %vm1694_vm0, %v2478_v44, %v13179_v47 }
 0x727   :  { %v8911_v59 = vperm.slane %v2391_v52, %v8291_v3  ;;  %v2364_v21 = vrot.slane %v2325_v54, 4 }
 0x72a   :  { %5538 = vrot.lane.b32.xlu0 %v2357_v46, %s7146_s29  ;;  %v2379_v46 = vsel %vm1694_vm0, %v2378_v7, %v13168_v38  ;;  %v2438_v7 = vrot.slane %v8873_v8, 4 }
 0x72b   :  { %v8908_v41 = vperm.slane %v2379_v46, %v8291_v3  ;;  %v13174_v46 = vld [vmem:[#allocation13_spill] sm:$0xff] }
 0x72c   :  { %5520 = vrot.lane.b32.xlu1 %v2241_v40, %s7145_s28  ;;  %5536 = vrot.lane.b32.xlu2 %v2245_v15, %s7146_s29  ;;  %v8891_v40 = vperm.slane %v2315_v34, %v8334_v9  ;;  %v2366_v15 = vrot.slane %v13171_v23, 4  ;;  %v8913_v34 = vpop.permute.xlu0 %1672  ;;  %v2439_v42 = vsel %vm1694_vm0, %v2438_v7, %v8911_v59 }
 0x72d   :  { %13172 = vst [vmem:[#allocation151_spill] sm:$0xff] %v8913_v34  ;;  %v2515_v34 = vsel %vm1694_vm0, %v2514_v39, %v13178_v60  ;;  %v8947_v7 = vperm.slane %v2439_v42, %v8334_v9  ;;  %v2247_v39 = vsel %vm1694_vm0, %v2246_v22, %v8852_v14  ;;  %v2509_v22 = vperm.slane %v2503_v61, %v8291_v3 }
 0x72e   :  { %v8878_v30 = vpop.permute.xlu2 %5402  ;;  %v2359_v13 = vsel %vm1694_vm0, %v2358_v11, %v8891_v40  ;;  %v2362_v11 = vrot.slane %v8894_v55, 4  ;;  %v2367_v52 = vsel %vm1694_vm0, %v2366_v15, %v13174_v46  ;;  %v2414_v15 = vrot.slane %v8908_v41, 4 }
 0x72f   :  { %13167 = vst [vmem:[#allocation11_spill] sm:$0xff] %v8878_v30  ;;  %v2373_v62 = vperm.slane %v2367_v52, %v8291_v3  ;;  %v2521_v42 = vperm.slane %v2515_v34, %v8291_v3  ;;  %v2462_v4 = vrot.slane %v8947_v7, 4 }
 0x731   :  { %v2415_v44 = vsel %vm1694_vm0, %v2414_v15, %v2373_v62  ;;  %v2516_v15 = vrot.slane %v13178_v60, 4  ;;  %v2416_v60 = vrot.slane %v2373_v62, 4 }
 0x732   :  { %5552 = vrot.lane.b32.xlu0 %v2249_v5, %s7147_s30  ;;  %v8925_v5 = vpop.permute.xlu1 %1660  ;;  %v2421_v34 = vperm.slane %v2415_v44, %v8334_v9 }
 0x733   :  { %13175 = vst [vmem:[#allocation89_spill] sm:$0xff] %v8925_v5 }
 0x734   :  { %5530 = vrot.lane.b32.xlu1 %v2355_v53, %s7144_s27  ;;  %5546 = vrot.lane.b32.xlu2 %v2359_v13, %s7148_s2  ;;  %v2205_v13 = vsel %vm1694_vm0, %v8793_v25, %v2204_v10  ;;  %v2363_v25 = vsel %vm1694_vm0, %v2362_v11, %v2325_v54  ;;  %v2463_v63 = vsel %vm1694_vm0, %v2462_v4, %v2421_v34 }
 0x735   :  { %v8944_v10 = vperm.slane %v2205_v13, %v8334_v9  ;;  %v2526_v13 = vrot.slane %v8938_v37, 4 }
 0x736   :  { %v8927_v53 = vpop.permute.xlu2 %5416 }
 0x737   :  { %13176 = vst [vmem:[#allocation54_spill] sm:$0xff] %v8927_v53  ;;  %v2251_v11 = vsel %vm1694_vm0, %v2250_v1, %v8944_v10  ;;  %v2252_v4 = vrot.slane %v8944_v10, 4 }
 0x73a   :  { %5562 = vrot.lane.b32.xlu0 %v2363_v25, %s7149_s3  ;;  %v8968_v25 = vperm.slane %v2479_v28, %v8291_v3  ;;  %v8971_v14 = vpop.permute.xlu1 %1678  ;;  %v2360_v28 = vrot.slane %v8891_v40, 4 }
 0x73b   :  { %13182 = vst [vmem:[#allocation23_spill] sm:$0xff] %v8971_v14  ;;  %v2552_v14 = vrot.slane %v2509_v22, 4 }
 0x73c   :  { %5544 = vrot.lane.b32.xlu1 %v2247_v39, %s7148_s2  ;;  %5560 = vrot.lane.b32.xlu2 %v2251_v11, %s7149_s3  ;;  %v8963_v52 = vpop.permute.xlu0 %5394  ;;  %v2404_v39 = vrot.slane %v8444_v31, 4  ;;  %v2550_v11 = vrot.slane %v2521_v42, 4  ;;  %v2527_v5 = vsel %vm1694_vm0, %v2526_v13, %v8968_v25  ;;  %v2361_v44 = vsel %vm1694_vm0, %v8862_v43, %v2360_v28 }
 0x73d   :  { %13181 = vst [vmem:[#allocation76_spill] sm:$0xff] %v8963_v52  ;;  %v2365_v31 = vsel %vm1694_vm0, %v8894_v55, %v2364_v21  ;;  %v8989_v13 = vperm.slane %v2527_v5, %v8334_v9  ;;  %v2504_v43 = vrot.slane %v13180_v50, 4  ;;  %v2517_v21 = vsel %vm1694_vm0, %v8539_v49, %v2516_v15 }
 0x73e   :  { %v8973_v1 = vpop.permute.xlu2 %5426  ;;  %v2551_v61 = vsel %vm1694_vm0, %v2550_v11, %v2509_v22  ;;  %v2380_v5 = vrot.slane %v13168_v38, 4  ;;  %v2417_v22 = vsel %vm1694_vm0, %v8908_v41, %v2416_v60  ;;  %v2492_v50 = vrot.slane %v13173_v57, 4 }
 0x73f   :  { %13183 = vst [vmem:[#allocation65_spill] sm:$0xff] %v8973_v1  ;;  %v2557_v55 = vperm.slane %v2551_v61, %v8334_v9  ;;  %v2505_v49 = vsel %vm1694_vm0, %v13177_v36, %v2504_v43  ;;  %v2440_v38 = vrot.slane %v8911_v59, 4  ;;  %v9017_v15 = vperm.slane %v2517_v21, %v8291_v3  ;;  %v13204_v1 = vld [vmem:[#allocation55_spill] sm:$0xff] }
 0x740   :  { %v2553_v10 = vsel %vm1694_vm0, %v2521_v42, %v2552_v14  ;;  %v2381_v41 = vsel %vm1694_vm0, %v13163_v24, %v2380_v5  ;;  %v2464_v36 = vrot.slane %v2421_v34, 4  ;;  %v9028_v59 = vperm.slane %v2505_v49, %v8291_v3 }
 0x741   :  { %v9032_v42 = vperm.slane %v2417_v22, %v8334_v9  ;;  %v2441_v24 = vsel %vm1694_vm0, %v8873_v8, %v2440_v38  ;;  %v2253_v14 = vsel %vm1694_vm0, %v8905_v2, %v2252_v4  ;;  %v9042_v34 = vperm.slane %v2553_v10, %v8334_v9 }
 0x742   :  { %5576 = vrot.lane.b32.xlu0 %v2463_v63, %s7150_s4  ;;  %v2405_v63 = vsel %vm1694_vm0, %v13162_v20, %v2404_v39  ;;  %v2392_v20 = vrot.slane %v13169_v48, 4  ;;  %v2576_v39 = vrot.slane %v8989_v13, 4  ;;  %v2493_v48 = vsel %vm1694_vm0, %v13170_v35, %v2492_v50 }
 0x743   :  { %v2413_v11 = vperm.slane %v2405_v63, %v8291_v3  ;;  %v2480_v35 = vrot.slane %v13179_v47, 4  ;;  %v2562_v60 = vrot.slane %v9017_v15, 4  ;;  %v2368_v2 = vrot.slane %v13174_v46, 4 }
 0x744   :  { %5554 = vrot.lane.b32.xlu1 %v2361_v44, %s7147_s30  ;;  %5570 = vrot.lane.b32.xlu2 %v2365_v31, %s7151_s5  ;;  %v8993_v40 = vpop.permute.xlu0 %5408  ;;  %v2577_v57 = vsel %vm1694_vm0, %v2557_v55, %v2576_v39  ;;  %v2393_v28 = vsel %vm1694_vm0, %v13164_v19, %v2392_v20  ;;  %v2465_v19 = vsel %vm1694_vm0, %v8947_v7, %v2464_v36  ;;  %v2528_v44 = vrot.slane %v8968_v25, 4 }
 0x745   :  { %v2450_v61 = vrot.slane %v2413_v11, 4  ;;  %v9046_v31 = vperm.slane %v2493_v48, %v8291_v3  ;;  %v2449_v7 = vperm.slane %v2441_v24, %v8334_v9  ;;  %v2389_v47 = vperm.slane %v2381_v41, %v8291_v3 }
 0x746   :  { %v9002_v54 = vpop.permute.xlu1 %1691  ;;  %v9004_v62 = vpop.permute.xlu2 %5440  ;;  %v2401_v63 = vperm.slane %v2393_v28, %v8291_v3  ;;  %v2563_v25 = vsel %vm1694_vm0, %v2562_v60, %v9028_v59  ;;  %v2529_v5 = vsel %vm1694_vm0, %v8938_v37, %v2528_v44  ;;  %v2481_v4 = vsel %vm1694_vm0, %v8483_v0, %v2480_v35 }
 0x747   :  { %13184 = vst [vmem:[#allocation150_spill] sm:$0xff] %v9002_v54  ;;  %v2468_v46 = vrot.slane %v9032_v42, 4  ;;  %v2578_v22 = vrot.slane %v9042_v34, 4  ;;  %v2574_v20 = vrot.slane %v2557_v55, 4  ;;  %v2538_v50 = vrot.slane %v9046_v31, 4 }
 0x748   :  { %13185 = vst [vmem:[#allocation35_spill] sm:$0xff] %v9004_v62  ;;  %v2451_v49 = vsel %vm1694_vm0, %v2450_v61, %v2401_v63  ;;  %v2369_v39 = vsel %vm1694_vm0, %v13171_v23, %v2368_v2  ;;  %v9075_v10 = vperm.slane %v2529_v5, %v8334_v9  ;;  %v9078_v37 = vperm.slane %v2563_v25, %v8334_v9 }
 0x749   :  { %v2469_v38 = vsel %vm1694_vm0, %v2449_v7, %v2468_v46  ;;  %v2426_v0 = vrot.slane %v2389_v47, 4  ;;  %v2489_v41 = vperm.slane %v2481_v4, %v8291_v3  ;;  %v2575_v23 = vsel %vm1694_vm0, %v2574_v20, %v8989_v13 }
 0x74a   :  { %5586 = vrot.lane.b32.xlu0 %v2577_v57, %s7152_s6  ;;  %v2579_v55 = vsel %vm1694_vm0, %v2578_v22, %v9075_v10  ;;  %v9087_v48 = vperm.slane %v2451_v49, %v8334_v9  ;;  %v2377_v57 = vperm.slane %v2369_v39, %v8291_v3  ;;  %v2452_v36 = vrot.slane %v2401_v63, 4  ;;  %v13191_v63 = vld [vmem:[#allocation44_spill] sm:$0xff] }
 0x74b   :  { %v2539_v24 = vsel %vm1694_vm0, %v2538_v50, %v2489_v41  ;;  %v2582_v35 = vrot.slane %v9078_v37, 4  ;;  %v2466_v2 = vrot.slane %v2449_v7, 4  ;;  %v2602_v25 = vrot.slane %v13191_v63, 4  ;;  %v13192_v50 = vld [vmem:[#allocation126_spill] sm:$0xff] }
 0x74c   :  { %5568 = vrot.lane.b32.xlu1 %v2253_v14, %s7151_s5  ;;  %5584 = vrot.lane.b32.xlu2 %v2465_v19, %s7152_s6  ;;  %v9051_v8 = vpop.permute.xlu0 %5418  ;;  %v2453_v14 = vsel %vm1694_vm0, %v2413_v11, %v2452_v36  ;;  %v2427_v61 = vsel %vm1694_vm0, %v2426_v0, %v2377_v57  ;;  %v2545_v44 = vperm.slane %v2539_v24, %v8334_v9  ;;  %v2470_v60 = vrot.slane %v9087_v48, 4  ;;  %v13194_v0 = vld [vmem:[#allocation26_spill] sm:$0xff] }
 0x74d   :  { %13186 = vst [vmem:[#allocation129_spill] sm:$0xff] %v9051_v8  ;;  %v2738_v5 = vrot.slane %v8788_v56, 4  ;;  %v9108_v46 = vperm.slane %v2427_v61, %v8334_v9  ;;  %v9111_v11 = vperm.slane %v2453_v14, %v8334_v9  ;;  %v2428_v22 = vrot.slane %v2377_v57, 4  ;;  %v13195_v57 = vld [vmem:[#allocation183_spill] sm:$0xff]  ;;  %v13197_v14 = vld [vmem:[#allocation88_spill] sm:$0xff] }
 0x74e   :  { %v9059_v43 = vpop.permute.xlu1 %5400  ;;  %v9061_v21 = vpop.permute.xlu2 %5450  ;;  %v2583_v4 = vsel %vm1694_vm0, %v2582_v35, %v2545_v44  ;;  %v2467_v7 = vsel %vm1694_vm0, %v2466_v2, %v9032_v42  ;;  %v2626_v49 = vrot.slane %v13192_v50, 4  ;;  %v13196_v42 = vld [vmem:[#allocation124_spill] sm:$0xff]  ;;  %v2614_v61 = vrot.slane %v13197_v14, 4 }
 0x74f   :  { %13187 = vst [vmem:[#allocation13_spill] sm:$0xff] %v9061_v21  ;;  %v2471_v20 = vsel %vm1694_vm0, %v2470_v60, %v9108_v46  ;;  %v2739_v36 = vsel %vm1694_vm0, %v2738_v5, %v13195_v57  ;;  %v2474_v24 = vrot.slane %v9111_v11, 4  ;;  %v2590_v35 = vrot.slane %v13196_v42, 4  ;;  %v13202_v21 = vld [vmem:[#allocation77_spill] sm:$0xff] }
 0x750   :  { %v2564_v60 = vrot.slane %v9028_v59, 4  ;;  %v2745_v54 = vperm.slane %v2739_v36, %v8291_v3  ;;  %v2627_v59 = vsel %vm1694_vm0, %v2626_v49, %v13202_v21  ;;  %v2615_v62 = vsel %vm1694_vm0, %v2614_v61, %v13204_v1  ;;  %v13206_v36 = vld [vmem:[#allocation128_spill] sm:$0xff] }
 0x751   :  { %v2633_v61 = vperm.slane %v2627_v59, %v8291_v3 }
 0x752   :  { %5600 = vrot.lane.b32.xlu0 %v2469_v38, %s7153_s7  ;;  %v2429_v38 = vsel %vm1694_vm0, %v2389_v47, %v2428_v22  ;;  %v13201_v22 = vld [vmem:[#allocation200_spill] sm:$0xff]  ;;  %v2565_v49 = vsel %vm1694_vm0, %v9017_v15, %v2564_v60  ;;  %v13208_v60 = vld [vmem:[#allocation147_spill] sm:$0xff] }
 0x753   :  { %v2437_v5 = vperm.slane %v2429_v38, %v8334_v9 }
 0x754   :  { %5594 = vrot.lane.b32.xlu2 %v2579_v55, %s7154_s8  ;;  %5578 = vrot.lane.b32.xlu1 %v2575_v23, %s7150_s4  ;;  %v9092_v28 = vpop.permute.xlu0 %5432  ;;  %v2603_v55 = vsel %vm1694_vm0, %v2602_v25, %v13194_v0  ;;  %v2540_v23 = vrot.slane %v2489_v41, 4  ;;  %v13200_v25 = vld [vmem:[#allocation164_spill] sm:$0xff] }
 0x755   :  { %13188 = vst [vmem:[#allocation209_spill] sm:$0xff] %v9092_v28  ;;  %v2714_v41 = vrot.slane %v13200_v25, 4  ;;  %v2476_v8 = vrot.slane %v2437_v5, 4  ;;  %v2628_v28 = vrot.slane %v13202_v21, 4 }
 0x756   :  { %v9097_v13 = vpop.permute.xlu1 %5410  ;;  %v9099_v19 = vpop.permute.xlu2 %5464  ;;  %v2541_v47 = vsel %vm1694_vm0, %v9046_v31, %v2540_v23  ;;  %v13203_v31 = vld [vmem:[#allocation10_spill] sm:$0xff] }
 0x757   :  { %13189 = vst [vmem:[#allocation193_spill] sm:$0xff] %v9097_v13  ;;  %v2591_v23 = vsel %vm1694_vm0, %v2590_v35, %v13203_v31  ;;  %v9155_v38 = vperm.slane %v2541_v47, %v8334_v9  ;;  %v2774_v47 = vrot.slane %v2745_v54, 4 }
 0x758   :  { %13190 = vst [vmem:[#allocation111_spill] sm:$0xff] %v9099_v19  ;;  %v2475_v19 = vsel %vm1694_vm0, %v2474_v24, %v2437_v5 }
 0x75a   :  { %5610 = vrot.lane.b32.xlu0 %v2583_v4, %s12814_s9 }
 0x75c   :  { %5608 = vrot.lane.b32.xlu2 %v2471_v20, %s12814_s9  ;;  %5592 = vrot.lane.b32.xlu1 %v2467_v7, %s7154_s8  ;;  %v9121_v39 = vpop.permute.xlu0 %5442  ;;  %v2726_v20 = vrot.slane %v13201_v22, 4  ;;  %v9142_v7 = vperm.slane %v2603_v55, %v8291_v3  ;;  %v13205_v55 = vld [vmem:[#allocation115_spill] sm:$0xff]  ;;  %s12816_s9 = smov 62  }
 0x75d   :  { %13193 = vst [vmem:[#allocation167_spill] sm:$0xff] %v9121_v39  ;;  %v2580_v39 = vrot.slane %v9075_v10, 4 }
 0x75e   :  { %v9132_v2 = vpop.permute.xlu1 %5424  ;;  %v9134_v4 = vpop.permute.xlu2 %5474  ;;  %v2727_v10 = vsel %vm1694_vm0, %v2726_v20, %v13206_v36  ;;  %v2573_v20 = vperm.slane %v2565_v49, %v8334_v9 }
 0x75f   :  { %13198 = vst [vmem:[#allocation44_spill] sm:$0xff] %v9132_v2  ;;  %v2581_v35 = vsel %vm1694_vm0, %v9042_v34, %v2580_v39  ;;  %v2621_v34 = vperm.slane %v2615_v62, %v8291_v3  ;;  %v13211_v62 = vld [vmem:[#allocation100_spill] sm:$0xff] }
 0x760   :  { %13199 = vst [vmem:[#allocation126_spill] sm:$0xff] %v9134_v4  ;;  %v2584_v4 = vrot.slane %v2545_v44, 4  ;;  %v2715_v44 = vsel %vm1694_vm0, %v2714_v41, %v13205_v55  ;;  %v2702_v41 = vrot.slane %v13208_v60, 4 }
 0x761   :  { %v2721_v39 = vperm.slane %v2715_v44, %v8291_v3 }
 0x762   :  { %5624 = vrot.lane.b32.xlu0 %v2475_v19, %s12820_s10  ;;  %v2585_v24 = vsel %vm1694_vm0, %v9078_v37, %v2584_v4  ;;  %v2638_v19 = vrot.slane %v9142_v7, 4  ;;  %v9176_v37 = vperm.slane %v2591_v23, %v8291_v3  ;;  %v2733_v4 = vperm.slane %v2727_v10, %v8291_v3 }
 0x763   :  { %v2703_v44 = vsel %vm1694_vm0, %v2702_v41, %v13211_v62  ;;  %v2750_v13 = vrot.slane %v2721_v39, 4 }
 0x764   :  { %5618 = vrot.lane.b32.xlu2 %v2585_v24, %s12818_s11  ;;  %5602 = vrot.lane.b32.xlu1 %v2581_v35, %s7153_s7  ;;  %v9171_v15 = vpop.permute.xlu0 %5456  ;;  %v2588_v35 = vrot.slane %v9155_v38, 4  ;;  %v2639_v49 = vsel %vm1694_vm0, %v2638_v19, %v9176_v37  ;;  %v2775_v23 = vsel %vm1694_vm0, %v2774_v47, %v2733_v4  ;;  %v2477_v19 = vsel %vm1694_vm0, %v9111_v11, %v2476_v8 }
 0x765   :  { %13207 = vst [vmem:[#allocation26_spill] sm:$0xff] %v9171_v15  ;;  %v2662_v15 = vrot.slane %v2633_v61, 4  ;;  %v9201_v21 = vperm.slane %v2639_v49, %v8334_v9  ;;  %v9204_v41 = vperm.slane %v2775_v23, %v8334_v9  ;;  %v2616_v8 = vrot.slane %v13204_v1, 4 }
 0x766   :  { %v9181_v59 = vpop.permute.xlu1 %5434  ;;  %v9183_v24 = vpop.permute.xlu2 %5488  ;;  %v2589_v10 = vsel %vm1694_vm0, %v2573_v20, %v2588_v35  ;;  %v2664_v35 = vrot.slane %v2621_v34, 4 }
 0x767   :  { %13209 = vst [vmem:[#allocation183_spill] sm:$0xff] %v9181_v59  ;;  %v2472_v59 = vrot.slane %v9108_v46, 4  ;;  %v2663_v5 = vsel %vm1694_vm0, %v2662_v15, %v2621_v34  ;;  %v2709_v46 = vperm.slane %v2703_v44, %v8291_v3  ;;  %v2617_v44 = vsel %vm1694_vm0, %v13197_v14, %v2616_v8 }
 0x768   :  { %13210 = vst [vmem:[#allocation124_spill] sm:$0xff] %v9183_v24  ;;  %v2776_v24 = vrot.slane %v2733_v4, 4  ;;  %v2669_v11 = vperm.slane %v2663_v5, %v8334_v9  ;;  %v2688_v1 = vrot.slane %v9201_v21, 4 }
 0x769   :  { %v2473_v47 = vsel %vm1694_vm0, %v9087_v48, %v2472_v59  ;;  %v2629_v48 = vsel %vm1694_vm0, %v13192_v50, %v2628_v28  ;;  %v2604_v59 = vrot.slane %v13194_v0, 4  ;;  %v2751_v4 = vsel %vm1694_vm0, %v2750_v13, %v2709_v46 }
 0x76a   :  { %5634 = vrot.lane.b32.xlu0 %v2589_v10, %s12816_s9  ;;  %v2777_v23 = vsel %vm1694_vm0, %v2745_v54, %v2776_v24  ;;  %v2798_v10 = vrot.slane %v9204_v41, 4  ;;  %v2586_v28 = vrot.slane %v2573_v20, 4  ;;  %v9227_v50 = vperm.slane %v2629_v48, %v8291_v3 }
 0x76b   :  { %v2665_v0 = vsel %vm1694_vm0, %v2633_v61, %v2664_v35  ;;  %v2605_v5 = vsel %vm1694_vm0, %v13191_v63, %v2604_v59  ;;  %v2689_v13 = vsel %vm1694_vm0, %v2669_v11, %v2688_v1  ;;  %v9234_v54 = vperm.slane %v2751_v4, %v8334_v9 }
 0x76c   :  { %5632 = vrot.lane.b32.xlu2 %v2477_v19, %s12816_s9  ;;  %5616 = vrot.lane.b32.xlu1 %v2473_v47, %s12818_s11  ;;  %v9209_v15 = vpop.permute.xlu0 %5466  ;;  %v9237_v14 = vperm.slane %v2777_v23, %v8334_v9  ;;  %v2592_v24 = vrot.slane %v13203_v31, 4  ;;  %v9241_v20 = vperm.slane %v2617_v44, %v8291_v3  ;;  %v2752_v19 = vrot.slane %v2709_v46, 4  ;;  %s12826_s9 = smov 66   ;;  %s12824_s11 = smov 64  }
 0x76d   :  { %13212 = vst [vmem:[#allocation88_spill] sm:$0xff] %v9209_v15  ;;  %v2716_v61 = vrot.slane %v13205_v55, 4  ;;  %v2799_v63 = vsel %vm1694_vm0, %v2798_v10, %v9234_v54  ;;  %v2587_v47 = vsel %vm1694_vm0, %v2586_v28, %v9155_v38  ;;  %v9250_v35 = vperm.slane %v2665_v0, %v8334_v9 }
 0x76e   :  { %v9216_v49 = vpop.permute.xlu1 %5448  ;;  %v9218_v34 = vpop.permute.xlu2 %5498  ;;  %v2640_v31 = vrot.slane %v9176_v37, 4  ;;  %v2613_v8 = vperm.slane %v2605_v5, %v8291_v3  ;;  %v2674_v46 = vrot.slane %v9227_v50, 4  ;;  %v2753_v48 = vsel %vm1694_vm0, %v2721_v39, %v2752_v19 }
 0x76f   :  { %13213 = vst [vmem:[#allocation164_spill] sm:$0xff] %v9216_v49  ;;  %v2717_v38 = vsel %vm1694_vm0, %v13200_v25, %v2716_v61  ;;  %v2740_v59 = vrot.slane %v13195_v57, 4  ;;  %v2802_v37 = vrot.slane %v9237_v14, 4  ;;  %v2593_v4 = vsel %vm1694_vm0, %v13196_v42, %v2592_v24 }
 0x770   :  { %13214 = vst [vmem:[#allocation200_spill] sm:$0xff] %v9218_v34  ;;  %v2675_v23 = vsel %vm1694_vm0, %v2674_v46, %v9241_v20  ;;  %v2641_v39 = vsel %vm1694_vm0, %v9142_v7, %v2640_v31  ;;  %v2761_v57 = vperm.slane %v2753_v48, %v8334_v9  ;;  %v2690_v10 = vrot.slane %v9250_v35, 4 }
 0x771   :  { %v2741_v25 = vsel %vm1694_vm0, %v8788_v56, %v2740_v59  ;;  %v2686_v28 = vrot.slane %v2669_v11, 4  ;;  %v2650_v0 = vrot.slane %v2613_v8, 4  ;;  %v9279_v42 = vperm.slane %v2717_v38, %v8291_v3 }
 0x772   :  { %5648 = vrot.lane.b32.xlu0 %v2689_v13, %s12826_s9  ;;  %v2704_v5 = vrot.slane %v13211_v62, 4  ;;  %v2803_v13 = vsel %vm1694_vm0, %v2802_v37, %v2761_v57  ;;  %v9284_v24 = vperm.slane %v2641_v39, %v8334_v9  ;;  %v9287_v7 = vperm.slane %v2675_v23, %v8334_v9 }
 0x773   :  { %v2601_v56 = vperm.slane %v2593_v4, %v8291_v3  ;;  %v2749_v19 = vperm.slane %v2741_v25, %v8291_v3  ;;  %v2728_v11 = vrot.slane %v13206_v36, 4  ;;  %v2962_v37 = vrot.slane %v8637_v45, 4 }
 0x774   :  { %5642 = vrot.lane.b32.xlu2 %v2799_v63, %s12824_s11  ;;  %5626 = vrot.lane.b32.xlu1 %v2587_v47, %s12820_s10  ;;  %v9257_v55 = vpop.permute.xlu0 %5480  ;;  %s12822_s10 = smov 68   ;;  %v2705_v62 = vsel %vm1694_vm0, %v13208_v60, %v2704_v5  ;;  %v2691_v61 = vsel %vm1694_vm0, %v2690_v10, %v9284_v24  ;;  %v2687_v63 = vsel %vm1694_vm0, %v2686_v28, %v9201_v21  ;;  %v2762_v47 = vrot.slane %v9279_v42, 4 }
 0x775   :  { %13215 = vst [vmem:[#allocation77_spill] sm:$0xff] %v9257_v55  ;;  %v2651_v46 = vsel %vm1694_vm0, %v2650_v0, %v2601_v56  ;;  %v2729_v36 = vsel %vm1694_vm0, %v13201_v22, %v2728_v11  ;;  %v2694_v60 = vrot.slane %v9287_v7, 4  ;;  %v9309_v48 = vperm.slane %v2705_v62, %v8291_v3  ;;  %v13221_v22 = vld [vmem:[#allocation99_spill] sm:$0xff] }
 0x776   :  { %v9268_v44 = vpop.permute.xlu1 %5458  ;;  %v9270_v1 = vpop.permute.xlu2 %5512  ;;  %v2786_v38 = vrot.slane %v2749_v19, 4  ;;  %v2657_v4 = vperm.slane %v2651_v46, %v8334_v9  ;;  %v2737_v23 = vperm.slane %v2729_v36, %v8291_v3  ;;  %v2850_v25 = vrot.slane %v13221_v22, 4  ;;  %v13222_v11 = vld [vmem:[#allocation195_spill] sm:$0xff]  ;;  %v13225_v36 = vld [vmem:[#allocation198_spill] sm:$0xff] }
 0x777   :  { %13216 = vst [vmem:[#allocation10_spill] sm:$0xff] %v9268_v44  ;;  %v2763_v39 = vsel %vm1694_vm0, %v2762_v47, %v9309_v48  ;;  %v2804_v28 = vrot.slane %v2761_v57, 4  ;;  %v2800_v0 = vrot.slane %v9234_v54, 4  ;;  %v2652_v5 = vrot.slane %v2601_v56, 4  ;;  %v13223_v57 = vld [vmem:[#allocation56_spill] sm:$0xff] }
 0x778   :  { %13217 = vst [vmem:[#allocation55_spill] sm:$0xff] %v9270_v1  ;;  %v2695_v10 = vsel %vm1694_vm0, %v2694_v60, %v2657_v4  ;;  %v2963_v62 = vsel %vm1694_vm0, %v2962_v37, %v13222_v11  ;;  %v9332_v47 = vperm.slane %v2763_v39, %v8334_v9  ;;  %v2826_v56 = vrot.slane %v13223_v57, 4  ;;  %v13241_v44 = vld [vmem:[#allocation12_spill] sm:$0xff] }
 0x779   :  { %v2653_v54 = vsel %vm1694_vm0, %v2613_v8, %v2652_v5  ;;  %v2950_v60 = vrot.slane %v13225_v36, 4  ;;  %v9348_v5 = vperm.slane %v2963_v62, %v8291_v3  ;;  %v2696_v1 = vrot.slane %v2657_v4, 4 }
 0x77a   :  { %5658 = vrot.lane.b32.xlu0 %v2803_v13, %s12822_s10  ;;  %v2787_v13 = vsel %vm1694_vm0, %v2786_v38, %v2737_v23 }
 0x77b   :  { %v2793_v39 = vperm.slane %v2787_v13, %v8334_v9  ;;  %v9358_v13 = vperm.slane %v2653_v54, %v8334_v9  ;;  %v2998_v4 = vrot.slane %v9348_v5, 4 }
 0x77c   :  { %5656 = vrot.lane.b32.xlu2 %v2691_v61, %s12822_s10  ;;  %5640 = vrot.lane.b32.xlu1 %v2687_v63, %s12824_s11  ;;  %v9302_v31 = vpop.permute.xlu0 %5490  ;;  %s12832_s10 = smov 72   ;;  %v2805_v61 = vsel %vm1694_vm0, %v9237_v14, %v2804_v28  ;;  %v2801_v63 = vsel %vm1694_vm0, %v9204_v41, %v2800_v0  ;;  %s12830_s11 = smov 70   ;;  %v13226_v14 = vld [vmem:[#allocation66_spill] sm:$0xff]  ;;  %v13227_v41 = vld [vmem:[#allocation153_spill] sm:$0xff]  ;;  %v2676_v28 = vrot.slane %v9241_v20, 4  ;;  %v2788_v0 = vrot.slane %v2737_v23, 4 }
 0x77d   :  { %13218 = vst [vmem:[#allocation115_spill] sm:$0xff] %v9302_v31  ;;  %v2851_v38 = vsel %vm1694_vm0, %v2850_v25, %v13226_v14  ;;  %v2938_v37 = vrot.slane %v13227_v41, 4  ;;  %v13231_v31 = vld [vmem:[#allocation196_spill] sm:$0xff] }
 0x77e   :  { %v9311_v21 = vpop.permute.xlu1 %5472  ;;  %v9313_v59 = vpop.permute.xlu2 %5522  ;;  %v2857_v25 = vperm.slane %v2851_v38, %v8291_v3  ;;  %v2789_v34 = vsel %vm1694_vm0, %v2749_v19, %v2788_v0  ;;  %v13232_v23 = vld [vmem:[#allocation180_spill] sm:$0xff]  ;;  %v2677_v54 = vsel %vm1694_vm0, %v9227_v50, %v2676_v28  ;;  %v2764_v0 = vrot.slane %v9309_v48, 4 }
 0x77f   :  { %13219 = vst [vmem:[#allocation128_spill] sm:$0xff] %v9311_v21  ;;  %v2939_v20 = vsel %vm1694_vm0, %v2938_v37, %v13231_v31  ;;  %v2951_v62 = vsel %vm1694_vm0, %v2950_v60, %v13232_v23  ;;  %v13234_v38 = vld [vmem:[#allocation192_spill] sm:$0xff]  ;;  %v13235_v37 = vld [vmem:[#allocation135_spill] sm:$0xff] }
 0x780   :  { %13220 = vst [vmem:[#allocation147_spill] sm:$0xff] %v9313_v59  ;;  %v2808_v59 = vrot.slane %v9332_v47, 4  ;;  %v2926_v60 = vrot.slane %v13235_v37, 4  ;;  %v9384_v55 = vperm.slane %v2939_v20, %v8291_v3  ;;  %v2765_v20 = vsel %vm1694_vm0, %v9279_v42, %v2764_v0 }
 0x781   :  { %v9415_v0 = vperm.slane %v2765_v20, %v8334_v9 }
 0x782   :  { %5672 = vrot.lane.b32.xlu0 %v2695_v10, %s12832_s10  ;;  %v13228_v10 = vld [vmem:[#allocation78_spill] sm:$0xff] }
 0x783   :  { %v2838_v8 = vrot.slane %v13228_v10, 4 }
 0x784   :  { %5666 = vrot.lane.b32.xlu2 %v2805_v61, %s12830_s11  ;;  %5650 = vrot.lane.b32.xlu1 %v2801_v63, %s12826_s9  ;;  %v9338_v46 = vpop.permute.xlu0 %5504  ;;  %s12828_s9 = smov 74  }
 0x785   :  { %13224 = vst [vmem:[#allocation100_spill] sm:$0xff] %v9338_v46  ;;  %v2809_v46 = vsel %vm1694_vm0, %v2793_v39, %v2808_v59  ;;  %v2839_v19 = vsel %vm1694_vm0, %v2838_v8, %v13234_v38  ;;  %v2697_v59 = vsel %vm1694_vm0, %v9287_v7, %v2696_v1  ;;  %v2886_v8 = vrot.slane %v2857_v25, 4  ;;  %v13237_v1 = vld [vmem:[#allocation41_spill] sm:$0xff] }
 0x786   :  { %v9350_v61 = vpop.permute.xlu1 %5482  ;;  %v9352_v63 = vpop.permute.xlu2 %5536  ;;  %v2845_v48 = vperm.slane %v2839_v19, %v8291_v3  ;;  %v2974_v19 = vrot.slane %v9384_v55, 4 }
 0x787   :  { %13229 = vst [vmem:[#allocation99_spill] sm:$0xff] %v9350_v61  ;;  %v13233_v61 = vld [vmem:[#allocation25_spill] sm:$0xff] }
 0x788   :  { %13230 = vst [vmem:[#allocation195_spill] sm:$0xff] %v9352_v63  ;;  %v2692_v63 = vrot.slane %v9284_v24, 4  ;;  %v2827_v15 = vsel %vm1694_vm0, %v2826_v56, %v13233_v61  ;;  %v9380_v56 = vperm.slane %v2789_v34, %v8334_v9  ;;  %v2685_v34 = vperm.slane %v2677_v54, %v8334_v9 }
 0x789   :  { %v2833_v7 = vperm.slane %v2827_v15, %v8291_v3  ;;  %v2806_v15 = vrot.slane %v2793_v39, 4  ;;  %v2888_v20 = vrot.slane %v2845_v48, 4 }
 0x78a   :  { %5682 = vrot.lane.b32.xlu0 %v2809_v46, %s12828_s9  ;;  %v2693_v24 = vsel %vm1694_vm0, %v9250_v35, %v2692_v63  ;;  %v9387_v46 = vperm.slane %v2951_v62, %v8291_v3  ;;  %v2814_v35 = vrot.slane %v13237_v1, 4  ;;  %v2810_v54 = vrot.slane %v9380_v56, 4 }
 0x78c   :  { %5680 = vrot.lane.b32.xlu2 %v2697_v59, %s12828_s9  ;;  %5664 = vrot.lane.b32.xlu1 %v2693_v24, %s12830_s11  ;;  %v9391_v50 = vpop.permute.xlu0 %5514  ;;  %v2999_v62 = vsel %vm1694_vm0, %v2998_v4, %v9387_v46  ;;  %v13240_v59 = vld [vmem:[#allocation114_spill] sm:$0xff]  ;;  %s12838_s9 = smov 78   ;;  %v2811_v39 = vsel %vm1694_vm0, %v2810_v54, %v9415_v0  ;;  %s12836_s11 = smov 76  }
 0x78d   :  { %13236 = vst [vmem:[#allocation56_spill] sm:$0xff] %v9391_v50  ;;  %v2927_v24 = vsel %vm1694_vm0, %v2926_v60, %v13240_v59  ;;  %v2700_v50 = vrot.slane %v9358_v13, 4  ;;  %v9418_v4 = vperm.slane %v2999_v62, %v8334_v9  ;;  %v2862_v60 = vrot.slane %v2833_v7, 4 }
 0x78e   :  { %v9397_v28 = vpop.permute.xlu1 %5496  ;;  %v9399_v63 = vpop.permute.xlu2 %5546  ;;  %v2933_v21 = vperm.slane %v2927_v24, %v8291_v3 }
 0x78f   :  { %13238 = vst [vmem:[#allocation198_spill] sm:$0xff] %v9397_v28  ;;  %v2887_v28 = vsel %vm1694_vm0, %v2886_v8, %v2845_v48  ;;  %v2701_v42 = vsel %vm1694_vm0, %v2685_v34, %v2700_v50  ;;  %v2807_v8 = vsel %vm1694_vm0, %v2806_v15, %v9332_v47  ;;  %v3022_v54 = vrot.slane %v9418_v4, 4 }
 0x790   :  { %13239 = vst [vmem:[#allocation66_spill] sm:$0xff] %v9399_v63  ;;  %v2815_v63 = vsel %vm1694_vm0, %v2814_v35, %v13241_v44  ;;  %v9427_v50 = vperm.slane %v2887_v28, %v8334_v9  ;;  %v2975_v24 = vsel %vm1694_vm0, %v2974_v19, %v2933_v21 }
 0x791   :  { %v2821_v35 = vperm.slane %v2815_v63, %v8291_v3  ;;  %v2889_v63 = vsel %vm1694_vm0, %v2857_v25, %v2888_v20  ;;  %v2981_v48 = vperm.slane %v2975_v24, %v8334_v9  ;;  %v2816_v24 = vrot.slane %v13241_v44, 4 }
 0x792   :  { %5696 = vrot.lane.b32.xlu0 %v2701_v42, %s12838_s9  ;;  %v2910_v15 = vrot.slane %v9427_v50, 4 }
 0x793   :  { %v2863_v28 = vsel %vm1694_vm0, %v2862_v60, %v2821_v35  ;;  %v2964_v60 = vrot.slane %v13222_v11, 4  ;;  %v2817_v44 = vsel %vm1694_vm0, %v13237_v1, %v2816_v24 }
 0x794   :  { %5690 = vrot.lane.b32.xlu2 %v2811_v39, %s12836_s11  ;;  %5674 = vrot.lane.b32.xlu1 %v2807_v8, %s12832_s10  ;;  %v9432_v62 = vpop.permute.xlu0 %5528  ;;  %v2698_v39 = vrot.slane %v2685_v34, 4  ;;  %v2828_v8 = vrot.slane %v13233_v61, 4  ;;  %v9447_v19 = vperm.slane %v2863_v28, %v8334_v9  ;;  %s12834_s10 = smov 80   ;;  %v2976_v28 = vrot.slane %v2933_v21, 4 }
 0x795   :  { %13242 = vst [vmem:[#allocation153_spill] sm:$0xff] %v9432_v62  ;;  %v3023_v62 = vsel %vm1694_vm0, %v3022_v54, %v2981_v48  ;;  %v2840_v21 = vrot.slane %v13234_v38, 4 }
 0x796   :  { %v9436_v42 = vpop.permute.xlu1 %5506  ;;  %v9438_v47 = vpop.permute.xlu2 %5560  ;;  %v2829_v25 = vsel %vm1694_vm0, %v13223_v57, %v2828_v8  ;;  %v2911_v61 = vsel %vm1694_vm0, %v2910_v15, %v9447_v19  ;;  %v2699_v34 = vsel %vm1694_vm0, %v2698_v39, %v9358_v13  ;;  %v2965_v57 = vsel %vm1694_vm0, %v8637_v45, %v2964_v60 }
 0x797   :  { %13243 = vst [vmem:[#allocation78_spill] sm:$0xff] %v9436_v42  ;;  %v9450_v42 = vperm.slane %v2889_v63, %v8334_v9  ;;  %v9471_v54 = vperm.slane %v2829_v25, %v8291_v3  ;;  %v2940_v13 = vrot.slane %v13231_v31, 4  ;;  %v2973_v39 = vperm.slane %v2965_v57, %v8291_v3 }
 0x798   :  { %13244 = vst [vmem:[#allocation196_spill] sm:$0xff] %v9438_v47  ;;  %v2864_v47 = vrot.slane %v2821_v35, 4  ;;  %v2977_v31 = vsel %vm1694_vm0, %v9384_v55, %v2976_v28  ;;  %v3024_v25 = vrot.slane %v2981_v48, 4 }
 0x799   :  { %v2914_v11 = vrot.slane %v9450_v42, 4  ;;  %v2941_v1 = vsel %vm1694_vm0, %v13227_v41, %v2940_v13  ;;  %v9505_v48 = vperm.slane %v2977_v31, %v8334_v9  ;;  %v2928_v13 = vrot.slane %v13240_v59, 4 }
 0x79a   :  { %5706 = vrot.lane.b32.xlu0 %v3023_v62, %s12834_s10  ;;  %v2865_v35 = vsel %vm1694_vm0, %v2833_v7, %v2864_v47  ;;  %v2852_v62 = vrot.slane %v13226_v14, 4  ;;  %v2952_v7 = vrot.slane %v13232_v23, 4  ;;  %v3000_v47 = vrot.slane %v9387_v46, 4 }
 0x79b   :  { %v2873_v45 = vperm.slane %v2865_v35, %v8334_v9  ;;  %v2874_v23 = vrot.slane %v9471_v54, 4  ;;  %v3025_v46 = vsel %vm1694_vm0, %v9418_v4, %v3024_v25  ;;  %v3028_v28 = vrot.slane %v9505_v48, 4 }
 0x79c   :  { %5704 = vrot.lane.b32.xlu2 %v2911_v61, %s12834_s10  ;;  %5688 = vrot.lane.b32.xlu1 %v2699_v34, %s12836_s11  ;;  %v9462_v20 = vpop.permute.xlu0 %5538  ;;  %v2853_v14 = vsel %vm1694_vm0, %v13221_v22, %v2852_v62  ;;  %v2812_v22 = vrot.slane %v9415_v0, 4  ;;  %s12844_s10 = smov 84   ;;  %v3001_v55 = vsel %vm1694_vm0, %v9348_v5, %v3000_v47  ;;  %v2953_v38 = vsel %vm1694_vm0, %v13225_v36, %v2952_v7  ;;  %s12842_s11 = smov 82  }
 0x79d   :  { %13245 = vst [vmem:[#allocation180_spill] sm:$0xff] %v9462_v20  ;;  %v2915_v8 = vsel %vm1694_vm0, %v2914_v11, %v2873_v45  ;;  %v2861_v60 = vperm.slane %v2853_v14, %v8291_v3  ;;  %v3010_v61 = vrot.slane %v2973_v39, 4  ;;  %v9512_v5 = vperm.slane %v2817_v44, %v8291_v3  ;;  %v13251_v11 = vld [vmem:[#allocation91_spill] sm:$0xff] }
 0x79e   :  { %v9474_v63 = vpop.permute.xlu1 %5520  ;;  %v9476_v15 = vpop.permute.xlu2 %5570  ;;  %v2813_v0 = vsel %vm1694_vm0, %v9380_v56, %v2812_v22  ;;  %v2841_v36 = vsel %vm1694_vm0, %v13228_v10, %v2840_v21  ;;  %v3009_v4 = vperm.slane %v3001_v55, %v8334_v9  ;;  %v9518_v34 = vperm.slane %v2941_v1, %v8291_v3  ;;  %v13252_v22 = vld [vmem:[#allocation79_spill] sm:$0xff]  ;;  %v13253_v1 = vld [vmem:[#allocation45_spill] sm:$0xff] }
 0x79f   :  { %13246 = vst [vmem:[#allocation25_spill] sm:$0xff] %v9474_v63  ;;  %v2898_v56 = vrot.slane %v2861_v60, 4  ;;  %v2961_v35 = vperm.slane %v2953_v38, %v8291_v3  ;;  %v3074_v24 = vrot.slane %v13251_v11, 4  ;;  %v2875_v10 = vsel %vm1694_vm0, %v2874_v23, %v9512_v5  ;;  %v13276_v63 = vld [vmem:[#allocation16_spill] sm:$0xff] }
 0x7a0   :  { %13247 = vst [vmem:[#allocation192_spill] sm:$0xff] %v9476_v15  ;;  %v2849_v14 = vperm.slane %v2841_v36, %v8291_v3  ;;  %v2929_v44 = vsel %vm1694_vm0, %v13235_v37, %v2928_v13  ;;  %v3029_v47 = vsel %vm1694_vm0, %v3009_v4, %v3028_v28  ;;  %v2916_v31 = vrot.slane %v2873_v45, 4 }
 0x7a1   :  { %v3011_v7 = vsel %vm1694_vm0, %v3010_v61, %v2961_v35  ;;  %v2912_v21 = vrot.slane %v9447_v19, 4  ;;  %v9539_v59 = vperm.slane %v2875_v10, %v8334_v9  ;;  %v3075_v23 = vsel %vm1694_vm0, %v3074_v24, %v13252_v22  ;;  %v13255_v61 = vld [vmem:[#allocation9_spill] sm:$0xff] }
 0x7a2   :  { %5720 = vrot.lane.b32.xlu0 %v2915_v8, %s12844_s10  ;;  %v2986_v8 = vrot.slane %v9518_v34, 4  ;;  %v2899_v25 = vsel %vm1694_vm0, %v2898_v56, %v2849_v14  ;;  %v2917_v37 = vsel %vm1694_vm0, %v9450_v42, %v2916_v31  ;;  %v9549_v19 = vperm.slane %v3011_v7, %v8334_v9 }
 0x7a3   :  { %v2913_v45 = vsel %vm1694_vm0, %v9427_v50, %v2912_v21  ;;  %v3050_v55 = vrot.slane %v13253_v1, 4  ;;  %v2937_v38 = vperm.slane %v2929_v44, %v8291_v3  ;;  %v3062_v36 = vrot.slane %v13255_v61, 4  ;;  %v13259_v21 = vld [vmem:[#allocation8_spill] sm:$0xff] }
 0x7a4   :  { %5714 = vrot.lane.b32.xlu2 %v3025_v46, %s12842_s11  ;;  %5698 = vrot.lane.b32.xlu1 %v2813_v0, %s12838_s9  ;;  %v9509_v41 = vpop.permute.xlu0 %5552  ;;  %s12840_s9 = smov 86   ;;  %v3012_v46 = vrot.slane %v2961_v35, 4  ;;  %v2900_v42 = vrot.slane %v2849_v14, 4  ;;  %v2905_v56 = vperm.slane %v2899_v25, %v8334_v9  ;;  %v9560_v50 = vperm.slane %v3075_v23, %v8291_v3  ;;  %v13260_v23 = vld [vmem:[#allocation67_spill] sm:$0xff] }
 0x7a5   :  { %13248 = vst [vmem:[#allocation135_spill] sm:$0xff] %v9509_v41  ;;  %v2987_v35 = vsel %vm1694_vm0, %v2986_v8, %v2937_v38  ;;  %v2920_v7 = vrot.slane %v9539_v59, 4  ;;  %v3030_v44 = vrot.slane %v9549_v19, 4  ;;  %v3026_v14 = vrot.slane %v3009_v4, 4  ;;  %v13261_v8 = vld [vmem:[#allocation36_spill] sm:$0xff] }
 0x7a6   :  { %v9521_v62 = vpop.permute.xlu1 %5530  ;;  %v9523_v57 = vpop.permute.xlu2 %5584  ;;  %v3013_v24 = vsel %vm1694_vm0, %v2973_v39, %v3012_v46  ;;  %v2901_v10 = vsel %vm1694_vm0, %v2861_v60, %v2900_v42  ;;  %v3051_v25 = vsel %vm1694_vm0, %v3050_v55, %v13259_v21  ;;  %v3063_v39 = vsel %vm1694_vm0, %v3062_v36, %v13260_v23  ;;  %v13270_v41 = vld [vmem:[#allocation212_spill] sm:$0xff] }
 0x7a7   :  { %13249 = vst [vmem:[#allocation41_spill] sm:$0xff] %v9521_v62  ;;  %v9581_v60 = vperm.slane %v3013_v24, %v8334_v9  ;;  %v3038_v46 = vrot.slane %v13261_v8, 4  ;;  %v3110_v4 = vrot.slane %v9560_v50, 4  ;;  %v2988_v42 = vrot.slane %v2937_v38, 4 }
 0x7a8   :  { %13250 = vst [vmem:[#allocation114_spill] sm:$0xff] %v9523_v57  ;;  %v9587_v55 = vperm.slane %v2901_v10, %v8334_v9  ;;  %v2876_v36 = vrot.slane %v9512_v5, 4  ;;  %v3027_v24 = vsel %vm1694_vm0, %v3026_v14, %v9505_v48  ;;  %v9599_v38 = vperm.slane %v3063_v39, %v8291_v3 }
 0x7a9   :  { %v2989_v10 = vsel %vm1694_vm0, %v9518_v34, %v2988_v42  ;;  %v3034_v48 = vrot.slane %v9581_v60, 4  ;;  %v13267_v34 = vld [vmem:[#allocation132_spill] sm:$0xff]  ;;  %v3174_v62 = vrot.slane %v13270_v41, 4 }
 0x7aa   :  { %5730 = vrot.lane.b32.xlu0 %v3029_v47, %s12840_s9  ;;  %v13258_v47 = vld [vmem:[#allocation110_spill] sm:$0xff]  ;;  %v2877_v14 = vsel %vm1694_vm0, %v9471_v54, %v2876_v36  ;;  %v3111_v57 = vsel %vm1694_vm0, %v3110_v4, %v9599_v38  ;;  %v2997_v54 = vperm.slane %v2989_v10, %v8334_v9  ;;  %v2918_v36 = vrot.slane %v2905_v56, 4 }
 0x7ab   :  { %v3162_v31 = vrot.slane %v13258_v47, 4 }
 0x7ac   :  { %5728 = vrot.lane.b32.xlu2 %v2917_v37, %s12840_s9  ;;  %5712 = vrot.lane.b32.xlu1 %v2913_v45, %s12842_s11  ;;  %v9555_v0 = vpop.permute.xlu0 %5562  ;;  %v2921_v37 = vsel %vm1694_vm0, %v2905_v56, %v2920_v7  ;;  %v9578_v45 = vperm.slane %v2987_v35, %v8334_v9  ;;  %s12850_s9 = smov 90   ;;  %v3186_v7 = vrot.slane %v8836_v58, 4  ;;  %s12848_s11 = smov 88   ;;  %v3035_v4 = vsel %vm1694_vm0, %v3034_v48, %v2997_v54 }
 0x7ad   :  { %13254 = vst [vmem:[#allocation12_spill] sm:$0xff] %v9555_v0  ;;  %v3163_v42 = vsel %vm1694_vm0, %v3162_v31, %v13267_v34  ;;  %v13268_v0 = vld [vmem:[#allocation185_spill] sm:$0xff]  ;;  %v9634_v31 = vperm.slane %v3111_v57, %v8334_v9 }
 0x7ae   :  { %v9563_v13 = vpop.permute.xlu1 %5544  ;;  %v9565_v28 = vpop.permute.xlu2 %5594  ;;  %v3031_v35 = vsel %vm1694_vm0, %v3030_v44, %v9578_v45  ;;  %v13263_v44 = vld [vmem:[#allocation149_spill] sm:$0xff]  ;;  %v9638_v10 = vperm.slane %v3163_v42, %v8291_v3  ;;  %v3188_v2 = vrot.slane %v13268_v0, 4 }
 0x7af   :  { %13256 = vst [vmem:[#allocation91_spill] sm:$0xff] %v9563_v13 }
 0x7b0   :  { %13257 = vst [vmem:[#allocation79_spill] sm:$0xff] %v9565_v28  ;;  %v9596_v28 = vperm.slane %v3051_v25, %v8291_v3  ;;  %v13264_v25 = vld [vmem:[#allocation15_spill] sm:$0xff] }
 0x7b1   :  { %v3039_v39 = vsel %vm1694_vm0, %v3038_v46, %v13264_v25 }
 0x7b2   :  { %5744 = vrot.lane.b32.xlu0 %v2921_v37, %s12850_s9  ;;  %v3150_v37 = vrot.slane %v13263_v44, 4  ;;  %v3086_v46 = vrot.slane %v9596_v28, 4 }
 0x7b4   :  { %5738 = vrot.lane.b32.xlu2 %v3031_v35, %s12848_s11  ;;  %5722 = vrot.lane.b32.xlu1 %v3027_v24, %s12844_s10  ;;  %v9603_v5 = vpop.permute.xlu0 %5576  ;;  %v2922_v24 = vrot.slane %v9587_v55, 4  ;;  %s12846_s10 = smov 92  }
 0x7b5   :  { %13262 = vst [vmem:[#allocation45_spill] sm:$0xff] %v9603_v5  ;;  %v3187_v5 = vsel %vm1694_vm0, %v3186_v7, %v13268_v0  ;;  %v3045_v7 = vperm.slane %v3039_v39, %v8291_v3  ;;  %v13272_v39 = vld [vmem:[#allocation170_spill] sm:$0xff] }
 0x7b6   :  { %v9613_v15 = vpop.permute.xlu1 %5554  ;;  %v9615_v35 = vpop.permute.xlu2 %5608  ;;  %v3193_v56 = vperm.slane %v3187_v5, %v8291_v3  ;;  %v3175_v42 = vsel %vm1694_vm0, %v3174_v62, %v13272_v39 }
 0x7b7   :  { %13265 = vst [vmem:[#allocation9_spill] sm:$0xff] %v9613_v15  ;;  %v9627_v15 = vperm.slane %v2877_v14, %v8334_v9  ;;  %v2919_v14 = vsel %vm1694_vm0, %v2918_v36, %v9539_v59  ;;  %v3087_v5 = vsel %vm1694_vm0, %v3086_v46, %v3045_v7  ;;  %v13275_v36 = vld [vmem:[#allocation14_spill] sm:$0xff]  ;;  %v3181_v49 = vperm.slane %v3175_v42, %v8291_v3 }
 0x7b8   :  { %13266 = vst [vmem:[#allocation110_spill] sm:$0xff] %v9615_v35  ;;  %v13269_v35 = vld [vmem:[#allocation102_spill] sm:$0xff]  ;;  %v3222_v13 = vrot.slane %v3193_v56, 4  ;;  %v3088_v53 = vrot.slane %v3045_v7, 4 }
 0x7b9   :  { %v3151_v20 = vsel %vm1694_vm0, %v3150_v37, %v13269_v35  ;;  %v2923_v37 = vsel %vm1694_vm0, %v2922_v24, %v9627_v15  ;;  %v3198_v24 = vrot.slane %v9638_v10, 4 }
 0x7ba   :  { %5754 = vrot.lane.b32.xlu0 %v3035_v4, %s12846_s10  ;;  %v9647_v48 = vperm.slane %v3151_v20, %v8291_v3  ;;  %v3134_v4 = vrot.slane %v9634_v31, 4  ;;  %v3223_v42 = vsel %vm1694_vm0, %v3222_v13, %v3181_v49 }
 0x7bc   :  { %5752 = vrot.lane.b32.xlu2 %v2923_v37, %s12846_s10  ;;  %5736 = vrot.lane.b32.xlu1 %v2919_v14, %s12848_s11  ;;  %v9651_v57 = vpop.permute.xlu0 %5586  ;;  %v3093_v14 = vperm.slane %v3087_v5, %v8334_v9  ;;  %v3199_v62 = vsel %vm1694_vm0, %v3198_v24, %v9647_v48  ;;  %v3052_v37 = vrot.slane %v13259_v21, 4  ;;  %v3076_v5 = vrot.slane %v13252_v22, 4  ;;  %s12856_s10 = smov 96   ;;  %v13277_v21 = vld [vmem:[#allocation17_spill] sm:$0xff]  ;;  %s12854_s11 = smov 94  }
 0x7bd   :  { %13271 = vst [vmem:[#allocation8_spill] sm:$0xff] %v9651_v57  ;;  %v3040_v57 = vrot.slane %v13264_v25, 4  ;;  %v3189_v24 = vsel %vm1694_vm0, %v8836_v58, %v3188_v2  ;;  %v3712_v7 = vrot.slane %v13277_v21, 4  ;;  %v3089_v2 = vsel %vm1694_vm0, %v9596_v28, %v3088_v53 }
 0x7be   :  { %v9658_v59 = vpop.permute.xlu1 %5568  ;;  %v9660_v20 = vpop.permute.xlu2 %5618  ;;  %v3135_v30 = vsel %vm1694_vm0, %v3134_v4, %v3093_v14 }
 0x7bf   :  { %13273 = vst [vmem:[#allocation67_spill] sm:$0xff] %v9658_v59  ;;  %v3036_v59 = vrot.slane %v2997_v54, 4 }
 0x7c0   :  { %13274 = vst [vmem:[#allocation36_spill] sm:$0xff] %v9660_v20  ;;  %v3032_v20 = vrot.slane %v9578_v45, 4  ;;  %v9683_v45 = vperm.slane %v3199_v62, %v8334_v9 }
 0x7c1   :  { %v3037_v0 = vsel %vm1694_vm0, %v9581_v60, %v3036_v59  ;;  %v3064_v60 = vrot.slane %v13260_v23, 4  ;;  %v3077_v59 = vsel %vm1694_vm0, %v13251_v11, %v3076_v5  ;;  %v3164_v23 = vrot.slane %v13267_v34, 4 }
 0x7c2   :  { %5768 = vrot.lane.b32.xlu0 %v3135_v30, %s12856_s10  ;;  %v3033_v54 = vsel %vm1694_vm0, %v9549_v19, %v3032_v20  ;;  %v13281_v19 = vld [vmem:[#allocation131_spill] sm:$0xff]  ;;  %v9699_v20 = vperm.slane %v3223_v42, %v8334_v9  ;;  %v9706_v30 = vperm.slane %v3189_v24, %v8291_v3  ;;  %v3176_v11 = vrot.slane %v13272_v39, 4 }
 0x7c3   :  { %v3710_v13 = vrot.slane %v13281_v19, 4  ;;  %v3713_v62 = vsel %vm1694_vm0, %v13281_v19, %v3712_v7  ;;  %v3248_v5 = vrot.slane %v9683_v45, 4  ;;  %v9716_v42 = vperm.slane %v3089_v2, %v8334_v9 }
 0x7c4   :  { %5762 = vrot.lane.b32.xlu2 %v3037_v0, %s12854_s11  ;;  %5746 = vrot.lane.b32.xlu1 %v3033_v54, %s12850_s9  ;;  %v9690_v58 = vpop.permute.xlu0 %5600  ;;  %v3053_v0 = vsel %vm1694_vm0, %v13253_v1, %v3052_v37  ;;  %v3224_v54 = vrot.slane %v3181_v49, 4  ;;  %v3112_v7 = vrot.slane %v9599_v38, 4  ;;  %v9720_v49 = vperm.slane %v3077_v59, %v8291_v3  ;;  %s12852_s9 = smov 98   ;;  %v13284_v59 = vld [vmem:[#allocation28_spill] sm:$0xff] }
 0x7c5   :  { %13280 = vst [vmem:[#allocation149_spill] sm:$0xff] %v9690_v58  ;;  %v3136_v1 = vrot.slane %v3093_v14, 4  ;;  %v3065_v24 = vsel %vm1694_vm0, %v13255_v61, %v3064_v60  ;;  %v3177_v34 = vsel %vm1694_vm0, %v13270_v41, %v3176_v11  ;;  %v3249_v39 = vsel %vm1694_vm0, %v9699_v20, %v3248_v5 }
 0x7c6   :  { %v9708_v53 = vpop.permute.xlu2 %5632  ;;  %v9710_v28 = vpop.permute.xlu1 %5578  ;;  %v3225_v37 = vsel %vm1694_vm0, %v3193_v56, %v3224_v54  ;;  %v2924_v2 = vrot.slane %v9627_v15, 4  ;;  %v3200_v19 = vrot.slane %v9647_v48, 4  ;;  %v3234_v38 = vrot.slane %v9706_v30, 4 }
 0x7c7   :  { %13282 = vst [vmem:[#allocation15_spill] sm:$0xff] %v9708_v53  ;;  %v3137_v56 = vsel %vm1694_vm0, %v9634_v31, %v3136_v1  ;;  %v3113_v61 = vsel %vm1694_vm0, %v9560_v50, %v3112_v7  ;;  %v3152_v41 = vrot.slane %v13269_v35, 4  ;;  %v3165_v14 = vsel %vm1694_vm0, %v13258_v47, %v3164_v23 }
 0x7c8   :  { %13283 = vst [vmem:[#allocation132_spill] sm:$0xff] %v9710_v28  ;;  %v2925_v15 = vsel %vm1694_vm0, %v9587_v55, %v2924_v2  ;;  %v9743_v48 = vperm.slane %v3225_v37, %v8334_v9  ;;  %v9746_v60 = vperm.slane %v3713_v62, %v8291_v3  ;;  %v3276_v54 = vrot.slane %v13284_v59, 4  ;;  %v13319_v28 = vld [vmem:[#allocation46_spill] sm:$0xff] }
 0x7c9   :  { %v3122_v31 = vrot.slane %v9720_v49, 4  ;;  %v9751_v50 = vperm.slane %v3177_v34, %v8291_v3  ;;  %v3041_v55 = vsel %vm1694_vm0, %v13261_v8, %v3040_v57  ;;  %v9762_v35 = vperm.slane %v3053_v0, %v8291_v3  ;;  %v13288_v0 = vld [vmem:[#allocation157_spill] sm:$0xff] }
 0x7ca   :  { %5778 = vrot.lane.b32.xlu0 %v3249_v39, %s12852_s9  ;;  %v3153_v62 = vsel %vm1694_vm0, %v13263_v44, %v3152_v41  ;;  %v9767_v23 = vperm.slane %v3113_v61, %v8334_v9  ;;  %v3073_v11 = vperm.slane %v3065_v24, %v8291_v3  ;;  %v9771_v5 = vperm.slane %v3165_v14, %v8291_v3  ;;  %v13289_v39 = vld [vmem:[#allocation43_spill] sm:$0xff] }
 0x7cb   :  { %v3201_v8 = vsel %vm1694_vm0, %v9638_v10, %v3200_v19  ;;  %v3235_v57 = vsel %vm1694_vm0, %v3234_v38, %v9751_v50  ;;  %v3274_v44 = vrot.slane %v13288_v0, 4  ;;  %v3140_v1 = vrot.slane %v9716_v42, 4 }
 0x7cc   :  { %5776 = vrot.lane.b32.xlu2 %v3137_v56, %s12852_s9  ;;  %5760 = vrot.lane.b32.xlu1 %v2925_v15, %s12854_s11  ;;  %v9755_v47 = vpop.permute.xlu0 %5610  ;;  %v3250_v37 = vrot.slane %v9743_v48, 4  ;;  %v3246_v24 = vrot.slane %v9699_v20, 4  ;;  %v3277_v34 = vsel %vm1694_vm0, %v13288_v0, %v3276_v54  ;;  %v3262_v2 = vrot.slane %v13289_v39, 4  ;;  %s12863_s9 = smov 102   ;;  %s12860_s11 = smov 100  }
 0x7cd   :  { %13285 = vst [vmem:[#allocation185_spill] sm:$0xff] %v9755_v47  ;;  %v9789_v56 = vperm.slane %v3153_v62, %v8291_v3  ;;  %v3123_v10 = vsel %vm1694_vm0, %v3122_v31, %v3073_v11  ;;  %v13290_v19 = vrot.slane %v13275_v36, 4  ;;  %v3141_v61 = vsel %vm1694_vm0, %v9767_v23, %v3140_v1  ;;  %v13292_v1 = vld [vmem:[#allocation27_spill] sm:$0xff]  ;;  %v13300_v47 = vld [vmem:[#allocation37_spill] sm:$0xff] }
 0x7ce   :  { %v9773_v7 = vpop.permute.xlu2 %5642  ;;  %v9775_v25 = vpop.permute.xlu1 %5592  ;;  %v9799_v20 = vperm.slane %v3201_v8, %v8334_v9  ;;  %v9802_v41 = vperm.slane %v3235_v57, %v8334_v9  ;;  %v3711_v14 = vsel %vm1694_vm0, %v3710_v13, %v13277_v21  ;;  %v3049_v15 = vperm.slane %v3041_v55, %v8291_v3 }
 0x7cf   :  { %13286 = vst [vmem:[#allocation102_spill] sm:$0xff] %v9773_v7  ;;  %v3265_v38 = vsel %vm1694_vm0, %v13289_v39, %v13290_v19  ;;  %v3098_v54 = vrot.slane %v9762_v35, 4  ;;  %v3210_v31 = vrot.slane %v9771_v5, 4  ;;  %v3275_v62 = vsel %vm1694_vm0, %v3274_v44, %v13284_v59  ;;  %v13298_v7 = vld [vmem:[#allocation30_spill] sm:$0xff] }
 0x7d0   :  { %13287 = vst [vmem:[#allocation212_spill] sm:$0xff] %v9775_v25  ;;  %v3251_v8 = vsel %vm1694_vm0, %v3250_v37, %v9799_v20  ;;  %v3247_v57 = vsel %vm1694_vm0, %v3246_v24, %v9683_v45  ;;  %v9817_v21 = vperm.slane %v3123_v10, %v8334_v9  ;;  %v3285_v13 = vperm.slane %v3277_v34, %v8291_v3  ;;  %v13308_v37 = vld [vmem:[#allocation203_spill] sm:$0xff] }
 0x7d1   :  { %v3273_v55 = vperm.slane %v3265_v38, %v8291_v3  ;;  %v3124_v0 = vrot.slane %v3073_v11, 4  ;;  %v3211_v44 = vsel %vm1694_vm0, %v3210_v31, %v9789_v56  ;;  %v3263_v34 = vsel %vm1694_vm0, %v3262_v2, %v13275_v36 }
 0x7d2   :  { %5792 = vrot.lane.b32.xlu0 %v3141_v61, %s12863_s9  ;;  %v3254_v39 = vrot.slane %v9802_v41, 4  ;;  %v9833_v11 = vperm.slane %v3711_v14, %v8291_v3  ;;  %v3281_v10 = vperm.slane %v3275_v62, %v8291_v3  ;;  %v3099_v31 = vsel %vm1694_vm0, %v3098_v54, %v3049_v15 }
 0x7d3   :  { %v3125_v19 = vsel %vm1694_vm0, %v9720_v49, %v3124_v0  ;;  %v3217_v36 = vperm.slane %v3211_v44, %v8334_v9  ;;  %v3142_v2 = vrot.slane %v9817_v21, 4  ;;  %v3138_v14 = vrot.slane %v9767_v23, 4 }
 0x7d4   :  { %5786 = vrot.lane.b32.xlu2 %v3251_v8, %s12860_s11  ;;  %5770 = vrot.lane.b32.xlu1 %v3247_v57, %s12856_s10  ;;  %v9823_v59 = vpop.permute.xlu0 %5624  ;;  %v3100_v57 = vrot.slane %v3049_v15, 4  ;;  %v3322_v4 = vrot.slane %v3285_v13, 4  ;;  %v3269_v62 = vperm.slane %v3263_v34, %v8291_v3  ;;  %v3324_v24 = vrot.slane %v3273_v55, 4  ;;  %s12858_s10 = smov 104   ;;  %v13296_v34 = vld [vmem:[#allocation101_spill] sm:$0xff] }
 0x7d5   :  { %13291 = vst [vmem:[#allocation170_spill] sm:$0xff] %v9823_v59  ;;  %v3410_v49 = vrot.slane %v8670_v29, 4  ;;  %v3255_v0 = vsel %vm1694_vm0, %v3254_v39, %v3217_v36  ;;  %v9851_v45 = vperm.slane %v3099_v31, %v8334_v9  ;;  %v9854_v54 = vperm.slane %v3125_v19, %v8334_v9  ;;  %v13307_v59 = vld [vmem:[#allocation166_spill] sm:$0xff] }
 0x7d6   :  { %v9838_v38 = vpop.permute.xlu2 %5656  ;;  %v9840_v61 = vpop.permute.xlu1 %5602  ;;  %v3310_v8 = vrot.slane %v3281_v10, 4  ;;  %v3101_v23 = vsel %vm1694_vm0, %v9762_v35, %v3100_v57  ;;  %v3323_v15 = vsel %vm1694_vm0, %v3322_v4, %v3273_v55  ;;  %v3298_v46 = vrot.slane %v13296_v34, 4  ;;  %v13303_v57 = vld [vmem:[#allocation160_spill] sm:$0xff] }
 0x7d7   :  { %13294 = vst [vmem:[#allocation14_spill] sm:$0xff] %v9838_v38  ;;  %v3212_v39 = vrot.slane %v9789_v56, 4  ;;  %v3143_v31 = vsel %vm1694_vm0, %v3142_v2, %v9851_v45  ;;  %v3139_v19 = vsel %vm1694_vm0, %v3138_v14, %v9716_v42  ;;  %v13302_v56 = vld [vmem:[#allocation163_spill] sm:$0xff]  ;;  %v3146_v2 = vrot.slane %v9854_v54, 4 }
 0x7d8   :  { %13295 = vst [vmem:[#allocation16_spill] sm:$0xff] %v9840_v61  ;;  %v3411_v55 = vsel %vm1694_vm0, %v3410_v49, %v13302_v56  ;;  %v3311_v42 = vsel %vm1694_vm0, %v3310_v8, %v3269_v62  ;;  %v3325_v14 = vsel %vm1694_vm0, %v3285_v13, %v3324_v24  ;;  %v3312_v53 = vrot.slane %v3269_v62, 4  ;;  %v13306_v49 = vld [vmem:[#allocation68_spill] sm:$0xff] }
 0x7d9   :  { %v3386_v8 = vrot.slane %v13307_v59, 4  ;;  %v3398_v13 = vrot.slane %v13308_v37, 4  ;;  %v3213_v24 = vsel %vm1694_vm0, %v9771_v5, %v3212_v39  ;;  %v3236_v62 = vrot.slane %v9751_v50, 4 }
 0x7da   :  { %5802 = vrot.lane.b32.xlu0 %v3255_v0, %s12858_s10  ;;  %v9899_v22 = vperm.slane %v3411_v55, %v8291_v3  ;;  %v3252_v58 = vrot.slane %v9799_v20, 4  ;;  %v9916_v50 = vperm.slane %v3213_v24, %v8334_v9  ;;  %v3313_v55 = vsel %vm1694_vm0, %v3281_v10, %v3312_v53  ;;  %v13321_v0 = vld [vmem:[#allocation47_spill] sm:$0xff] }
 0x7db   :  { %v3237_v39 = vsel %vm1694_vm0, %v9706_v30, %v3236_v62  ;;  %v3722_v44 = vrot.slane %v13321_v0, 4  ;;  %v3300_v52 = vrot.slane %v13306_v49, 4 }
 0x7dc   :  { %5800 = vrot.lane.b32.xlu2 %v3143_v31, %s12858_s10  ;;  %5784 = vrot.lane.b32.xlu1 %v3139_v19, %s12860_s11  ;;  %v9873_v4 = vpop.permute.xlu0 %5634  ;;  %v9886_v31 = vperm.slane %v3101_v23, %v8334_v9  ;;  %v9889_v19 = vperm.slane %v3323_v15, %v8334_v9  ;;  %v9902_v23 = vperm.slane %v3311_v42, %v8334_v9  ;;  %s12871_s10 = smov 108   ;;  %v13311_v42 = vld [vmem:[#allocation118_spill] sm:$0xff]  ;;  %v3446_v30 = vrot.slane %v9899_v22, 4  ;;  %s12869_s11 = smov 106  }
 0x7dd   :  { %13301 = vst [vmem:[#allocation17_spill] sm:$0xff] %v9873_v4  ;;  %v3299_v4 = vsel %vm1694_vm0, %v3298_v46, %v13306_v49  ;;  %v9905_v15 = vperm.slane %v3325_v14, %v8334_v9  ;;  %v3934_v14 = vrot.slane %v13319_v28, 4  ;;  %v3260_v25 = vrot.slane %v9916_v50, 4 }
 0x7de   :  { %v9881_v38 = vpop.permute.xlu2 %5666  ;;  %v9883_v35 = vpop.permute.xlu1 %5616  ;;  %v3147_v61 = vsel %vm1694_vm0, %v3146_v2, %v9886_v31  ;;  %v9912_v5 = vperm.slane %v3299_v4, %v8291_v3  ;;  %v3387_v2 = vsel %vm1694_vm0, %v3386_v8, %v13311_v42  ;;  %v13315_v8 = vld [vmem:[#allocation57_spill] sm:$0xff] }
 0x7df   :  { %13304 = vst [vmem:[#allocation131_spill] sm:$0xff] %v9881_v38  ;;  %v13310_v38 = vld [vmem:[#allocation90_spill] sm:$0xff] }
 0x7e0   :  { %13305 = vst [vmem:[#allocation28_spill] sm:$0xff] %v9883_v35  ;;  %v3286_v46 = vrot.slane %v13310_v38, 4  ;;  %v3256_v35 = vrot.slane %v3217_v36, 4  ;;  %v13312_v36 = vld [vmem:[#allocation182_spill] sm:$0xff]  ;;  %v3334_v62 = vrot.slane %v9912_v5, 4 }
 0x7e1   :  { %13309 = vst [vmem:[#allocation157_spill] sm:$0xff] %v9905_v15  ;;  %v3399_v20 = vsel %vm1694_vm0, %v3398_v13, %v13312_v36  ;;  %v3360_v13 = vrot.slane %v9902_v23, 4 }
 0x7e2   :  { %5816 = vrot.lane.b32.xlu0 %v3147_v61, %s12871_s10  ;;  %v3257_v4 = vsel %vm1694_vm0, %v9802_v41, %v3256_v35  ;;  %v3253_v61 = vsel %vm1694_vm0, %v9743_v48, %v3252_v58  ;;  %v3287_v41 = vsel %vm1694_vm0, %v3286_v46, %v13315_v8  ;;  %v13316_v35 = vld [vmem:[#allocation137_spill] sm:$0xff]  ;;  %v9941_v48 = vperm.slane %v3237_v39, %v8334_v9 }
 0x7e3   :  { %v3374_v58 = vrot.slane %v13316_v35, 4  ;;  %v9954_v46 = vperm.slane %v3313_v55, %v8334_v9  ;;  %v13320_v39 = vrot.slane %v13276_v63, 4 }
 0x7e4   :  { %5810 = vrot.lane.b32.xlu2 %v3257_v4, %s12869_s11  ;;  %5794 = vrot.lane.b32.xlu1 %v3253_v61, %s12863_s9  ;;  %v9934_v53 = vpop.permute.xlu0 %5648  ;;  %v9946_v4 = vperm.slane %v3387_v2, %v8291_v3  ;;  %v3405_v61 = vperm.slane %v3399_v20, %v8291_v3  ;;  %v3293_v20 = vperm.slane %v3287_v41, %v8291_v3  ;;  %s12867_s9 = smov 110  }
 0x7e5   :  { %13314 = vst [vmem:[#allocation43_spill] sm:$0xff] %v9934_v53  ;;  %v3937_v53 = vsel %vm1694_vm0, %v13319_v28, %v13320_v39  ;;  %v3375_v6 = vsel %vm1694_vm0, %v3374_v58, %v13303_v57  ;;  %v3261_v28 = vsel %vm1694_vm0, %v9941_v48, %v3260_v25  ;;  %v13322_v39 = vrot.slane %v13298_v7, 4 }
 0x7e6   :  { %v9949_v24 = vpop.permute.xlu2 %5680  ;;  %v9951_v10 = vpop.permute.xlu1 %5626  ;;  %v3447_v55 = vsel %vm1694_vm0, %v3446_v30, %v3405_v61  ;;  %v3335_v49 = vsel %vm1694_vm0, %v3334_v62, %v3293_v20  ;;  %v3301_v30 = vsel %vm1694_vm0, %v13296_v34, %v3300_v52  ;;  %v3381_v15 = vperm.slane %v3375_v6, %v8291_v3 }
 0x7e7   :  { %13317 = vst [vmem:[#allocation27_spill] sm:$0xff] %v9949_v24  ;;  %v3148_v24 = vrot.slane %v9886_v31, 4  ;;  %v3725_v41 = vsel %vm1694_vm0, %v13321_v0, %v13322_v39  ;;  %v13323_v31 = vld [vmem:[#allocation58_spill] sm:$0xff]  ;;  %v9988_v0 = vperm.slane %v3447_v55, %v8334_v9  ;;  %v9991_v39 = vperm.slane %v3937_v53, %v8291_v3 }
 0x7e8   :  { %13318 = vst [vmem:[#allocation101_spill] sm:$0xff] %v9951_v10  ;;  %v3144_v10 = vrot.slane %v9851_v45, 4  ;;  %v3498_v2 = vrot.slane %v13323_v31, 4  ;;  %v3422_v45 = vrot.slane %v9946_v4, 4  ;;  %v3733_v34 = vperm.slane %v3725_v41, %v8291_v3 }
 0x7e9   :  { %v3149_v25 = vsel %vm1694_vm0, %v9854_v54, %v3148_v24  ;;  %v3364_v54 = vrot.slane %v9954_v46, 4  ;;  %v3288_v24 = vrot.slane %v13315_v8, 4  ;;  %v10004_v53 = vperm.slane %v3335_v49, %v8334_v9 }
 0x7ea   :  { %5826 = vrot.lane.b32.xlu0 %v3261_v28, %s12867_s9  ;;  %v3145_v58 = vsel %vm1694_vm0, %v9817_v21, %v3144_v10  ;;  %v3448_v28 = vrot.slane %v3405_v61, 4  ;;  %v3723_v21 = vsel %vm1694_vm0, %v3722_v44, %v13298_v7  ;;  %v3336_v6 = vrot.slane %v3293_v20, 4 }
 0x7eb   :  { %v10007_v10 = vperm.slane %v3301_v30, %v8291_v3  ;;  %v3423_v55 = vsel %vm1694_vm0, %v3422_v45, %v3381_v15  ;;  %v3935_v44 = vsel %vm1694_vm0, %v3934_v14, %v13276_v63  ;;  %v3499_v8 = vsel %vm1694_vm0, %v3498_v2, %v13292_v1 }
 0x7ec   :  { %5824 = vrot.lane.b32.xlu2 %v3149_v25, %s12867_s9  ;;  %5808 = vrot.lane.b32.xlu1 %v3145_v58, %s12869_s11  ;;  %v9996_v52 = vpop.permute.xlu0 %5658  ;;  %v3449_v7 = vsel %vm1694_vm0, %v9899_v22, %v3448_v28  ;;  %v3470_v20 = vrot.slane %v9988_v0, 4  ;;  %v3258_v41 = vrot.slane %v9941_v48, 4  ;;  %v10023_v49 = vperm.slane %v3723_v21, %v8291_v3  ;;  %s12877_s9 = smov 114   ;;  %s12875_s11 = smov 112  }
 0x7ed   :  { %v13324_v30 = vrot.slane %v13300_v47, 4  ;;  %v3289_v22 = vsel %vm1694_vm0, %v13310_v38, %v3288_v24  ;;  %v3337_v63 = vsel %vm1694_vm0, %v9912_v5, %v3336_v6  ;;  %v3388_v14 = vrot.slane %v13311_v42, 4 }
 0x7ee   :  { %v10009_v62 = vpop.permute.xlu2 %5690  ;;  %v10011_v61 = vpop.permute.xlu1 %5640  ;;  %v3361_v2 = vsel %vm1694_vm0, %v10004_v53, %v3360_v13  ;;  %v10037_v48 = vperm.slane %v3423_v55, %v8334_v9  ;;  %v10040_v25 = vperm.slane %v3449_v7, %v8334_v9  ;;  %v13325_v58 = vrot.slane %v9746_v60, 4 }
 0x7ef   :  { %v3487_v45 = vsel %vm1694_vm0, %v13324_v30, %v8590_v16  ;;  %v10046_v38 = vperm.slane %v3499_v8, %v8291_v3  ;;  %v3346_v5 = vrot.slane %v10007_v10, 4  ;;  %v3424_v21 = vrot.slane %v3381_v15, 4 }
 0x7f0   :  { %v3773_v28 = vsel %vm1694_vm0, %v3733_v34, %v13325_v58  ;;  %v3389_v42 = vsel %vm1694_vm0, %v13307_v59, %v3388_v14  ;;  %v3471_v13 = vsel %vm1694_vm0, %v3470_v20, %v10037_v48  ;;  %v3259_v24 = vsel %vm1694_vm0, %v3258_v41, %v9916_v50 }
 0x7f1   :  { %v10057_v6 = vperm.slane %v3337_v63, %v8334_v9  ;;  %v3770_v55 = vrot.slane %v3733_v34, 4  ;;  %v3493_v7 = vperm.slane %v3487_v45, %v8291_v3  ;;  %v10061_v15 = vperm.slane %v3289_v22, %v8291_v3 }
 0x7f2   :  { %5840 = vrot.lane.b32.xlu0 %v3361_v2, %s12877_s9  ;;  %v3425_v8 = vsel %vm1694_vm0, %v9946_v4, %v3424_v21  ;;  %v10070_v50 = vperm.slane %v3935_v44, %v8291_v3  ;;  %v13326_v34 = vrot.slane %v13292_v1, 4  ;;  %v3474_v41 = vrot.slane %v10040_v25, 4 }
 0x7f3   :  { %v10078_v30 = vperm.slane %v3773_v28, %v8334_v9  ;;  %v3534_v45 = vrot.slane %v10046_v38, 4  ;;  %v3488_v22 = vrot.slane %v8590_v16, 4  ;;  %v10083_v63 = vperm.slane %v3389_v42, %v8291_v3 }
 0x7f4   :  { %5834 = vrot.lane.b32.xlu2 %v3471_v13, %s12875_s11  ;;  %5818 = vrot.lane.b32.xlu1 %v3259_v24, %s12871_s10  ;;  %v10065_v59 = vpop.permute.xlu0 %5672  ;;  %v3501_v20 = vsel %vm1694_vm0, %v13323_v31, %v13326_v34  ;;  %v3347_v1 = vsel %vm1694_vm0, %v3346_v5, %v10061_v15  ;;  %v13327_v31 = vrot.slane %v13302_v56, 4  ;;  %v3433_v2 = vperm.slane %v3425_v8, %v8334_v9  ;;  %s12873_s10 = smov 116  }
 0x7f5   :  { %v3362_v58 = vrot.slane %v10057_v6, 4  ;;  %v3358_v16 = vrot.slane %v10004_v53, 4  ;;  %v3758_v28 = vrot.slane %v10023_v49, 4  ;;  %v3535_v21 = vsel %vm1694_vm0, %v3534_v45, %v3493_v7 }
 0x7f6   :  { %v10085_v4 = vpop.permute.xlu2 %5704  ;;  %v10087_v44 = vpop.permute.xlu1 %5650  ;;  %v3413_v14 = vsel %vm1694_vm0, %v8670_v29, %v13327_v31  ;;  %v13328_v42 = vrot.slane %v9833_v11, 4  ;;  %v10108_v56 = vsel %vm1694_vm0, %v3770_v55, %v9746_v60  ;;  %v10111_v29 = vperm.slane %v3501_v20, %v8291_v3  ;;  %v13332_v31 = vld [vmem:[#allocation69_spill] sm:$0xff] }
 0x7f7   :  { %v13329_v13 = vrot.slane %v13303_v57, 4  ;;  %v3475_v24 = vsel %vm1694_vm0, %v3474_v41, %v3433_v2  ;;  %v10119_v8 = vperm.slane %v3347_v1, %v8334_v9  ;;  %v3536_v34 = vrot.slane %v3493_v7, 4 }
 0x7f8   :  { %v10104_v5 = vsel %vm1694_vm0, %v10023_v49, %v13328_v42  ;;  %v3489_v49 = vsel %vm1694_vm0, %v13300_v47, %v3488_v22  ;;  %v3434_v60 = vrot.slane %v10083_v63, 4  ;;  %v10125_v55 = vperm.slane %v3413_v14, %v8291_v3  ;;  %v13331_v47 = vld [vmem:[#allocation93_spill] sm:$0xff] }
 0x7f9   :  { %v3377_v53 = vsel %vm1694_vm0, %v13316_v35, %v13329_v13  ;;  %v3400_v57 = vrot.slane %v13312_v36, 4  ;;  %v3363_v35 = vsel %vm1694_vm0, %v3362_v58, %v9954_v46  ;;  %v3359_v20 = vsel %vm1694_vm0, %v3358_v16, %v9902_v23  ;;  %v13344_v46 = vld [vmem:[#allocation11_spill] sm:$0xff] }
 0x7fa   :  { %5850 = vrot.lane.b32.xlu0 %v3475_v24, %s12873_s10  ;;  %v10134_v41 = vperm.slane %v3535_v21, %v8334_v9  ;;  %v3522_v7 = vrot.slane %v13331_v47, 4  ;;  %v10138_v45 = vperm.slane %v3377_v53, %v8291_v3  ;;  %v1790_v22 = vrot.slane %v8370_v26, 4  ;;  %v13334_v53 = vld [vmem:[#allocation80_spill] sm:$0xff] }
 0x7fb   :  { %v10147_v1 = vsel %vm1694_vm0, %v3758_v28, %v9833_v11  ;;  %v3401_v58 = vsel %vm1694_vm0, %v13308_v37, %v3400_v57  ;;  %v3366_v16 = vrot.slane %v10119_v8, 4  ;;  %v10155_v26 = vperm.slane %v3489_v49, %v8291_v3 }
 0x7fc   :  { %13330 = vst [vmem:[#allocation30_spill] sm:$0xff] %v10134_v41  ;;  %5848 = vrot.lane.b32.xlu2 %v3363_v35, %s12873_s10  ;;  %5832 = vrot.lane.b32.xlu1 %v3359_v20, %s12875_s11  ;;  %v10143_v36 = vpop.permute.xlu0 %5682  ;;  %v3458_v21 = vrot.slane %v10125_v55, 4  ;;  %v3435_v11 = vsel %vm1694_vm0, %v3434_v60, %v10138_v45  ;;  %v3537_v28 = vsel %vm1694_vm0, %v10046_v38, %v3536_v34  ;;  %v3510_v24 = vrot.slane %v13334_v53, 4  ;;  %v13335_v35 = vld [vmem:[#allocation155_spill] sm:$0xff]  ;;  %s7186_s10 = smov 120   ;;  %s12881_s11 = smov 118  }
 0x7fd   :  { %v3348_v37 = vrot.slane %v10061_v15, 4  ;;  %v3523_v57 = vsel %vm1694_vm0, %v3522_v7, %v8634_v12  ;;  %v3610_v20 = vrot.slane %v13335_v35, 4  ;;  %v3409_v23 = vperm.slane %v3401_v58, %v8291_v3  ;;  %v13336_v58 = vld [vmem:[#allocation134_spill] sm:$0xff] }
 0x7fe   :  { %v10158_v42 = vpop.permute.xlu2 %5714  ;;  %v10160_v13 = vpop.permute.xlu1 %5664  ;;  %v1791_v60 = vsel %vm1694_vm0, %v1790_v22, %v8356_v51  ;;  %v3367_v38 = vsel %vm1694_vm0, %v3366_v16, %v9889_v19  ;;  %v3476_v34 = vrot.slane %v3433_v2, 4  ;;  %v3472_v14 = vrot.slane %v10037_v48, 4 }
 0x7ff   :  { %13333 = vst [vmem:[#allocation37_spill] sm:$0xff] %v10158_v42  ;;  %v10179_v15 = vperm.slane %v3435_v11, %v8334_v9  ;;  %v6423_v49 = vsel %vm6422_vm1, %v1791_v60, %v8838_v32  ;;  %v1902_v7 = vrot.slane %v8366_v27, 4  ;;  %v3459_v51 = vsel %vm1694_vm0, %v3458_v21, %v3409_v23  ;;  %v13356_v42 = vld [vmem:[#allocation164_spill] sm:$0xff] }
 0x800   :  { %v6426_v2 = vsel %vm6425_vm2, %v6423_v49, %v9059_v43  ;;  %v3477_v48 = vsel %vm1694_vm0, %v10040_v25, %v3476_v34  ;;  %v3473_v22 = vsel %vm1694_vm0, %v9988_v0, %v3472_v14  ;;  %v3598_v32 = vrot.slane %v8679_v33, 4 }
 0x801   :  { %v3634_v27 = vrot.slane %v8739_v17, 4  ;;  %v3611_v16 = vsel %vm1694_vm0, %v3610_v20, %v13336_v58  ;;  %v10201_v43 = vperm.slane %v3537_v28, %v8334_v9  ;;  %v3511_v0 = vsel %vm1694_vm0, %v3510_v24, %v13332_v31 }
 0x802   :  { %5864 = vrot.lane.b32.xlu0 %v3367_v38, %s7186_s10  ;;  %v10206_v25 = vperm.slane %v3523_v57, %v8291_v3  ;;  %v10209_v14 = vperm.slane %v3459_v51, %v8334_v9  ;;  %v3349_v11 = vsel %vm1694_vm0, %v10007_v10, %v3348_v37  ;;  %v3460_v49 = vrot.slane %v3409_v23, 4  ;;  %v13338_v38 = vld [vmem:[#allocation214_spill] sm:$0xff]  ;;  %v13339_v51 = vld [vmem:[#allocation76_spill] sm:$0xff] }
 0x803   :  { %v1903_v20 = vsel %vm1694_vm0, %v1902_v7, %v8343_v18  ;;  %v6429_v28 = vsel %vm6428_vm3, %v6426_v2, %v8993_v40  ;;  %v10222_v57 = vperm.slane %v3611_v16, %v8291_v3  ;;  %v3622_v34 = vrot.slane %v13338_v38, 4  ;;  %v13342_v16 = vld [vmem:[#allocation54_spill] sm:$0xff] }
 0x804   :  { %5858 = vrot.lane.b32.xlu2 %v3477_v48, %s12881_s11  ;;  %5842 = vrot.lane.b32.xlu1 %v3473_v22, %s12877_s9  ;;  %v10198_v21 = vpop.permute.xlu0 %5696  ;;  %v6424_v10 = vsel %vm6422_vm1, %v1903_v20, %v13339_v51  ;;  %v3480_v23 = vrot.slane %v10179_v15, 4  ;;  %v3461_v18 = vsel %vm1694_vm0, %v10125_v55, %v3460_v49  ;;  %v13340_v40 = vrot.slane %v9889_v19, 4  ;;  %v13341_v48 = vld [vmem:[#allocation197_spill] sm:$0xff]  ;;  %s12879_s9 = smov 122  }
 0x805   :  { %v3365_v7 = vsel %vm1694_vm0, %v10057_v6, %v3364_v54  ;;  %v10239_v2 = vperm.slane %v3349_v11, %v8334_v9  ;;  %v3635_v22 = vsel %vm1694_vm0, %v3634_v27, %v13341_v48  ;;  %v6432_v55 = vsel %vm6431_vm4, %v6429_v28, %v13342_v16  ;;  %v13343_v49 = vld [vmem:[#allocation117_spill] sm:$0xff]  ;;  %v13345_v54 = vld [vmem:[#allocation44_spill] sm:$0xff] }
 0x806   :  { %v10217_v60 = vpop.permute.xlu2 %5728  ;;  %v10219_v24 = vpop.permute.xlu1 %5674  ;;  %v3369_v37 = vsel %vm1694_vm0, %v10119_v8, %v13340_v40  ;;  %v3481_v19 = vsel %vm1694_vm0, %v10209_v14, %v3480_v23  ;;  %v3599_v8 = vsel %vm1694_vm0, %v3598_v32, %v13343_v49  ;;  %v6427_v20 = vsel %vm6425_vm2, %v6424_v10, %v13344_v46  ;;  %v13346_v11 = vld [vmem:[#allocation173_spill] sm:$0xff] }
 0x807   :  { %13337 = vst [vmem:[#allocation163_spill] sm:$0xff] %v10217_v60  ;;  %v6435_v6 = vsel %vm6434_vm5, %v6432_v55, %v13345_v54  ;;  %v3646_v27 = vrot.slane %v10222_v57, 4  ;;  %v3623_v28 = vsel %vm1694_vm0, %v3622_v34, %v13346_v11  ;;  %v13347_v51 = vld [vmem:[#allocation193_spill] sm:$0xff]  ;;  %v10260_v32 = vperm.slane %v3461_v18, %v8334_v9 }
 0x808   :  { %v6430_v23 = vsel %vm6428_vm3, %v6427_v20, %v13347_v51  ;;  %v3524_v10 = vrot.slane %v8634_v12, 4  ;;  %v13348_v40 = vrot.slane %v13332_v31, 4  ;;  %v3436_v55 = vrot.slane %v10138_v45, 4  ;;  %v13349_v31 = vld [vmem:[#allocation209_spill] sm:$0xff] }
 0x809   :  { %v10276_v18 = vperm.slane %v3511_v0, %v8291_v3  ;;  %v10279_v12 = vperm.slane %v3599_v8, %v8291_v3  ;;  %v3558_v45 = vrot.slane %v10206_v25, 4  ;;  %v13350_v46 = vld [vmem:[#allocation129_spill] sm:$0xff]  ;;  %v3482_v51 = vrot.slane %v10260_v32, 4 }
 0x80a   :  { %5874 = vrot.lane.b32.xlu0 %v3481_v19, %s12879_s9  ;;  %v10267_v16 = vsel %vm1694_vm0, %v13334_v53, %v13348_v40  ;;  %v3641_v19 = vperm.slane %v3635_v22, %v8291_v3  ;;  %v6438_v53 = vsel %vm6437_vm6, %v6435_v6, %v13349_v31  ;;  %v3629_v22 = vperm.slane %v3623_v28, %v8291_v3  ;;  %v13352_v8 = vld [vmem:[#allocation157_spill] sm:$0xff] }
 0x80b   :  { %v3437_v0 = vsel %vm1694_vm0, %v10083_v63, %v3436_v55  ;;  %v13353_v54 = vrot.slane %v13352_v8, 4  ;;  %v3478_v40 = vrot.slane %v10209_v14, 4  ;;  %v3647_v28 = vsel %vm1694_vm0, %v3646_v27, %v10279_v12  ;;  %v13355_v63 = vld [vmem:[#allocation65_spill] sm:$0xff]  ;;  %v13357_v27 = vld [vmem:[#allocation183_spill] sm:$0xff] }
 0x80c   :  { %5872 = vrot.lane.b32.xlu2 %v3369_v37, %s12879_s9  ;;  %5856 = vrot.lane.b32.xlu1 %v3365_v7, %s12881_s11  ;;  %v10273_v34 = vpop.permute.xlu0 %5706  ;;  %v6433_v37 = vsel %vm6431_vm4, %v6430_v23, %v13350_v46  ;;  %v3636_v23 = vrot.slane %v13341_v48, 4  ;;  %v3670_v31 = vrot.slane %v3641_v19, 4  ;;  %v13354_v46 = vld [vmem:[#allocation35_spill] sm:$0xff]  ;;  %v10309_v60 = vperm.slane %v3437_v0, %v8334_v9  ;;  %s7189_s9 = smov 126   ;;  %s7190_s11 = smov 124  }
 0x80d   :  { %v3373_v6 = vsel %vm1694_vm0, %v10239_v2, %v13353_v54  ;;  %v6436_v55 = vsel %vm6434_vm5, %v6433_v37, %v13355_v63  ;;  %v3525_v14 = vsel %vm1694_vm0, %v13331_v47, %v3524_v10  ;;  %v3559_v47 = vsel %vm1694_vm0, %v3558_v45, %v10276_v18  ;;  %v13360_v45 = vld [vmem:[#allocation167_spill] sm:$0xff] }
 0x80e   :  { %v10287_v7 = vpop.permute.xlu2 %5738  ;;  %v10289_v20 = vpop.permute.xlu1 %5688  ;;  %v6439_v48 = vsel %vm6437_vm6, %v6436_v55, %v13357_v27  ;;  %v3671_v37 = vsel %vm1694_vm0, %v3670_v31, %v3629_v22  ;;  %v3637_v10 = vsel %vm1694_vm0, %v8739_v17, %v3636_v23  ;;  %v3672_v0 = vrot.slane %v3629_v22, 4  ;;  %v13364_v27 = vld [vmem:[#allocation111_spill] sm:$0xff] }
 0x80f   :  { %13351 = vst [vmem:[#allocation160_spill] sm:$0xff] %v10287_v7  ;;  %v6441_v7 = vsel %vm6440_vm7, %v6438_v53, %v13354_v46  ;;  %v10317_v53 = vperm.slane %v3647_v28, %v8334_v9  ;;  %v3560_v46 = vrot.slane %v10276_v18, 4  ;;  %v3624_v18 = vrot.slane %v13346_v11, 4 }
 0x810   :  { %v6444_v54 = vsel %vm6443_vm8, %v6441_v7, %v13356_v42  ;;  %v3483_v42 = vsel %vm1694_vm0, %v3482_v51, %v10309_v60  ;;  %v3479_v7 = vsel %vm1694_vm0, %v3478_v40, %v10179_v15  ;;  %v10336_v15 = vperm.slane %v3525_v14, %v8291_v3 }
 0x811   :  { %13358 = vst [vmem:[#allocation68_spill] sm:$0xff] %v10317_v53  ;;  %v6442_v17 = vsel %vm6440_vm7, %v6439_v48, %v13360_v45  ;;  %v10342_v22 = vperm.slane %v3671_v37, %v8334_v9  ;;  %v3612_v40 = vrot.slane %v13336_v58, 4  ;;  %v3696_v63 = vrot.slane %v10317_v53, 4  ;;  %v13365_v48 = vld [vmem:[#allocation13_spill] sm:$0xff] }
 0x812   :  { %5888 = vrot.lane.b32.xlu0 %v3373_v6, %s7189_s9  ;;  %v13359_v6 = vld [vmem:[#allocation26_spill] sm:$0xff]  ;;  %v3370_v55 = vrot.slane %v10239_v2, 4  ;;  %v10355_v11 = vperm.slane %v3637_v10, %v8291_v3  ;;  %v3625_v14 = vsel %vm1694_vm0, %v13338_v38, %v3624_v18  ;;  %v6445_v37 = vsel %vm6443_vm8, %v6442_v17, %v13365_v48  ;;  %v13370_v48 = vld [vmem:[#allocation88_spill] sm:$0xff] }
 0x813   :  { %v6447_v28 = vsel %vm6446_vm9, %v6444_v54, %v13359_v6  ;;  %13361 = vst [vmem:[#allocation166_spill] sm:$0xff] %v10342_v22  ;;  %v10352_v54 = vperm.slane %v3559_v47, %v8334_v9  ;;  %v3600_v47 = vrot.slane %v13343_v49, 4  ;;  %v3613_v10 = vsel %vm1694_vm0, %v13335_v35, %v3612_v40  ;;  %v13367_v6 = vld [vmem:[#allocation10_spill] sm:$0xff] }
 0x814   :  { %5882 = vrot.lane.b32.xlu2 %v3483_v42, %s7190_s11  ;;  %5866 = vrot.lane.b32.xlu1 %v3479_v7, %s7186_s10  ;;  %v10333_v51 = vpop.permute.xlu0 %5720  ;;  %v6450_v58 = vsel %vm6449_vm10, %v6447_v28, %v13364_v27  ;;  %v13366_v42 = vld [vmem:[#allocation128_spill] sm:$0xff]  ;;  %v3673_v7 = vsel %vm1694_vm0, %v3641_v19, %v3672_v0  ;;  %v6448_v38 = vsel %vm6446_vm9, %v6445_v37, %v13367_v6  ;;  %v3570_v18 = vrot.slane %v10336_v15, 4  ;;  %v13369_v0 = vld [vmem:[#allocation77_spill] sm:$0xff] }
 0x815   :  { %13363 = vst [vmem:[#allocation90_spill] sm:$0xff] %v10352_v54  ;;  %v6453_v2 = vsel %vm12885_vm11, %v6450_v58, %v13366_v42  ;;  %v3697_v28 = vsel %vm1694_vm0, %v10342_v22, %v3696_v63  ;;  %v10375_v45 = vperm.slane %v3625_v14, %v8291_v3  ;;  %v13368_v19 = vrot.slane %v10134_v41, 4  ;;  %v13392_v22 = vld [vmem:[#allocation56_spill] sm:$0xff] }
 0x816   :  { %v10345_v23 = vpop.permute.xlu2 %5752  ;;  %v10347_v31 = vpop.permute.xlu1 %5698  ;;  %v3561_v35 = vsel %vm1694_vm0, %v10206_v25, %v3560_v46  ;;  %v6456_v17 = vsel %vm12883_vm12, %v6453_v2, %v13369_v0  ;;  %v3371_v40 = vsel %vm1694_vm0, %v3370_v55, %v13352_v8  ;;  %v10389_v63 = vperm.slane %v3673_v7, %v8334_v9  ;;  %v13372_v2 = vld [vmem:[#allocation124_spill] sm:$0xff]  ;;  %v13376_v0 = vld [vmem:[#allocation99_spill] sm:$0xff] }
 0x817   :  { %13362 = vst [vmem:[#allocation203_spill] sm:$0xff] %v10345_v23  ;;  %v3585_v49 = vsel %vm1694_vm0, %v10352_v54, %v13368_v19  ;;  %v3648_v14 = vrot.slane %v10279_v12, 4  ;;  %v10393_v27 = vperm.slane %v3613_v10, %v8291_v3  ;;  %v3682_v58 = vrot.slane %v10355_v11, 4 }
 0x818   :  { %v6451_v25 = vsel %vm6449_vm10, %v6448_v38, %v13370_v48  ;;  %v3521_v8 = vperm.slane %v10267_v16, %v8291_v3  ;;  %v3601_v12 = vsel %vm1694_vm0, %v8679_v33, %v3600_v47  ;;  %v10407_v55 = vperm.slane %v3561_v35, %v8334_v9  ;;  %v13374_v33 = vld [vmem:[#allocation126_spill] sm:$0xff] }
 0x819   :  { %v3588_v37 = vrot.slane %v10201_v43, 4  ;;  %v3683_v42 = vsel %vm1694_vm0, %v3682_v58, %v10375_v45  ;;  %v6459_v7 = vsel %vm12884_vm13, %v6456_v17, %v13372_v2  ;;  %v3649_v16 = vsel %vm1694_vm0, %v10222_v57, %v3648_v14  ;;  %v13375_v38 = vld [vmem:[#allocation198_spill] sm:$0xff] }
 0x81a   :  { %5898 = vrot.lane.b32.xlu0 %v3697_v28, %s7129_s0  ;;  %v6454_v47 = vsel %vm12885_vm11, %v6451_v25, %v13374_v33  ;;  %v6462_v28 = vsel %vm12890_vm14, %v6459_v7, %v13375_v38  ;;  %v3698_v19 = vrot.slane %v10389_v63, 4  ;;  %v3658_v35 = vrot.slane %v10393_v27, 4  ;;  %v13377_v7 = vld [vmem:[#allocation100_spill] sm:$0xff] }
 0x81b   :  { %v6457_v17 = vsel %vm12883_vm12, %v6454_v47, %v13376_v0  ;;  %v3589_v57 = vsel %vm1694_vm0, %v10407_v55, %v3588_v37  ;;  %v3484_v14 = vrot.slane %v10309_v60, 4  ;;  %v10434_v58 = vperm.slane %v3649_v16, %v8334_v9  ;;  %v13380_v0 = vld [vmem:[#allocation55_spill] sm:$0xff] }
 0x81c   :  { %5880 = vrot.lane.b32.xlu1 %v3371_v40, %s7190_s11  ;;  %5896 = vrot.lane.b32.xlu2 %v3585_v49, %s7129_s0  ;;  %v10400_v46 = vpop.permute.xlu0 %5730  ;;  %v3548_v49 = vrot.slane %v10155_v26, 4  ;;  %v3571_v40 = vsel %vm1694_vm0, %v3570_v18, %v3521_v8  ;;  %v10437_v48 = vperm.slane %v3683_v42, %v8334_v9  ;;  %v3572_v25 = vrot.slane %v3521_v8, 4  ;;  %v13378_v18 = vld [vmem:[#allocation115_spill] sm:$0xff] }
 0x81d   :  { %13371 = vst [vmem:[#allocation118_spill] sm:$0xff] %v10400_v46  ;;  %v10440_v2 = vperm.slane %v3601_v12, %v8291_v3  ;;  %v6465_v33 = vsel %vm12886_vm15, %v6462_v28, %v13377_v7  ;;  %vm12891_vm12 = vcmask 261120   ;;  %v6460_v37 = vsel %vm12884_vm13, %v6457_v17, %v13378_v18  ;;  %v13383_v18 = vld [vmem:[#allocation25_spill] sm:$0xff]  ;;  %v13420_v46 = vld [vmem:[#allocation132_spill] sm:$0xff] }
 0x81e   :  { %v10414_v10 = vpop.permute.xlu2 %5762  ;;  %v10416_v6 = vpop.permute.xlu1 %5712  ;;  %v3485_v60 = vsel %vm1694_vm0, %v10260_v32, %v3484_v14  ;;  %v3699_v42 = vsel %vm1694_vm0, %v3698_v19, %v10434_v58  ;;  %v10452_v8 = vperm.slane %v3571_v40, %v8334_v9  ;;  %v13379_v32 = vrot.slane %v10111_v29, 4  ;;  %v13390_v12 = vld [vmem:[#allocation133_spill] sm:$0xff] }
 0x81f   :  { %13373 = vst [vmem:[#allocation182_spill] sm:$0xff] %v10414_v10  ;;  %v3659_v47 = vsel %vm1694_vm0, %v3658_v35, %v10440_v2  ;;  %v3549_v28 = vsel %vm1694_vm0, %v10111_v29, %v3548_v49  ;;  %v3573_v19 = vsel %vm1694_vm0, %v10336_v15, %v3572_v25  ;;  %vm12895_vm13 = vcmask 277504   ;;  %v13382_v35 = vld [vmem:[#allocation200_spill] sm:$0xff]  ;;  %v13385_v15 = vld [vmem:[#allocation78_spill] sm:$0xff] }
 0x820   :  { %v3547_v38 = vsel %vm1694_vm0, %v13379_v32, %v10155_v26  ;;  %v6468_v17 = vsel %vm12891_vm12, %v6465_v33, %v13380_v0  ;;  %v3702_v40 = vrot.slane %v10437_v48, 4  ;;  %v6463_v7 = vsel %vm12890_vm14, %v6460_v37, %v13382_v35  ;;  %v13386_v35 = vld [vmem:[#allocation24_spill] sm:$0xff] }
 0x821   :  { %vm12893_vm11 = vcmask 293888   ;;  %v6471_v26 = vsel %vm12895_vm13, %v6468_v17, %v13383_v18  ;;  %v6466_v49 = vsel %vm12886_vm15, %v6463_v7, %v13385_v15  ;;  %v3665_v25 = vperm.slane %v3659_v47, %v8334_v9  ;;  %v13387_v7 = vld [vmem:[#allocation153_spill] sm:$0xff]  ;;  %v13388_v18 = vld [vmem:[#allocation59_spill] sm:$0xff] }
 0x822   :  { %5912 = vrot.lane.b32.xlu0 %v3589_v57, %s7130_s13  ;;  %v13381_v57 = vld [vmem:[#allocation92_spill] sm:$0xff]  ;;  %v3586_v33 = vrot.slane %v10407_v55, 4  ;;  %v10487_v32 = vperm.slane %v3547_v38, %v8334_v9  ;;  %v10490_v37 = vperm.slane %v3573_v19, %v8334_v9  ;;  %v10494_v0 = vperm.slane %v10147_v1, %v8334_v9  ;;  %v13389_v19 = vld [vmem:[#allocation81_spill] sm:$0xff] }
 0x823   :  { %v3734_v14 = vrot.slane %v13381_v57, 4  ;;  %v10498_v17 = vperm.slane %v10104_v5, %v8334_v9  ;;  %v3858_v47 = vrot.slane %v13386_v35, 4  ;;  %v6474_v55 = vsel %vm12893_vm11, %v6471_v26, %v13387_v7 }
 0x824   :  { %5890 = vrot.lane.b32.xlu1 %v3485_v60, %s7189_s9  ;;  %5906 = vrot.lane.b32.xlu2 %v3699_v42, %s7131_s14  ;;  %v10457_v16 = vpop.permute.xlu0 %5744  ;;  %v3590_v42 = vrot.slane %v10452_v8, 4  ;;  %vm12894_vm15 = vcmask 310272   ;;  %v3703_v38 = vsel %vm1694_vm0, %v3702_v40, %v3665_v25  ;;  %v3736_v15 = vrot.slane %v13388_v18, 4 }
 0x825   :  { %v13391_v53 = vrot.slane %v13390_v12, 4  ;;  %v6469_v41 = vsel %vm12891_vm12, %v6466_v49, %v13392_v22  ;;  %v10513_v5 = vperm.slane %v3549_v28, %v8334_v9  ;;  %v3748_v26 = vrot.slane %v13389_v19, 4  ;;  %v13393_v22 = vld [vmem:[#allocation195_spill] sm:$0xff] }
 0x826   :  { %v10477_v60 = vpop.permute.xlu2 %5776  ;;  %v10479_v29 = vpop.permute.xlu1 %5722  ;;  %v3735_v40 = vsel %vm1694_vm0, %v3734_v14, %v13388_v18  ;;  %v3587_v7 = vsel %vm1694_vm0, %v3586_v33, %v10201_v43  ;;  %v3591_v10 = vsel %vm1694_vm0, %v3590_v42, %v10487_v32  ;;  %vm12897_vm14 = vcmask 326656   ;;  %v13396_v33 = vld [vmem:[#allocation147_spill] sm:$0xff] }
 0x827   :  { %13384 = vst [vmem:[#allocation57_spill] sm:$0xff] %v10477_v60  ;;  %v3747_v1 = vsel %vm1694_vm0, %v13391_v53, %v13389_v19  ;;  %v3660_v53 = vrot.slane %v10440_v2, 4  ;;  %v6477_v49 = vsel %vm12894_vm15, %v6474_v55, %v13393_v22  ;;  %v3594_v14 = vrot.slane %v10490_v37, 4  ;;  %v13397_v2 = vld [vmem:[#allocation91_spill] sm:$0xff]  ;;  %v13398_v19 = vld [vmem:[#allocation169_spill] sm:$0xff]  ;;  %v13399_v22 = vld [vmem:[#allocation206_spill] sm:$0xff] }
 0x828   :  { %v6472_v42 = vsel %vm12895_vm13, %v6469_v41, %v13396_v33  ;;  %vm12896_vm12 = vcmask 343040   ;;  %v6480_v18 = vsel %vm12897_vm14, %v6477_v49, %v13397_v2  ;;  %v3834_v55 = vrot.slane %v13398_v19, 4  ;;  %v13400_v60 = vld [vmem:[#allocation41_spill] sm:$0xff] }
 0x829   :  { %v3749_v41 = vsel %vm1694_vm0, %v13390_v12, %v3748_v26  ;;  %v3661_v49 = vsel %vm1694_vm0, %v10393_v27, %v3660_v53  ;;  %v3592_v33 = vrot.slane %v10487_v32, 4  ;;  %v3700_v27 = vrot.slane %v10434_v58, 4  ;;  %v13404_v32 = vld [vmem:[#allocation121_spill] sm:$0xff]  ;;  %v13405_v53 = vld [vmem:[#allocation138_spill] sm:$0xff] }
 0x82a   :  { %5922 = vrot.lane.b32.xlu0 %v3703_v38, %s7132_s15  ;;  %v13395_v38 = vld [vmem:[#allocation188_spill] sm:$0xff]  ;;  %v3704_v26 = vrot.slane %v3665_v25, 4  ;;  %vm12899_vm13 = vcmask 392192  }
 0x82b   :  { %v3859_v43 = vsel %vm1694_vm0, %v3858_v47, %v13395_v38  ;;  %v10548_v47 = vperm.slane %v3747_v1, %v8291_v3  ;;  %v3595_v1 = vsel %vm1694_vm0, %v3594_v14, %v10513_v5  ;;  %v3701_v58 = vsel %vm1694_vm0, %v10389_v63, %v3700_v27 }
 0x82c   :  { %5904 = vrot.lane.b32.xlu1 %v3587_v7, %s7131_s14  ;;  %5920 = vrot.lane.b32.xlu2 %v3591_v10, %s7132_s15  ;;  %v10527_v28 = vpop.permute.xlu0 %5754  ;;  %v3846_v7 = vrot.slane %v13399_v22, 4  ;;  %v3684_v10 = vrot.slane %v10375_v45, 4  ;;  %v10554_v45 = vperm.slane %v3735_v40, %v8291_v3  ;;  %v3835_v40 = vsel %vm1694_vm0, %v3834_v55, %v13404_v32  ;;  %s13521_s15 = smov 60  }
 0x82d   :  { %13394 = vst [vmem:[#allocation137_spill] sm:$0xff] %v10527_v28  ;;  %v6475_v28 = vsel %vm12893_vm11, %v6472_v42, %v13400_v60  ;;  %v10557_v60 = vperm.slane %v3859_v43, %v8291_v3  ;;  %v13402_v42 = vld [vmem:[#allocation135_spill] sm:$0xff]  ;;  %vm12898_vm11 = vcmask 359424   ;;  %v3705_v25 = vsel %vm1694_vm0, %v10437_v48, %v3704_v26 }
 0x82e   :  { %v10541_v54 = vpop.permute.xlu2 %5786  ;;  %v10543_v23 = vpop.permute.xlu1 %5736  ;;  %v6483_v2 = vsel %vm12896_vm12, %v6480_v18, %v13402_v42  ;;  %v3847_v43 = vsel %vm1694_vm0, %v3846_v7, %v13405_v53  ;;  %v10572_v18 = vperm.slane %v3661_v49, %v8334_v9  ;;  %v13407_v7 = vld [vmem:[#allocation66_spill] sm:$0xff]  ;;  %v13408_v49 = vld [vmem:[#allocation67_spill] sm:$0xff]  ;;  %v3737_v63 = vsel %vm1694_vm0, %v13381_v57, %v3736_v15 }
 0x82f   :  { %13401 = vst [vmem:[#allocation46_spill] sm:$0xff] %v10541_v54  ;;  %v13403_v54 = vld [vmem:[#allocation180_spill] sm:$0xff]  ;;  %v3894_v55 = vrot.slane %v10557_v60, 4  ;;  %v10600_v26 = vperm.slane %v3749_v41, %v8291_v3  ;;  %v3596_v57 = vrot.slane %v10513_v5, 4  ;;  %v3782_v15 = vrot.slane %v10548_v47, 4 }
 0x830   :  { %v6478_v12 = vsel %vm12894_vm15, %v6475_v28, %v13403_v54  ;;  %v3685_v54 = vsel %vm1694_vm0, %v10355_v11, %v3684_v10  ;;  %vm12900_vm15 = vcmask 375808   ;;  %v13406_v28 = vld [vmem:[#allocation196_spill] sm:$0xff]  ;;  %v3708_v41 = vrot.slane %v10572_v18, 4 }
 0x831   :  { %v6486_v14 = vsel %vm12898_vm11, %v6483_v2, %v13406_v28  ;;  %v6481_v42 = vsel %vm12897_vm14, %v6478_v12, %v13407_v7  ;;  %v13410_v10 = vld [vmem:[#allocation152_spill] sm:$0xff]  ;;  %v13411_v2 = vld [vmem:[#allocation9_spill] sm:$0xff]  ;;  %v10597_v12 = vperm.slane %v3685_v54, %v8334_v9  ;;  %v10603_v28 = vperm.slane %v3835_v40, %v8291_v3 }
 0x832   :  { %5936 = vrot.lane.b32.xlu0 %v3595_v1, %s7133_s16  ;;  %v6489_v1 = vsel %vm12900_vm15, %v6486_v14, %v13408_v49  ;;  %v3822_v48 = vrot.slane %v13410_v10, 4  ;;  %v6484_v27 = vsel %vm12896_vm12, %v6481_v42, %v13411_v2  ;;  %v3853_v14 = vperm.slane %v3847_v43, %v8291_v3  ;;  %v13414_v7 = vld [vmem:[#allocation45_spill] sm:$0xff]  ;;  %v13415_v43 = vld [vmem:[#allocation12_spill] sm:$0xff] }
 0x833   :  { %v6492_v54 = vsel %vm12899_vm13, %v6489_v1, %v13414_v7  ;;  %vm12901_vm12 = vcmask 408576   ;;  %v10616_v42 = vperm.slane %v3737_v63, %v8291_v3  ;;  %v3784_v40 = vrot.slane %v10554_v45, 4 }
 0x834   :  { %5914 = vrot.lane.b32.xlu1 %v3701_v58, %s7130_s13  ;;  %5930 = vrot.lane.b32.xlu2 %v3705_v25, %s7134_s17  ;;  %v10589_v11 = vpop.permute.xlu0 %5768  ;;  %v6487_v49 = vsel %vm12898_vm11, %v6484_v27, %v13415_v43  ;;  %v3895_v2 = vsel %vm1694_vm0, %v3894_v55, %v3853_v14  ;;  %v3597_v1 = vsel %vm1694_vm0, %v10490_v37, %v3596_v57  ;;  %v3870_v7 = vrot.slane %v10603_v28, 4  ;;  %v13419_v43 = vld [vmem:[#allocation212_spill] sm:$0xff] }
 0x835   :  { %13409 = vst [vmem:[#allocation47_spill] sm:$0xff] %v10589_v11  ;;  %v3709_v11 = vsel %vm1694_vm0, %v10597_v12, %v3708_v41  ;;  %v3783_v63 = vsel %vm1694_vm0, %v3782_v15, %v10554_v45  ;;  %vm12904_vm14 = vcmask 424960   ;;  %v3593_v55 = vsel %vm1694_vm0, %v10452_v8, %v3592_v33 }
 0x836   :  { %v10606_v58 = vpop.permute.xlu2 %5800  ;;  %v10608_v25 = vpop.permute.xlu1 %5746  ;;  %vm12902_vm11 = vcmask 441344   ;;  %v10641_v45 = vperm.slane %v3895_v2, %v8334_v9  ;;  %v3896_v15 = vrot.slane %v3853_v14, 4  ;;  %v10651_v33 = vperm.slane %v3783_v63, %v8334_v9 }
 0x837   :  { %13412 = vst [vmem:[#allocation58_spill] sm:$0xff] %v10606_v58  ;;  %v13416_v58 = vld [vmem:[#allocation104_spill] sm:$0xff] }
 0x838   :  { %13413 = vst [vmem:[#allocation93_spill] sm:$0xff] %v10608_v25  ;;  %v3823_v5 = vsel %vm1694_vm0, %v3822_v48, %v13416_v58  ;;  %v13417_v25 = vld [vmem:[#allocation114_spill] sm:$0xff]  ;;  %v13418_v48 = vld [vmem:[#allocation192_spill] sm:$0xff]  ;;  %v3918_v14 = vrot.slane %v10641_v45, 4 }
 0x839   :  { %v6495_v27 = vsel %vm12901_vm12, %v6492_v54, %v13417_v25  ;;  %v6490_v41 = vsel %vm12900_vm15, %v6487_v49, %v13418_v48  ;;  %v3829_v57 = vperm.slane %v3823_v5, %v8291_v3  ;;  %v3808_v54 = vrot.slane %v10494_v0, 4 }
 0x83a   :  { %5946 = vrot.lane.b32.xlu0 %v3709_v11, %s7135_s18  ;;  %v6498_v37 = vsel %vm12904_vm14, %v6495_v27, %v13419_v43  ;;  %v6493_v25 = vsel %vm12899_vm13, %v6490_v41, %v13420_v46  ;;  %v3794_v11 = vrot.slane %v10600_v26, 4  ;;  %v10657_v49 = vperm.slane %v10108_v56, %v8334_v9  ;;  %v13422_v46 = vld [vmem:[#allocation149_spill] sm:$0xff]  ;;  %v13425_v41 = vld [vmem:[#allocation8_spill] sm:$0xff] }
 0x83b   :  { %v6501_v2 = vsel %vm12902_vm11, %v6498_v37, %v13422_v46  ;;  %vm12903_vm13 = vcmask 457728   ;;  %v3871_v63 = vsel %vm1694_vm0, %v3870_v7, %v3829_v57  ;;  %v3897_v27 = vsel %vm1694_vm0, %v10557_v60, %v3896_v15  ;;  %v13426_v15 = vld [vmem:[#allocation110_spill] sm:$0xff] }
 0x83c   :  { %5928 = vrot.lane.b32.xlu1 %v3593_v55, %s7134_s17  ;;  %5944 = vrot.lane.b32.xlu2 %v3597_v1, %s7135_s18  ;;  %v10648_v8 = vpop.permute.xlu0 %5778  ;;  %v13424_v55 = vld [vmem:[#allocation60_spill] sm:$0xff]  ;;  %v6496_v56 = vsel %vm12901_vm12, %v6493_v25, %v13425_v41  ;;  %v3706_v43 = vrot.slane %v10597_v12, 4  ;;  %v3795_v37 = vsel %vm1694_vm0, %v3794_v11, %v10616_v42  ;;  %v3836_v46 = vrot.slane %v13404_v32, 4  ;;  %v13427_v11 = vld [vmem:[#allocation79_spill] sm:$0xff]  ;;  %s13528_s17 = smov 62   ;;  %s13529_s18 = smov 66  }
 0x83d   :  { %13421 = vst [vmem:[#allocation69_spill] sm:$0xff] %v10648_v8  ;;  %v3946_v48 = vrot.slane %v13424_v55, 4  ;;  %v3809_v7 = vsel %vm1694_vm0, %v10651_v33, %v3808_v54  ;;  %v3785_v60 = vsel %vm1694_vm0, %v10548_v47, %v3784_v40  ;;  %vm12905_vm15 = vcmask 474112   ;;  %v13428_v8 = vld [vmem:[#allocation28_spill] sm:$0xff] }
 0x83e   :  { %v10662_v5 = vpop.permute.xlu2 %5810  ;;  %v10664_v1 = vpop.permute.xlu1 %5760  ;;  %v10684_v25 = vperm.slane %v3871_v63, %v8334_v9  ;;  %v10687_v12 = vperm.slane %v3897_v27, %v8334_v9  ;;  %v3872_v41 = vrot.slane %v3829_v57, 4  ;;  %v6499_v32 = vsel %vm12904_vm14, %v6496_v56, %v13427_v11  ;;  %v13429_v47 = vld [vmem:[#allocation16_spill] sm:$0xff]  ;;  %v13430_v27 = vld [vmem:[#allocation29_spill] sm:$0xff] }
 0x83f   :  { %13423 = vst [vmem:[#allocation80_spill] sm:$0xff] %v10662_v5  ;;  %v6504_v5 = vsel %vm12903_vm13, %v6501_v2, %v13426_v15  ;;  %vm12906_vm12 = vcmask 490496   ;;  %v6502_v40 = vsel %vm12902_vm11, %v6499_v32, %v13429_v47  ;;  %v3707_v2 = vsel %vm1694_vm0, %v3706_v43, %v10572_v18 }
 0x840   :  { %v6507_v54 = vsel %vm12905_vm15, %v6504_v5, %v13428_v8  ;;  %v3919_v63 = vsel %vm1694_vm0, %v3918_v14, %v10684_v25  ;;  %v10701_v57 = vperm.slane %v3785_v60, %v8334_v9  ;;  %v13431_v56 = vrot.slane %v13430_v27, 4 }
 0x841   :  { %v3837_v8 = vsel %vm1694_vm0, %v13398_v19, %v3836_v46  ;;  %v3873_v18 = vsel %vm1694_vm0, %v10603_v28, %v3872_v41  ;;  %v3860_v43 = vrot.slane %v13395_v38, 4  ;;  %vm12907_vm11 = vcmask 506880   ;;  %v13433_v46 = vld [vmem:[#allocation185_spill] sm:$0xff] }
 0x842   :  { %5960 = vrot.lane.b32.xlu0 %v3809_v7, %s7136_s19  ;;  %v3949_v15 = vsel %vm1694_vm0, %v13424_v55, %v13431_v56  ;;  %v13432_v7 = vld [vmem:[#allocation170_spill] sm:$0xff]  ;;  %v3922_v55 = vrot.slane %v10687_v12, 4  ;;  %v3947_v19 = vsel %vm1694_vm0, %v3946_v48, %v13430_v27  ;;  %v6505_v11 = vsel %vm12903_vm13, %v6502_v40, %v13433_v46  ;;  %v13436_v27 = vld [vmem:[#allocation36_spill] sm:$0xff] }
 0x843   :  { %v6510_v60 = vsel %vm12906_vm12, %v6507_v54, %v13432_v7  ;;  %v3806_v28 = vrot.slane %v10651_v33, 4  ;;  %v10730_v38 = vperm.slane %v3795_v37, %v8334_v9  ;;  %v10733_v41 = vperm.slane %v3837_v8, %v8291_v3  ;;  %v13435_v33 = vld [vmem:[#allocation15_spill] sm:$0xff]  ;;  %v13438_v46 = vld [vmem:[#allocation48_spill] sm:$0xff] }
 0x844   :  { %5938 = vrot.lane.b32.xlu1 %v3707_v2, %s7133_s16  ;;  %5954 = vrot.lane.b32.xlu2 %v3919_v63, %s7126_s12  ;;  %v10711_v5 = vpop.permute.xlu0 %5792  ;;  %v3861_v54 = vsel %vm1694_vm0, %v13386_v35, %v3860_v43  ;;  %v3881_v48 = vperm.slane %v3873_v18, %v8334_v9  ;;  %v3810_v2 = vrot.slane %v10701_v57, 4  ;;  %v10740_v40 = vperm.slane %v3949_v15, %v8291_v3  ;;  %v13437_v43 = vld [vmem:[#allocation101_spill] sm:$0xff]  ;;  %s13524_s16 = smov 58  }
 0x845   :  { %v3824_v63 = vrot.slane %v13416_v58, 4  ;;  %vm12910_vm13 = vcmask 523264   ;;  %v6513_v37 = vsel %vm12907_vm11, %v6510_v60, %v13435_v33  ;;  %v6508_v56 = vsel %vm12905_vm15, %v6505_v11, %v13436_v27  ;;  %v13439_v11 = vld [vmem:[#allocation43_spill] sm:$0xff]  ;;  %v13442_v27 = vld [vmem:[#allocation17_spill] sm:$0xff] }
 0x846   :  { %v10724_v32 = vpop.permute.xlu2 %5824  ;;  %v10726_v47 = vpop.permute.xlu1 %5770  ;;  %vm12908_vm14 = vcmask 539648   ;;  %v6516_v35 = vsel %vm12910_vm13, %v6513_v37, %v10011_v61  ;;  %v3923_v8 = vsel %vm1694_vm0, %v3922_v55, %v3881_v48  ;;  %v10751_v18 = vperm.slane %v3947_v19, %v8291_v3 }
 0x847   :  { %13434 = vst [vmem:[#allocation155_spill] sm:$0xff] %v10724_v32  ;;  %v3825_v15 = vsel %vm1694_vm0, %v13410_v10, %v3824_v63  ;;  %v10756_v58 = vperm.slane %v3861_v54, %v8291_v3  ;;  %v6511_v7 = vsel %vm12906_vm12, %v6508_v56, %v13437_v43  ;;  %v3882_v60 = vrot.slane %v10733_v41, 4 }
 0x848   :  { %v3807_v61 = vsel %vm1694_vm0, %v3806_v28, %v10494_v0  ;;  %v3811_v55 = vsel %vm1694_vm0, %v3810_v2, %v10498_v17  ;;  %v3814_v19 = vrot.slane %v10730_v38, 4  ;;  %v6519_v54 = vsel %vm12908_vm14, %v6516_v35, %v13439_v11 }
 0x849   :  { %vm12909_vm15 = vcmask 556032   ;;  %v3816_v33 = vrot.slane %v10657_v49, 4  ;;  %v10777_v28 = vperm.slane %v3825_v15, %v8291_v3  ;;  %v13441_v2 = vrot.slane %v13405_v53, 4  ;;  %v13446_v53 = vld [vmem:[#allocation14_spill] sm:$0xff] }
 0x84a   :  { %5970 = vrot.lane.b32.xlu0 %v3923_v8, %s7137_s20  ;;  %v6514_v56 = vsel %vm12907_vm11, %v6511_v7, %v13442_v27  ;;  %v13443_v8 = vld [vmem:[#allocation82_spill] sm:$0xff]  ;;  %v3906_v11 = vrot.slane %v10756_v58, 4  ;;  %vm12913_vm12 = vcmask 572416   ;;  %v6522_v0 = vsel %vm12909_vm15, %v6519_v54, %v13446_v53 }
 0x84b   :  { %v3849_v37 = vsel %vm1694_vm0, %v13399_v22, %v13441_v2  ;;  %v3958_v43 = vrot.slane %v13443_v8, 4  ;;  %v3815_v22 = vsel %vm1694_vm0, %v3814_v19, %v10657_v49  ;;  %v3883_v7 = vsel %vm1694_vm0, %v3882_v60, %v10777_v28  ;;  %v13447_v27 = vld [vmem:[#allocation102_spill] sm:$0xff]  ;;  %v13449_v19 = vld [vmem:[#allocation201_spill] sm:$0xff] }
 0x84c   :  { %5952 = vrot.lane.b32.xlu1 %v3807_v61, %s7126_s12  ;;  %5968 = vrot.lane.b32.xlu2 %v3811_v55, %s7137_s20  ;;  %v10772_v63 = vpop.permute.xlu0 %5802  ;;  %v13444_v61 = vld [vmem:[#allocation148_spill] sm:$0xff]  ;;  %v3857_v2 = vperm.slane %v3849_v37, %v8291_v3  ;;  %v6517_v35 = vsel %vm12910_vm13, %v6514_v56, %v13447_v27  ;;  %vm12911_vm11 = vcmask 588800   ;;  %v6525_v14 = vsel %vm12913_vm12, %v6522_v0, %v10160_v13  ;;  %s13514_s12 = smov 56   ;;  %s13532_s20 = smov 68  }
 0x84d   :  { %13440 = vst [vmem:[#allocation134_spill] sm:$0xff] %v10772_v63  ;;  %v4082_v55 = vrot.slane %v13444_v61, 4  ;;  %v6520_v54 = vsel %vm12908_vm14, %v6517_v35, %v10087_v44  ;;  %v3920_v53 = vrot.slane %v10684_v25, 4  ;;  %v3924_v49 = vrot.slane %v3881_v48, 4  ;;  %v13450_v63 = vld [vmem:[#allocation199_spill] sm:$0xff]  ;;  %v13451_v48 = vld [vmem:[#allocation208_spill] sm:$0xff] }
 0x84e   :  { %v10789_v10 = vpop.permute.xlu2 %5834  ;;  %v10791_v15 = vpop.permute.xlu1 %5784  ;;  %v3959_v60 = vsel %vm1694_vm0, %v3958_v43, %v13449_v19  ;;  %v10814_v56 = vperm.slane %v3883_v7, %v8334_v9  ;;  %v3907_v13 = vsel %vm1694_vm0, %v3906_v11, %v3857_v2  ;;  %v6528_v0 = vsel %vm12911_vm11, %v6525_v14, %v10065_v59  ;;  %v13454_v14 = vld [vmem:[#allocation70_spill] sm:$0xff] }
 0x84f   :  { %13445 = vst [vmem:[#allocation214_spill] sm:$0xff] %v10789_v10  ;;  %v13448_v10 = vld [vmem:[#allocation103_spill] sm:$0xff]  ;;  %v4083_v37 = vsel %vm1694_vm0, %v4082_v55, %v13450_v63  ;;  %vm12912_vm14 = vcmask 605184   ;;  %v3921_v44 = vsel %vm1694_vm0, %v10641_v45, %v3920_v53  ;;  %v3925_v25 = vsel %vm1694_vm0, %v10687_v12, %v3924_v49 }
 0x850   :  { %v3970_v32 = vrot.slane %v13448_v10, 4  ;;  %v4070_v35 = vrot.slane %v13451_v48, 4  ;;  %v3796_v43 = vrot.slane %v10616_v42, 4  ;;  %v6523_v55 = vsel %vm12909_vm15, %v6520_v54, %v9996_v52  ;;  %v13456_v53 = vld [vmem:[#allocation27_spill] sm:$0xff] }
 0x851   :  { %v13453_v59 = vrot.slane %v10070_v50, 4  ;;  %v10838_v12 = vperm.slane %v3959_v60, %v8291_v3  ;;  %v10844_v7 = vperm.slane %v3907_v13, %v8334_v9  ;;  %v3908_v27 = vrot.slane %v3857_v2, 4 }
 0x852   :  { %5984 = vrot.lane.b32.xlu0 %v3815_v22, %s7138_s21  ;;  %v3971_v42 = vsel %vm1694_vm0, %v3970_v32, %v13454_v14  ;;  %v13455_v22 = vld [vmem:[#allocation158_spill] sm:$0xff]  ;;  %v10847_v54 = vperm.slane %v4083_v37, %v8291_v3  ;;  %vm12916_vm15 = vcmask 621568   ;;  %v6531_v49 = vsel %vm12912_vm14, %v6528_v0, %v13456_v53 }
 0x853   :  { %v10835_v45 = vsel %vm1694_vm0, %v10751_v18, %v13453_v59  ;;  %v4058_v52 = vrot.slane %v13455_v22, 4  ;;  %vm12914_vm13 = vcmask 637952   ;;  %v6534_v13 = vsel %vm12916_vm15, %v6531_v49, %v10289_v20 }
 0x854   :  { %5962 = vrot.lane.b32.xlu1 %v3921_v44, %s7136_s19  ;;  %5978 = vrot.lane.b32.xlu2 %v3925_v25, %s7139_s22  ;;  %v10829_v11 = vpop.permute.xlu0 %5816  ;;  %v13458_v25 = vld [vmem:[#allocation131_spill] sm:$0xff]  ;;  %v3928_v2 = vrot.slane %v10814_v56, 4  ;;  %v3977_v37 = vperm.slane %v3971_v42, %v8291_v3  ;;  %v3909_v59 = vsel %vm1694_vm0, %v10756_v58, %v3908_v27  ;;  %v3797_v53 = vsel %vm1694_vm0, %v10600_v26, %v3796_v43  ;;  %s13530_s19 = smov 64  }
 0x855   :  { %13452 = vst [vmem:[#allocation76_spill] sm:$0xff] %v10829_v11  ;;  %v6526_v32 = vsel %vm12913_vm12, %v6523_v55, %v13458_v25  ;;  %v13460_v25 = vld [vmem:[#allocation184_spill] sm:$0xff]  ;;  %v3817_v42 = vsel %vm1694_vm0, %v10730_v38, %v3816_v33  ;;  %v4118_v58 = vrot.slane %v10847_v54, 4  ;;  %v13461_v26 = vrot.slane %v10498_v17, 4 }
 0x856   :  { %v10851_v44 = vpop.permute.xlu2 %5848  ;;  %v10853_v60 = vpop.permute.xlu1 %5794  ;;  %v6529_v0 = vsel %vm12911_vm11, %v6526_v32, %v10219_v24  ;;  %v4071_v11 = vsel %vm1694_vm0, %v4070_v35, %v13460_v25  ;;  %v3929_v20 = vsel %vm1694_vm0, %v10844_v7, %v3928_v2  ;;  %v6537_v24 = vsel %vm12914_vm13, %v6534_v13, %v10198_v21  ;;  %v13462_v35 = vld [vmem:[#allocation140_spill] sm:$0xff] }
 0x857   :  { %13457 = vst [vmem:[#allocation197_spill] sm:$0xff] %v10851_v44  ;;  %v13459_v44 = vld [vmem:[#allocation204_spill] sm:$0xff]  ;;  %vm12915_vm11 = vcmask 654336   ;;  %v3813_v43 = vsel %vm1694_vm0, %v10701_v57, %v13461_v26  ;;  %v3884_v27 = vrot.slane %v10777_v28, 4  ;;  %v6532_v38 = vsel %vm12912_vm14, %v6529_v0, %v10143_v36 }
 0x858   :  { %v4059_v55 = vsel %vm1694_vm0, %v4058_v52, %v13459_v44  ;;  %v4046_v52 = vrot.slane %v13462_v35, 4  ;;  %v10888_v33 = vperm.slane %v3909_v59, %v8334_v9  ;;  %v4006_v49 = vrot.slane %v3977_v37, 4 }
 0x859   :  { %v10891_v21 = vperm.slane %v4059_v55, %v8291_v3  ;;  %v10894_v32 = vperm.slane %v4071_v11, %v8291_v3  ;;  %v10901_v57 = vperm.slane %v3797_v53, %v8334_v9  ;;  %vm12918_vm14 = vcmask 670720  }
 0x85a   :  { %5994 = vrot.lane.b32.xlu0 %v3929_v20, %s7140_s23  ;;  %v6540_v36 = vsel %vm12915_vm11, %v6537_v24, %v10085_v4  ;;  %v3885_v28 = vsel %vm1694_vm0, %v10733_v41, %v3884_v27  ;;  %v13463_v11 = vrot.slane %v10751_v18, 4  ;;  %v6535_v2 = vsel %vm12916_vm15, %v6532_v38, %v10009_v62  ;;  %v13464_v41 = vld [vmem:[#allocation119_spill] sm:$0xff] }
 0x85b   :  { %vm12917_vm12 = vcmask 687104   ;;  %v6543_v59 = vsel %vm12918_vm14, %v6540_v36, %v10416_v6  ;;  %v4119_v4 = vsel %vm1694_vm0, %v4118_v58, %v10894_v32  ;;  %v4047_v55 = vsel %vm1694_vm0, %v4046_v52, %v13464_v41 }
 0x85c   :  { %5976 = vrot.lane.b32.xlu1 %v3813_v43, %s7139_s22  ;;  %5992 = vrot.lane.b32.xlu2 %v3817_v42, %s7140_s23  ;;  %v10898_v17 = vpop.permute.xlu0 %5826  ;;  %v3983_v13 = vsel %vm1694_vm0, %v13463_v11, %v10070_v50  ;;  %v6538_v50 = vsel %vm12914_vm13, %v6535_v2, %v10347_v31  ;;  %v3926_v18 = vrot.slane %v10844_v7, 4  ;;  %v3930_v62 = vrot.slane %v10888_v33, 4  ;;  %s13538_s22 = smov 72   ;;  %s13540_s23 = smov 70  }
 0x85d   :  { %v4008_v20 = vrot.slane %v10838_v12, 4  ;;  %v4094_v6 = vrot.slane %v10891_v21, 4  ;;  %v13465_v42 = vrot.slane %v10078_v30, 4  ;;  %v4007_v58 = vsel %vm1694_vm0, %v4006_v49, %v10838_v12 }
 0x85e   :  { %v10915_v0 = vpop.permute.xlu2 %5858  ;;  %v10917_v53 = vpop.permute.xlu1 %5808  ;;  %v6546_v26 = vsel %vm12917_vm12, %v6543_v59, %v10333_v51  ;;  %vm12919_vm13 = vcmask 703488   ;;  %v10938_v31 = vperm.slane %v3885_v28, %v8334_v9  ;;  %v10941_v7 = vperm.slane %v4119_v4, %v8334_v9  ;;  %v13467_v28 = vld [vmem:[#allocation163_spill] sm:$0xff]  ;;  %v13468_v59 = vld [vmem:[#allocation37_spill] sm:$0xff] }
 0x85f   :  { %v3821_v24 = vsel %vm1694_vm0, %v10901_v57, %v13465_v42  ;;  %v10944_v43 = vperm.slane %v4047_v55, %v8291_v3  ;;  %v6541_v52 = vsel %vm12915_vm11, %v6538_v50, %v10273_v34  ;;  %v10951_v12 = vperm.slane %v10835_v45, %v8334_v9  ;;  %v13469_v42 = vld [vmem:[#allocation113_spill] sm:$0xff] }
 0x860   :  { %v13466_v51 = vrot.slane %v10740_v40, 4  ;;  %v3927_v38 = vsel %vm1694_vm0, %v3926_v18, %v10814_v56  ;;  %v3931_v49 = vsel %vm1694_vm0, %v3930_v62, %v10938_v31  ;;  %v10962_v36 = vperm.slane %v4007_v58, %v8334_v9 }
 0x861   :  { %v4009_v34 = vsel %vm1694_vm0, %v3977_v37, %v4008_v20  ;;  %vm12921_vm11 = vcmask 719872   ;;  %v6549_v45 = vsel %vm12919_vm13, %v6546_v26, %v13467_v28  ;;  %v4095_v56 = vsel %vm1694_vm0, %v4094_v6, %v10944_v43 }
 0x862   :  { %6008 = vrot.lane.b32.xlu0 %v3821_v24, %s7141_s24  ;;  %v3995_v27 = vsel %vm1694_vm0, %v13466_v51, %v9991_v39  ;;  %v10974_v2 = vperm.slane %v3983_v13, %v8334_v9  ;;  %v6544_v4 = vsel %vm12918_vm14, %v6541_v52, %v13468_v59  ;;  %vm12920_vm15 = vcmask 736256  }
 0x863   :  { %v6552_v37 = vsel %vm12921_vm11, %v6549_v45, %v10543_v23  ;;  %v4142_v55 = vrot.slane %v10941_v7, 4  ;;  %v3996_v50 = vrot.slane %v9991_v39, 4  ;;  %v6547_v18 = vsel %vm12917_vm12, %v6544_v4, %v10479_v29  ;;  %v13473_v4 = vld [vmem:[#allocation203_spill] sm:$0xff] }
 0x864   :  { %5986 = vrot.lane.b32.xlu1 %v3927_v38, %s7138_s21  ;;  %6002 = vrot.lane.b32.xlu2 %v3931_v49, %s7142_s25  ;;  %v10969_v11 = vpop.permute.xlu0 %5840  ;;  %v3818_v13 = vrot.slane %v10901_v57, 4  ;;  %v10990_v6 = vperm.slane %v4009_v34, %v8334_v9  ;;  %v13470_v24 = vrot.slane %v13438_v46, 4  ;;  %v4101_v58 = vperm.slane %v4095_v56, %v8334_v9  ;;  %v13471_v49 = vld [vmem:[#allocation118_spill] sm:$0xff]  ;;  %v13472_v56 = vld [vmem:[#allocation95_spill] sm:$0xff] }
 0x865   :  { %v4030_v26 = vrot.slane %v10962_v36, 4  ;;  %v11001_v29 = vperm.slane %v3995_v27, %v8334_v9  ;;  %v3972_v52 = vrot.slane %v13454_v14, 4  ;;  %v6555_v57 = vsel %vm12920_vm15, %v6552_v37, %v10457_v16 }
 0x866   :  { %v10984_v62 = vpop.permute.xlu2 %5872  ;;  %v10986_v20 = vpop.permute.xlu1 %5818  ;;  %v10996_v23 = vsel %vm1694_vm0, %v13470_v24, %v13469_v42  ;;  %vm12922_vm12 = vcmask 752640   ;;  %v4036_v51 = vrot.slane %v10951_v12, 4  ;;  %v3960_v38 = vrot.slane %v13449_v19, 4  ;;  %v13474_v24 = vld [vmem:[#allocation160_spill] sm:$0xff] }
 0x867   :  { %v6550_v34 = vsel %vm12919_vm13, %v6547_v18, %v13471_v49  ;;  %v4143_v28 = vsel %vm1694_vm0, %v4142_v55, %v4101_v58  ;;  %v4032_v45 = vrot.slane %v10974_v2, 4  ;;  %v4194_v27 = vrot.slane %v13472_v56, 4 }
 0x868   :  { %v3973_v14 = vsel %vm1694_vm0, %v13448_v10, %v3972_v52  ;;  %v3819_v16 = vsel %vm1694_vm0, %v3818_v13, %v10078_v30  ;;  %v4034_v59 = vrot.slane %v10990_v6, 4  ;;  %v4084_v19 = vrot.slane %v13450_v63, 4 }
 0x869   :  { %vm12924_vm14 = vcmask 769024   ;;  %v6558_v37 = vsel %vm12922_vm12, %v6555_v57, %v13473_v4  ;;  %v4031_v55 = vsel %vm1694_vm0, %v4030_v26, %v10974_v2  ;;  %v4096_v18 = vrot.slane %v10944_v43, 4  ;;  %v13475_v26 = vld [vmem:[#allocation93_spill] sm:$0xff]  ;;  %v13477_v4 = vld [vmem:[#allocation90_spill] sm:$0xff] }
 0x86a   :  { %6018 = vrot.lane.b32.xlu0 %v4143_v28, %s7143_s26  ;;  %v6553_v10 = vsel %vm12921_vm11, %v6550_v34, %v13474_v24  ;;  %vm12923_vm13 = vcmask 785408   ;;  %v6561_v30 = vsel %vm12924_vm14, %v6558_v37, %v10664_v1  ;;  %v4060_v13 = vrot.slane %v13459_v44, 4  ;;  %v13476_v1 = vld [vmem:[#allocation83_spill] sm:$0xff] }
 0x86b   :  { %v4072_v52 = vrot.slane %v13460_v25, 4  ;;  %v4085_v43 = vsel %vm1694_vm0, %v13444_v61, %v4084_v19  ;;  %v6556_v57 = vsel %vm12920_vm15, %v6553_v10, %v13475_v26  ;;  %v3961_v49 = vsel %vm1694_vm0, %v13443_v8, %v3960_v38  ;;  %v13478_v19 = vld [vmem:[#allocation47_spill] sm:$0xff] }
 0x86c   :  { %6000 = vrot.lane.b32.xlu1 %v3819_v16, %s7142_s25  ;;  %6016 = vrot.lane.b32.xlu2 %v4031_v55, %s7143_s26  ;;  %v11031_v63 = vpop.permute.xlu0 %5850  ;;  %v4195_v34 = vsel %vm1694_vm0, %v4194_v27, %v13476_v1  ;;  %v3582_v44 = vrot.slane %v13477_v4, 4  ;;  %v4097_v25 = vsel %vm1694_vm0, %v10891_v21, %v4096_v18  ;;  %v11051_v61 = vperm.slane %v3973_v14, %v8291_v3  ;;  %v13479_v55 = vld [vmem:[#allocation137_spill] sm:$0xff]  ;;  %s13561_s25 = smov 78   ;;  %s13562_s26 = smov 76  }
 0x86d   :  { %v6564_v37 = vsel %vm12923_vm13, %v6561_v30, %v13478_v19  ;;  %vm12925_vm15 = vcmask 801792   ;;  %v4035_v8 = vsel %vm1694_vm0, %v4034_v59, %v10951_v12  ;;  %v4120_v38 = vrot.slane %v10894_v32, 4  ;;  %v13480_v32 = vld [vmem:[#allocation57_spill] sm:$0xff] }
 0x86e   :  { %v11043_v28 = vpop.permute.xlu2 %5882  ;;  %v11045_v16 = vpop.permute.xlu1 %5832  ;;  %v11059_v27 = vperm.slane %v4085_v43, %v8291_v3  ;;  %v6559_v24 = vsel %vm12922_vm12, %v6556_v57, %v13479_v55  ;;  %v4144_v10 = vrot.slane %v4101_v58, 4  ;;  %v4061_v21 = vsel %vm1694_vm0, %v13455_v22, %v4060_v13  ;;  %v13481_v13 = vld [vmem:[#allocation182_spill] sm:$0xff]  ;;  %v13484_v55 = vld [vmem:[#allocation116_spill] sm:$0xff] }
 0x86f   :  { %v4073_v14 = vsel %vm1694_vm0, %v13451_v48, %v4072_v52  ;;  %v3932_v18 = vrot.slane %v10938_v31, 4  ;;  %v11069_v30 = vperm.slane %v4097_v25, %v8334_v9  ;;  %vm12928_vm11 = vcmask 818176  }
 0x870   :  { %v6567_v59 = vsel %vm12925_vm15, %v6564_v37, %v13480_v32  ;;  %v4145_v58 = vsel %vm1694_vm0, %v10941_v7, %v4144_v10  ;;  %v4121_v22 = vsel %vm1694_vm0, %v10847_v54, %v4120_v38  ;;  %v6562_v48 = vsel %vm12924_vm14, %v6559_v24, %v13481_v13  ;;  %v13483_v38 = vld [vmem:[#allocation71_spill] sm:$0xff] }
 0x871   :  { %vm12926_vm12 = vcmask 834560   ;;  %v6570_v31 = vsel %vm12928_vm11, %v6567_v59, %v10791_v15  ;;  %v3933_v52 = vsel %vm1694_vm0, %v10888_v33, %v3932_v18  ;;  %v11085_v43 = vperm.slane %v4195_v34, %v8291_v3  ;;  %v13482_v34 = vld [vmem:[#allocation30_spill] sm:$0xff] }
 0x872   :  { %6032 = vrot.lane.b32.xlu0 %v4035_v8, %s7144_s27  ;;  %v4018_v26 = vrot.slane %v11051_v61, 4  ;;  %v4130_v7 = vrot.slane %v11059_v27, 4  ;;  %v6565_v54 = vsel %vm12923_vm13, %v6562_v48, %v10726_v47  ;;  %v3969_v15 = vperm.slane %v3961_v49, %v8291_v3 }
 0x873   :  { %v11097_v33 = vperm.slane %v4061_v21, %v8291_v3  ;;  %v3583_v4 = vsel %vm1694_vm0, %v3582_v44, %v13482_v34  ;;  %v11102_v25 = vperm.slane %v4121_v22, %v8334_v9  ;;  %v4048_v19 = vrot.slane %v13464_v41, 4  ;;  %v13486_v44 = vld [vmem:[#allocation69_spill] sm:$0xff]  ;;  %v13487_v22 = vld [vmem:[#allocation58_spill] sm:$0xff] }
 0x874   :  { %6010 = vrot.lane.b32.xlu1 %v3933_v52, %s7141_s24  ;;  %6026 = vrot.lane.b32.xlu2 %v4145_v58, %s7145_s28  ;;  %v11093_v57 = vpop.permute.xlu0 %5864  ;;  %v4081_v47 = vperm.slane %v4073_v14, %v8291_v3  ;;  %v6573_v37 = vsel %vm12926_vm12, %v6570_v31, %v10711_v5  ;;  %vm12927_vm13 = vcmask 850944   ;;  %v13485_v24 = vrot.slane %v13484_v55, 4  ;;  %v13488_v31 = vld [vmem:[#allocation46_spill] sm:$0xff]  ;;  %s13553_s24 = smov 74  }
 0x875   :  { %v6568_v21 = vsel %vm12925_vm15, %v6565_v54, %v13486_v44  ;;  %v4148_v41 = vrot.slane %v11069_v30, 4  ;;  %v4230_v14 = vrot.slane %v11085_v43, 4  ;;  %v4049_v5 = vsel %vm1694_vm0, %v13462_v35, %v4048_v19 }
 0x876   :  { %v11108_v8 = vpop.permute.xlu1 %5842  ;;  %v5897_v49 = vpop.permute.xlu2 %5896  ;;  %v4183_v10 = vsel %vm1694_vm0, %v13485_v24, %v13483_v38  ;;  %v4019_v32 = vsel %vm1694_vm0, %v4018_v26, %v3969_v15  ;;  %v4131_v59 = vsel %vm1694_vm0, %v4130_v7, %v4081_v47  ;;  %v4106_v58 = vrot.slane %v11097_v33, 4 }
 0x877   :  { %v11117_v18 = vsel %vm6422_vm1, %v3583_v4, %v5897_v49  ;;  %vm12931_vm14 = vcmask 867328   ;;  %v6576_v13 = vsel %vm12927_vm13, %v6573_v37, %v13487_v22  ;;  %v4149_v48 = vsel %vm1694_vm0, %v11102_v25, %v4148_v41 }
 0x878   :  { %v6571_v52 = vsel %vm12928_vm11, %v6568_v21, %v13488_v31  ;;  %vm12929_vm15 = vcmask 883712   ;;  %v6579_v35 = vsel %vm12931_vm14, %v6576_v13, %v10917_v53  ;;  %v4037_v26 = vsel %vm1694_vm0, %v10990_v6, %v4036_v51  ;;  %v13489_v51 = vld [vmem:[#allocation76_spill] sm:$0xff]  ;;  %v13494_v31 = vld [vmem:[#allocation19_spill] sm:$0xff] }
 0x879   :  { %v4057_v7 = vperm.slane %v4049_v5, %v8291_v3  ;;  %v6574_v54 = vsel %vm12926_vm12, %v6571_v52, %v10853_v60  ;;  %v4033_v34 = vsel %vm1694_vm0, %v10962_v36, %v4032_v45  ;;  %v11147_v4 = vperm.slane %v4131_v59, %v8334_v9  ;;  %v13491_v5 = vld [vmem:[#allocation155_spill] sm:$0xff] }
 0x87a   :  { %6042 = vrot.lane.b32.xlu0 %v4149_v48, %s7146_s29  ;;  %v11151_v53 = vperm.slane %v10996_v23, %v8291_v3  ;;  %v11154_v12 = vperm.slane %v4183_v10, %v8291_v3  ;;  %v4132_v6 = vrot.slane %v4081_v47, 4  ;;  %v11161_v2 = vperm.slane %v4019_v32, %v8334_v9  ;;  %v13490_v47 = vld [vmem:[#allocation134_spill] sm:$0xff]  ;;  %v13495_v52 = vld [vmem:[#allocation39_spill] sm:$0xff] }
 0x87b   :  { %v4020_v36 = vrot.slane %v3969_v15, 4  ;;  %v6582_v45 = vsel %vm12929_vm15, %v6579_v35, %v13489_v51  ;;  %vm12930_vm12 = vcmask 900096   ;;  %v4107_v23 = vsel %vm1694_vm0, %v4106_v58, %v4057_v7  ;;  %v13493_v58 = vld [vmem:[#allocation154_spill] sm:$0xff] }
 0x87c   :  { %6024 = vrot.lane.b32.xlu1 %v4033_v34, %s7145_s28  ;;  %6040 = vrot.lane.b32.xlu2 %v4037_v26, %s7146_s29  ;;  %v11158_v60 = vpop.permute.xlu0 %5874  ;;  %v4133_v19 = vsel %vm1694_vm0, %v11059_v27, %v4132_v6  ;;  %v6577_v37 = vsel %vm12927_vm13, %v6574_v54, %v13490_v47  ;;  %v4040_v10 = vrot.slane %v11001_v29, 4  ;;  %v3997_v15 = vsel %vm1694_vm0, %v10740_v40, %v3996_v50  ;;  %v13492_v40 = vld [vmem:[#allocation80_spill] sm:$0xff]  ;;  %s13570_s28 = smov 84   ;;  %s13571_s29 = smov 82  }
 0x87d   :  { %v4021_v44 = vsel %vm1694_vm0, %v11051_v61, %v4020_v36  ;;  %v4146_v21 = vrot.slane %v11102_v25, 4  ;;  %v4150_v27 = vrot.slane %v11147_v4, 4  ;;  %v4231_v41 = vsel %vm1694_vm0, %v4230_v14, %v11154_v12  ;;  %v13499_v47 = vld [vmem:[#allocation120_spill] sm:$0xff] }
 0x87e   :  { %v5857_v49 = vpop.permute.xlu1 %5856  ;;  %v11170_v24 = vpop.permute.xlu2 %5906  ;;  %vm12934_vm13 = vcmask 916480   ;;  %v6585_v32 = vsel %vm12930_vm12, %v6582_v45, %v13491_v5  ;;  %v4041_v39 = vsel %vm1694_vm0, %v11161_v2, %v4040_v10  ;;  %v11188_v59 = vperm.slane %v4107_v23, %v8334_v9 }
 0x87f   :  { %v6580_v50 = vsel %vm12931_vm14, %v6577_v37, %v13492_v40  ;;  %vm12932_vm11 = vcmask 932864   ;;  %v6588_v61 = vsel %vm12934_vm13, %v6585_v32, %v11045_v16  ;;  %v11195_v25 = vperm.slane %v4133_v19, %v8334_v9  ;;  %v13497_v16 = vld [vmem:[#allocation89_spill] sm:$0xff] }
 0x880   :  { %v4108_v14 = vrot.slane %v4057_v7, 4  ;;  %v4270_v22 = vrot.slane %v13493_v58, 4  ;;  %v6583_v13 = vsel %vm12929_vm15, %v6580_v50, %v10986_v20  ;;  %v11202_v48 = vperm.slane %v4021_v44, %v8334_v9  ;;  %v13501_v44 = vld [vmem:[#allocation106_spill] sm:$0xff] }
 0x881   :  { %v13496_v35 = vrot.slane %v13495_v52, 4  ;;  %v4306_v54 = vrot.slane %v13497_v16, 4  ;;  %v4147_v7 = vsel %vm1694_vm0, %v4146_v21, %v11069_v30  ;;  %v4151_v34 = vsel %vm1694_vm0, %v4150_v27, %v11188_v59  ;;  %v13504_v50 = vld [vmem:[#allocation214_spill] sm:$0xff] }
 0x882   :  { %6056 = vrot.lane.b32.xlu0 %v4041_v39, %s7147_s30  ;;  %v4206_v20 = vrot.slane %v11151_v53, 4  ;;  %v6591_v6 = vsel %vm12932_vm11, %v6588_v61, %v10969_v11  ;;  %vm12933_vm15 = vcmask 949248   ;;  %v4109_v51 = vsel %vm1694_vm0, %v11097_v33, %v4108_v14  ;;  %v13498_v11 = vld [vmem:[#allocation136_spill] sm:$0xff] }
 0x883   :  { %v4159_v26 = vsel %vm1694_vm0, %v13496_v35, %v13494_v31  ;;  %v6586_v30 = vsel %vm12930_vm12, %v6583_v13, %v10898_v17  ;;  %v4154_v45 = vrot.slane %v11195_v25, 4  ;;  %v11224_v23 = vperm.slane %v3997_v15, %v8334_v9  ;;  %v13502_v15 = vld [vmem:[#allocation190_spill] sm:$0xff]  ;;  %v13506_v35 = vld [vmem:[#allocation216_spill] sm:$0xff] }
 0x884   :  { %6034 = vrot.lane.b32.xlu1 %v4147_v7, %s7144_s27  ;;  %6050 = vrot.lane.b32.xlu2 %v4151_v34, %s7148_s2  ;;  %v5889_v36 = vpop.permute.xlu0 %5888  ;;  %v11227_v19 = vperm.slane %v4231_v41, %v8334_v9  ;;  %v13500_v37 = vrot.slane %v13499_v47, 4  ;;  %v4271_v21 = vsel %vm1694_vm0, %v4270_v22, %v13501_v44  ;;  %v4038_v17 = vrot.slane %v11161_v2, 4  ;;  %v13503_v41 = vld [vmem:[#allocation197_spill] sm:$0xff]  ;;  %v13505_v22 = vld [vmem:[#allocation166_spill] sm:$0xff]  ;;  %s13566_s27 = smov 80  }
 0x885   :  { %v4042_v5 = vrot.slane %v11202_v48, 4  ;;  %v4307_v32 = vsel %vm1694_vm0, %v4306_v54, %v13502_v15  ;;  %vm6596_vm12 = vcmask 965632   ;;  %v6594_v39 = vsel %vm12933_vm15, %v6591_v6, %v13503_v41  ;;  %v13508_v41 = vld [vmem:[#allocation175_spill] sm:$0xff] }
 0x886   :  { %v4283_v10 = vsel %vm1694_vm0, %v13500_v37, %v13498_v11  ;;  %v5867_v33 = vpop.permute.xlu1 %5866  ;;  %v11235_v27 = vpop.permute.xlu2 %5920  ;;  %v4117_v40 = vperm.slane %v4109_v51, %v8334_v9  ;;  %v6589_v61 = vsel %vm12934_vm13, %v6586_v30, %v13504_v50  ;;  %vm6599_vm14 = vcmask 982016  }
 0x887   :  { %v6597_v14 = vsel %vm6596_vm12, %v6594_v39, %v5857_v49  ;;  %v3694_v13 = vrot.slane %v13505_v22, 4  ;;  %v11249_v2 = vperm.slane %v4283_v10, %v8291_v3  ;;  %v4294_v7 = vrot.slane %v13506_v35, 4 }
 0x888   :  { %v6592_v54 = vsel %vm12932_vm11, %v6589_v61, %v11108_v8  ;;  %v4155_v34 = vsel %vm1694_vm0, %v4154_v45, %v4117_v40  ;;  %v4172_v6 = vrot.slane %v13469_v42, 4  ;;  %v4165_v51 = vperm.slane %v4159_v26, %v8291_v3  ;;  %v13507_v45 = vld [vmem:[#allocation68_spill] sm:$0xff] }
 0x889   :  { %v11258_v30 = vperm.slane %v4307_v32, %v8291_v3  ;;  %v4043_v49 = vsel %vm1694_vm0, %v4042_v5, %v11224_v23  ;;  %v11264_v37 = vperm.slane %v4271_v21, %v8291_v3  ;;  %v6600_v8 = vsel %vm6599_vm14, %v6597_v14, %v11093_v57 }
 0x88a   :  { %6066 = vrot.lane.b32.xlu0 %v4155_v34, %s7149_s3  ;;  %vm6602_vm11 = vcmask 998400   ;;  %v4039_v42 = vsel %vm1694_vm0, %v4038_v17, %v11001_v29  ;;  %v6595_v26 = vsel %vm12933_vm15, %v6592_v54, %v11031_v63  ;;  %v3695_v10 = vsel %vm1694_vm0, %v3694_v13, %v13507_v45 }
 0x88b   :  { %v4207_v21 = vsel %vm1694_vm0, %v4206_v20, %v4165_v51  ;;  %v4254_v32 = vrot.slane %v11227_v19, 4  ;;  %v4318_v57 = vrot.slane %v11249_v2, 4  ;;  %v4295_v29 = vsel %vm1694_vm0, %v4294_v7, %v13508_v41 }
 0x88c   :  { %6048 = vrot.lane.b32.xlu1 %v4039_v42, %s7148_s2  ;;  %6064 = vrot.lane.b32.xlu2 %v4043_v49, %s7149_s3  ;;  %v5899_v5 = vpop.permute.xlu0 %5898  ;;  %vm12935_vm15 = vcmask 1031168   ;;  %v4342_v63 = vrot.slane %v11258_v30, 4  ;;  %vm12936_vm13 = vcmask 1014784   ;;  %v6603_v50 = vsel %vm6602_vm11, %v6600_v8, %v10984_v62  ;;  %s13587_s2 = smov 90   ;;  %s13589_s3 = smov 88  }
 0x88d   :  { %v6612_v17 = vsel %vm6422_vm1, %v3695_v10, %v5899_v5  ;;  %v6598_v14 = vsel %vm6596_vm12, %v6595_v26, %v10915_v0  ;;  %v4213_v13 = vperm.slane %v4207_v21, %v8334_v9  ;;  %v4319_v7 = vsel %vm1694_vm0, %v4318_v57, %v11264_v37 }
 0x88e   :  { %v5881_v39 = vpop.permute.xlu1 %5880  ;;  %v11285_v61 = vpop.permute.xlu2 %5930  ;;  %v11289_v20 = vsel %vm6425_vm2, %v6612_v17, %v11170_v24  ;;  %v4208_v54 = vrot.slane %v4165_v51, 4  ;;  %v4301_v34 = vperm.slane %v4295_v29, %v8291_v3  ;;  %v6601_v62 = vsel %vm6599_vm14, %v6598_v14, %v5867_v33 }
 0x88f   :  { %v6606_v22 = vsel %vm12936_vm13, %v6603_v50, %v5881_v39  ;;  %v4308_v24 = vrot.slane %v13502_v15, 4  ;;  %v4255_v8 = vsel %vm1694_vm0, %v4254_v32, %v4213_v13  ;;  %v4152_v0 = vrot.slane %v11188_v59, 4 }
 0x890   :  { %v6609_v49 = vsel %vm12935_vm15, %v6606_v22, %v5889_v36  ;;  %v4156_v42 = vrot.slane %v4117_v40, 4  ;;  %v4196_v26 = vrot.slane %v13476_v1, 4  ;;  %v11306_v51 = vperm.slane %v4319_v7, %v8334_v9 }
 0x891   :  { %6743 = vst [vmem:[#allocation5] sm:$0xff] %v6609_v49  ;;  %v4343_v45 = vsel %vm1694_vm0, %v4342_v63, %v4301_v34  ;;  %v4209_v36 = vsel %vm1694_vm0, %v11151_v53, %v4208_v54  ;;  %v4309_v33 = vsel %vm1694_vm0, %v13497_v16, %v4308_v24  ;;  %v6604_v15 = vsel %vm6602_vm11, %v6601_v62, %v11158_v60 }
 0x892   :  { %6080 = vrot.lane.b32.xlu0 %v4255_v8, %s7150_s4  ;;  %v4153_v59 = vsel %vm1694_vm0, %v11147_v4, %v4152_v0  ;;  %v4157_v1 = vsel %vm1694_vm0, %v11195_v25, %v4156_v42  ;;  %v4160_v40 = vrot.slane %v13494_v31, 4  ;;  %v4173_v53 = vsel %vm1694_vm0, %v13438_v46, %v4172_v6 }
 0x893   :  { %v4184_v16 = vrot.slane %v13483_v38, 4  ;;  %v4197_v60 = vsel %vm1694_vm0, %v13472_v56, %v4196_v26  ;;  %v4349_v4 = vperm.slane %v4343_v45, %v8334_v9  ;;  %v4344_v5 = vrot.slane %v4301_v34, 4 }
 0x894   :  { %6058 = vrot.lane.b32.xlu1 %v4153_v59, %s7147_s30  ;;  %6074 = vrot.lane.b32.xlu2 %v4157_v1, %s7151_s5  ;;  %v5913_v10 = vpop.permute.xlu0 %5912  ;;  %v11329_v25 = vperm.slane %v4309_v33, %v8291_v3  ;;  %v6607_v21 = vsel %vm12936_vm13, %v6604_v15, %v11043_v28  ;;  %v11336_v57 = vperm.slane %v4209_v36, %v8334_v9  ;;  %v4284_v46 = vrot.slane %v13498_v11, 4  ;;  %s13578_s30 = smov 86  }
 0x895   :  { %v4296_v38 = vrot.slane %v13508_v41, 4  ;;  %v4368_v6 = vrot.slane %v11306_v51, 4  ;;  %v4232_v29 = vrot.slane %v11154_v12, 4  ;;  %v4205_v17 = vperm.slane %v4197_v60, %v8291_v3 }
 0x896   :  { %v5891_v31 = vpop.permute.xlu1 %5890  ;;  %v11333_v32 = vpop.permute.xlu2 %5944  ;;  %v4256_v63 = vrot.slane %v4213_v13, 4  ;;  %v4345_v28 = vsel %vm1694_vm0, %v11258_v30, %v4344_v5  ;;  %v4185_v39 = vsel %vm1694_vm0, %v13484_v55, %v4184_v16  ;;  %v4044_v50 = vrot.slane %v11224_v23, 4 }
 0x897   :  { %v6610_v56 = vsel %vm12935_vm15, %v6607_v21, %v5891_v31  ;;  %v4297_v11 = vsel %vm1694_vm0, %v13506_v35, %v4296_v38  ;;  %v4369_v41 = vsel %vm1694_vm0, %v4349_v4, %v4368_v6  ;;  %v4320_v14 = vrot.slane %v11264_v37, 4  ;;  %v13509_v21 = vld [vmem:[#allocation165_spill] sm:$0xff] }
 0x898   :  { %6746 = vst [vmem:[#allocation5 + $0x18] sm:$0xff] %v6610_v56  ;;  %v4354_v12 = vrot.slane %v11329_v25, 4  ;;  %v4257_v22 = vsel %vm1694_vm0, %v11227_v19, %v4256_v63  ;;  %v4233_v30 = vsel %vm1694_vm0, %v11085_v43, %v4232_v29  ;;  %v4272_v55 = vrot.slane %v13501_v44, 4 }
 0x899   :  { %v4285_v35 = vsel %vm1694_vm0, %v13499_v47, %v4284_v46  ;;  %v4045_v23 = vsel %vm1694_vm0, %v11202_v48, %v4044_v50  ;;  %v11365_v37 = vperm.slane %v4345_v28, %v8334_v9  ;;  %v11368_v13 = vperm.slane %v4173_v53, %v8291_v3  ;;  %v13510_v50 = vld [vmem:[#allocation38_spill] sm:$0xff] }
 0x89a   :  { %6090 = vrot.lane.b32.xlu0 %v4369_v41, %s7152_s6  ;;  %v4242_v7 = vrot.slane %v4205_v17, 4  ;;  %v11371_v19 = vperm.slane %v4297_v11, %v8291_v3  ;;  %v4161_v47 = vsel %vm1694_vm0, %v13495_v52, %v4160_v40  ;;  %v4273_v48 = vsel %vm1694_vm0, %v13493_v58, %v4272_v55  ;;  %v13512_v55 = vld [vmem:[#allocation49_spill] sm:$0xff] }
 0x89b   :  { %v4241_v44 = vperm.slane %v4233_v30, %v8334_v9  ;;  %v4193_v54 = vperm.slane %v4185_v39, %v8291_v3  ;;  %v11382_v34 = vperm.slane %v4285_v35, %v8291_v3  ;;  %v4321_v24 = vsel %vm1694_vm0, %v11249_v2, %v4320_v14 }
 0x89c   :  { %6072 = vrot.lane.b32.xlu1 %v4045_v23, %s7151_s5  ;;  %6088 = vrot.lane.b32.xlu2 %v4257_v22, %s7152_s6  ;;  %v5923_v43 = vpop.permute.xlu0 %5922  ;;  %v4355_v8 = vsel %vm1694_vm0, %v4354_v12, %v11371_v19  ;;  %v4260_v58 = vrot.slane %v11336_v57, 4  ;;  %v4366_v0 = vrot.slane %v4349_v4, 4  ;;  %v4370_v42 = vrot.slane %v11365_v37, 4  ;;  %v13511_v22 = vld [vmem:[#allocation32_spill] sm:$0xff]  ;;  %v13513_v23 = vld [vmem:[#allocation105_spill] sm:$0xff]  ;;  %s13604_s5 = smov 96  }
 0x89d   :  { %v4218_v26 = vrot.slane %v11368_v13, 4  ;;  %v4281_v45 = vperm.slane %v4273_v48, %v8291_v3  ;;  %v4243_v33 = vsel %vm1694_vm0, %v4242_v7, %v4193_v54  ;;  %v11400_v15 = vperm.slane %v4321_v24, %v8334_v9  ;;  %s13605_s6 = smov 94  }
 0x89e   :  { %v5905_v62 = vpop.permute.xlu1 %5904  ;;  %v11384_v49 = vpop.permute.xlu2 %5954  ;;  %v4261_v2 = vsel %vm1694_vm0, %v4241_v44, %v4260_v58  ;;  %v4330_v1 = vrot.slane %v11382_v34, 4  ;;  %v4169_v40 = vperm.slane %v4161_v47, %v8291_v3  ;;  %v11415_v16 = vperm.slane %v4243_v33, %v8334_v9  ;;  %v13517_v58 = vld [vmem:[#allocation72_spill] sm:$0xff]  ;;  %v13519_v33 = vld [vmem:[#allocation207_spill] sm:$0xff] }
 0x89f   :  { %v6613_v52 = vsel %vm6425_vm2, %v11117_v18, %v5905_v62  ;;  %v11403_v18 = vperm.slane %v4355_v8, %v8334_v9  ;;  %v4371_v53 = vsel %vm1694_vm0, %v4370_v42, %v11400_v15  ;;  %v4244_v60 = vrot.slane %v4193_v54, 4  ;;  %v13515_v54 = vld [vmem:[#allocation172_spill] sm:$0xff] }
 0x8a0   :  { %v6615_v36 = vsel %vm6428_vm3, %v6613_v52, %v5913_v10  ;;  %v4367_v10 = vsel %vm1694_vm0, %v4366_v0, %v11306_v51  ;;  %v4331_v4 = vsel %vm1694_vm0, %v4330_v1, %v4281_v45  ;;  %v4219_v31 = vsel %vm1694_vm0, %v4218_v26, %v4169_v40 }
 0x8a1   :  { %v6617_v59 = vsel %vm6431_vm4, %v6615_v36, %v11235_v27  ;;  %v4374_v5 = vrot.slane %v11403_v18, 4  ;;  %v4394_v51 = vrot.slane %v13509_v21, 4  ;;  %v4245_v46 = vsel %vm1694_vm0, %v4205_v17, %v4244_v60 }
 0x8a2   :  { %6104 = vrot.lane.b32.xlu0 %v4261_v2, %s7153_s7  ;;  %v4337_v29 = vperm.slane %v4331_v4, %v8334_v9  ;;  %v4258_v63 = vrot.slane %v4241_v44, 4  ;;  %v4262_v28 = vrot.slane %v11415_v16, 4  ;;  %v4220_v39 = vrot.slane %v4169_v40, 4 }
 0x8a3   :  { %v11432_v41 = vperm.slane %v4219_v31, %v8334_v9  ;;  %v4530_v14 = vrot.slane %v13510_v50, 4  ;;  %v11437_v12 = vperm.slane %v4245_v46, %v8334_v9  ;;  %v4395_v30 = vsel %vm1694_vm0, %v4394_v51, %v13511_v22 }
 0x8a4   :  { %6082 = vrot.lane.b32.xlu1 %v4367_v10, %s7150_s4  ;;  %6098 = vrot.lane.b32.xlu2 %v4371_v53, %s7154_s8  ;;  %v5937_v27 = vpop.permute.xlu0 %5936  ;;  %v4375_v17 = vsel %vm1694_vm0, %v4374_v5, %v4337_v29  ;;  %v4382_v35 = vrot.slane %v13512_v55, 4  ;;  %v4418_v7 = vrot.slane %v13513_v23, 4  ;;  %v4259_v47 = vsel %vm1694_vm0, %v4258_v63, %v11336_v57  ;;  %v13516_v57 = vld [vmem:[#allocation18_spill] sm:$0xff]  ;;  %s13598_s4 = smov 92  }
 0x8a5   :  { %v4263_v48 = vsel %vm1694_vm0, %v4262_v28, %v11432_v41  ;;  %v4221_v44 = vsel %vm1694_vm0, %v11368_v13, %v4220_v39  ;;  %v4531_v62 = vsel %vm1694_vm0, %v4530_v14, %v13515_v54  ;;  %v4266_v24 = vrot.slane %v11437_v12, 4  ;;  %v13520_v10 = vld [vmem:[#allocation94_spill] sm:$0xff]  ;;  %v13525_v14 = vld [vmem:[#allocation61_spill] sm:$0xff] }
 0x8a6   :  { %v5915_v38 = vpop.permute.xlu1 %5914  ;;  %v11424_v56 = vpop.permute.xlu2 %5968  ;;  %v11458_v8 = vperm.slane %v4395_v30, %v8291_v3  ;;  %v4383_v52 = vsel %vm1694_vm0, %v4382_v35, %v13516_v57  ;;  %v4419_v0 = vsel %vm1694_vm0, %v4418_v7, %v13517_v58  ;;  %v4229_v26 = vperm.slane %v4221_v44, %v8334_v9  ;;  %v13526_v30 = vld [vmem:[#allocation143_spill] sm:$0xff] }
 0x8a7   :  { %v6616_v6 = vsel %vm6428_vm3, %v11289_v20, %v5915_v38  ;;  %v4518_v2 = vrot.slane %v13519_v33, 4  ;;  %v4406_v53 = vrot.slane %v13520_v10, 4  ;;  %v4356_v60 = vrot.slane %v11371_v19, 4 }
 0x8a8   :  { %v6618_v11 = vsel %vm6431_vm4, %v6616_v6, %v5923_v43  ;;  %v4332_v43 = vrot.slane %v4281_v45, 4  ;;  %v13518_v45 = vld [vmem:[#allocation171_spill] sm:$0xff]  ;;  %v11475_v4 = vperm.slane %v4531_v62, %v8291_v3  ;;  %v4267_v31 = vsel %vm1694_vm0, %v4266_v24, %v4229_v26 }
 0x8a9   :  { %v6620_v20 = vsel %vm6434_vm5, %v6618_v11, %v11285_v61  ;;  %v4506_v36 = vrot.slane %v13518_v45, 4  ;;  %v4372_v51 = vrot.slane %v11400_v15, 4  ;;  %v4376_v46 = vrot.slane %v4337_v29, 4  ;;  %v13522_v6 = vld [vmem:[#allocation123_spill] sm:$0xff]  ;;  %v13523_v29 = vld [vmem:[#allocation186_spill] sm:$0xff] }
 0x8aa   :  { %6114 = vrot.lane.b32.xlu0 %v4375_v17, %s13514_s12  ;;  %v4333_v40 = vsel %vm1694_vm0, %v11382_v34, %v4332_v43  ;;  %v11483_v38 = vperm.slane %v4383_v52, %v8291_v3  ;;  %v4425_v34 = vperm.slane %v4419_v0, %v8291_v3  ;;  %v4519_v63 = vsel %vm1694_vm0, %v4518_v2, %v13523_v29 }
 0x8ab   :  { %v11488_v19 = vperm.slane %v4333_v40, %v8334_v9  ;;  %v4507_v15 = vsel %vm1694_vm0, %v4506_v36, %v13522_v6  ;;  %v4377_v28 = vsel %vm1694_vm0, %v11403_v18, %v4376_v46  ;;  %v4430_v39 = vrot.slane %v11458_v8, 4 }
 0x8ac   :  { %6096 = vrot.lane.b32.xlu1 %v4259_v47, %s7154_s8  ;;  %6112 = vrot.lane.b32.xlu2 %v4263_v48, %s13514_s12  ;;  %v5947_v61 = vpop.permute.xlu0 %5946  ;;  %v4566_v11 = vrot.slane %v11475_v4, 4  ;;  %v4407_v17 = vsel %vm1694_vm0, %v4406_v53, %v13525_v14  ;;  %v4494_v35 = vrot.slane %v13526_v30, 4  ;;  %v11511_v18 = vperm.slane %v4507_v15, %v8291_v3  ;;  %v13527_v53 = vld [vmem:[#allocation168_spill] sm:$0xff]  ;;  %s13613_s8 = smov 102   ;;  %s13614_s12 = smov 100  }
 0x8ad   :  { %v4525_v43 = vperm.slane %v4519_v63, %v8291_v3  ;;  %v4431_v44 = vsel %vm1694_vm0, %v4430_v39, %v11483_v38  ;;  %v4420_v62 = vrot.slane %v13517_v58, 4  ;;  %v4380_v52 = vrot.slane %v11488_v19, 4 }
 0x8ae   :  { %v5929_v13 = vpop.permute.xlu1 %5928  ;;  %v11464_v42 = vpop.permute.xlu2 %5978  ;;  %v4268_v0 = vrot.slane %v4229_v26, 4  ;;  %v4264_v2 = vrot.slane %v11432_v41, 4  ;;  %v4542_v26 = vrot.slane %v11511_v18, 4  ;;  %v11536_v41 = vperm.slane %v4431_v44, %v8334_v9 }
 0x8af   :  { %v6619_v1 = vsel %vm6434_vm5, %v6617_v59, %v5929_v13  ;;  %v4413_v13 = vperm.slane %v4407_v17, %v8291_v3  ;;  %v4421_v40 = vsel %vm1694_vm0, %v13513_v23, %v4420_v62  ;;  %v4568_v46 = vrot.slane %v4525_v43, 4 }
 0x8b0   :  { %v6621_v5 = vsel %vm6437_vm6, %v6619_v1, %v5937_v27  ;;  %v4357_v27 = vsel %vm1694_vm0, %v11329_v25, %v4356_v60  ;;  %v4567_v1 = vsel %vm1694_vm0, %v4566_v11, %v4525_v43  ;;  %v4495_v60 = vsel %vm1694_vm0, %v4494_v35, %v13527_v53 }
 0x8b1   :  { %v6623_v59 = vsel %vm6440_vm7, %v6621_v5, %v11333_v32  ;;  %v4373_v32 = vsel %vm1694_vm0, %v11365_v37, %v4372_v51  ;;  %v11508_v7 = vperm.slane %v4357_v27, %v8334_v9  ;;  %v4454_v37 = vrot.slane %v4425_v34, 4 }
 0x8b2   :  { %6128 = vrot.lane.b32.xlu0 %v4267_v31, %s13521_s15  ;;  %v4265_v23 = vsel %vm1694_vm0, %v11415_v16, %v4264_v2  ;;  %v4269_v5 = vsel %vm1694_vm0, %v11437_v12, %v4268_v0  ;;  %v11544_v31 = vperm.slane %v4567_v1, %v8334_v9  ;;  %v4501_v51 = vperm.slane %v4495_v60, %v8291_v3 }
 0x8b3   :  { %v4384_v15 = vrot.slane %v13516_v57, 4  ;;  %v4396_v16 = vrot.slane %v13511_v22, 4  ;;  %v4456_v63 = vrot.slane %v4413_v13, 4  ;;  %v4480_v11 = vrot.slane %v11536_v41, 4 }
 0x8b4   :  { %6106 = vrot.lane.b32.xlu1 %v4373_v32, %s7153_s7  ;;  %6122 = vrot.lane.b32.xlu2 %v4377_v28, %s13524_s16  ;;  %v5961_v25 = vpop.permute.xlu0 %5960  ;;  %v4408_v32 = vrot.slane %v13525_v14, 4  ;;  %v4543_v17 = vsel %vm1694_vm0, %v4542_v26, %v4501_v51  ;;  %v4569_v35 = vsel %vm1694_vm0, %v11475_v4, %v4568_v46  ;;  %v4378_v57 = vrot.slane %v11508_v7, 4  ;;  %s13609_s7 = smov 98  }
 0x8b5   :  { %v4590_v22 = vrot.slane %v11544_v31, 4  ;;  %v4457_v43 = vsel %vm1694_vm0, %v4425_v34, %v4456_v63  ;;  %v4397_v14 = vsel %vm1694_vm0, %v13509_v21, %v4396_v16  ;;  %v4385_v21 = vsel %vm1694_vm0, %v13512_v55, %v4384_v15 }
 0x8b6   :  { %v5939_v47 = vpop.permute.xlu1 %5938  ;;  %v11514_v48 = vpop.permute.xlu2 %5992  ;;  %v4508_v0 = vrot.slane %v13522_v6, 4  ;;  %v4405_v55 = vperm.slane %v4397_v14, %v8291_v3  ;;  %v4532_v2 = vrot.slane %v13515_v54, 4  ;;  %v4393_v60 = vperm.slane %v4385_v21, %v8291_v3  ;;  %v13536_v21 = vld [vmem:[#allocation151_spill] sm:$0xff] }
 0x8b7   :  { %v6622_v24 = vsel %vm6437_vm6, %v6620_v20, %v5939_v47  ;;  %v4381_v20 = vsel %vm1694_vm0, %v11508_v7, %v4380_v52  ;;  %v4409_v47 = vsel %vm1694_vm0, %v13520_v10, %v4408_v32  ;;  %v11577_v7 = vperm.slane %v4569_v35, %v8334_v9 }
 0x8b8   :  { %v6624_v36 = vsel %vm6440_vm7, %v6622_v24, %v5947_v61  ;;  %v4455_v61 = vsel %vm1694_vm0, %v4454_v37, %v4413_v13  ;;  %v4432_v10 = vrot.slane %v11483_v38, 4  ;;  %v4544_v24 = vrot.slane %v4501_v51, 4 }
 0x8b9   :  { %v6626_v58 = vsel %vm6443_vm8, %v6624_v36, %v11384_v49  ;;  %v11547_v49 = vperm.slane %v4421_v40, %v8291_v3  ;;  %v4461_v12 = vperm.slane %v4455_v61, %v8334_v9  ;;  %v11589_v52 = vperm.slane %v4409_v47, %v8291_v3 }
 0x8ba   :  { %6138 = vrot.lane.b32.xlu0 %v4381_v20, %s13528_s17  ;;  %v4379_v13 = vsel %vm1694_vm0, %v4378_v57, %v11488_v19  ;;  %v4545_v36 = vsel %vm1694_vm0, %v11511_v18, %v4544_v24  ;;  %v4509_v6 = vsel %vm1694_vm0, %v13518_v45, %v4508_v0  ;;  %v4594_v19 = vrot.slane %v11577_v7, 4 }
 0x8bb   :  { %v4466_v44 = vrot.slane %v11547_v49, 4  ;;  %v4481_v4 = vsel %vm1694_vm0, %v4461_v12, %v4480_v11  ;;  %v4496_v40 = vrot.slane %v13527_v53, 4  ;;  %v4433_v18 = vsel %vm1694_vm0, %v11458_v8, %v4432_v10 }
 0x8bc   :  { %6120 = vrot.lane.b32.xlu1 %v4265_v23, %s13524_s16  ;;  %6136 = vrot.lane.b32.xlu2 %v4269_v5, %s13528_s17  ;;  %v5971_v27 = vpop.permute.xlu0 %5970  ;;  %v4533_v45 = vsel %vm1694_vm0, %v13510_v50, %v4532_v2  ;;  %v4553_v23 = vperm.slane %v4545_v36, %v8334_v9  ;;  %v4478_v5 = vrot.slane %v4461_v12, 4  ;;  %v4442_v51 = vrot.slane %v4405_v55, 4  ;;  %s13634_s16 = smov 108   ;;  %s13636_s17 = smov 106  }
 0x8bd   :  { %v4467_v1 = vsel %vm1694_vm0, %v4466_v44, %v11589_v52  ;;  %v11619_v53 = vperm.slane %v4509_v6, %v8291_v3  ;;  %v11627_v16 = vperm.slane %v4433_v18, %v8334_v9  ;;  %vm13531_vm5 = vcmask 179200  }
 0x8be   :  { %v5953_v28 = vpop.permute.xlu1 %5952  ;;  %v11556_v39 = vpop.permute.xlu2 %6002  ;;  %v11623_v15 = vperm.slane %v4467_v1, %v8334_v9  ;;  %v4595_v8 = vsel %vm1694_vm0, %v4594_v19, %v4553_v23  ;;  %v4443_v63 = vsel %vm1694_vm0, %v4442_v51, %v4393_v60  ;;  %v4520_v12 = vrot.slane %v13523_v29, 4  ;;  %vm13534_vm6 = vmmov %vm13531_vm5  ;;  %v13541_v1 = vld [vmem:[#allocation53_spill] sm:$0xff] }
 0x8bf   :  { %v6625_v37 = vsel %vm6443_vm8, %v6623_v59, %v5953_v28  ;;  %v11574_v59 = vperm.slane %v4543_v17, %v8334_v9  ;;  %v4479_v32 = vsel %vm1694_vm0, %v4478_v5, %v11536_v41  ;;  %v4554_v11 = vrot.slane %v11619_v53, 4 }
 0x8c0   :  { %v6627_v62 = vsel %vm6446_vm9, %v6625_v37, %v5961_v25  ;;  %v11586_v25 = vperm.slane %v4457_v43, %v8334_v9  ;;  %v4486_v17 = vrot.slane %v11623_v15, 4  ;;  %v4444_v35 = vrot.slane %v4393_v60, 4  ;;  %v13533_v43 = vld [vmem:[#allocation97_spill] sm:$0xff] }
 0x8c1   :  { %v6629_v34 = vsel %vm6449_vm10, %v6627_v62, %v11424_v56  ;;  %v4591_v56 = vsel %vm1694_vm0, %v4590_v22, %v11574_v59  ;;  %v4449_v22 = vperm.slane %v4443_v63, %v8334_v9  ;;  %v4642_v14 = vrot.slane %v13533_v43, 4 }
 0x8c2   :  { %6152 = vrot.lane.b32.xlu0 %v4481_v4, %s13529_s18  ;;  %v4482_v54 = vrot.slane %v11586_v25, 4  ;;  %vm13535_vm7 = vcmask 195584   ;;  %v4754_v10 = vrot.slane %v13536_v21, 4  ;;  %v4592_v24 = vrot.slane %v11574_v59, 4 }
 0x8c3   :  { %v4596_v0 = vrot.slane %v4553_v23, 4  ;;  %vm13537_vm8 = vcmask 211968   ;;  %v4488_v19 = vrot.slane %v4449_v22, 4  ;;  %v4484_v5 = vrot.slane %v11627_v16, 4 }
 0x8c4   :  { %6130 = vrot.lane.b32.xlu1 %v4379_v13, %s13521_s15  ;;  %6146 = vrot.lane.b32.xlu2 %v4591_v56, %s13530_s19  ;;  %v5985_v38 = vpop.permute.xlu0 %5984  ;;  %v4483_v28 = vsel %vm1694_vm0, %v4482_v54, %v11627_v16  ;;  %v4445_v56 = vsel %vm1694_vm0, %v4405_v55, %v4444_v35  ;;  %v4593_v2 = vsel %vm1694_vm0, %v11544_v31, %v4592_v24  ;;  %v13549_v35 = vld [vmem:[#allocation139_spill] sm:$0xff]  ;;  %s13621_s15 = smov 104  }
 0x8c5   :  { %v4597_v6 = vsel %vm1694_vm0, %v11577_v7, %v4596_v0  ;;  %v4643_v55 = vsel %vm1694_vm0, %v4642_v14, %v13541_v1  ;;  %v13544_v7 = vld [vmem:[#allocation85_spill] sm:$0xff]  ;;  %v11688_v51 = vperm.slane %v4445_v56, %v8334_v9 }
 0x8c6   :  { %v5963_v20 = vpop.permute.xlu1 %5962  ;;  %v11609_v26 = vpop.permute.xlu2 %6016  ;;  %v4630_v54 = vrot.slane %v13544_v7, 4  ;;  %v13552_v14 = vld [vmem:[#allocation73_spill] sm:$0xff] }
 0x8c7   :  { %v6628_v61 = vsel %vm6446_vm9, %v6626_v58, %v5963_v20  ;;  %v4541_v58 = vperm.slane %v4533_v45, %v8291_v3  ;;  %v13543_v20 = vld [vmem:[#allocation202_spill] sm:$0xff]  ;;  %vm13546_vm9 = vmmov %vm13535_vm7 }
 0x8c8   :  { %v6630_v46 = vsel %vm6449_vm10, %v6628_v61, %v5971_v27  ;;  %v4497_v27 = vsel %vm1694_vm0, %v13526_v30, %v4496_v40  ;;  %v4521_v30 = vsel %vm1694_vm0, %v13519_v33, %v4520_v12  ;;  %v4487_v33 = vsel %vm1694_vm0, %v4486_v17, %v4449_v22  ;;  %v13542_v40 = vld [vmem:[#allocation161_spill] sm:$0xff]  ;;  %vm13547_vm10 = vmmov %vm13537_vm8  ;;  %v13548_v17 = vld [vmem:[#allocation62_spill] sm:$0xff] }
 0x8c9   :  { %v6632_v50 = vsel %vm13531_vm5, %v6630_v46, %v11464_v42  ;;  %v11648_v29 = vperm.slane %v4497_v27, %v8291_v3  ;;  %v4578_v41 = vrot.slane %v4541_v58, 4  ;;  %v4529_v44 = vperm.slane %v4521_v30, %v8291_v3 }
 0x8ca   :  { %6162 = vrot.lane.b32.xlu0 %v4595_v8, %s13532_s20  ;;  %v4730_v60 = vrot.slane %v13542_v40, 4  ;;  %v4755_v31 = vsel %vm1694_vm0, %v4754_v10, %v13543_v20  ;;  %v4468_v46 = vrot.slane %v11589_v52, 4  ;;  %v13545_v8 = vld [vmem:[#allocation177_spill] sm:$0xff]  ;;  %v4618_v30 = vrot.slane %v13548_v17, 4 }
 0x8cb   :  { %v4555_v4 = vsel %vm1694_vm0, %v4554_v11, %v11648_v29  ;;  %v4580_v45 = vrot.slane %v4529_v44, 4  ;;  %vm13550_vm5 = vcmask 228352   ;;  %v4556_v24 = vrot.slane %v11648_v29, 4 }
 0x8cc   :  { %6144 = vrot.lane.b32.xlu1 %v4479_v32, %s13530_s19  ;;  %6160 = vrot.lane.b32.xlu2 %v4483_v28, %s13532_s20  ;;  %v5995_v42 = vpop.permute.xlu0 %5994  ;;  %v11673_v59 = vperm.slane %v4555_v4, %v8334_v9  ;;  %v4649_v32 = vperm.slane %v4643_v55, %v8291_v3  ;;  %v11697_v28 = vperm.slane %v4755_v31, %v8291_v3  ;;  %s13647_s19 = smov 114   ;;  %s13648_s20 = smov 112  }
 0x8cd   :  { %v4581_v11 = vsel %vm1694_vm0, %v4541_v58, %v4580_v45  ;;  %v4731_v52 = vsel %vm1694_vm0, %v4730_v60, %v13549_v35  ;;  %v4469_v58 = vsel %vm1694_vm0, %v11547_v49, %v4468_v46  ;;  %v4557_v60 = vsel %vm1694_vm0, %v11619_v53, %v4556_v24 }
 0x8ce   :  { %v5977_v37 = vpop.permute.xlu1 %5976  ;;  %v11650_v57 = vpop.permute.xlu2 %6026  ;;  %v4600_v12 = vrot.slane %v11673_v59, 4  ;;  %v11722_v4 = vperm.slane %v4581_v11, %v8334_v9  ;;  %v4678_v10 = vrot.slane %v4649_v32, 4  ;;  %v11726_v0 = vperm.slane %v4731_v52, %v8291_v3 }
 0x8cf   :  { %v6631_v47 = vsel %vm13534_vm6, %v6629_v34, %v5977_v37  ;;  %v4579_v34 = vsel %vm1694_vm0, %v4578_v41, %v4529_v44  ;;  %v13551_v37 = vld [vmem:[#allocation40_spill] sm:$0xff]  ;;  %vm13558_vm6 = vmmov %vm13550_vm5 }
 0x8d0   :  { %v6633_v62 = vsel %vm13535_vm7, %v6631_v47, %v5985_v38  ;;  %v13539_v38 = vld [vmem:[#allocation217_spill] sm:$0xff]  ;;  %v4585_v18 = vperm.slane %v4579_v34, %v8334_v9  ;;  %v4606_v22 = vrot.slane %v13551_v37, 4  ;;  %v4631_v47 = vsel %vm1694_vm0, %v4630_v54, %v13552_v14  ;;  %v13557_v54 = vld [vmem:[#allocation122_spill] sm:$0xff] }
 0x8d1   :  { %v6635_v13 = vsel %vm13537_vm8, %v6633_v62, %v11514_v48  ;;  %v4742_v36 = vrot.slane %v13539_v38, 4  ;;  %v4790_v34 = vrot.slane %v11697_v28, 4  ;;  %v4602_v46 = vrot.slane %v11722_v4, 4 }
 0x8d2   :  { %6176 = vrot.lane.b32.xlu0 %v4487_v33, %s13538_s22  ;;  %v4601_v41 = vsel %vm1694_vm0, %v4585_v18, %v4600_v12  ;;  %v4485_v33 = vsel %vm1694_vm0, %v11586_v25, %v4484_v5  ;;  %v13555_v25 = vld [vmem:[#allocation31_spill] sm:$0xff]  ;;  %v4598_v5 = vrot.slane %v4585_v18, 4  ;;  %vm13559_vm7 = vcmask 244736  }
 0x8d3   :  { %v4743_v63 = vsel %vm1694_vm0, %v4742_v36, %v13545_v8  ;;  %v4619_v56 = vsel %vm1694_vm0, %v4618_v30, %v13555_v25  ;;  %v4492_v36 = vrot.slane %v11688_v51, 4  ;;  %vm13560_vm8 = vcmask 261120  }
 0x8d4   :  { %6154 = vrot.lane.b32.xlu1 %v4593_v2, %s13529_s18  ;;  %6170 = vrot.lane.b32.xlu2 %v4597_v6, %s13540_s23  ;;  %v6009_v48 = vpop.permute.xlu0 %6008  ;;  %v11711_v44 = vperm.slane %v4743_v63, %v8291_v3  ;;  %v13556_v2 = vld [vmem:[#allocation112_spill] sm:$0xff]  ;;  %v4637_v6 = vperm.slane %v4631_v47, %v8291_v3  ;;  %v4625_v63 = vperm.slane %v4619_v56, %v8291_v3  ;;  %s13643_s18 = smov 110  }
 0x8d5   :  { %v4607_v29 = vsel %vm1694_vm0, %v4606_v22, %v13556_v2 }
 0x8d6   :  { %v5987_v61 = vpop.permute.xlu1 %5986  ;;  %v11684_v23 = vpop.permute.xlu2 %6040  ;;  %v4791_v31 = vsel %vm1694_vm0, %v4790_v34, %v11711_v44  ;;  %v4679_v11 = vsel %vm1694_vm0, %v4678_v10, %v4637_v6  ;;  %v4613_v18 = vperm.slane %v4607_v29, %v8291_v3 }
 0x8d7   :  { %v6634_v27 = vsel %vm13546_vm9, %v6632_v50, %v5987_v61  ;;  %v11757_v30 = vperm.slane %v4791_v31, %v8334_v9  ;;  %v11769_v47 = vperm.slane %v4679_v11, %v8334_v9  ;;  %vm13563_vm9 = vmmov %vm13559_vm7 }
 0x8d8   :  { %v6636_v16 = vsel %vm13547_vm10, %v6634_v27, %v5995_v42  ;;  %v13554_v42 = vld [vmem:[#allocation130_spill] sm:$0xff]  ;;  %v4766_v27 = vrot.slane %v11726_v0, 4  ;;  %v4656_v10 = vrot.slane %v4613_v18, 4  ;;  %vm13564_vm10 = vmmov %vm13560_vm8 }
 0x8d9   :  { %v6638_v50 = vsel %vm13550_vm5, %v6636_v16, %v11556_v39  ;;  %v4718_v62 = vrot.slane %v13554_v42, 4  ;;  %v4489_v39 = vsel %vm1694_vm0, %v11623_v15, %v4488_v19  ;;  %v4477_v15 = vperm.slane %v4469_v58, %v8334_v9 }
 0x8da   :  { %6186 = vrot.lane.b32.xlu0 %v4601_v41, %s13553_s24  ;;  %v11754_v16 = vperm.slane %v4557_v60, %v8334_v9  ;;  %v4599_v41 = vsel %vm1694_vm0, %v4598_v5, %v11673_v59  ;;  %v4654_v58 = vrot.slane %v4625_v63, 4  ;;  %v4644_v60 = vrot.slane %v13541_v1, 4 }
 0x8db   :  { %v4719_v45 = vsel %vm1694_vm0, %v4718_v62, %v13557_v54  ;;  %v4493_v53 = vsel %vm1694_vm0, %v4477_v15, %v4492_v36  ;;  %v4490_v29 = vrot.slane %v4477_v15, 4  ;;  %vm13565_vm5 = vcmask 277504  }
 0x8dc   :  { %6168 = vrot.lane.b32.xlu1 %v4485_v33, %s13540_s23  ;;  %6184 = vrot.lane.b32.xlu2 %v4489_v39, %s13553_s24  ;;  %v6019_v49 = vpop.permute.xlu0 %6018  ;;  %v4725_v52 = vperm.slane %v4719_v45, %v8291_v3  ;;  %v4603_v22 = vsel %vm1694_vm0, %v4602_v46, %v11754_v16  ;;  %v4814_v33 = vrot.slane %v11757_v30, 4  ;;  %v4655_v34 = vsel %vm1694_vm0, %v4654_v58, %v4613_v18  ;;  %s13665_s23 = smov 118   ;;  %s13675_s24 = smov 122  }
 0x8dd   :  { %v4756_v1 = vrot.slane %v13543_v20, 4  ;;  %v4657_v46 = vsel %vm1694_vm0, %v4625_v63, %v4656_v10  ;;  %v4744_v18 = vrot.slane %v13545_v8, 4 }
 0x8de   :  { %v6001_v19 = vpop.permute.xlu1 %6000  ;;  %v11738_v55 = vpop.permute.xlu2 %6050  ;;  %v4767_v62 = vsel %vm1694_vm0, %v4766_v27, %v4725_v52  ;;  %v4768_v27 = vrot.slane %v4725_v52, 4 }
 0x8df   :  { %v6637_v61 = vsel %vm13558_vm6, %v6635_v13, %v6001_v19  ;;  %v4773_v36 = vperm.slane %v4767_v62, %v8334_v9  ;;  %v4620_v19 = vrot.slane %v13555_v25, 4  ;;  %v4608_v25 = vrot.slane %v13556_v2, 4  ;;  %vm13567_vm6 = vmmov %vm13565_vm5 }
 0x8e0   :  { %v6639_v12 = vsel %vm13559_vm7, %v6637_v61, %v6009_v48  ;;  %v4680_v48 = vrot.slane %v4637_v6, 4  ;;  %v4702_v6 = vrot.slane %v11769_v47, 4  ;;  %v11790_v61 = vperm.slane %v4655_v34, %v8334_v9 }
 0x8e1   :  { %v6641_v13 = vsel %vm13560_vm8, %v6639_v12, %v11609_v26  ;;  %v4815_v45 = vsel %vm1694_vm0, %v4814_v33, %v4773_v36  ;;  %v4621_v15 = vsel %vm1694_vm0, %v13548_v17, %v4620_v19  ;;  %v4792_v12 = vrot.slane %v11711_v44, 4 }
 0x8e2   :  { %6200 = vrot.lane.b32.xlu0 %v4493_v53, %s13561_s25  ;;  %v4681_v39 = vsel %vm1694_vm0, %v4649_v32, %v4680_v48  ;;  %v4703_v5 = vsel %vm1694_vm0, %v4702_v6, %v11790_v61  ;;  %v11810_v20 = vperm.slane %v4621_v15, %v8291_v3  ;;  %v4757_v48 = vsel %vm1694_vm0, %v13536_v21, %v4756_v1 }
 0x8e3   :  { %v11786_v32 = vperm.slane %v4681_v39, %v8334_v9  ;;  %vm13568_vm7 = vcmask 293888   ;;  %v4745_v58 = vsel %vm1694_vm0, %v13539_v38, %v4744_v18  ;;  %v4604_v62 = vrot.slane %v11754_v16, 4 }
 0x8e4   :  { %6178 = vrot.lane.b32.xlu1 %v4599_v41, %s13538_s22  ;;  %6194 = vrot.lane.b32.xlu2 %v4603_v22, %s13562_s26  ;;  %v6033_v26 = vpop.permute.xlu0 %6032  ;;  %v4769_v22 = vsel %vm1694_vm0, %v11726_v0, %v4768_v27  ;;  %v4816_v8 = vrot.slane %v4773_v36, 4  ;;  %vm13569_vm8 = vcmask 310272   ;;  %v4793_v0 = vsel %vm1694_vm0, %v11697_v28, %v4792_v12  ;;  %v13572_v28 = vld [vmem:[#allocation144_spill] sm:$0xff]  ;;  %s13653_s22 = smov 116  }
 0x8e5   :  { %v4706_v2 = vrot.slane %v11786_v32, 4  ;;  %v4605_v16 = vsel %vm1694_vm0, %v11722_v4, %v4604_v62  ;;  %v4666_v33 = vrot.slane %v11810_v20, 4  ;;  %v4753_v10 = vperm.slane %v4745_v58, %v8291_v3 }
 0x8e6   :  { %v6011_v59 = vpop.permute.xlu1 %6010  ;;  %v11776_v24 = vpop.permute.xlu2 %6064  ;;  %v4866_v4 = vrot.slane %v13572_v28, 4  ;;  %v4801_v34 = vperm.slane %v4793_v0, %v8334_v9  ;;  %v4704_v15 = vrot.slane %v11790_v61, 4 }
 0x8e7   :  { %v6640_v56 = vsel %vm13563_vm9, %v6638_v50, %v6011_v59  ;;  %vm13574_vm9 = vmmov %vm13568_vm7  ;;  %v4804_v61 = vrot.slane %v4753_v10, 4 }
 0x8e8   :  { %v6642_v31 = vsel %vm13564_vm10, %v6640_v56, %v6019_v49  ;;  %v4491_v49 = vsel %vm1694_vm0, %v4490_v29, %v11688_v51  ;;  %v4609_v51 = vsel %vm1694_vm0, %v13551_v37, %v4608_v25  ;;  %v4732_v37 = vrot.slane %v13549_v35, 4  ;;  %v13573_v56 = vld [vmem:[#allocation50_spill] sm:$0xff]  ;;  %v13575_v25 = vld [vmem:[#allocation96_spill] sm:$0xff]  ;;  %vm13576_vm10 = vmmov %vm13569_vm8 }
 0x8e9   :  { %v6644_v50 = vsel %vm13565_vm5, %v6642_v31, %v11650_v57  ;;  %v4645_v57 = vsel %vm1694_vm0, %v13533_v43, %v4644_v60  ;;  %v4665_v43 = vperm.slane %v4657_v46, %v8334_v9  ;;  %v11837_v35 = vperm.slane %v4609_v51, %v8291_v3 }
 0x8ea   :  { %6210 = vrot.lane.b32.xlu0 %v4815_v45, %s13566_s27  ;;  %v11819_v53 = vperm.slane %v4645_v57, %v8291_v3  ;;  %v4733_v38 = vsel %vm1694_vm0, %v13542_v40, %v4732_v37  ;;  %v4842_v36 = vrot.slane %v13573_v56, 4  ;;  %v4854_v1 = vrot.slane %v13575_v25, 4  ;;  %v13580_v37 = vld [vmem:[#allocation34_spill] sm:$0xff] }
 0x8eb   :  { %v4707_v44 = vsel %vm1694_vm0, %v4706_v2, %v4665_v43  ;;  %v11864_v29 = vperm.slane %v4733_v38, %v8291_v3  ;;  %v4667_v60 = vsel %vm1694_vm0, %v4666_v33, %v11837_v35  ;;  %v4708_v46 = vrot.slane %v4665_v43, 4 }
 0x8ec   :  { %6192 = vrot.lane.b32.xlu1 %v4491_v49, %s13562_s26  ;;  %6208 = vrot.lane.b32.xlu2 %v4703_v5, %s13566_s27  ;;  %v6043_v17 = vpop.permute.xlu0 %6042  ;;  %v4690_v59 = vrot.slane %v11819_v53, 4  ;;  %vm13577_vm5 = vcmask 326656   ;;  %v11886_v12 = vperm.slane %v4667_v60, %v8334_v9 }
 0x8ed   :  { %v4778_v27 = vrot.slane %v11864_v29, 4  ;;  %v4709_v43 = vsel %vm1694_vm0, %v11786_v32, %v4708_v46  ;;  %v13591_v46 = vld [vmem:[#allocation127_spill] sm:$0xff] }
 0x8ee   :  { %v6025_v63 = vpop.permute.xlu1 %6024  ;;  %v11815_v11 = vpop.permute.xlu2 %6074 }
 0x8ef   :  { %v6643_v41 = vsel %vm13567_vm6, %v6641_v13, %v6025_v63  ;;  %v4632_v13 = vrot.slane %v13552_v14, 4  ;;  %v11850_v14 = vperm.slane %v4769_v22, %v8334_v9  ;;  %vm13582_vm6 = vmmov %vm13577_vm5 }
 0x8f0   :  { %v6645_v52 = vsel %vm13568_vm7, %v6643_v41, %v6033_v26  ;;  %v4765_v26 = vperm.slane %v4757_v48, %v8291_v3  ;;  %vm13584_vm7 = vcmask 343040  }
 0x8f1   :  { %v6647_v21 = vsel %vm13569_vm8, %v6645_v52, %v11684_v23  ;;  %v4817_v23 = vsel %vm1694_vm0, %v11757_v30, %v4816_v8  ;;  %v4633_v39 = vsel %vm1694_vm0, %v13544_v7, %v4632_v13  ;;  %v4720_v30 = vrot.slane %v13557_v54, 4 }
 0x8f2   :  { %6224 = vrot.lane.b32.xlu0 %v4707_v44, %s13570_s28  ;;  %v4802_v7 = vrot.slane %v4765_v26, 4  ;;  %v4641_v31 = vperm.slane %v4633_v39, %v8291_v3  ;;  %v4820_v54 = vrot.slane %v11850_v14, 4  ;;  %v4843_v52 = vsel %vm1694_vm0, %v4842_v36, %v13580_v37  ;;  %v13583_v39 = vld [vmem:[#allocation141_spill] sm:$0xff]  ;;  %v13585_v36 = vld [vmem:[#allocation174_spill] sm:$0xff] }
 0x8f3   :  { %v4721_v57 = vsel %vm1694_vm0, %v13554_v42, %v4720_v30  ;;  %v4705_v42 = vsel %vm1694_vm0, %v11769_v47, %v4704_v15  ;;  %v13581_v47 = vld [vmem:[#allocation63_spill] sm:$0xff]  ;;  %v4712_v8 = vrot.slane %v11886_v12, 4  ;;  %v4805_v0 = vsel %vm1694_vm0, %v4765_v26, %v4804_v61 }
 0x8f4   :  { %6202 = vrot.lane.b32.xlu1 %v4605_v16, %s13561_s25  ;;  %6218 = vrot.lane.b32.xlu2 %v4817_v23, %s13571_s29  ;;  %v6057_v40 = vpop.permute.xlu0 %6056  ;;  %v4803_v49 = vsel %vm1694_vm0, %v4802_v7, %v4753_v10  ;;  %v4821_v2 = vsel %vm1694_vm0, %v4801_v34, %v4820_v54  ;;  %v4691_v51 = vsel %vm1694_vm0, %v4690_v59, %v4641_v31  ;;  %v4692_v44 = vrot.slane %v4641_v31, 4 }
 0x8f5   :  { %v11895_v18 = vperm.slane %v4803_v49, %v8334_v9  ;;  %v4697_v41 = vperm.slane %v4691_v51, %v8334_v9  ;;  %v4855_v22 = vsel %vm1694_vm0, %v4854_v1, %v13581_v47  ;;  %v4818_v23 = vrot.slane %v4801_v34, 4  ;;  %v13590_v49 = vld [vmem:[#allocation21_spill] sm:$0xff] }
 0x8f6   :  { %v6035_v6 = vpop.permute.xlu1 %6034  ;;  %v11866_v19 = vpop.permute.xlu2 %6088  ;;  %v4693_v38 = vsel %vm1694_vm0, %v11819_v53, %v4692_v44  ;;  %v4830_v10 = vrot.slane %v13583_v39, 4  ;;  %v4954_v7 = vrot.slane %v13585_v36, 4  ;;  %v11928_v53 = vperm.slane %v4805_v0, %v8334_v9  ;;  %v13596_v0 = vld [vmem:[#allocation210_spill] sm:$0xff] }
 0x8f7   :  { %v6646_v45 = vsel %vm13574_vm9, %v6644_v50, %v6035_v6  ;;  %v4822_v33 = vrot.slane %v11895_v18, 4  ;;  %v4713_v30 = vsel %vm1694_vm0, %v4697_v41, %v4712_v8  ;;  %vm13586_vm8 = vcmask 359424   ;;  %vm13594_vm9 = vmmov %vm13584_vm7 }
 0x8f8   :  { %v6648_v5 = vsel %vm13576_vm10, %v6646_v45, %v6043_v17  ;;  %v13579_v17 = vld [vmem:[#allocation84_spill] sm:$0xff]  ;;  %v11933_v34 = vperm.slane %v4843_v52, %v8291_v3  ;;  %v4668_v6 = vrot.slane %v11837_v35, 4  ;;  %v13588_v45 = vld [vmem:[#allocation23_spill] sm:$0xff]  ;;  %v4819_v15 = vsel %vm1694_vm0, %v4818_v23, %v11850_v14  ;;  %vm13595_vm10 = vmmov %vm13586_vm8 }
 0x8f9   :  { %v6650_v50 = vsel %vm13577_vm5, %v6648_v5, %v11738_v55  ;;  %v4867_v63 = vsel %vm1694_vm0, %v4866_v4, %v13579_v17  ;;  %v4729_v55 = vperm.slane %v4721_v57, %v8291_v3  ;;  %v11919_v4 = vperm.slane %v4855_v22, %v8291_v3  ;;  %v13593_v52 = vld [vmem:[#allocation191_spill] sm:$0xff] }
 0x8fa   :  { %6234 = vrot.lane.b32.xlu0 %v4821_v2, %s13578_s30  ;;  %v11906_v32 = vperm.slane %v4867_v63, %v8291_v3  ;;  %v4978_v54 = vrot.slane %v13588_v45, 4  ;;  %v4831_v5 = vsel %vm1694_vm0, %v4830_v10, %v13590_v49  ;;  %v4955_v57 = vsel %vm1694_vm0, %v4954_v7, %v13591_v46  ;;  %v13599_v10 = vld [vmem:[#allocation108_spill] sm:$0xff] }
 0x8fb   :  { %v4779_v13 = vsel %vm1694_vm0, %v4778_v27, %v4729_v55  ;;  %v4780_v60 = vrot.slane %v4729_v55, 4  ;;  %v4826_v2 = vrot.slane %v11928_v53, 4  ;;  %v4878_v51 = vrot.slane %v11933_v34, 4 }
 0x8fc   :  { %6216 = vrot.lane.b32.xlu1 %v4705_v42, %s13571_s29  ;;  %6232 = vrot.lane.b32.xlu2 %v4709_v43, %s13578_s30  ;;  %v6067_v48 = vpop.permute.xlu0 %6066  ;;  %v11925_v26 = vperm.slane %v4779_v13, %v8334_v9  ;;  %v4902_v31 = vrot.slane %v11906_v32, 4  ;;  %v4710_v63 = vrot.slane %v4697_v41, 4  ;;  %v13592_v43 = vld [vmem:[#allocation156_spill] sm:$0xff]  ;;  %v4979_v44 = vsel %vm1694_vm0, %v4978_v54, %v13593_v52 }
 0x8fd   :  { %v4781_v1 = vsel %vm1694_vm0, %v11864_v29, %v4780_v60  ;;  %v4669_v29 = vsel %vm1694_vm0, %v11810_v20, %v4668_v6  ;;  %v4942_v55 = vrot.slane %v13592_v43, 4  ;;  %v4837_v8 = vperm.slane %v4831_v5, %v8291_v3 }
 0x8fe   :  { %v6049_v58 = vpop.permute.xlu1 %6048  ;;  %v11908_v62 = vpop.permute.xlu2 %6098  ;;  %v4903_v14 = vsel %vm1694_vm0, %v4902_v31, %v11919_v4  ;;  %v11970_v13 = vperm.slane %v4955_v57, %v8291_v3  ;;  %v11979_v23 = vperm.slane %v4669_v29, %v8334_v9  ;;  %vm13597_vm5 = vcmask 375808   ;;  %v13600_v31 = vld [vmem:[#allocation146_spill] sm:$0xff] }
 0x8ff   :  { %v6649_v16 = vsel %vm13582_vm6, %v6647_v21, %v6049_v58  ;;  %v4789_v58 = vperm.slane %v4781_v1, %v8334_v9  ;;  %v11974_v20 = vperm.slane %v4903_v14, %v8334_v9  ;;  %v4879_v7 = vsel %vm1694_vm0, %v4878_v51, %v4837_v8  ;;  %vm13601_vm6 = vmmov %vm13597_vm5 }
 0x900   :  { %v6651_v59 = vsel %vm13584_vm7, %v6649_v16, %v6057_v40  ;;  %v11938_v40 = vperm.slane %v4693_v38, %v8334_v9  ;;  %v4966_v38 = vrot.slane %v13596_v0, 4  ;;  %v4990_v6 = vrot.slane %v11970_v13, 4 }
 0x901   :  { %v6653_v21 = vsel %vm13586_vm8, %v6651_v59, %v11776_v24  ;;  %v4823_v24 = vsel %vm1694_vm0, %v4822_v33, %v11925_v26  ;;  %v4827_v16 = vsel %vm1694_vm0, %v4826_v2, %v4789_v58  ;;  %v4985_v33 = vperm.slane %v4979_v44, %v8291_v3 }
 0x902   :  { %6248 = vrot.lane.b32.xlu0 %v4713_v30, %s13587_s2  ;;  %v4714_v42 = vrot.slane %v11938_v40, 4  ;;  %v4711_v59 = vsel %vm1694_vm0, %v4710_v63, %v11886_v12  ;;  %v4926_v60 = vrot.slane %v11974_v20, 4  ;;  %v4967_v54 = vsel %vm1694_vm0, %v4966_v38, %v13600_v31 }
 0x903   :  { %v5014_v12 = vrot.slane %v4985_v33, 4  ;;  %v4885_v5 = vperm.slane %v4879_v7, %v8334_v9  ;;  %v4973_v2 = vperm.slane %v4967_v54, %v8291_v3  ;;  %vm13602_vm7 = vcmask 392192  }
 0x904   :  { %6226 = vrot.lane.b32.xlu1 %v4819_v15, %s13570_s28  ;;  %6242 = vrot.lane.b32.xlu2 %v4823_v24, %s13589_s3  ;;  %v6081_v35 = vpop.permute.xlu0 %6080  ;;  %v4715_v30 = vsel %vm1694_vm0, %v4714_v42, %v11979_v23  ;;  %v4980_v63 = vrot.slane %v13593_v52, 4  ;;  %v4824_v29 = vrot.slane %v11925_v26, 4  ;;  %v4828_v42 = vrot.slane %v4789_v58, 4 }
 0x905   :  { %v4927_v51 = vsel %vm1694_vm0, %v4926_v60, %v4885_v5  ;;  %vm13603_vm8 = vcmask 408576   ;;  %v4880_v44 = vrot.slane %v4837_v8, 4  ;;  %v4928_v8 = vrot.slane %v4885_v5, 4 }
 0x906   :  { %v6059_v27 = vpop.permute.xlu1 %6058  ;;  %v11958_v61 = vpop.permute.xlu2 %6112  ;;  %v4825_v26 = vsel %vm1694_vm0, %v11895_v18, %v4824_v29  ;;  %v4829_v52 = vsel %vm1694_vm0, %v11928_v53, %v4828_v42  ;;  %v4856_v38 = vrot.slane %v13581_v47, 4  ;;  %v4956_v7 = vrot.slane %v13591_v46, 4 }
 0x907   :  { %v6652_v22 = vsel %vm13594_vm9, %v6650_v50, %v6059_v27  ;;  %v4881_v53 = vsel %vm1694_vm0, %v11933_v34, %v4880_v44  ;;  %vm13606_vm9 = vmmov %vm13602_vm7  ;;  %v4716_v60 = vrot.slane %v11979_v23, 4 }
 0x908   :  { %v6654_v41 = vsel %vm13595_vm10, %v6652_v22, %v6067_v48  ;;  %v4943_v48 = vsel %vm1694_vm0, %v4942_v55, %v13599_v10  ;;  %v4868_v22 = vrot.slane %v13579_v17, 4  ;;  %v4968_v17 = vrot.slane %v13600_v31, 4  ;;  %vm13607_vm10 = vmmov %vm13603_vm8 }
 0x909   :  { %v6656_v50 = vsel %vm13597_vm5, %v6654_v41, %v11815_v11  ;;  %v11999_v15 = vperm.slane %v4943_v48, %v8291_v3  ;;  %v4981_v41 = vsel %vm1694_vm0, %v13588_v45, %v4980_v63  ;;  %v4857_v47 = vsel %vm1694_vm0, %v13575_v25, %v4856_v38 }
 0x90a   :  { %6258 = vrot.lane.b32.xlu0 %v4827_v16, %s13598_s4  ;;  %v5016_v16 = vrot.slane %v4973_v2, 4  ;;  %v12043_v48 = vperm.slane %v4981_v41, %v8291_v3  ;;  %v4957_v54 = vsel %vm1694_vm0, %v13585_v36, %v4956_v7  ;;  %vm13608_vm5 = vcmask 424960  }
 0x90b   :  { %v4991_v27 = vsel %vm1694_vm0, %v4990_v6, %v11999_v15  ;;  %v12069_v23 = vperm.slane %v4881_v53, %v8334_v9  ;;  %v4992_v5 = vrot.slane %v11999_v15, 4 }
 0x90c   :  { %6240 = vrot.lane.b32.xlu1 %v4711_v59, %s13589_s3  ;;  %6256 = vrot.lane.b32.xlu2 %v4715_v30, %s13598_s4  ;;  %v6091_v11 = vpop.permute.xlu0 %6090  ;;  %v5017_v31 = vsel %vm1694_vm0, %v4985_v33, %v5016_v16  ;;  %v4717_v33 = vsel %vm1694_vm0, %v11938_v40, %v4716_v60  ;;  %v13615_v16 = vld [vmem:[#allocation64_spill] sm:$0xff] }
 0x90d   :  { %v4932_v63 = vrot.slane %v12069_v23, 4  ;;  %v4993_v29 = vsel %vm1694_vm0, %v11970_v13, %v4992_v5 }
 0x90e   :  { %v6073_v24 = vpop.permute.xlu1 %6072  ;;  %v12001_v1 = vpop.permute.xlu2 %6122 }
 0x90f   :  { %v6655_v57 = vsel %vm13601_vm6, %v6653_v21, %v6073_v24  ;;  %v4844_v21 = vrot.slane %v13580_v37, 4  ;;  %v4832_v37 = vrot.slane %v13590_v49, 4  ;;  %v4904_v49 = vrot.slane %v11919_v4, 4  ;;  %vm13610_vm6 = vmmov %vm13608_vm5 }
 0x910   :  { %v6657_v14 = vsel %vm13602_vm7, %v6655_v57, %v6081_v35  ;;  %v5015_v35 = vsel %vm1694_vm0, %v5014_v12, %v4973_v2  ;;  %v12081_v12 = vperm.slane %v5017_v31, %v8334_v9  ;;  %v4865_v24 = vperm.slane %v4857_v47, %v8291_v3  ;;  %v13617_v31 = vld [vmem:[#allocation51_spill] sm:$0xff] }
 0x911   :  { %v12014_v55 = vsel %vm13603_vm8, %v6657_v14, %v11866_v19  ;;  %v12027_v19 = vperm.slane %v4991_v27, %v8334_v9  ;;  %v4845_v45 = vsel %vm1694_vm0, %v13573_v56, %v4844_v21  ;;  %v12036_v18 = vperm.slane %v5015_v35, %v8334_v9 }
 0x912   :  { %6272 = vrot.lane.b32.xlu0 %v4927_v51, %s13604_s5  ;;  %v4869_v56 = vsel %vm1694_vm0, %v13572_v28, %v4868_v22  ;;  %v4969_v28 = vsel %vm1694_vm0, %v13596_v0, %v4968_v17  ;;  %v4905_v36 = vsel %vm1694_vm0, %v11906_v32, %v4904_v49  ;;  %v12074_v0 = vperm.slane %v4845_v45, %v8291_v3 }
 0x913   :  { %v5040_v34 = vrot.slane %v12027_v19, 4  ;;  %v4877_v25 = vperm.slane %v4869_v56, %v8291_v3  ;;  %v12086_v57 = vperm.slane %v4957_v54, %v8291_v3  ;;  %v12089_v32 = vperm.slane %v4969_v28, %v8291_v3 }
 0x914   :  { %6250 = vrot.lane.b32.xlu1 %v4825_v26, %s13587_s2  ;;  %6266 = vrot.lane.b32.xlu2 %v4829_v52, %s13605_s6  ;;  %v6105_v58 = vpop.permute.xlu0 %6104  ;;  %v4944_v2 = vrot.slane %v13599_v10, 4  ;;  %v4913_v14 = vperm.slane %v4905_v36, %v8334_v9  ;;  %v5038_v10 = vrot.slane %v12036_v18, 4  ;;  %v5042_v21 = vrot.slane %v12081_v12, 4 }
 0x915   :  { %v5041_v46 = vsel %vm1694_vm0, %v12036_v18, %v5040_v34  ;;  %v4914_v51 = vrot.slane %v4877_v25, 4  ;;  %v4890_v22 = vrot.slane %v12074_v0, 4  ;;  %v5002_v41 = vrot.slane %v12086_v57, 4 }
 0x916   :  { %v6083_v59 = vpop.permute.xlu1 %6082  ;;  %v12045_v30 = vpop.permute.xlu2 %6136  ;;  %v4945_v44 = vsel %vm1694_vm0, %v13592_v43, %v4944_v2  ;;  %vm13611_vm7 = vcmask 441344   ;;  %v4933_v26 = vsel %vm1694_vm0, %v4913_v14, %v4932_v63  ;;  %v12116_v52 = vperm.slane %v4993_v29, %v8334_v9 }
 0x917   :  { %v6658_v6 = vsel %vm13606_vm9, %v6656_v50, %v6083_v59  ;;  %v4915_v35 = vsel %vm1694_vm0, %v4914_v51, %v4865_v24  ;;  %vm13612_vm8 = vcmask 457728   ;;  %v4953_v17 = vperm.slane %v4945_v44, %v8291_v3  ;;  %vm13616_vm9 = vmmov %vm13611_vm7  ;;  %v13624_v51 = vld [vmem:[#allocation20_spill] sm:$0xff]  ;;  %v13626_v44 = vld [vmem:[#allocation162_spill] sm:$0xff] }
 0x918   :  { %v6660_v4 = vsel %vm13607_vm10, %v6658_v6, %v6091_v11  ;;  %v5026_v11 = vrot.slane %v12043_v48, 4  ;;  %v5043_v18 = vsel %vm1694_vm0, %v5042_v21, %v12116_v52  ;;  %v5066_v59 = vrot.slane %v13615_v16, 4  ;;  %vm13618_vm10 = vmmov %vm13612_vm8 }
 0x919   :  { %v6662_v50 = vsel %vm13608_vm5, %v6660_v4, %v11908_v62  ;;  %v4929_v62 = vsel %vm1694_vm0, %v11974_v20, %v4928_v8  ;;  %v4833_v20 = vsel %vm1694_vm0, %v13583_v39, %v4832_v37  ;;  %v4916_v37 = vrot.slane %v4865_v24, 4  ;;  %v13622_v24 = vld [vmem:[#allocation33_spill] sm:$0xff] }
 0x91a   :  { %6282 = vrot.lane.b32.xlu0 %v5041_v46, %s13609_s7  ;;  %v5027_v42 = vsel %vm1694_vm0, %v5026_v11, %v12089_v32  ;;  %v4841_v45 = vperm.slane %v4833_v20, %v8291_v3  ;;  %v12131_v8 = vperm.slane %v4915_v35, %v8334_v9  ;;  %v5003_v53 = vsel %vm1694_vm0, %v5002_v41, %v4953_v17  ;;  %v13619_v11 = vld [vmem:[#allocation178_spill] sm:$0xff]  ;;  %v13627_v35 = vld [vmem:[#allocation215_spill] sm:$0xff] }
 0x91b   :  { %v12119_v43 = vperm.slane %v5027_v42, %v8334_v9  ;;  %v4917_v7 = vsel %vm1694_vm0, %v4877_v25, %v4916_v37  ;;  %v5009_v34 = vperm.slane %v5003_v53, %v8334_v9  ;;  %v4930_v47 = vrot.slane %v4913_v14, 4  ;;  %v13629_v37 = vld [vmem:[#allocation74_spill] sm:$0xff] }
 0x91c   :  { %6264 = vrot.lane.b32.xlu1 %v4717_v33, %s13605_s6  ;;  %6280 = vrot.lane.b32.xlu2 %v4929_v62, %s13609_s7  ;;  %v6115_v40 = vpop.permute.xlu0 %6114  ;;  %v4891_v49 = vsel %vm1694_vm0, %v4890_v22, %v4841_v45  ;;  %v4934_v4 = vrot.slane %v12131_v8, 4  ;;  %v4892_v60 = vrot.slane %v4841_v45, 4  ;;  %v5054_v54 = vrot.slane %v13617_v31, 4 }
 0x91d   :  { %v5046_v38 = vrot.slane %v12119_v43, 4  ;;  %v12148_v46 = vperm.slane %v4891_v49, %v8334_v9  ;;  %v5202_v36 = vrot.slane %v13619_v11, 4  ;;  %v12153_v25 = vperm.slane %v4917_v7, %v8334_v9 }
 0x91e   :  { %v6097_v15 = vpop.permute.xlu1 %6096  ;;  %v12097_v27 = vpop.permute.xlu2 %6146  ;;  %vm13620_vm5 = vcmask 474112   ;;  %v4893_v62 = vsel %vm1694_vm0, %v12074_v0, %v4892_v60  ;;  %v5067_v5 = vsel %vm1694_vm0, %v5066_v59, %v13622_v24  ;;  %v4931_v2 = vsel %vm1694_vm0, %v4930_v47, %v12069_v23  ;;  %v13625_v0 = vld [vmem:[#allocation205_spill] sm:$0xff] }
 0x91f   :  { %v6661_v39 = vsel %vm13610_vm6, %v12014_v55, %v6097_v15  ;;  %v5047_v33 = vsel %vm1694_vm0, %v5046_v38, %v5009_v34  ;;  %v4935_v14 = vsel %vm1694_vm0, %v4934_v4, %v12148_v46  ;;  %v5055_v15 = vsel %vm1694_vm0, %v5054_v54, %v13624_v51  ;;  %vm13630_vm6 = vmmov %vm13620_vm5  ;;  %v13635_v47 = vld [vmem:[#allocation189_spill] sm:$0xff] }
 0x920   :  { %v6663_v13 = vsel %vm13611_vm7, %v6661_v39, %v6105_v58  ;;  %v5039_v58 = vsel %vm1694_vm0, %v5038_v10, %v12027_v19  ;;  %v5203_v63 = vsel %vm1694_vm0, %v5202_v36, %v13625_v0  ;;  %v4938_v29 = vrot.slane %v12153_v25, 4  ;;  %v13637_v36 = vld [vmem:[#allocation211_spill] sm:$0xff] }
 0x921   :  { %v6665_v55 = vsel %vm13612_vm8, %v6663_v13, %v11958_v61  ;;  %v12175_v42 = vperm.slane %v5067_v5, %v8291_v3  ;;  %v5004_v23 = vrot.slane %v4953_v17, 4  ;;  %v5178_v39 = vrot.slane %v13626_v44, 4  ;;  %v13628_v13 = vld [vmem:[#allocation87_spill] sm:$0xff] }
 0x922   :  { %6296 = vrot.lane.b32.xlu0 %v4933_v26, %s13613_s8  ;;  %v4901_v22 = vperm.slane %v4893_v62, %v8334_v9  ;;  %v5190_v41 = vrot.slane %v13627_v35, 4  ;;  %v5078_v26 = vrot.slane %v13628_v13, 4  ;;  %v5028_v17 = vrot.slane %v12089_v32, 4 }
 0x923   :  { %v12190_v53 = vperm.slane %v5203_v63, %v8291_v3  ;;  %vm13631_vm7 = vcmask 490496   ;;  %v5044_v59 = vrot.slane %v12116_v52, 4  ;;  %vm13632_vm8 = vcmask 506880  }
 0x924   :  { %6274 = vrot.lane.b32.xlu1 %v5039_v58, %s13604_s5  ;;  %6290 = vrot.lane.b32.xlu2 %v5043_v18, %s13614_s12  ;;  %v6129_v61 = vpop.permute.xlu0 %6128  ;;  %v5005_v18 = vsel %vm1694_vm0, %v12086_v57, %v5004_v23  ;;  %v4939_v49 = vsel %vm1694_vm0, %v4938_v29, %v4901_v22  ;;  %v13633_v57 = vld [vmem:[#allocation213_spill] sm:$0xff]  ;;  %v5191_v52 = vsel %vm1694_vm0, %v5190_v41, %v13635_v47  ;;  %v4940_v63 = vrot.slane %v4901_v22, 4 }
 0x925   :  { %v5179_v32 = vsel %vm1694_vm0, %v5178_v39, %v13633_v57  ;;  %v12213_v4 = vperm.slane %v5005_v18, %v8334_v9  ;;  %v12216_v60 = vperm.slane %v5055_v15, %v8291_v3  ;;  %v5238_v54 = vrot.slane %v12190_v53, 4 }
 0x926   :  { %v6107_v19 = vpop.permute.xlu1 %6106  ;;  %v12139_v56 = vpop.permute.xlu2 %6160  ;;  %v5080_v22 = vrot.slane %v13637_v36, 4 }
 0x927   :  { %v6664_v6 = vsel %vm13616_vm9, %v6662_v50, %v6107_v19  ;;  %v5048_v19 = vrot.slane %v5009_v34, 4  ;;  %v5045_v34 = vsel %vm1694_vm0, %v12081_v12, %v5044_v59  ;;  %v5079_v12 = vsel %vm1694_vm0, %v5078_v26, %v13637_v36  ;;  %vm13639_vm9 = vmmov %vm13631_vm7 }
 0x928   :  { %v6666_v28 = vsel %vm13618_vm10, %v6664_v6, %v6115_v40  ;;  %v13623_v40 = vld [vmem:[#allocation107_spill] sm:$0xff]  ;;  %v5052_v39 = vrot.slane %v12213_v4, 4  ;;  %v5085_v41 = vperm.slane %v5079_v12, %v8291_v3  ;;  %vm13640_vm10 = vmmov %vm13632_vm8 }
 0x929   :  { %v6668_v50 = vsel %vm13620_vm5, %v6666_v28, %v12001_v1  ;;  %v5090_v20 = vrot.slane %v13623_v40, 4  ;;  %v5092_v28 = vrot.slane %v13629_v37, 4  ;;  %vm13642_vm5 = vcmask 523264  }
 0x92a   :  { %6306 = vrot.lane.b32.xlu0 %v5047_v33, %s13621_s15  ;;  %v13638_v33 = vld [vmem:[#allocation145_spill] sm:$0xff] }
 0x92b   :  { %v5091_v45 = vsel %vm1694_vm0, %v5090_v20, %v13629_v37  ;;  %v12228_v20 = vperm.slane %v5179_v32, %v8291_v3  ;;  %v5093_v29 = vsel %vm1694_vm0, %v13623_v40, %v5092_v28  ;;  %v4936_v37 = vrot.slane %v12148_v46, 4 }
 0x92c   :  { %6288 = vrot.lane.b32.xlu1 %v4931_v2, %s13614_s12  ;;  %6304 = vrot.lane.b32.xlu2 %v4935_v14, %s13621_s15  ;;  %v6139_v1 = vpop.permute.xlu0 %6138  ;;  %v12199_v6 = vperm.slane %v5091_v45, %v8291_v3  ;;  %v5197_v2 = vperm.slane %v5191_v52, %v8291_v3  ;;  %v5128_v52 = vrot.slane %v5085_v41, 4 }
 0x92d   :  { %v4937_v59 = vsel %vm1694_vm0, %v12131_v8, %v4936_v37  ;;  %v5081_v8 = vsel %vm1694_vm0, %v13628_v13, %v5080_v22  ;;  %v5204_v37 = vrot.slane %v13625_v0, 4 }
 0x92e   :  { %v6121_v10 = vpop.permute.xlu1 %6120  ;;  %v12178_v21 = vpop.permute.xlu2 %6170  ;;  %v5126_v5 = vrot.slane %v12199_v6, 4  ;;  %v5239_v45 = vsel %vm1694_vm0, %v5238_v54, %v5197_v2  ;;  %v5240_v32 = vrot.slane %v5197_v2, 4  ;;  %v5180_v2 = vrot.slane %v13633_v57, 4 }
 0x92f   :  { %v6667_v58 = vsel %vm13630_vm6, %v6665_v55, %v6121_v10  ;;  %v5102_v55 = vrot.slane %v12175_v42, 4  ;;  %vm13644_vm6 = vmmov %vm13642_vm5 }
 0x930   :  { %v6669_v38 = vsel %vm13631_vm7, %v6667_v58, %v6129_v61  ;;  %v5029_v61 = vsel %vm1694_vm0, %v12043_v48, %v5028_v17  ;;  %v13641_v58 = vld [vmem:[#allocation125_spill] sm:$0xff]  ;;  %v12250_v17 = vperm.slane %v5093_v29, %v8291_v3  ;;  %v5241_v12 = vsel %vm1694_vm0, %v12190_v53, %v5240_v32 }
 0x931   :  { %v6671_v7 = vsel %vm13632_vm8, %v6669_v38, %v12045_v30  ;;  %v5049_v30 = vsel %vm1694_vm0, %v12119_v43, %v5048_v19  ;;  %v5166_v43 = vrot.slane %v13638_v33, 4  ;;  %v5037_v62 = vperm.slane %v5029_v61, %v8334_v9 }
 0x932   :  { %6320 = vrot.lane.b32.xlu0 %v4939_v49, %s13634_s16  ;;  %v5103_v10 = vsel %vm1694_vm0, %v5102_v55, %v12216_v60  ;;  %v5214_v38 = vrot.slane %v12228_v20, 4  ;;  %v5068_v49 = vrot.slane %v13622_v24, 4  ;;  %v12264_v19 = vperm.slane %v5239_v45, %v8334_v9 }
 0x933   :  { %v5167_v40 = vsel %vm1694_vm0, %v5166_v43, %v13641_v58  ;;  %v12255_v46 = vperm.slane %v5103_v10, %v8334_v9  ;;  %v5050_v43 = vrot.slane %v5037_v62, 4  ;;  %vm13645_vm7 = vcmask 539648  }
 0x934   :  { %6298 = vrot.lane.b32.xlu1 %v5045_v34, %s13613_s8  ;;  %6314 = vrot.lane.b32.xlu2 %v5049_v30, %s13636_s17  ;;  %v6153_v48 = vpop.permute.xlu0 %6152  ;;  %v5173_v55 = vperm.slane %v5167_v40, %v8291_v3  ;;  %v5069_v24 = vsel %vm1694_vm0, %v13615_v16, %v5068_v49  ;;  %v5138_v34 = vrot.slane %v12250_v17, 4  ;;  %v5262_v13 = vrot.slane %v12264_v19, 4 }
 0x935   :  { %v5152_v28 = vrot.slane %v12255_v46, 4  ;;  %v12295_v53 = vperm.slane %v5241_v12, %v8334_v9  ;;  %vm13646_vm8 = vcmask 556032   ;;  %v12301_v57 = vperm.slane %v5069_v24, %v8291_v3  ;;  %v13654_v12 = vld [vmem:[#allocation150_spill] sm:$0xff] }
 0x936   :  { %v6131_v14 = vpop.permute.xlu1 %6130  ;;  %v12231_v15 = vpop.permute.xlu2 %6184  ;;  %v5215_v36 = vsel %vm1694_vm0, %v5214_v38, %v5173_v55  ;;  %v5051_v10 = vsel %vm1694_vm0, %v5050_v43, %v12213_v4  ;;  %v5181_v4 = vsel %vm1694_vm0, %v13626_v44, %v5180_v2  ;;  %v5205_v44 = vsel %vm1694_vm0, %v13619_v11, %v5204_v37  ;;  %v13655_v2 = vld [vmem:[#allocation142_spill] sm:$0xff] }
 0x937   :  { %v6670_v23 = vsel %vm13639_vm9, %v6668_v50, %v6131_v14  ;;  %v5053_v50 = vsel %vm1694_vm0, %v5037_v62, %v5052_v39  ;;  %v12287_v14 = vperm.slane %v5081_v8, %v8291_v3  ;;  %v5216_v62 = vrot.slane %v5173_v55, 4  ;;  %vm13649_vm9 = vmmov %vm13645_vm7  ;;  %v13652_v8 = vld [vmem:[#allocation187_spill] sm:$0xff] }
 0x938   :  { %v6672_v26 = vsel %vm13640_vm10, %v6670_v23, %v6139_v1  ;;  %v5127_v1 = vsel %vm1694_vm0, %v5126_v5, %v5085_v41  ;;  %v5129_v5 = vsel %vm1694_vm0, %v12199_v6, %v5128_v52  ;;  %v12292_v23 = vperm.slane %v5215_v36, %v8334_v9  ;;  %vm13650_vm10 = vmmov %vm13646_vm8 }
 0x939   :  { %v6674_v18 = vsel %vm13642_vm5, %v6672_v26, %v12097_v27  ;;  %v4941_v27 = vsel %vm1694_vm0, %v12153_v25, %v4940_v63  ;;  %v5133_v25 = vperm.slane %v5127_v1, %v8334_v9  ;;  %v5056_v6 = vrot.slane %v13624_v51, 4 }
 0x93a   :  { %6330 = vrot.lane.b32.xlu0 %v5053_v50, %s13643_s18  ;;  %v5104_v39 = vrot.slane %v12216_v60, 4  ;;  %v5263_v41 = vsel %vm1694_vm0, %v5262_v13, %v12292_v23  ;;  %v5217_v60 = vsel %vm1694_vm0, %v12228_v20, %v5216_v62  ;;  %v5266_v45 = vrot.slane %v12295_v53, 4 }
 0x93b   :  { %v5153_v29 = vsel %vm1694_vm0, %v5133_v25, %v5152_v28  ;;  %v5057_v51 = vsel %vm1694_vm0, %v13617_v31, %v5056_v6  ;;  %v5114_v31 = vrot.slane %v12301_v57, 4  ;;  %v5225_v20 = vperm.slane %v5217_v60, %v8334_v9 }
 0x93c   :  { %6312 = vrot.lane.b32.xlu1 %v4937_v59, %s13636_s17  ;;  %6328 = vrot.lane.b32.xlu2 %v4941_v27, %s13643_s18  ;;  %v6163_v61 = vpop.permute.xlu0 %6162  ;;  %v5105_v22 = vsel %vm1694_vm0, %v12175_v42, %v5104_v39  ;;  %v5150_v49 = vrot.slane %v5133_v25, 4  ;;  %v12338_v42 = vperm.slane %v5057_v51, %v8291_v3  ;;  %v12341_v59 = vperm.slane %v5181_v4, %v8291_v3  ;;  %v13659_v51 = vld [vmem:[#allocation218_spill] sm:$0xff] }
 0x93d   :  { %v12345_v55 = vperm.slane %v5105_v22, %v8334_v9  ;;  %v5168_v32 = vrot.slane %v13641_v58, 4  ;;  %v5192_v11 = vrot.slane %v13635_v47, 4  ;;  %vm13651_vm5 = vcmask 572416   ;;  %v13660_v4 = vld [vmem:[#allocation194_spill] sm:$0xff]  ;;  %v13662_v22 = vld [vmem:[#allocation181_spill] sm:$0xff] }
 0x93e   :  { %v6145_v30 = vpop.permute.xlu1 %6144  ;;  %v12275_v54 = vpop.permute.xlu2 %6194  ;;  %v5340_v52 = vrot.slane %v13652_v8, 4  ;;  %v12354_v25 = vperm.slane %v5205_v44, %v8291_v3  ;;  %v5151_v47 = vsel %vm1694_vm0, %v5150_v49, %v12255_v46  ;;  %v5346_v60 = vrot.slane %v13659_v51, 4  ;;  %v13664_v44 = vld [vmem:[#allocation109_spill] sm:$0xff]  ;;  %v13667_v8 = vld [vmem:[#allocation98_spill] sm:$0xff] }
 0x93f   :  { %v6673_v16 = vsel %vm13644_vm6, %v6671_v7, %v6145_v30  ;;  %v5169_v58 = vsel %vm1694_vm0, %v13638_v33, %v5168_v32  ;;  %v5226_v30 = vrot.slane %v12341_v59, 4  ;;  %v5193_v36 = vsel %vm1694_vm0, %v13627_v35, %v5192_v11  ;;  %vm13657_vm6 = vmmov %vm13651_vm5 }
 0x940   :  { %v6675_v63 = vsel %vm13645_vm7, %v6673_v16, %v6153_v48  ;;  %v12305_v48 = vperm.slane %v5129_v5, %v8334_v9  ;;  %v5352_v33 = vrot.slane %v13654_v12, 4  ;;  %v12374_v46 = vperm.slane %v5169_v58, %v8291_v3 }
 0x941   :  { %v6677_v7 = vsel %vm13646_vm8, %v6675_v63, %v12139_v56  ;;  %v5139_v56 = vsel %vm1694_vm0, %v5138_v34, %v12287_v14  ;;  %v5250_v43 = vrot.slane %v12354_v25, 4  ;;  %v5341_v63 = vsel %vm1694_vm0, %v5340_v52, %v13655_v2 }
 0x942   :  { %6344 = vrot.lane.b32.xlu0 %v5153_v29, %s13647_s19  ;;  %v5154_v38 = vrot.slane %v12305_v48, 4  ;;  %v12331_v1 = vperm.slane %v5139_v56, %v8334_v9  ;;  %v13656_v29 = vld [vmem:[#allocation159_spill] sm:$0xff]  ;;  %v12385_v39 = vperm.slane %v5193_v36, %v8291_v3  ;;  %vm13658_vm7 = vcmask 588800  }
 0x943   :  { %v5334_v6 = vrot.slane %v13656_v29, 4  ;;  %v5227_v56 = vsel %vm1694_vm0, %v5226_v30, %v12374_v46  ;;  %v5353_v37 = vsel %vm1694_vm0, %v5352_v33, %v13660_v4  ;;  %vm13661_vm8 = vcmask 605184   ;;  %v13670_v33 = vld [vmem:[#allocation75_spill] sm:$0xff] }
 0x944   :  { %6322 = vrot.lane.b32.xlu1 %v5051_v10, %s13634_s16  ;;  %6338 = vrot.lane.b32.xlu2 %v5263_v41, %s13648_s20  ;;  %v6177_v26 = vpop.permute.xlu0 %6176  ;;  %v5155_v34 = vsel %vm1694_vm0, %v5154_v38, %v12345_v55  ;;  %v5268_v41 = vrot.slane %v5225_v20, 4  ;;  %v5140_v49 = vrot.slane %v12287_v14, 4  ;;  %v5357_v32 = vperm.slane %v5353_v37, %v8291_v3  ;;  %v13669_v14 = vld [vmem:[#allocation176_spill] sm:$0xff] }
 0x945   :  { %v5296_v52 = vrot.slane %v13667_v8, 4  ;;  %v5156_v12 = vrot.slane %v12345_v55, 4 }
 0x946   :  { %v6155_v40 = vpop.permute.xlu1 %6154  ;;  %v12327_v50 = vpop.permute.xlu2 %6208 }
 0x947   :  { %v6676_v0 = vsel %vm13649_vm9, %v6674_v18, %v6155_v40  ;;  %v5267_v18 = vsel %vm1694_vm0, %v5266_v45, %v5225_v20  ;;  %v5264_v45 = vrot.slane %v12292_v23, 4  ;;  %v13663_v40 = vld [vmem:[#allocation52_spill] sm:$0xff]  ;;  %v5269_v23 = vsel %vm1694_vm0, %v12295_v53, %v5268_v41  ;;  %v13668_v53 = vld [vmem:[#allocation179_spill] sm:$0xff]  ;;  %vm13671_vm9 = vmmov %vm13658_vm7 }
 0x948   :  { %v6678_v27 = vsel %vm13650_vm10, %v6676_v0, %v6163_v61  ;;  %v5115_v61 = vsel %vm1694_vm0, %v5114_v31, %v12338_v42  ;;  %v5290_v31 = vrot.slane %v13662_v22, 4  ;;  %v5284_v38 = vrot.slane %v13663_v40, 4  ;;  %vm13672_vm10 = vmmov %vm13661_vm8 }
 0x949   :  { %v6680_v24 = vsel %vm13651_vm5, %v6678_v27, %v12178_v21  ;;  %v5158_v21 = vrot.slane %v12331_v1, 4  ;;  %v5121_v16 = vperm.slane %v5115_v61, %v8334_v9  ;;  %v5335_v0 = vsel %vm1694_vm0, %v5334_v6, %v13664_v44 }
 0x94a   :  { %6354 = vrot.lane.b32.xlu0 %v5267_v18, %s13653_s22  ;;  %v5265_v20 = vsel %vm1694_vm0, %v12264_v19, %v5264_v45  ;;  %v12412_v27 = vperm.slane %v5341_v63, %v8291_v3  ;;  %v13666_v18 = vld [vmem:[#allocation42_spill] sm:$0xff]  ;;  %v5347_v61 = vsel %vm1694_vm0, %v5346_v60, %v13668_v53  ;;  %vm13674_vm5 = vcmask 621568  }
 0x94b   :  { %v5159_v35 = vsel %vm1694_vm0, %v5158_v21, %v5121_v16  ;;  %v5278_v19 = vrot.slane %v13666_v18, 4  ;;  %v5339_v21 = vperm.slane %v5335_v0, %v8291_v3  ;;  %v5160_v63 = vrot.slane %v5121_v16, 4  ;;  %v13676_v60 = vld [vmem:[#allocation22_spill] sm:$0xff] }
 0x94c   :  { %6336 = vrot.lane.b32.xlu1 %v5151_v47, %s13648_s20  ;;  %6352 = vrot.lane.b32.xlu2 %v5155_v34, %s13653_s22  ;;  %v6187_v28 = vpop.permute.xlu0 %6186  ;;  %v5285_v47 = vsel %vm1694_vm0, %v5284_v38, %v13669_v14  ;;  %v5141_v34 = vsel %vm1694_vm0, %v12250_v17, %v5140_v49  ;;  %v5358_v29 = vrot.slane %v12412_v27, 4  ;;  %v5351_v6 = vperm.slane %v5347_v61, %v8291_v3 }
 0x94d   :  { %v5370_v17 = vrot.slane %v5357_v32, 4  ;;  %v12441_v41 = vperm.slane %v5141_v34, %v8334_v9  ;;  %v5116_v16 = vrot.slane %v12338_v42, 4  ;;  %v5279_v4 = vsel %vm1694_vm0, %v5278_v19, %v13676_v60 }
 0x94e   :  { %v6169_v13 = vpop.permute.xlu1 %6168  ;;  %v12377_v5 = vpop.permute.xlu2 %6218  ;;  %v5157_v37 = vsel %vm1694_vm0, %v12305_v48, %v5156_v12  ;;  %v5161_v45 = vsel %vm1694_vm0, %v12331_v1, %v5160_v63  ;;  %v5372_v42 = vrot.slane %v5351_v6, 4  ;;  %v5283_v1 = vperm.slane %v5279_v4, %v8291_v3 }
 0x94f   :  { %v6679_v62 = vsel %vm13657_vm6, %v6677_v7, %v6169_v13  ;;  %v5371_v40 = vsel %vm1694_vm0, %v5370_v17, %v5351_v6  ;;  %v5162_v38 = vrot.slane %v12441_v41, 4  ;;  %vm13677_vm6 = vmmov %vm13674_vm5 }
 0x950   :  { %v6681_v10 = vsel %vm13658_vm7, %v6679_v62, %v6177_v26  ;;  %v5251_v26 = vsel %vm1694_vm0, %v5250_v43, %v12385_v39  ;;  %v5291_v43 = vsel %vm1694_vm0, %v5290_v31, %v13670_v33  ;;  %v5117_v31 = vsel %vm1694_vm0, %v12301_v57, %v5116_v16 }
 0x951   :  { %v6683_v7 = vsel %vm13661_vm8, %v6681_v10, %v12231_v15  ;;  %v12408_v15 = vperm.slane %v5227_v56, %v8334_v9  ;;  %v5257_v58 = vperm.slane %v5251_v26, %v8334_v9  ;;  %v5289_v56 = vperm.slane %v5285_v47, %v8291_v3 }
 0x952   :  { %6368 = vrot.lane.b32.xlu0 %v5159_v35, %s7186_s10  ;;  %v13673_v35 = vld [vmem:[#allocation86_spill] sm:$0xff]  ;;  %v5295_v51 = vperm.slane %v5291_v43, %v8291_v3  ;;  %v12472_v57 = vperm.slane %v5117_v31, %v8334_v9  ;;  %v12475_v19 = vperm.slane %v5371_v40, %v8334_v9  ;;  %vm13678_vm7 = vcmask 637952  }
 0x953   :  { %v5272_v2 = vrot.slane %v12408_v15, 4  ;;  %v5297_v10 = vsel %vm1694_vm0, %v5296_v52, %v13673_v35  ;;  %v5302_v26 = vrot.slane %v5289_v56, 4  ;;  %v5270_v18 = vrot.slane %v5257_v58, 4 }
 0x954   :  { %6346 = vrot.lane.b32.xlu1 %v5265_v20, %s13647_s19  ;;  %6362 = vrot.lane.b32.xlu2 %v5269_v23, %s13665_s23  ;;  %v6201_v11 = vpop.permute.xlu0 %6200  ;;  %v5316_v44 = vrot.slane %v5295_v51, 4  ;;  %v5373_v23 = vsel %vm1694_vm0, %v5357_v32, %v5372_v42  ;;  %v5360_v52 = vrot.slane %v5339_v21, 4  ;;  %v5163_v61 = vsel %vm1694_vm0, %v5162_v38, %v12472_v57 }
 0x955   :  { %v5273_v55 = vsel %vm1694_vm0, %v5257_v58, %v5272_v2  ;;  %vm13679_vm8 = vcmask 654336   ;;  %v5303_v14 = vsel %vm1694_vm0, %v5302_v26, %v5283_v1  ;;  %v5252_v43 = vrot.slane %v12385_v39, 4 }
 0x956   :  { %v6179_v30 = vpop.permute.xlu1 %6178  ;;  %v12427_v36 = vpop.permute.xlu2 %6232 }
 0x957   :  { %v6682_v13 = vsel %vm13671_vm9, %v6680_v24, %v6179_v30  ;;  %vm13680_vm9 = vmmov %vm13678_vm7  ;;  %v5253_v35 = vsel %vm1694_vm0, %v12354_v25, %v5252_v43 }
 0x958   :  { %v6684_v62 = vsel %vm13672_vm10, %v6682_v13, %v6187_v28  ;;  %v5359_v28 = vsel %vm1694_vm0, %v5358_v29, %v5339_v21  ;;  %v5304_v21 = vrot.slane %v5283_v1, 4  ;;  %vm13681_vm10 = vmmov %vm13679_vm8 }
 0x959   :  { %v6686_v24 = vsel %vm13674_vm5, %v6684_v62, %v12275_v54  ;;  %v5301_v54 = vperm.slane %v5297_v10, %v8291_v3  ;;  %v12464_v48 = vperm.slane %v5359_v28, %v8334_v9  ;;  %v5228_v62 = vrot.slane %v12374_v46, 4 }
 0x95a   :  { %6378 = vrot.lane.b32.xlu0 %v5273_v55, %s13675_s24  ;;  %v5305_v63 = vsel %vm1694_vm0, %v5289_v56, %v5304_v21  ;;  %vm13682_vm5 = vcmask 670720  }
 0x95b   :  { %v5314_v8 = vrot.slane %v5301_v54, 4  ;;  %v5317_v53 = vsel %vm1694_vm0, %v5301_v54, %v5316_v44  ;;  %v5384_v32 = vrot.slane %v12464_v48, 4  ;;  %v5313_v16 = vperm.slane %v5305_v63, %v8334_v9 }
 0x95c   :  { %6360 = vrot.lane.b32.xlu1 %v5157_v37, %s13665_s23  ;;  %6376 = vrot.lane.b32.xlu2 %v5161_v45, %s13675_s24  ;;  %v6211_v22 = vpop.permute.xlu0 %6210  ;;  %v5325_v34 = vperm.slane %v5317_v53, %v8334_v9  ;;  %v5229_v56 = vsel %vm1694_vm0, %v12341_v59, %v5228_v62 }
 0x95d   :  { %v5385_v47 = vsel %vm1694_vm0, %v12475_v19, %v5384_v32  ;;  %v5315_v12 = vsel %vm1694_vm0, %v5314_v8, %v5295_v51  ;;  %v5261_v51 = vperm.slane %v5253_v35, %v8334_v9  ;;  %v5237_v60 = vperm.slane %v5229_v56, %v8334_v9 }
 0x95e   :  { %v6193_v0 = vpop.permute.xlu1 %6192  ;;  %v12467_v20 = vpop.permute.xlu2 %6242  ;;  %v12508_v17 = vperm.slane %v5315_v12, %v8334_v9  ;;  %v5332_v45 = vrot.slane %v5313_v16, 4 }
 0x95f   :  { %v6685_v49 = vsel %vm13677_vm6, %v6683_v7, %v6193_v0  ;;  %v12483_v7 = vperm.slane %v5373_v23, %v8334_v9  ;;  %vm13683_vm6 = vmmov %vm13682_vm5  ;;  %v5274_v59 = vrot.slane %v5261_v51, 4  ;;  %v5164_v23 = vrot.slane %v12472_v57, 4 }
 0x960   :  { %v6687_v3 = vsel %vm13678_vm7, %v6685_v49, %v6201_v11  ;;  %v5271_v11 = vsel %vm1694_vm0, %v5270_v18, %v12408_v15  ;;  %v12501_v15 = vperm.slane %v5303_v14, %v8334_v9  ;;  %vm13684_vm7 = vcmask 687104  }
 0x961   :  { %v6689_v58 = vsel %vm13679_vm8, %v6687_v3, %v12327_v50  ;;  %v5361_v50 = vsel %vm1694_vm0, %v12412_v27, %v5360_v52  ;;  %v5386_v33 = vrot.slane %v12483_v7, 4  ;;  %v5330_v27 = vrot.slane %v5325_v34, 4 }
 0x962   :  { %6384 = vrot.lane.b32.xlu0 %v5163_v61, %s7190_s11  ;;  %v5369_v6 = vperm.slane %v5361_v50, %v8334_v9  ;;  %v5328_v55 = vrot.slane %v12501_v15, 4  ;;  %v5333_v42 = vsel %vm1694_vm0, %v5325_v34, %v5332_v45  ;;  %vm13685_vm8 = vcmask 703488  }
 0x963   :  { %v5331_v25 = vsel %vm1694_vm0, %v5330_v27, %v5313_v16  ;;  %v5275_v40 = vsel %vm1694_vm0, %v5274_v59, %v5237_v60  ;;  %v5165_v49 = vsel %vm1694_vm0, %v12441_v41, %v5164_v23 }
 0x964   :  { %6370 = vrot.lane.b32.xlu1 %v5271_v11, %s7186_s10  ;;  %6402 = vrot.lane.b32.xlu2 %v5385_v47, %s7129_s0  ;;  %v6225_v30 = vpop.permute.xlu0 %6224  ;;  %v5387_v39 = vsel %vm1694_vm0, %v5386_v33, %v5369_v6  ;;  %v5329_v46 = vsel %vm1694_vm0, %v12508_v17, %v5328_v55  ;;  %v5388_v53 = vrot.slane %v5369_v6, 4 }
 0x966   :  { %v6203_v13 = vpop.permute.xlu1 %6202  ;;  %v6257_v2 = vpop.permute.xlu2 %6256  ;;  %v5389_v57 = vsel %vm1694_vm0, %v12483_v7, %v5388_v53 }
 0x967   :  { %v6688_v29 = vsel %vm13680_vm9, %v6686_v24, %v6203_v13  ;;  %vm13686_vm9 = vmmov %vm13684_vm7 }
 0x968   :  { %v6690_v10 = vsel %vm13681_vm10, %v6688_v29, %v6211_v22  ;;  %v5276_v22 = vrot.slane %v5237_v60, 4  ;;  %vm13687_vm10 = vmmov %vm13685_vm8 }
 0x969   :  { %v6692_v24 = vsel %vm13682_vm5, %v6690_v10, %v12377_v5  ;;  %vm13688_vm5 = vcmask 719872  }
 0x96a   :  { %6410 = vrot.lane.b32.xlu0 %v5387_v39, %s7131_s14  ;;  %v5277_v9 = vsel %vm1694_vm0, %v5261_v51, %v5276_v22 }
 0x96c   :  { %6400 = vrot.lane.b32.xlu1 %v5329_v46, %s7129_s0  ;;  %6408 = vrot.lane.b32.xlu2 %v5331_v25, %s7131_s14  ;;  %v6235_v28 = vpop.permute.xlu0 %6234  ;;  %s6755_s14 = sshll.u32 %s12608_s1, 4  ;;  %s6756_s14 = int_to_ptr.hbm [resolvable:$true] %s6755_s14 }
 0x96e   :  { %v6217_v5 = vpop.permute.xlu1 %6216  ;;  %v6267_v37 = vpop.permute.xlu2 %6266 }
 0x96f   :  { %v6691_v4 = vsel %vm13683_vm6, %v6689_v58, %v6217_v5  ;;  %vm13689_vm6 = vmmov %vm13688_vm5 }
 0x970   :  { %v6693_v54 = vsel %vm13684_vm7, %v6691_v4, %v6225_v30  ;;  %vm13690_vm7 = vcmask 736256  }
 0x971   :  { %v6695_v31 = vsel %vm13685_vm8, %v6693_v54, %v12427_v36  ;;  %vm13691_vm8 = vcmask 752640  }
 0x972   :  { %6416 = vrot.lane.b32.xlu0 %v5333_v42, %s7130_s13 }
 0x974   :  { %6386 = vrot.lane.b32.xlu1 %v5275_v40, %s7190_s11  ;;  %6394 = vrot.lane.b32.xlu2 %v5277_v9, %s7189_s9  ;;  %v6249_v38 = vpop.permute.xlu0 %6248  ;;  %s7192_s11 = smov 384  }
 0x976   :  { %v6227_v1 = vpop.permute.xlu1 %6226  ;;  %v6281_v0 = vpop.permute.xlu2 %6280 }
 0x977   :  { %v6694_v26 = vsel %vm13686_vm9, %v6692_v24, %v6227_v1  ;;  %vm13692_vm9 = vmmov %vm13690_vm7 }
 0x978   :  { %v6696_v44 = vsel %vm13687_vm10, %v6694_v26, %v6235_v28  ;;  %vm13693_vm10 = vmmov %vm13691_vm8 }
 0x979   :  { %v6698_v36 = vsel %vm13688_vm5, %v6696_v44, %v12467_v20  ;;  %vm13694_vm5 = vcmask 769024  }
 0x97c   :  { %6392 = vrot.lane.b32.xlu1 %v5165_v49, %s7189_s9  ;;  %v6259_v18 = vpop.permute.xlu0 %6258  ;;  %s7191_s9 = smov [#allocation5]  }
 0x97d   :  { %s6753_s10 = sshll.u32 %s7191_s9, 4  ;;  %s6754_s10 = int_to_ptr.vmem [resolvable:$true] %s6753_s10 }
 0x97e   :  { %v6241_v8 = vpop.permute.xlu1 %6240  ;;  %v6291_v32 = vpop.permute.xlu2 %6290 }
 0x97f   :  { %v6697_v52 = vsel %vm13689_vm6, %v6695_v31, %v6241_v8  ;;  %vm13695_vm6 = vmmov %vm13694_vm5 }
 0x980   :  { %v6699_v3 = vsel %vm13690_vm7, %v6697_v52, %v6249_v38  ;;  %vm13696_vm7 = vcmask 785408  }
 0x981   :  { %v6701_v61 = vsel %vm13691_vm8, %v6699_v3, %v6257_v2  ;;  %vm13697_vm8 = vcmask 801792   ;;  %vm13698_vm15 = vmmov %vm13696_vm7 }
 0x982   :  { %vm13699_vm13 = vmmov %vm13697_vm8 }
 0x984   :  { %6418 = vrot.lane.b32.xlu1 %v5389_v57, %s7130_s13  ;;  %v6273_v20 = vpop.permute.xlu0 %6272 }
 0x986   :  { %v6251_v58 = vpop.permute.xlu1 %6250  ;;  %v6305_v34 = vpop.permute.xlu2 %6304 }
 0x987   :  { %v6700_v41 = vsel %vm13692_vm9, %v6698_v36, %v6251_v58  ;;  %vm13700_vm9 = vcmask 818176  }
 0x988   :  { %v6702_v14 = vsel %vm13693_vm10, %v6700_v41, %v6259_v18  ;;  %vm13701_vm10 = vmmov %vm13700_vm9  ;;  %v5326_v18 = vrot.slane %v12508_v17, 4 }
 0x989   :  { %v6704_v11 = vsel %vm13694_vm5, %v6702_v14, %v6267_v37  ;;  %vm13702_vm5 = vcmask 834560  }
 0x98c   :  { %v6283_v47 = vpop.permute.xlu0 %6282 }
 0x98e   :  { %v6265_v21 = vpop.permute.xlu1 %6264  ;;  %v6315_v43 = vpop.permute.xlu2 %6314 }
 0x98f   :  { %v6703_v30 = vsel %vm13695_vm6, %v6701_v61, %v6265_v21  ;;  %vm13703_vm6 = vcmask 850944  }
 0x990   :  { %v6705_v50 = vsel %vm13696_vm7, %v6703_v30, %v6273_v20  ;;  %vm13704_vm7 = vmmov %vm13702_vm5 }
 0x991   :  { %v6707_v12 = vsel %vm13697_vm8, %v6705_v50, %v6281_v0  ;;  %vm13705_vm8 = vmmov %vm13703_vm6 }
 0x994   :  { %v6297_v7 = vpop.permute.xlu0 %6296 }
 0x996   :  { %v6275_v33 = vpop.permute.xlu1 %6274  ;;  %v6329_v35 = vpop.permute.xlu2 %6328 }
 0x997   :  { %v6706_v13 = vsel %vm13698_vm15, %v6704_v11, %v6275_v33  ;;  %vm13707_vm15 = vcmask 883712  }
 0x998   :  { %v6708_v2 = vsel %vm13699_vm13, %v6706_v13, %v6283_v47  ;;  %vm13706_vm13 = vcmask 867328  }
 0x999   :  { %v6710_v63 = vsel %vm13700_vm9, %v6708_v2, %v6291_v32  ;;  %vm13708_vm9 = vmmov %vm13706_vm13  ;;  %v5327_v32 = vsel %vm1694_vm0, %v5326_v18, %v12501_v15 }
 0x99c   :  { %v6307_v29 = vpop.permute.xlu0 %6306 }
 0x99e   :  { %v6289_v6 = vpop.permute.xlu1 %6288  ;;  %v6339_v56 = vpop.permute.xlu2 %6338 }
 0x99f   :  { %v6709_v27 = vsel %vm13701_vm10, %v6707_v12, %v6289_v6  ;;  %vm13709_vm10 = vmmov %vm13707_vm15 }
 0x9a0   :  { %v6711_v62 = vsel %vm13702_vm5, %v6709_v27, %v6297_v7  ;;  %vm13710_vm5 = vcmask 900096  }
 0x9a1   :  { %v6713_v10 = vsel %vm13703_vm6, %v6711_v62, %v6305_v34  ;;  %vm13711_vm6 = vcmask 916480  }
 0x9a4   :  { %v6321_v39 = vpop.permute.xlu0 %6320 }
 0x9a6   :  { %v6299_v55 = vpop.permute.xlu1 %6298  ;;  %v6353_v5 = vpop.permute.xlu2 %6352 }
 0x9a7   :  { %v6712_v16 = vsel %vm13704_vm7, %v6710_v63, %v6299_v55  ;;  %vm13712_vm7 = vcmask 932864   ;;  %v5382_v63 = vrot.slane %v12475_v19, 4 }
 0x9a8   :  { %v6714_v24 = vsel %vm13705_vm8, %v6712_v16, %v6307_v29  ;;  %vm13713_vm8 = vmmov %vm13710_vm5 }
 0x9a9   :  { %v6716_v38 = vsel %vm13708_vm9, %v6714_v24, %v6315_v43  ;;  %vm13716_vm9 = vmmov %vm13712_vm7  ;;  %v5383_v29 = vsel %vm1694_vm0, %v5382_v63, %v12464_v48 }
 0x9ac   :  { %v6331_v46 = vpop.permute.xlu0 %6330 }
 0x9ae   :  { %v6313_v25 = vpop.permute.xlu1 %6312  ;;  %v6363_v59 = vpop.permute.xlu2 %6362 }
 0x9af   :  { %v6715_v51 = vsel %vm13706_vm13, %v6713_v10, %v6313_v25  ;;  %vm13714_vm13 = vcmask 949248  }
 0x9b0   :  { %v6717_v28 = vsel %vm13707_vm15, %v6715_v51, %v6321_v39  ;;  %vm13715_vm15 = vmmov %vm13711_vm6 }
 0x9b1   :  { %v6719_v3 = vsel %vm13713_vm8, %v6717_v28, %v6329_v35 }
 0x9b4   :  { %v6345_v60 = vpop.permute.xlu0 %6344 }
 0x9b6   :  { %v6323_v4 = vpop.permute.xlu1 %6322  ;;  %v6377_v22 = vpop.permute.xlu2 %6376 }
 0x9b7   :  { %v6718_v26 = vsel %vm13709_vm10, %v6716_v38, %v6323_v4  ;;  %vm13717_vm10 = vmmov %vm13714_vm13 }
 0x9b8   :  { %v6720_v0 = vsel %vm13710_vm5, %v6718_v26, %v6331_v46  ;;  %vm13718_vm5 = vcmask 1014784  }
 0x9b9   :  { %v6722_v23 = vsel %vm13711_vm6, %v6720_v0, %v6339_v56  ;;  %vm13719_vm6 = vcmask 1031168  }
 0x9ba   :  { %vm13721_vm8 = vmmov %vm13719_vm6 }
 0x9bc   :  { %v6355_v37 = vpop.permute.xlu0 %6354 }
 0x9be   :  { %v6337_v45 = vpop.permute.xlu1 %6336  ;;  %v6403_v9 = vpop.permute.xlu2 %6402 }
 0x9bf   :  { %v6721_v61 = vsel %vm13715_vm15, %v6719_v3, %v6337_v45  ;;  %v6738_v6 = vsel %vm6422_vm1, %v5383_v29, %v6403_v9 }
 0x9c0   :  { %v6723_v58 = vsel %vm13716_vm9, %v6721_v61, %v6345_v60 }
 0x9c1   :  { %v6725_v47 = vsel %vm13717_vm10, %v6723_v58, %v6353_v5 }
 0x9c4   :  { %v6369_v54 = vpop.permute.xlu0 %6368 }
 0x9c6   :  { %v6347_v42 = vpop.permute.xlu1 %6346  ;;  %v6409_v8 = vpop.permute.xlu2 %6408 }
 0x9c7   :  { %v6724_v36 = vsel %vm13712_vm7, %v6722_v23, %v6347_v42  ;;  %vm13720_vm7 = vmmov %vm13718_vm5 }
 0x9c8   :  { %v6726_v53 = vsel %vm13714_vm13, %v6724_v36, %v6355_v37 }
 0x9c9   :  { %v6728_v20 = vsel %vm6596_vm12, %v6726_v53, %v6363_v59 }
 0x9cc   :  { %v6379_v31 = vpop.permute.xlu0 %6378 }
 0x9ce   :  { %v6361_v40 = vpop.permute.xlu1 %6360  ;;  %v6395_v30 = vpop.permute.xlu2 %6394 }
 0x9cf   :  { %v6727_v21 = vsel %vm6596_vm12, %v6725_v47, %v6361_v40 }
 0x9d0   :  { %v6729_v7 = vsel %vm6599_vm14, %v6727_v21, %v6369_v54 }
 0x9d1   :  { %v6731_v33 = vsel %vm6602_vm11, %v6729_v7, %v6377_v22 }
 0x9d4   :  { %v6385_v1 = vpop.permute.xlu0 %6384 }
 0x9d5   :  { %v6733_v43 = vsel %vm13720_vm7, %v6731_v33, %v6385_v1 }
 0x9d6   :  { %v6371_v44 = vpop.permute.xlu1 %6370 }
 0x9d7   :  { %v6730_v41 = vsel %vm6599_vm14, %v6728_v20, %v6371_v44 }
 0x9d8   :  { %v6732_v15 = vsel %vm6602_vm11, %v6730_v41, %v6379_v31 }
 0x9dc   :  { %v6411_v49 = vpop.permute.xlu0 %6410 }
 0x9dd   :  { %v6740_v27 = vsel %vm6425_vm2, %v6738_v6, %v6411_v49 }
 0x9de   :  { %v6401_v52 = vpop.permute.xlu1 %6400 }
 0x9df   :  { %v6737_v57 = vsel %vm6422_vm1, %v5327_v32, %v6401_v52 }
 0x9e0   :  { %v6739_v17 = vsel %vm6425_vm2, %v6737_v57, %v6409_v8 }
 0x9e4   :  { %v6417_v14 = vpop.permute.xlu0 %6416 }
 0x9e5   :  { %v6741_v11 = vsel %vm6428_vm3, %v6739_v17, %v6417_v14 }
 0x9e6   :  { %6745 = vst.msk [vmem:[#allocation5 + $0x10] sm:$0xff] %vm6431_vm4, %v6741_v11  ;;  %v6387_v34 = vpop.permute.xlu1 %6386 }
 0x9e7   :  { %v6734_v50 = vsel %vm13718_vm5, %v6732_v15, %v6387_v34 }
 0x9e8   :  { %v6736_v12 = vsel %vm13719_vm6, %v6734_v50, %v6395_v30 }
 0x9e9   :  { %6747 = vst [vmem:[#allocation5 + $0x20] sm:$0xff] %v6736_v12 }
 0x9ee   :  { %v6393_v13 = vpop.permute.xlu1 %6392 }
 0x9ef   :  { %v6735_v2 = vsel %vm13721_vm8, %v6733_v43, %v6393_v13 }
 0x9f0   :  { %6744 = vst [vmem:[#allocation5 + $0x8] sm:$0xff] %v6735_v2 }
 0x9f6   :  { %v6419_v62 = vpop.permute.xlu1 %6418 }
 0x9f7   :  { %v6742_v35 = vsel %vm6428_vm3, %v6740_v27, %v6419_v62 }
 0x9f8   :  { %6748 = vst.msk [vmem:[#allocation5 + $0x28] sm:$0xff] %vm6431_vm4, %v6742_v35 }
 0x9f9   :  { %6761 = dma.vmem_to_hbm [thread:$0]  %s6754_s10, 768, %s6756_s14, [#allocation4], %s7192_s11, %s7192_s11, %s7138_s21  }
 0x9fa   :  { %7122 = dma.done.wait [#allocation4], 768  }
 0x9fb   :  { %7123 = vsyncadd [#allocation4], 4294966528 }
 0x9fc   :  { %6766 = vsyncpa [#allocation3], 1 }
 0x9fd   :  { %6767 = vsyncpa [#allocation4], 1 }

// kernel: tpu_custom_call.1
= control target key start
LH: loop header
LB: loop body
LE: loop exit
PB: predicated region body
PF: predicated region fallthrough
CT: control target
= control target key end

     0   :  { %s1420_s0 = inlined_call_operand.hbm [shape: bf16[2,16,64], index: 0, kind: input, shape index: {}]   ;;  %s1421_s1 = inlined_call_operand.hbm [shape: f32[2,8,64], index: 1, kind: input, shape index: {}]   ;;  %s1422_s2 = inlined_call_operand.hbm [shape: bf16[16,16], index: 2, kind: input, shape index: {}]   ;;  %s1423_s3 = inlined_call_operand.hbm [shape: bf16[8,72], index: 3, kind: input, shape index: {}]   ;;  %s1424_s4 = inlined_call_operand.hbm [shape: bf16[8,24], index: 4, kind: input, shape index: {}]   ;;  %s1425_s5 = inlined_call_operand.vmem [shape: bf16[8,24], index: 5, kind: input, shape index: {}]   ;;  %s1426_s6 = inlined_call_operand.hbm [shape: f32[2,8,64], index: 6, kind: output, shape index: {}]  }
   0x1   :  { %1432 = sst [smem:[#allocation23_spill]] %s1422_s2 }
   0x2   :  { %1433 = sst [smem:[#allocation24_spill]] %s1423_s3 }
   0x3   :  { %1434 = sst [smem:[#allocation25_spill]] %s1424_s4 }
   0x4   :  { %11 = vsyncpa [#allocation5], 0 }
   0x5   :  { %13 = vsyncpa [#allocation5 + $0x1], 0 }
   0x6   :  { %14 = vsyncpa [#allocation8], 0 }
   0x7   :  { %16 = vsyncpa [#allocation8 + $0x1], 0 }
   0x8   :  { %17 = vsyncpa [#allocation11], 0 }
   0x9   :  { %18 = vsyncpa [#allocation6], 0 }
   0xa   :  { %20 = vsyncpa [#allocation6 + $0x1], 0  ;;  %s1189_s21 = smov 0   ;;  %s1191_s22 = smov 0  }
   0xb   :  { %s1193_s23 = smov 0   ;;  %s1195_s24 = smov 0  }
   0xc   :  { %s1197_s25 = smov 0   ;;  %s1199_s26 = smov 0  }
   0xd LB: > { %1435 = sst [smem:[#allocation19_spill]] %s1129_s23  ;;  %s1220_s27 = sadd.s32 4294967295, %s1141_s26   ;;  %s1141_s26 = sphi %s1199_s26, %s26_s26   ;;  %s1137_s25 = sphi %s1197_s25, %s1455_s25   ;;  %s1133_s24 = sphi %s1195_s24, %s1454_s24   ;;  %s1129_s23 = sphi %s1193_s23, %s1453_s23   ;;  %s1125_s22 = sphi %s1191_s22, %s1457_s22   ;;  %s1121_s21 = sphi %s1189_s21, %s1456_s21  }
   0xe   : > { %1436 = sst [smem:[#allocation20_spill]] %s1137_s25  ;;  %s754_s28 = sadd.s32 4294967294, %s1141_s26  }
   0xf   : > { %p60_p0 = scmp.ne.s32.totalorder %s1125_s22, %s1121_s21  ;;  %p61_p1 = scmp.eq.s32.totalorder %s1220_s27, 0 }
  0x10   : > { %p198_p2 = scmp.eq.s32.totalorder %s1220_s27, 1  ;;  %p204_p3 = scmp.eq.s32.totalorder %s754_s28, 1 }
  0x11   : > { %p1229_p4 = por %p61_p1, %p60_p0  ;;  %p755_p5 = scmp.ge.s32.totalorder %s1141_s26, 1 }
  0x12   : > { %p1234_p6 = por %p204_p3, %p60_p0  ;;  %p211_p7 = scmp.lt.s32.totalorder %s1141_s26, 3 }
  0x13   : > { %s1439_s2 = sld [smem:[#allocation23_spill]]  ;;  %s1143_s11 = smov [#allocation9]  }
  0x14   : > { %p1242_p8 = pnand %p755_p5, %p211_p7  ;;  %s224_s12 = sshll.u32 %s1143_s11, 4  ;;  %s225_s12 = int_to_ptr.vmem [resolvable:$true] %s224_s12 }
  0x15   : > { %p759_p11 = scmp.ge.s32.totalorder %s1141_s26, 2  ;;  %s1442_s3 = sld [smem:[#allocation24_spill]] }
  0x16   : > { %p809_p9 = pneg %p1242_p8  ;;  %s1427_s17 = smov 64  }
  0x17   : > { %s1428_s18 = smov 4   ;;  %s1146_s19 = smov [#allocation10]  }
  0x18   : > { %p1250_p10 = pnand %p809_p9, %p61_p1  ;;  %s239_s20 = sshll.u32 %s1146_s19, 4  ;;  %s240_s20 = int_to_ptr.vmem [resolvable:$true] %s239_s20 }
  0x19   : > { %s222_s9 = sshll.u32 %s1439_s2, 4  ;;  %s1443_s4 = sld [smem:[#allocation25_spill]]  ;;  %s223_s9 = int_to_ptr.hbm [resolvable:$true] %s222_s9 }
  0x1a   : > { %812 = dma.hbm_to_vmem [thread:$0]  (!%p1250_p10), %s223_s9, 128, %s225_s12, [#allocation8], %s1427_s17, %s1427_s17, %s1428_s18  }
  0x1b   : > { %s237_s16 = sshll.u32 %s1442_s3, 4  ;;  %s1147_s11 = smov [#allocation12]   ;;  %s238_s16 = int_to_ptr.hbm [resolvable:$true] %s237_s16 }
  0x1c   : > { %815 = dma.hbm_to_vmem [thread:$0]  (!%p1250_p10), %s238_s16, 64, %s240_s20, [#allocation11]  }
  0x1d   : > { %s251_s14 = sshll.u32 %s1147_s11, 4  ;;  %s38_s9 = sadd.s32 1, %s1137_s25  ;;  %s252_s14 = int_to_ptr.vmem [resolvable:$true] %s251_s14 }
  0x1e   : > { %p40_p12 = scmp.ge.s32.totalorder %s38_s9, 2  ;;  %s47_s12 = sadd.s32 1, %s1129_s23 }
  0x1f   : > { %s249_s8 = sshll.u32 %s1443_s4, 4  ;;  %p54_p13 = scmp.ne.s32.totalorder %s1129_s23, %s1125_s22  ;;  %s250_s8 = int_to_ptr.hbm [resolvable:$true] %s249_s8 }
  0x20   : > { %818 = dma.hbm_to_vmem [thread:$0]  (!%p1250_p10), %s250_s8, 64, %s252_s14, [#allocation11]  }
  0x21   : > { %p55_p0 = scmp.eq.s32.totalorder %s1141_s26, 0  ;;  %s1459_s9 = smov (%p40_p12, %s38_s9), 0 }
  0x22   : > { %1444 = sst [smem:[#allocation21_spill]] %s1459_s9  ;;  %p1283_p5 = por %p198_p2, %p54_p13 }
  0x23   : > { %p1277_p3 = por %p55_p0, %p54_p13  ;;  %s42_s13 = ssub.s32 %s1137_s25, %s1459_s9 }
  0x24   : > { %p833_p7 = scmp.lt.s32.totalorder %s1141_s26, 2  ;;  %p45_p9 = scmp.eq.s32.totalorder %s42_s13, 0 }
  0x25   : > { %s265_s19 = sand.u32 1, %s1129_s23   ;;  %s788_s7 = sshll.u32 %s1137_s25, 3 }
  0x26   : > { %s760_s20 = sshll.u32 %s265_s19, 3  ;;  %s275_s14 = scalar_lea.hbm %s1420_s0, %s788_s7 }
  0x27   : > { %s1292_s28 = scalar_select %p45_p9, %s1129_s23, %s47_s12  }
  0x28   : > { %s269_s17 = scalar_lea.vmem [#allocation4], %s760_s20  ;;  %s276_s2 = sshll.u32 %s275_s14, 4  ;;  %s277_s2 = int_to_ptr.hbm [resolvable:$true] %s276_s2 }
  0x29   : > { %1447 = sst [smem:[#allocation22_spill]] %s1292_s28  ;;  %s278_s18 = sshll.u32 %s269_s17, 4  ;;  %s279_s18 = int_to_ptr.vmem [resolvable:$true] %s278_s18 }
  0x2a   : > { %p820_p2 = pnand %p833_p7, %p1277_p3  ;;  %s288_s3 = sand.u32 1, %s1141_s26  }
  0x2b   : > { %s266_s4 = scalar_lea.sflag [#allocation5], %s265_s19  ;;  %s1448_s9 = smov 4  }
  0x2c   : > { %s1449_s13 = smov 64   ;;  %s297_s25 = scalar_lea.hbm %s1421_s1, %s788_s7 }
  0x2d   : > { %822 = dma.hbm_to_vmem [thread:$0]  (!%p820_p2), %s277_s2, 128, %s279_s18, %s266_s4, %s1449_s13, %s1449_s13, %s1448_s9  }
  0x2e   : > { %s292_s23 = scalar_lea.vmem [#allocation7], %s760_s20  ;;  %s299_s11 = sshll.u32 %s297_s25, 4  ;;  %s300_s11 = int_to_ptr.hbm [resolvable:$true] %s299_s11 }
  0x2f   : > { %s301_s8 = sshll.u32 %s292_s23, 4  ;;  %s289_s17 = scalar_lea.sflag [#allocation8], %s288_s3  ;;  %s302_s8 = int_to_ptr.vmem [resolvable:$true] %s301_s8 }
  0x30   : > { %825 = dma.hbm_to_vmem [thread:$0]  (!%p820_p2), %s300_s11, 128, %s302_s8, %s289_s17  }
  0x31   : > { %310 = sbr.rel (%p1242_p8) target bundleno = 1623 (0x657), region = 44  ;;  %s1310_s15 = sand.u32 (!%p1242_p8), 1, %s1125_s22  }
  0x32   : > { %s1313_s2 = sshll.u32 (!%p1242_p8), %s1310_s15, 3  ;;  %s313_s4 = scalar_lea.sflag (!%p1242_p8), [#allocation5], %s1310_s15 }
  0x33   : > { %s316_s18 = scalar_lea.vmem (!%p1242_p8), [#allocation4], %s1313_s2 }
  0x36   : > { %1100 = dma.done.wait (%p1229_p4), %s313_s4, 128  }
  0x37   : > { %1102 = vsyncadd (%p1229_p4), %s313_s4, 4294967168  ;;  %s322_s3 = sand.u32 1, %s1220_s27   ;;  %s326_s25 = scalar_lea.vmem [#allocation7], %s1313_s2 }
  0x38   : > { %s323_s23 = scalar_lea.sflag [#allocation8], %s322_s3 }
  0x39   : > { %1104 = dma.done.wait (%p1229_p4), %s323_s23, 128  }
  0x3a   : > { %1106 = vsyncadd (%p1229_p4), %s323_s23, 4294967168 }
  0x3b   : > { %1108 = dma.done.wait (%p61_p1), [#allocation8], 128  }
  0x3c   : > { %1110 = vsyncadd (%p61_p1), [#allocation8], 4294967168 }
  0x3d   : > { %1112 = dma.done.wait (%p61_p1), [#allocation11], 128  }
  0x3e   : > { %1114 = vsyncadd (%p61_p1), [#allocation11], 4294967168  ;;  %v398_v0 = vld [vmem:[%s316_s18] sm:$0xf]  ;;  %s1148_s10 = smov 4   ;;  %v386_v2 = vld [vmem:[%s326_s25] sm:$0xff]  ;;  %v377_v7 = vlaneseq }
  0x3f   : > { %402 = vrot.lane.b32.xlu0 %v398_v0, %s1148_s10  ;;  %v399_v1 = vld [vmem:[%s316_s18 + $0x4] sm:$0xf]  ;;  %388 = vrot.lane.b32.xlu1 %v386_v2, %s1148_s10  ;;  %vm408_vm0 = vcmask 551968   ;;  %vm426_vm1 = vcmask 130048   ;;  %vm391_vm2 = vcmask 556064   ;;  %s1149_s27 = smov 126  }
  0x40   : > { %v789_v6 = vld [vmem:[#allocation9] sm:$0xff]  ;;  %v378_v8 = vand.u32 127, %v377_v7  ;;  %s1150_s29 = smov 127   ;;  %vm456_vm6 = vcmask 1043456   ;;  %v454_v34 = vld [vmem:[#allocation10] sm:$0xf] }
  0x41   : > { %vm475_vm7 = vcmask 588800   ;;  %s1151_s9 = smov 1   ;;  %v508_v51 = vld [vmem:[#allocation12] sm:$0xf]  ;;  %vm525_vm8 = vcmask 195584   ;;  %s1152_s19 = smov 2  }
  0x42   : > { %v382_v9 = vadd.s32 4294967292, %v378_v8  ;;  %s1153_s20 = smov 125   ;;  %s785_s14 = sshll.u32 %s1133_s24, 3  ;;  %vm601_vm9 = vcmask 523264  }
  0x43   : > { %s615_s8 = scalar_lea.hbm %s1426_s6, %s785_s14  ;;  %s375_s11 = scalar_lea.vmem [#allocation13], %s1313_s2 }
  0x44   : > { %vm383_vm3 = vcmp.ge.s32.totalorder %v382_v9, 0  ;;  %vm384_vm4 = vcmp.lt.s32.totalorder %v382_v9, 64  ;;  %s617_s17 = sshll.u32 %s375_s11, 4  ;;  %s619_s4 = sshll.u32 %s615_s8, 4  ;;  %s618_s17 = int_to_ptr.vmem [resolvable:$true] %s617_s17  ;;  %s620_s4 = int_to_ptr.hbm [resolvable:$true] %s619_s4 }
  0x45   : > { %vm1335_vm5 = vmand %vm383_vm3, %vm384_vm4  ;;  %s604_s18 = scalar_lea.sflag [#allocation6], %s1310_s15  ;;  %s1061_s3 = sshra.s32 %s620_s4, 4  ;;  %s1062_s3 = int_to_ptr.hbm [resolvable:$true] %s1061_s3 }
  0x46   : > { %s1063_s23 = scalar_lea.hbm %s1062_s3, 8  ;;  %p1068_p10 = scmp.lt.s32.totalorder %s1062_s3, %s1426_s6 }
  0x47   : > { %404 = vrot.lane.b32.xlu0 %v399_v1, %s1148_s10  ;;  %p1064_p1 = scmp.ne.s32.totalorder %s1062_s3, %s1063_s23  ;;  %s1067_s10 = scalar_lea.hbm %s1426_s6, 16 }
  0x48   : > { %p1069_p12 = scmp.lt.s32.totalorder %s1067_s10, %s1063_s23 }
  0x49   : > { %p1065_p4 = pnand %p1064_p1, %p1283_p5 }
  0x4a   : > { %p1070_p13 = por %p1069_p12, %p1068_p10 }
  0x4b   : > { %p1066_p8 = pneg %p1065_p4 }
  0x4d   : > { %p1071_p0 = pnand %p1070_p13, %p1066_p8 }
  0xb1   : > { %v403_v3 = vpop.permute.xlu0 %402  ;;  %v389_v10 = vpop.permute.xlu1 %388 }
  0xb2   : > { %409 = vst.msk [vmem:[#allocation2] sm:$0xf] %vm408_vm0, %v403_v3 }
  0xb3   : > { %392 = vst.msk [vmem:[#allocation3] sm:$0xff] %vm391_vm2, %v389_v10 }
  0xb9   : > { %v405_v4 = vpop.permute.xlu0 %404 }
  0xba   : > { %410 = vst.msk [vmem:[#allocation2 + $0x4] sm:$0xf] %vm408_vm0, %v405_v4  ;;  %v393_v12 = vld [vmem:[#allocation3] sm:$0xff]  ;;  %v556_v4 = vld [vmem:[%s1425_s5] sm:$0xf] }
  0xbb   : > { %v396_v13 = vsel %vm1335_vm5, %v393_v12, 0.0 }
  0xbc   : > { %v397_v14 = vpack.c.bf16 %v396_v13, %v396_v13 }
  0xbe   : > { %467 = vrot.lane.b32.xlu1 %v397_v14, %s1149_s27  ;;  %v1342_v15 = vunpack.c.l.bf16 %v397_v14  ;;  %v458_v26 = vrot.slane %v397_v14, 4 }
  0xc1   : > { %v790_v5 = vld [vmem:[#allocation2] sm:$0xff] }
  0xc2   : > { %437 = vmatpush.bf16.msra.mxu0 %v790_v5 }
  0xc5   : > { %780 = vmatmul.msk.bf16.vlgmr.msra.gmra.mxu0 %vm426_vm1, %v789_v6 }
  0xc6   : > { %498 = vrot.lane.b32.xlu1 %v1342_v15, %s1150_s29 }
 0x130   : > { %v468_v28 = vpop.permute.xlu1 %467 }
 0x131   : > { %v480_v29 = vsel %vm456_vm6, %v468_v28, 0 }
 0x132   : > { %485 = vmatpush.bf16.msra.mxu1 %v480_v29 }
 0x138   : > { %v499_v37 = vpop.permute.xlu1 %498 }
 0x142   : > { %v439_v16 = vpop.f32.mrf.mxu0 }
 0x143   : > { %v444_v17 = vsel %vm1335_vm5, %v439_v16, 0.0 }
 0x144   : > { %v446_v18 = vpack.c.bf16 %v444_v17, %v444_v17 }
 0x146   : > { %v450_v22 = vunpack.c.l.b16 %v446_v18 }
 0x14a   : > { %v441_v19 = vpop.f32.mrf.mxu0 }
 0x14b   : > { %v445_v20 = vsel %vm1335_vm5, %v441_v19, 0.0 }
 0x14c   : > { %v447_v21 = vpack.c.bf16 %v445_v20, %v445_v20 }
 0x14e   : > { %v451_v23 = vunpack.c.l.b16 %v447_v21 }
 0x150   : > { %v452_v24 = vpack.c.b16 %v451_v23, %v450_v22 }
 0x152   : > { %465 = vrot.lane.b32.xlu2 %v452_v24, %s1149_s27  ;;  %v457_v25 = vrot.slane %v452_v24, 4 }
 0x154   : > { %460 = vrot.lane.b32.xlu0 %v457_v25, %s1150_s29  ;;  %v459_v27 = vsel %vm456_vm6, %v457_v25, %v458_v26 }
 0x15a   : > { %462 = vrot.lane.b32.xlu2 %v459_v27, %s1150_s29 }
 0x1ac   : > { %v466_v30 = vpop.permute.xlu2 %465 }
 0x1ad   : > { %486 = vmatpush.bf16.msra.mxu1 %v466_v30 }
 0x1b4   : > { %v463_v31 = vpop.permute.xlu2 %462 }
 0x1b5   : > { %487 = vmatpush.bf16.msra.mxu1 %v463_v31 }
 0x1c6   : > { %v461_v32 = vpop.permute.xlu0 %460 }
 0x1c7   : > { %v473_v33 = vsel %vm456_vm6, %v397_v14, %v461_v32 }
 0x1c8   : > { %488 = vmatpush.bf16.msra.mxu1 %v473_v33 }
 0x1cc   : > { %489 = vmatpush.bf16.msra.mxu1 %v452_v24 }
 0x1cf   : > { %781 = vmatmul.msk.bf16.vlgmr.msra.gmra.mxu1 %vm475_vm7, %v454_v34 }
 0x24c   : > { %v491_v35 = vpop.f32.mrf.mxu1 }
 0x24d   : > { %v495_v36 = vmax.f32 %v491_v35, 0.0 }
 0x24f   : > { %v501_v38 = vadd.f32 %v499_v37, %v495_v36 }
 0x251   : > { %503 = vrot.lane.b32.xlu2 %v501_v38, %s1151_s9 }
 0x254   : > { %v493_v39 = vpop.f32.mrf.mxu1 }
 0x2ab   : > { %v504_v40 = vpop.permute.xlu2 %503 }
 0x2ac   : > { %v506_v41 = vsel %vm1335_vm5, %v504_v40, 0.0 }
 0x2ad   : > { %v507_v42 = vpack.c.bf16 %v506_v41, %v506_v41 }
 0x2af   : > { %v510_v43 = vunpack.c.l.b16 %v507_v42 }
 0x2b1   : > { %v511_v44 = vpack.c.b16 %v510_v43, %v510_v43 }
 0x2b3   : > { %512 = vrot.lane.b32.xlu1 %v511_v44, %s1150_s29  ;;  %514 = vrot.lane.b32.xlu0 %v511_v44, %s1149_s27 }
 0x2bb   : > { %546 = vrot.lane.b32.xlu1 %v1342_v15, %s1149_s27 }
 0x325   : > { %v513_v45 = vpop.permute.xlu1 %512  ;;  %v515_v46 = vpop.permute.xlu0 %514 }
 0x326   : > { %522 = vrot.lane.b32.xlu2 %v515_v46, %s1150_s29  ;;  %v518_v47 = vsel %vm456_vm6, %v507_v42, %v513_v45 }
 0x327   : > { %520 = vrot.lane.b32.xlu0 %v518_v47, %s1150_s29 }
 0x32d   : > { %v547_v54 = vpop.permute.xlu1 %546 }
 0x380   : > { %v523_v48 = vpop.permute.xlu2 %522 }
 0x381   : > { %v530_v49 = vsel %vm456_vm6, %v523_v48, 0 }
 0x382   : > { %538 = vmatpush.bf16.msra.mxu2 %v530_v49 }
 0x399   : > { %v521_v50 = vpop.permute.xlu0 %520 }
 0x39a   : > { %539 = vmatpush.bf16.msra.mxu2 %v521_v50 }
 0x39d   : > { %782 = vmatmul.msk.bf16.vlgmr.msra.gmra.mxu2 %vm525_vm8, %v508_v51 }
 0x420   : > { %v541_v52 = vpop.f32.mrf.mxu2 }
 0x421   : > { %v545_v53 = vmax.f32 %v541_v52, 0.0 }
 0x423   : > { %v549_v55 = vadd.f32 %v547_v54, %v545_v53 }
 0x425   : > { %551 = vrot.lane.b32.xlu2 %v549_v55, %s1152_s19 }
 0x428   : > { %v543_v56 = vpop.f32.mrf.mxu2 }
 0x47f   : > { %v552_v57 = vpop.permute.xlu2 %551 }
 0x480   : > { %v554_v58 = vsel %vm1335_vm5, %v552_v57, 0.0 }
 0x481   : > { %v555_v59 = vpack.c.bf16 %v554_v58, %v554_v58 }
 0x483   : > { %v558_v60 = vunpack.c.l.b16 %v555_v59 }
 0x485   : > { %v559_v61 = vpack.c.b16 %v558_v60, %v558_v60 }
 0x487   : > { %560 = vrot.lane.b32.xlu1 %v559_v61, %s1150_s29  ;;  %562 = vrot.lane.b32.xlu0 %v559_v61, %s1149_s27 }
 0x48f   : > { %593 = vrot.lane.b32.xlu1 %v1342_v15, %s1153_s20 }
 0x4f9   : > { %v561_v62 = vpop.permute.xlu1 %560  ;;  %v563_v63 = vpop.permute.xlu0 %562 }
 0x4fa   : > { %570 = vrot.lane.b32.xlu2 %v563_v63, %s1149_s27  ;;  %v566_v0 = vsel %vm456_vm6, %v555_v59, %v561_v62 }
 0x4fb   : > { %568 = vrot.lane.b32.xlu0 %v566_v0, %s1149_s27 }
 0x501   : > { %v594_v7 = vpop.permute.xlu1 %593 }
 0x554   : > { %v571_v1 = vpop.permute.xlu2 %570 }
 0x555   : > { %v577_v2 = vsel %vm456_vm6, %v571_v1, 0 }
 0x556   : > { %585 = vmatpush.bf16.msra.mxu3 %v577_v2 }
 0x56d   : > { %v569_v3 = vpop.permute.xlu0 %568 }
 0x56e   : > { %586 = vmatpush.bf16.msra.mxu3 %v569_v3 }
 0x571   : > { %783 = vmatmul.msk.bf16.vlgmr.msra.gmra.mxu3 %vm525_vm8, %v556_v4 }
 0x5f4   : > { %v588_v5 = vpop.f32.mrf.mxu3 }
 0x5f5   : > { %v592_v6 = vmax.f32 %v588_v5, 0.0 }
 0x5f7   : > { %v596_v8 = vadd.f32 %v594_v7, %v592_v6 }
 0x5f9   : > { %598 = vrot.lane.b32.xlu2 %v596_v8, %s1150_s29 }
 0x5fc   : > { %v590_v9 = vpop.f32.mrf.mxu3 }
 0x653   : > { %v599_v10 = vpop.permute.xlu2 %598 }
 0x654   : > { %602 = vst.msk [vmem:[%s375_s11] sm:$0xff] %vm601_vm9, %v599_v10 }
 0x655   : > { %1074 = shalt.err (!%p1071_p0)
}
 0x656   : > { %807 = dma.vmem_to_hbm [thread:$0]  (%p1283_p5), %s618_s17, 128, %s620_s4, %s604_s18  }
 0x657 PF: > { %s631_s15 = sand.u32 1, %s1121_s21   ;;  %p827_p3 = pnand %p759_p11, %p1234_p6 }
 0x658   : > { %s632_s29 = scalar_lea.sflag [#allocation6], %s631_s15 }
 0x659   : > { %p828_p7 = pneg %p827_p3 }
 0x65b   : > { %1116 = dma.done.wait (%p828_p7), %s632_s29, 128  }
 0x65c   : > { %1118 = vsyncadd (%p828_p7), %s632_s29, 4294967168  ;;  %s26_s26 = sadd.s32 1, %s1141_s26   ;;  %s1452_s9 = sld [smem:[#allocation19_spill]] }
 0x65d   : > { %p23_p9 = scmp.ge.s32.totalorder %s26_s26, 4   ;;  %s1453_s23 = sld [smem:[#allocation22_spill]] }
 0x65e   : > { %s1454_s24 = sld [smem:[#allocation20_spill]]  ;;  %s1456_s21 = smov %s1125_s22 }
 0x65f   : > { %s1455_s25 = sld [smem:[#allocation21_spill]]  ;;  %25 = sbr.rel (!%p23_p9) target bundleno = 13 (0xd), region = 114 }
 0x662   : > { %s1457_s22 = smov %s1452_s9 }
 0x664   :  { %638 = vsyncpa [#allocation5], 1 }
 0x665   :  { %640 = vsyncpa [#allocation5 + $0x1], 1 }
 0x666   :  { %641 = vsyncpa [#allocation8], 1 }
 0x667   :  { %643 = vsyncpa [#allocation8 + $0x1], 1 }
 0x668   :  { %644 = vsyncpa [#allocation11], 1 }
 0x669   :  { %645 = vsyncpa [#allocation6], 1 }
 0x66a   :  { %647 = vsyncpa [#allocation6 + $0x1], 1 }

</bundles_post_ra>
